<compile_context>
chip_gen: v7x
topology: tpu7x:2x2x1
jax: 0.10.0
libtpu: 0.0.40
codegen_flags: <defaults>
</compile_context>

<pallas_src>
import math

import jax
import jax.numpy as jnp
import numpy as np
from jax import lax
from jax.experimental import pallas as pl
from jax.experimental.pallas import tpu as pltpu


_VMEM_LIMIT_BYTES = 48 * 1024 * 1024    # conservative: fits v5e/v6e/v7x
_BLOCK_BUDGET_BYTES = 20 * 1024 * 1024  # per-grid-step block budget for batch tiling


# ----------------------------------------------------------------------------
# Pallas kernels
# ----------------------------------------------------------------------------

def skip_attn_kernel(xp_ref, w_ref, scale_ref, bias_ref, pw_ref, pb_ref, o_ref):
    """Fused skip_attention for a block of NB batch elements.

    xp_ref : (NB, H+2, W+2, Cin) zero-padded NHWC input, bf16
    w_ref  : (9*Cin, Cout)       conv1 weights (tap-major HWIO flatten), bf16
    scale  : (1, Cout)           fused BN scale (gamma / sqrt(var+eps)), f32
    bias   : (1, Cout)           fused BN bias  (beta - mean*scale),     f32
    pw_ref : (Cout, Cout)        pconv weight ([in, out] layout), bf16
    pb_ref : (1, Cout)           pconv bias, f32
    o_ref  : (NB, H*W, Cout)     fea * hard_sigmoid(pconv(avgpool(fea))), f32
    """
    xp = xp_ref[...]
    nb, hp2, wp2, cin = xp.shape
    h, w = hp2 - 2, wp2 - 2
    cout = o_ref.shape[-1]

    # In-VMEM im2col: 9 shifted views concatenated along the channel (lane) axis.
    cols = [xp[:, kh:kh + h, kw:kw + w, :] for kh in range(3) for kw in range(3)]
    patches = jnp.concatenate(cols, axis=-1).reshape(nb * h * w, 9 * cin)

    # conv1 (MXU, bf16 inputs / f32 accumulation) + fused BN + ReLU.
    fea = jnp.dot(patches, w_ref[...], preferred_element_type=jnp.float32)
    fea = jnp.maximum(fea * scale_ref[...] + bias_ref[...], 0.0)
    fea = fea.reshape(nb, h * w, cout)

    # Global average pool + 1x1 pconv + hard-sigmoid gate, per batch element.
    pooled = jnp.sum(fea, axis=1) * (1.0 / (h * w))                    # (NB, Cout)
    gate = jnp.dot(pooled.astype(jnp.bfloat16), pw_ref[...],
                   preferred_element_type=jnp.float32) + pb_ref[...]
    gate = jnp.clip(gate + 3.0, 0.0, 6.0) * (1.0 / 6.0)

    o_ref[...] = (fea * gate[:, None, :]).astype(o_ref.dtype)


def _pool_rows_max(x, f):
    """(M, H, W) -> (M, H//f, W): max over groups of f rows (sublane reduce)."""
    m, h, w = x.shape
    return jnp.max(x.reshape(m, h // f, f, w), axis=2)


def _pool2d_max(x, f):
    """(M, H, W) -> (M, H//f, W//f) non-overlapping max pool."""
    x = _pool_rows_max(x, f)
    x = jnp.transpose(x, (0, 2, 1))
    x = _pool_rows_max(x, f)
    return jnp.transpose(x, (0, 2, 1))


def _emit_stage(o_ref, raw):
    """raw: (4, hs, ws) raw max-pools of [F, 1-F, B, 1-B].

    Output channel order matches PyTorch: [F_small, F_large, B_small, B_large],
    written lane-dense as (4, hs*ws).
    """
    hs, ws = raw.shape[1], raw.shape[2]
    out = jnp.stack([1.0 - raw[1], raw[0], 1.0 - raw[3], raw[2]], axis=0)
    o_ref[0] = out.reshape(4, hs * ws)


def trimap_kernel(t_ref, o2_ref, o3_ref, o4_ref, o5_ref):
    """Fused trimap path for one batch element: masks + maxpool4 + 3x maxpool2."""
    t = t_ref[0]                                        # (H, W)
    f_mask = jnp.maximum(t - 0.75, 0.0) * 4.0
    b_mask = jnp.maximum(0.25 - t, 0.0) * 4.0
    # Raw max-pools of [F, 1-F, B, 1-B]; the "small" maps are flipped on emit,
    # exactly as in the PyTorch code (flip applied after the pooling cascade).
    pooled = [_pool2d_max(m[None], 4)[0]
              for m in (f_mask, 1.0 - f_mask, b_mask, 1.0 - b_mask)]
    raw = jnp.stack(pooled, axis=0)                     # (4, H/4, W/4)
    _emit_stage(o2_ref, raw)
    raw = _pool2d_max(raw, 2)
    _emit_stage(o3_ref, raw)
    raw = _pool2d_max(raw, 2)
    _emit_stage(o4_ref, raw)
    raw = _pool2d_max(raw, 2)
    _emit_stage(o5_ref, raw)


# ----------------------------------------------------------------------------
# Wrappers (layout glue + pallas_call setup)
# ----------------------------------------------------------------------------

def _pick_batch_tile(n, per_batch_bytes, budget_bytes):
    nb = int(max(1, min(n, budget_bytes // max(per_batch_bytes, 1))))
    while n % nb:
        nb -= 1
    return nb


def skip_attention_apply(x_nchw, params):
    n, cin, h, w = x_nchw.shape
    cout = params["w"].shape[-1]
    x = jnp.transpose(x_nchw, (0, 2, 3, 1)).astype(jnp.bfloat16)       # NHWC bf16
    xp = jnp.pad(x, ((0, 0), (1, 1), (1, 1), (0, 0)))                  # (N, H+2, W+2, Cin)

    wmat = params["w"].reshape(9 * cin, cout).astype(jnp.bfloat16)     # tap-major HWIO
    scale = params["bn_scale"].reshape(1, cout)
    bias = params["bn_bias"].reshape(1, cout)
    pw = params["pw"].astype(jnp.bfloat16)
    pb = params["pb"].reshape(1, cout)

    hw = h * w
    per_batch = (2 * (h + 2) * (w + 2) * cin * 2     # padded input (double-buffered)
                 + hw * 9 * cin * 2                  # in-VMEM im2col slab
                 + 3 * hw * cout * 4)                # fea + double-buffered output
    nb = _pick_batch_tile(n, per_batch, _BLOCK_BUDGET_BYTES)

    out = pl.pallas_call(
        skip_attn_kernel,
        out_shape=jax.ShapeDtypeStruct((n, hw, cout), jnp.float32),
        grid=(n // nb,),
        in_specs=[
            pl.BlockSpec((nb, h + 2, w + 2, cin), lambda i: (i, 0, 0, 0)),
            pl.BlockSpec((9 * cin, cout), lambda i: (0, 0)),
            pl.BlockSpec((1, cout), lambda i: (0, 0)),
            pl.BlockSpec((1, cout), lambda i: (0, 0)),
            pl.BlockSpec((cout, cout), lambda i: (0, 0)),
            pl.BlockSpec((1, cout), lambda i: (0, 0)),
        ],
        out_specs=pl.BlockSpec((nb, hw, cout), lambda i: (i, 0, 0)),
        compiler_params=pltpu.CompilerParams(
            dimension_semantics=("parallel",),
            vmem_limit_bytes=_VMEM_LIMIT_BYTES),
    )(xp, wmat, scale, bias, pw, pb)

    # Back to NCHW to match the PyTorch module's output layout.
    # (This transpose could be elided if the consumer accepted NHWC.)
    return out.reshape(n, h, w, cout).transpose(0, 3, 1, 2)


def trimap_process_apply(image):
    n, _, h, w = image.shape
    assert h % 32 == 0 and w % 32 == 0, "trimap path needs H, W divisible by 32"
    trimap = image[:, 3, :, :]                                          # (N, H, W)
    sizes = [(h // f) * (w // f) for f in (4, 8, 16, 32)]
    outs = pl.pallas_call(
        trimap_kernel,
        out_shape=tuple(jax.ShapeDtypeStruct((n, 4, s), jnp.float32) for s in sizes),
        grid=(n,),
        in_specs=[pl.BlockSpec((1, h, w), lambda i: (i, 0, 0))],
        out_specs=tuple(pl.BlockSpec((1, 4, s), lambda i: (i, 0, 0)) for s in sizes),
        compiler_params=pltpu.CompilerParams(
            dimension_semantics=("parallel",),
            vmem_limit_bytes=_VMEM_LIMIT_BYTES),
    )(trimap)
    out = {}
    for stage, f, o in zip(("stage2", "stage3", "stage4", "stage5"),
                           (4, 8, 16, 32), outs):
        out[stage] = o.reshape(n, 4, h // f, w // f)
    return out


def skip_module_apply(image, in_features, params):
    trimaps = trimap_process_apply(image)
    out = {}
    out["stage0"] = image[:, :3, :, :]
    out["stage1"] = in_features["stage1"]
    for s in ("stage2", "stage3", "stage4", "stage5"):
        x = jnp.concatenate([in_features[s], trimaps[s]], axis=1)
        out[s] = skip_attention_apply(x, params[s])
    return out


# ----------------------------------------------------------------------------
# Deterministic parameter init (mirrors skipModule.__init__ / init_weights)
# ----------------------------------------------------------------------------

def xavier_uniform(key, shape, fan_in, fan_out):
    bound = math.sqrt(6.0 / (fan_in + fan_out))
    return jax.random.uniform(key, shape, jnp.float32, -bound, bound)


def init_skip_attention(key, cin, cout):
    k1, k2 = jax.random.split(key)
    w = xavier_uniform(k1, (3, 3, cin, cout), cin * 9, cout * 9)      # HWIO
    eps = 1e-5
    gamma = jnp.ones((cout,), jnp.float32)
    beta = jnp.zeros((cout,), jnp.float32)
    rmean = jnp.zeros((cout,), jnp.float32)
    rvar = jnp.ones((cout,), jnp.float32)
    bn_scale = gamma / jnp.sqrt(rvar + eps)
    bn_bias = beta - rmean * bn_scale
    pw = xavier_uniform(k2, (cout, cout), cout, cout)                 # [in, out]
    pb = jnp.zeros((cout,), jnp.float32)                              # bias.fill_(0)
    return dict(w=w, bn_scale=bn_scale, bn_bias=bn_bias, pw=pw, pb=pb)


def init_skip_module(key, in_channels):
    out_channels = {"stage2": 64, "stage3": 128, "stage4": 256, "stage5": 512}
    params = {}
    for s in ("stage2", "stage3", "stage4", "stage5"):
        key, sub = jax.random.split(key)
        params[s] = init_skip_attention(sub, in_channels[s] + 4, out_channels[s])
    return params


# ----------------------------------------------------------------------------
# Pure-JAX references (sanity checks only)
# ----------------------------------------------------------------------------

def skip_attention_ref(x, p, cast_bf16=True):
    w = jnp.transpose(p["w"], (3, 2, 0, 1))                           # OIHW
    if cast_bf16:
        x = x.astype(jnp.bfloat16)
        w = w.astype(jnp.bfloat16)
    fea = lax.conv_general_dilated(
        x, w, (1, 1), ((1, 1), (1, 1)),
        dimension_numbers=("NCHW", "OIHW", "NCHW"),
        preferred_element_type=jnp.float32)
    fea = fea * p["bn_scale"][None, :, None, None] + p["bn_bias"][None, :, None, None]
    fea = jnp.maximum(fea, 0.0)
    pooled = jnp.mean(fea, axis=(2, 3))
    if cast_bf16:
        g = jnp.dot(pooled.astype(jnp.bfloat16), p["pw"].astype(jnp.bfloat16),
                    preferred_element_type=jnp.float32) + p["pb"]
    else:
        g = pooled @ p["pw"] + p["pb"]
    g = jnp.clip(g + 3.0, 0.0, 6.0) / 6.0
    return fea * g[:, :, None, None]


def trimap_process_ref(image):
    t = image[:, 3:4, :, :]
    f = jnp.maximum(t - 0.75, 0.0) * 4.0
    b = jnp.maximum(0.25 - t, 0.0) * 4.0

    def mp(x, k):
        return lax.reduce_window(x, -jnp.inf, lax.max,
                                 (1, 1, k, k), (1, 1, k, k), "VALID")

    fl, fs = mp(f, 4), mp(1.0 - f, 4)
    bl, bs = mp(b, 4), mp(1.0 - b, 4)
    out = {}
    for stage in ("stage2", "stage3", "stage4", "stage5"):
        if stage != "stage2":
            fl, fs, bl, bs = mp(fl, 2), mp(fs, 2), mp(bl, 2), mp(bs, 2)
        out[stage] = jnp.concatenate([1.0 - fs, fl, 1.0 - bs, bl], axis=1)
    return out


# ----------------------------------------------------------------------------
# Main
# ----------------------------------------------------------------------------

if __name__ == "__main__":
    key = jax.random.PRNGKey(0)
    n, h, w = 2, 32, 32
    in_channels = {"stage2": 12, "stage3": 12, "stage4": 12, "stage5": 12}

    key, k_img, k1, k2, k3, k4, k5, k_p = jax.random.split(key, 8)
    image = jax.random.uniform(k_img, (n, 4, h, w), jnp.float32)       # trimap in [0,1]
    in_features = {
        "stage1": jax.random.normal(k1, (n, 8, h // 2, w // 2), jnp.float32),
        "stage2": jax.random.normal(k2, (n, in_channels["stage2"], h // 4, w // 4), jnp.float32),
        "stage3": jax.random.normal(k3, (n, in_channels["stage3"], h // 8, w // 8), jnp.float32),
        "stage4": jax.random.normal(k4, (n, in_channels["stage4"], h // 16, w // 16), jnp.float32),
        "stage5": jax.random.normal(k5, (n, in_channels["stage5"], h // 32, w // 32), jnp.float32),
    }
    params = init_skip_module(k_p, in_channels)

    run = jax.jit(skip_module_apply)
    out = run(image, in_features, params)
    out = jax.tree_util.tree_map(jax.block_until_ready, out)

    # --- shape checks ---
    assert out["stage0"].shape == (n, 3, h, w)
    assert out["stage1"].shape == (n, 8, h // 2, w // 2)
    assert out["stage2"].shape == (n, 64, h // 4, w // 4)
    assert out["stage3"].shape == (n, 128, h // 8, w // 8)
    assert out["stage4"].shape == (n, 256, h // 16, w // 16)
    assert out["stage5"].shape == (n, 512, h // 32, w // 32)

    # --- trimap path: fused kernel vs XLA reduce_window reference (exact ops) ---
    trimaps = trimap_process_apply(image)
    trimaps_ref = trimap_process_ref(image)
    for s in ("stage2", "stage3", "stage4", "stage5"):
        np.testing.assert_allclose(np.asarray(trimaps[s]), np.asarray(trimaps_ref[s]),
                                   rtol=1e-6, atol=1e-6)

    # --- skip_attention: kernel vs references ---
    # tight check vs a reference that mirrors the bf16 operand casts
    for s in ("stage2", "stage3", "stage4", "stage5"):
        x_s = jnp.concatenate([in_features[s], trimaps[s]], axis=1)
        ref_b = skip_attention_ref(x_s, params[s], cast_bf16=True)
        np.testing.assert_allclose(np.asarray(out[s]), np.asarray(ref_b),
                                   rtol=1e-2, atol=1e-2)
    # looser check vs full-f32 PyTorch-equivalent semantics (bf16 MXU inputs)
    x2 = jnp.concatenate([in_features["stage2"], trimaps["stage2"]], axis=1)
    ref_f = skip_attention_ref(x2, params["stage2"], cast_bf16=False)
    np.testing.assert_allclose(np.asarray(out["stage2"]), np.asarray(ref_f),
                               rtol=5e-2, atol=5e-2)

    print("KERNEL_OK")
</pallas_src>

<mosaic_0001>
module attributes {stable_mosaic.version = 11 : i64} {
  func.func @trimap_kernel(%arg0: i32, %arg1: memref<1x32x32xf32, #tpu.memory_space<vmem>>, %arg2: memref<1x4x64xf32, #tpu.memory_space<vmem>>, %arg3: memref<1x4x16xf32, #tpu.memory_space<vmem>>, %arg4: memref<1x4x4xf32, #tpu.memory_space<vmem>>, %arg5: memref<1x4x1xf32, #tpu.memory_space<vmem>>) attributes {dimension_semantics = [#tpu.dimension_semantics<parallel>], iteration_bounds = array<i64: 2>, scalar_prefetch = 0 : i64, scratch_operands = 0 : i64, tpu.core_type = #tpu.core_type<tc>, window_params = [{transform_indices = @transform_0, window_bounds = array<i64: 1, 32, 32>}, {transform_indices = @transform_1, window_bounds = array<i64: 1, 4, 64>}, {transform_indices = @transform_2, window_bounds = array<i64: 1, 4, 16>}, {transform_indices = @transform_3, window_bounds = array<i64: 1, 4, 4>}, {transform_indices = @transform_4, window_bounds = array<i64: 1, 4, 1>}]} {
    %c0 = arith.constant 0 : index
    %c0_0 = arith.constant 0 : index
    %c0_1 = arith.constant 0 : index
    %0 = vector.load %arg1[%c0, %c0_0, %c0_1] : memref<1x32x32xf32, #tpu.memory_space<vmem>>, vector<1x32x32xf32>
    %1 = vector.shape_cast %0 : vector<1x32x32xf32> to vector<32x32xf32>
    %cst = arith.constant 7.500000e-01 : f32
    %2 = vector.broadcast %cst : f32 to vector<32x32xf32>
    %3 = arith.subf %1, %2 : vector<32x32xf32>
    %cst_2 = arith.constant 0.000000e+00 : f32
    %4 = vector.broadcast %cst_2 : f32 to vector<32x32xf32>
    %5 = arith.maximumf %3, %4 : vector<32x32xf32>
    %cst_3 = arith.constant 4.000000e+00 : f32
    %6 = vector.broadcast %cst_3 : f32 to vector<32x32xf32>
    %7 = arith.mulf %5, %6 : vector<32x32xf32>
    %cst_4 = arith.constant 2.500000e-01 : f32
    %8 = vector.broadcast %cst_4 : f32 to vector<32x32xf32>
    %9 = arith.subf %8, %1 : vector<32x32xf32>
    %cst_5 = arith.constant 0.000000e+00 : f32
    %10 = vector.broadcast %cst_5 : f32 to vector<32x32xf32>
    %11 = arith.maximumf %9, %10 : vector<32x32xf32>
    %cst_6 = arith.constant 4.000000e+00 : f32
    %12 = vector.broadcast %cst_6 : f32 to vector<32x32xf32>
    %13 = arith.mulf %11, %12 : vector<32x32xf32>
    %cst_7 = arith.constant 1.000000e+00 : f32
    %14 = vector.broadcast %cst_7 : f32 to vector<32x32xf32>
    %15 = arith.subf %14, %7 : vector<32x32xf32>
    %cst_8 = arith.constant 1.000000e+00 : f32
    %16 = vector.broadcast %cst_8 : f32 to vector<32x32xf32>
    %17 = arith.subf %16, %13 : vector<32x32xf32>
    %18 = vector.shape_cast %7 : vector<32x32xf32> to vector<1x32x32xf32>
    %19 = vector.shape_cast %18 : vector<1x32x32xf32> to vector<1x8x4x32xf32>
    %cst_9 = arith.constant dense<0xFF800000> : vector<1x8x32xf32>
    %20 = vector.multi_reduction <maximumf>, %19, %cst_9 [2] : vector<1x8x4x32xf32> to vector<1x8x32xf32>
    %21 = tpu.transpose %20, [0, 2, 1] : vector<1x8x32xf32> -> vector<1x32x8xf32>
    %22 = vector.shape_cast %21 : vector<1x32x8xf32> to vector<1x8x4x8xf32>
    %cst_10 = arith.constant dense<0xFF800000> : vector<1x8x8xf32>
    %23 = vector.multi_reduction <maximumf>, %22, %cst_10 [2] : vector<1x8x4x8xf32> to vector<1x8x8xf32>
    %24 = tpu.transpose %23, [0, 2, 1] : vector<1x8x8xf32> -> vector<1x8x8xf32>
    %25 = vector.shape_cast %24 : vector<1x8x8xf32> to vector<8x8xf32>
    %26 = vector.shape_cast %15 : vector<32x32xf32> to vector<1x32x32xf32>
    %27 = vector.shape_cast %26 : vector<1x32x32xf32> to vector<1x8x4x32xf32>
    %cst_11 = arith.constant dense<0xFF800000> : vector<1x8x32xf32>
    %28 = vector.multi_reduction <maximumf>, %27, %cst_11 [2] : vector<1x8x4x32xf32> to vector<1x8x32xf32>
    %29 = tpu.transpose %28, [0, 2, 1] : vector<1x8x32xf32> -> vector<1x32x8xf32>
    %30 = vector.shape_cast %29 : vector<1x32x8xf32> to vector<1x8x4x8xf32>
    %cst_12 = arith.constant dense<0xFF800000> : vector<1x8x8xf32>
    %31 = vector.multi_reduction <maximumf>, %30, %cst_12 [2] : vector<1x8x4x8xf32> to vector<1x8x8xf32>
    %32 = tpu.transpose %31, [0, 2, 1] : vector<1x8x8xf32> -> vector<1x8x8xf32>
    %33 = vector.shape_cast %32 : vector<1x8x8xf32> to vector<8x8xf32>
    %34 = vector.shape_cast %13 : vector<32x32xf32> to vector<1x32x32xf32>
    %35 = vector.shape_cast %34 : vector<1x32x32xf32> to vector<1x8x4x32xf32>
    %cst_13 = arith.constant dense<0xFF800000> : vector<1x8x32xf32>
    %36 = vector.multi_reduction <maximumf>, %35, %cst_13 [2] : vector<1x8x4x32xf32> to vector<1x8x32xf32>
    %37 = tpu.transpose %36, [0, 2, 1] : vector<1x8x32xf32> -> vector<1x32x8xf32>
    %38 = vector.shape_cast %37 : vector<1x32x8xf32> to vector<1x8x4x8xf32>
    %cst_14 = arith.constant dense<0xFF800000> : vector<1x8x8xf32>
    %39 = vector.multi_reduction <maximumf>, %38, %cst_14 [2] : vector<1x8x4x8xf32> to vector<1x8x8xf32>
    %40 = tpu.transpose %39, [0, 2, 1] : vector<1x8x8xf32> -> vector<1x8x8xf32>
    %41 = vector.shape_cast %40 : vector<1x8x8xf32> to vector<8x8xf32>
    %42 = vector.shape_cast %17 : vector<32x32xf32> to vector<1x32x32xf32>
    %43 = vector.shape_cast %42 : vector<1x32x32xf32> to vector<1x8x4x32xf32>
    %cst_15 = arith.constant dense<0xFF800000> : vector<1x8x32xf32>
    %44 = vector.multi_reduction <maximumf>, %43, %cst_15 [2] : vector<1x8x4x32xf32> to vector<1x8x32xf32>
    %45 = tpu.transpose %44, [0, 2, 1] : vector<1x8x32xf32> -> vector<1x32x8xf32>
    %46 = vector.shape_cast %45 : vector<1x32x8xf32> to vector<1x8x4x8xf32>
    %cst_16 = arith.constant dense<0xFF800000> : vector<1x8x8xf32>
    %47 = vector.multi_reduction <maximumf>, %46, %cst_16 [2] : vector<1x8x4x8xf32> to vector<1x8x8xf32>
    %48 = tpu.transpose %47, [0, 2, 1] : vector<1x8x8xf32> -> vector<1x8x8xf32>
    %49 = vector.shape_cast %48 : vector<1x8x8xf32> to vector<8x8xf32>
    %50 = vector.shape_cast %25 : vector<8x8xf32> to vector<1x8x8xf32>
    %51 = vector.shape_cast %33 : vector<8x8xf32> to vector<1x8x8xf32>
    %52 = vector.shape_cast %41 : vector<8x8xf32> to vector<1x8x8xf32>
    %53 = vector.shape_cast %49 : vector<8x8xf32> to vector<1x8x8xf32>
    %54 = tpu.concatenate %50, %51, %52, %53 in 0 : vector<1x8x8xf32>, vector<1x8x8xf32>, vector<1x8x8xf32>, vector<1x8x8xf32> -> vector<4x8x8xf32>
    %55 = vector.extract_strided_slice %54 {offsets = [1, 0, 0], sizes = [1, 8, 8], strides = [1, 1, 1]} : vector<4x8x8xf32> to vector<1x8x8xf32>
    %56 = vector.shape_cast %55 : vector<1x8x8xf32> to vector<8x8xf32>
    %cst_17 = arith.constant 1.000000e+00 : f32
    %57 = vector.broadcast %cst_17 : f32 to vector<8x8xf32>
    %58 = arith.subf %57, %56 : vector<8x8xf32>
    %59 = vector.extract_strided_slice %54 {offsets = [0, 0, 0], sizes = [1, 8, 8], strides = [1, 1, 1]} : vector<4x8x8xf32> to vector<1x8x8xf32>
    %60 = vector.shape_cast %59 : vector<1x8x8xf32> to vector<8x8xf32>
    %61 = vector.extract_strided_slice %54 {offsets = [3, 0, 0], sizes = [1, 8, 8], strides = [1, 1, 1]} : vector<4x8x8xf32> to vector<1x8x8xf32>
    %62 = vector.shape_cast %61 : vector<1x8x8xf32> to vector<8x8xf32>
    %cst_18 = arith.constant 1.000000e+00 : f32
    %63 = vector.broadcast %cst_18 : f32 to vector<8x8xf32>
    %64 = arith.subf %63, %62 : vector<8x8xf32>
    %65 = vector.extract_strided_slice %54 {offsets = [2, 0, 0], sizes = [1, 8, 8], strides = [1, 1, 1]} : vector<4x8x8xf32> to vector<1x8x8xf32>
    %66 = vector.shape_cast %65 : vector<1x8x8xf32> to vector<8x8xf32>
    %67 = vector.shape_cast %58 : vector<8x8xf32> to vector<1x8x8xf32>
    %68 = vector.shape_cast %60 : vector<8x8xf32> to vector<1x8x8xf32>
    %69 = vector.shape_cast %64 : vector<8x8xf32> to vector<1x8x8xf32>
    %70 = vector.shape_cast %66 : vector<8x8xf32> to vector<1x8x8xf32>
    %71 = tpu.concatenate %67, %68, %69, %70 in 0 : vector<1x8x8xf32>, vector<1x8x8xf32>, vector<1x8x8xf32>, vector<1x8x8xf32> -> vector<4x8x8xf32>
    %72 = vector.shape_cast %71 : vector<4x8x8xf32> to vector<4x64xf32>
    %c0_19 = arith.constant 0 : index
    %c0_20 = arith.constant 0 : index
    %c0_21 = arith.constant 0 : index
    %73 = vector.load %arg2[%c0_19, %c0_20, %c0_21] : memref<1x4x64xf32, #tpu.memory_space<vmem>>, vector<1x4x64xf32>
    %74 = vector.shape_cast %73 : vector<1x4x64xf32> to vector<4x64xf32>
    %75 = vector.shape_cast %72 : vector<4x64xf32> to vector<1x4x64xf32>
    tpu.vector_store %arg2[%c0_19, %c0_20, %c0_21], %75 {strides = array<i32>} : memref<1x4x64xf32, #tpu.memory_space<vmem>>, vector<1x4x64xf32>,
    %76 = vector.shape_cast %54 : vector<4x8x8xf32> to vector<4x4x2x8xf32>
    %cst_22 = arith.constant dense<0xFF800000> : vector<4x4x8xf32>
    %77 = vector.multi_reduction <maximumf>, %76, %cst_22 [2] : vector<4x4x2x8xf32> to vector<4x4x8xf32>
    %78 = tpu.transpose %77, [0, 2, 1] : vector<4x4x8xf32> -> vector<4x8x4xf32>
    %79 = vector.shape_cast %78 : vector<4x8x4xf32> to vector<4x4x2x4xf32>
    %cst_23 = arith.constant dense<0xFF800000> : vector<4x4x4xf32>
    %80 = vector.multi_reduction <maximumf>, %79, %cst_23 [2] : vector<4x4x2x4xf32> to vector<4x4x4xf32>
    %81 = tpu.transpose %80, [0, 2, 1] : vector<4x4x4xf32> -> vector<4x4x4xf32>
    %82 = vector.extract_strided_slice %81 {offsets = [1, 0, 0], sizes = [1, 4, 4], strides = [1, 1, 1]} : vector<4x4x4xf32> to vector<1x4x4xf32>
    %83 = vector.shape_cast %82 : vector<1x4x4xf32> to vector<4x4xf32>
    %cst_24 = arith.constant 1.000000e+00 : f32
    %84 = vector.broadcast %cst_24 : f32 to vector<4x4xf32>
    %85 = arith.subf %84, %83 : vector<4x4xf32>
    %86 = vector.extract_strided_slice %81 {offsets = [0, 0, 0], sizes = [1, 4, 4], strides = [1, 1, 1]} : vector<4x4x4xf32> to vector<1x4x4xf32>
    %87 = vector.shape_cast %86 : vector<1x4x4xf32> to vector<4x4xf32>
    %88 = vector.extract_strided_slice %81 {offsets = [3, 0, 0], sizes = [1, 4, 4], strides = [1, 1, 1]} : vector<4x4x4xf32> to vector<1x4x4xf32>
    %89 = vector.shape_cast %88 : vector<1x4x4xf32> to vector<4x4xf32>
    %cst_25 = arith.constant 1.000000e+00 : f32
    %90 = vector.broadcast %cst_25 : f32 to vector<4x4xf32>
    %91 = arith.subf %90, %89 : vector<4x4xf32>
    %92 = vector.extract_strided_slice %81 {offsets = [2, 0, 0], sizes = [1, 4, 4], strides = [1, 1, 1]} : vector<4x4x4xf32> to vector<1x4x4xf32>
    %93 = vector.shape_cast %92 : vector<1x4x4xf32> to vector<4x4xf32>
    %94 = vector.shape_cast %85 : vector<4x4xf32> to vector<1x4x4xf32>
    %95 = vector.shape_cast %87 : vector<4x4xf32> to vector<1x4x4xf32>
    %96 = vector.shape_cast %91 : vector<4x4xf32> to vector<1x4x4xf32>
    %97 = vector.shape_cast %93 : vector<4x4xf32> to vector<1x4x4xf32>
    %98 = tpu.concatenate %94, %95, %96, %97 in 0 : vector<1x4x4xf32>, vector<1x4x4xf32>, vector<1x4x4xf32>, vector<1x4x4xf32> -> vector<4x4x4xf32>
    %99 = vector.shape_cast %98 : vector<4x4x4xf32> to vector<4x16xf32>
    %c0_26 = arith.constant 0 : index
    %c0_27 = arith.constant 0 : index
    %c0_28 = arith.constant 0 : index
    %100 = vector.load %arg3[%c0_26, %c0_27, %c0_28] : memref<1x4x16xf32, #tpu.memory_space<vmem>>, vector<1x4x16xf32>
    %101 = vector.shape_cast %100 : vector<1x4x16xf32> to vector<4x16xf32>
    %102 = vector.shape_cast %99 : vector<4x16xf32> to vector<1x4x16xf32>
    tpu.vector_store %arg3[%c0_26, %c0_27, %c0_28], %102 {strides = array<i32>} : memref<1x4x16xf32, #tpu.memory_space<vmem>>, vector<1x4x16xf32>,
    %103 = vector.shape_cast %81 : vector<4x4x4xf32> to vector<4x2x2x4xf32>
    %cst_29 = arith.constant dense<0xFF800000> : vector<4x2x4xf32>
    %104 = vector.multi_reduction <maximumf>, %103, %cst_29 [2] : vector<4x2x2x4xf32> to vector<4x2x4xf32>
    %105 = tpu.transpose %104, [0, 2, 1] : vector<4x2x4xf32> -> vector<4x4x2xf32>
    %106 = vector.shape_cast %105 : vector<4x4x2xf32> to vector<4x2x2x2xf32>
    %cst_30 = arith.constant dense<0xFF800000> : vector<4x2x2xf32>
    %107 = vector.multi_reduction <maximumf>, %106, %cst_30 [2] : vector<4x2x2x2xf32> to vector<4x2x2xf32>
    %108 = tpu.transpose %107, [0, 2, 1] : vector<4x2x2xf32> -> vector<4x2x2xf32>
    %109 = vector.extract_strided_slice %108 {offsets = [1, 0, 0], sizes = [1, 2, 2], strides = [1, 1, 1]} : vector<4x2x2xf32> to vector<1x2x2xf32>
    %110 = vector.shape_cast %109 : vector<1x2x2xf32> to vector<2x2xf32>
    %cst_31 = arith.constant 1.000000e+00 : f32
    %111 = vector.broadcast %cst_31 : f32 to vector<2x2xf32>
    %112 = arith.subf %111, %110 : vector<2x2xf32>
    %113 = vector.extract_strided_slice %108 {offsets = [0, 0, 0], sizes = [1, 2, 2], strides = [1, 1, 1]} : vector<4x2x2xf32> to vector<1x2x2xf32>
    %114 = vector.shape_cast %113 : vector<1x2x2xf32> to vector<2x2xf32>
    %115 = vector.extract_strided_slice %108 {offsets = [3, 0, 0], sizes = [1, 2, 2], strides = [1, 1, 1]} : vector<4x2x2xf32> to vector<1x2x2xf32>
    %116 = vector.shape_cast %115 : vector<1x2x2xf32> to vector<2x2xf32>
    %cst_32 = arith.constant 1.000000e+00 : f32
    %117 = vector.broadcast %cst_32 : f32 to vector<2x2xf32>
    %118 = arith.subf %117, %116 : vector<2x2xf32>
    %119 = vector.extract_strided_slice %108 {offsets = [2, 0, 0], sizes = [1, 2, 2], strides = [1, 1, 1]} : vector<4x2x2xf32> to vector<1x2x2xf32>
    %120 = vector.shape_cast %119 : vector<1x2x2xf32> to vector<2x2xf32>
    %121 = vector.shape_cast %112 : vector<2x2xf32> to vector<1x2x2xf32>
    %122 = vector.shape_cast %114 : vector<2x2xf32> to vector<1x2x2xf32>
    %123 = vector.shape_cast %118 : vector<2x2xf32> to vector<1x2x2xf32>
    %124 = vector.shape_cast %120 : vector<2x2xf32> to vector<1x2x2xf32>
    %125 = tpu.concatenate %121, %122, %123, %124 in 0 : vector<1x2x2xf32>, vector<1x2x2xf32>, vector<1x2x2xf32>, vector<1x2x2xf32> -> vector<4x2x2xf32>
    %126 = vector.shape_cast %125 : vector<4x2x2xf32> to vector<4x4xf32>
    %c0_33 = arith.constant 0 : index
    %c0_34 = arith.constant 0 : index
    %c0_35 = arith.constant 0 : index
    %127 = vector.load %arg4[%c0_33, %c0_34, %c0_35] : memref<1x4x4xf32, #tpu.memory_space<vmem>>, vector<1x4x4xf32>
    %128 = vector.shape_cast %127 : vector<1x4x4xf32> to vector<4x4xf32>
    %129 = vector.shape_cast %126 : vector<4x4xf32> to vector<1x4x4xf32>
    tpu.vector_store %arg4[%c0_33, %c0_34, %c0_35], %129 {strides = array<i32>} : memref<1x4x4xf32, #tpu.memory_space<vmem>>, vector<1x4x4xf32>,
    %130 = vector.shape_cast %108 : vector<4x2x2xf32> to vector<4x1x2x2xf32>
    %cst_36 = arith.constant dense<0xFF800000> : vector<4x1x2xf32>
    %131 = vector.multi_reduction <maximumf>, %130, %cst_36 [2] : vector<4x1x2x2xf32> to vector<4x1x2xf32>
    %132 = tpu.transpose %131, [0, 2, 1] : vector<4x1x2xf32> -> vector<4x2x1xf32>
    %133 = vector.shape_cast %132 : vector<4x2x1xf32> to vector<4x1x2x1xf32>
    %cst_37 = arith.constant dense<0xFF800000> : vector<4x1x1xf32>
    %134 = vector.multi_reduction <maximumf>, %133, %cst_37 [2] : vector<4x1x2x1xf32> to vector<4x1x1xf32>
    %135 = tpu.transpose %134, [0, 2, 1] : vector<4x1x1xf32> -> vector<4x1x1xf32>
    %136 = vector.extract_strided_slice %135 {offsets = [1, 0, 0], sizes = [1, 1, 1], strides = [1, 1, 1]} : vector<4x1x1xf32> to vector<1x1x1xf32>
    %137 = vector.shape_cast %136 : vector<1x1x1xf32> to vector<1x1xf32>
    %cst_38 = arith.constant 1.000000e+00 : f32
    %138 = vector.broadcast %cst_38 : f32 to vector<1x1xf32>
    %139 = arith.subf %138, %137 : vector<1x1xf32>
    %140 = vector.extract_strided_slice %135 {offsets = [0, 0, 0], sizes = [1, 1, 1], strides = [1, 1, 1]} : vector<4x1x1xf32> to vector<1x1x1xf32>
    %141 = vector.shape_cast %140 : vector<1x1x1xf32> to vector<1x1xf32>
    %142 = vector.extract_strided_slice %135 {offsets = [3, 0, 0], sizes = [1, 1, 1], strides = [1, 1, 1]} : vector<4x1x1xf32> to vector<1x1x1xf32>
    %143 = vector.shape_cast %142 : vector<1x1x1xf32> to vector<1x1xf32>
    %cst_39 = arith.constant 1.000000e+00 : f32
    %144 = vector.broadcast %cst_39 : f32 to vector<1x1xf32>
    %145 = arith.subf %144, %143 : vector<1x1xf32>
    %146 = vector.extract_strided_slice %135 {offsets = [2, 0, 0], sizes = [1, 1, 1], strides = [1, 1, 1]} : vector<4x1x1xf32> to vector<1x1x1xf32>
    %147 = vector.shape_cast %146 : vector<1x1x1xf32> to vector<1x1xf32>
    %148 = vector.shape_cast %139 : vector<1x1xf32> to vector<1x1x1xf32>
    %149 = vector.shape_cast %141 : vector<1x1xf32> to vector<1x1x1xf32>
    %150 = vector.shape_cast %145 : vector<1x1xf32> to vector<1x1x1xf32>
    %151 = vector.shape_cast %147 : vector<1x1xf32> to vector<1x1x1xf32>
    %152 = tpu.concatenate %148, %149, %150, %151 in 0 : vector<1x1x1xf32>, vector<1x1x1xf32>, vector<1x1x1xf32>, vector<1x1x1xf32> -> vector<4x1x1xf32>
    %153 = vector.shape_cast %152 : vector<4x1x1xf32> to vector<4x1xf32>
    %c0_40 = arith.constant 0 : index
    %c0_41 = arith.constant 0 : index
    %c0_42 = arith.constant 0 : index
    %154 = vector.load %arg5[%c0_40, %c0_41, %c0_42] : memref<1x4x1xf32, #tpu.memory_space<vmem>>, vector<1x4x1xf32>
    %155 = vector.shape_cast %154 : vector<1x4x1xf32> to vector<4x1xf32>
    %156 = vector.shape_cast %153 : vector<4x1xf32> to vector<1x4x1xf32>
    tpu.vector_store %arg5[%c0_40, %c0_41, %c0_42], %156 {strides = array<i32>} : memref<1x4x1xf32, #tpu.memory_space<vmem>>, vector<1x4x1xf32>,
    return
  }
  func.func @transform_0(%arg0: i32) -> (i32, i32, i32) {
    %c0_i32 = arith.constant 0 : i32
    %c0_i32_0 = arith.constant 0 : i32
    %c0_i32_1 = arith.constant 0 : i32
    return %arg0, %c0_i32, %c0_i32_0 : i32, i32, i32
  }
  func.func @transform_1(%arg0: i32) -> (i32, i32, i32) {
    %c0_i32 = arith.constant 0 : i32
    %c0_i32_0 = arith.constant 0 : i32
    %c0_i32_1 = arith.constant 0 : i32
    return %arg0, %c0_i32, %c0_i32_0 : i32, i32, i32
  }
  func.func @transform_2(%arg0: i32) -> (i32, i32, i32) {
    %c0_i32 = arith.constant 0 : i32
    %c0_i32_0 = arith.constant 0 : i32
    %c0_i32_1 = arith.constant 0 : i32
    return %arg0, %c0_i32, %c0_i32_0 : i32, i32, i32
  }
  func.func @transform_3(%arg0: i32) -> (i32, i32, i32) {
    %c0_i32 = arith.constant 0 : i32
    %c0_i32_0 = arith.constant 0 : i32
    %c0_i32_1 = arith.constant 0 : i32
    return %arg0, %c0_i32, %c0_i32_0 : i32, i32, i32
  }
  func.func @transform_4(%arg0: i32) -> (i32, i32, i32) {
    %c0_i32 = arith.constant 0 : i32
    %c0_i32_0 = arith.constant 0 : i32
    %c0_i32_1 = arith.constant 0 : i32
    return %arg0, %c0_i32, %c0_i32_0 : i32, i32, i32
  }
}

module attributes {stable_mosaic.version = 11 : i64} {
  func.func @skip_attn_kernel(%arg0: i32, %arg1: memref<2x3x3x16xbf16, #tpu.memory_space<vmem>>, %arg2: memref<144x512xbf16, #tpu.memory_space<vmem>>, %arg3: memref<1x512xf32, #tpu.memory_space<vmem>>, %arg4: memref<1x512xf32, #tpu.memory_space<vmem>>, %arg5: memref<512x512xbf16, #tpu.memory_space<vmem>>, %arg6: memref<1x512xf32, #tpu.memory_space<vmem>>, %arg7: memref<2x1x512xf32, #tpu.memory_space<vmem>>) attributes {dimension_semantics = [#tpu.dimension_semantics<parallel>], iteration_bounds = array<i64: 1>, scalar_prefetch = 0 : i64, scratch_operands = 0 : i64, tpu.core_type = #tpu.core_type<tc>, window_params = [{transform_indices = @transform_0, window_bounds = array<i64: 2, 3, 3, 16>}, {pipeline_mode = #tpu.pipeline_mode<synchronous>, transform_indices = @transform_1, window_bounds = array<i64: 144, 512>}, {pipeline_mode = #tpu.pipeline_mode<synchronous>, transform_indices = @transform_2, window_bounds = array<i64: 1, 512>}, {pipeline_mode = #tpu.pipeline_mode<synchronous>, transform_indices = @transform_3, window_bounds = array<i64: 1, 512>}, {pipeline_mode = #tpu.pipeline_mode<synchronous>, transform_indices = @transform_4, window_bounds = array<i64: 512, 512>}, {pipeline_mode = #tpu.pipeline_mode<synchronous>, transform_indices = @transform_5, window_bounds = array<i64: 1, 512>}, {transform_indices = @transform_6, window_bounds = array<i64: 2, 1, 512>}]} {
    %c0 = arith.constant 0 : index
    %c0_0 = arith.constant 0 : index
    %c0_1 = arith.constant 0 : index
    %c0_2 = arith.constant 0 : index
    %0 = vector.load %arg1[%c0, %c0_0, %c0_1, %c0_2] : memref<2x3x3x16xbf16, #tpu.memory_space<vmem>>, vector<2x3x3x16xbf16>
    %1 = vector.extract_strided_slice %0 {offsets = [0, 0, 0, 0], sizes = [2, 1, 1, 16], strides = [1, 1, 1, 1]} : vector<2x3x3x16xbf16> to vector<2x1x1x16xbf16>
    %2 = vector.extract_strided_slice %0 {offsets = [0, 0, 1, 0], sizes = [2, 1, 1, 16], strides = [1, 1, 1, 1]} : vector<2x3x3x16xbf16> to vector<2x1x1x16xbf16>
    %3 = vector.extract_strided_slice %0 {offsets = [0, 0, 2, 0], sizes = [2, 1, 1, 16], strides = [1, 1, 1, 1]} : vector<2x3x3x16xbf16> to vector<2x1x1x16xbf16>
    %4 = vector.extract_strided_slice %0 {offsets = [0, 1, 0, 0], sizes = [2, 1, 1, 16], strides = [1, 1, 1, 1]} : vector<2x3x3x16xbf16> to vector<2x1x1x16xbf16>
    %5 = vector.extract_strided_slice %0 {offsets = [0, 1, 1, 0], sizes = [2, 1, 1, 16], strides = [1, 1, 1, 1]} : vector<2x3x3x16xbf16> to vector<2x1x1x16xbf16>
    %6 = vector.extract_strided_slice %0 {offsets = [0, 1, 2, 0], sizes = [2, 1, 1, 16], strides = [1, 1, 1, 1]} : vector<2x3x3x16xbf16> to vector<2x1x1x16xbf16>
    %7 = vector.extract_strided_slice %0 {offsets = [0, 2, 0, 0], sizes = [2, 1, 1, 16], strides = [1, 1, 1, 1]} : vector<2x3x3x16xbf16> to vector<2x1x1x16xbf16>
    %8 = vector.extract_strided_slice %0 {offsets = [0, 2, 1, 0], sizes = [2, 1, 1, 16], strides = [1, 1, 1, 1]} : vector<2x3x3x16xbf16> to vector<2x1x1x16xbf16>
    %9 = vector.extract_strided_slice %0 {offsets = [0, 2, 2, 0], sizes = [2, 1, 1, 16], strides = [1, 1, 1, 1]} : vector<2x3x3x16xbf16> to vector<2x1x1x16xbf16>
    %10 = tpu.concatenate %1, %2, %3, %4, %5, %6, %7, %8, %9 in 3 : vector<2x1x1x16xbf16>, vector<2x1x1x16xbf16>, vector<2x1x1x16xbf16>, vector<2x1x1x16xbf16>, vector<2x1x1x16xbf16>, vector<2x1x1x16xbf16>, vector<2x1x1x16xbf16>, vector<2x1x1x16xbf16>, vector<2x1x1x16xbf16> -> vector<2x1x1x144xbf16>
    %11 = vector.shape_cast %10 : vector<2x1x1x144xbf16> to vector<2x144xbf16>
    %c0_3 = arith.constant 0 : index
    %c0_4 = arith.constant 0 : index
    %12 = vector.load %arg2[%c0_3, %c0_4] : memref<144x512xbf16, #tpu.memory_space<vmem>>, vector<144x512xbf16>
    %cst = arith.constant dense<0.000000e+00> : vector<2x512xf32>
    %13 = tpu.matmul %11, %12, %cst {dimension_numbers = #tpu.dot_dimension_numbers<[1], [0], [0], [1], [0, 0, 1, 1], [], []>} : vector<2x144xbf16>, vector<144x512xbf16>, vector<2x512xf32> -> vector<2x512xf32>
    %c0_5 = arith.constant 0 : index
    %c0_6 = arith.constant 0 : index
    %14 = vector.load %arg3[%c0_5, %c0_6] : memref<1x512xf32, #tpu.memory_space<vmem>>, vector<1x512xf32>
    %15 = vector.broadcast %14 : vector<1x512xf32> to vector<2x512xf32>
    %16 = arith.mulf %13, %15 : vector<2x512xf32>
    %c0_7 = arith.constant 0 : index
    %c0_8 = arith.constant 0 : index
    %17 = vector.load %arg4[%c0_7, %c0_8] : memref<1x512xf32, #tpu.memory_space<vmem>>, vector<1x512xf32>
    %18 = vector.broadcast %17 : vector<1x512xf32> to vector<2x512xf32>
    %19 = arith.addf %16, %18 : vector<2x512xf32>
    %cst_9 = arith.constant 0.000000e+00 : f32
    %20 = vector.broadcast %cst_9 : f32 to vector<2x512xf32>
    %21 = arith.maximumf %19, %20 : vector<2x512xf32>
    %22 = vector.shape_cast %21 : vector<2x512xf32> to vector<2x1x512xf32>
    %cst_10 = arith.constant dense<0.000000e+00> : vector<2x512xf32>
    %23 = vector.multi_reduction <add>, %22, %cst_10 [1] : vector<2x1x512xf32> to vector<2x512xf32>
    %cst_11 = arith.constant 1.000000e+00 : f32
    %24 = vector.broadcast %cst_11 : f32 to vector<2x512xf32>
    %25 = arith.mulf %23, %24 : vector<2x512xf32>
    %26 = arith.truncf %25 : vector<2x512xf32> to vector<2x512xbf16>
    %c0_12 = arith.constant 0 : index
    %c0_13 = arith.constant 0 : index
    %27 = vector.load %arg5[%c0_12, %c0_13] : memref<512x512xbf16, #tpu.memory_space<vmem>>, vector<512x512xbf16>
    %cst_14 = arith.constant dense<0.000000e+00> : vector<2x512xf32>
    %28 = tpu.matmul %26, %27, %cst_14 {dimension_numbers = #tpu.dot_dimension_numbers<[1], [0], [0], [1], [0, 0, 1, 1], [], []>} : vector<2x512xbf16>, vector<512x512xbf16>, vector<2x512xf32> -> vector<2x512xf32>
    %c0_15 = arith.constant 0 : index
    %c0_16 = arith.constant 0 : index
    %29 = vector.load %arg6[%c0_15, %c0_16] : memref<1x512xf32, #tpu.memory_space<vmem>>, vector<1x512xf32>
    %30 = vector.broadcast %29 : vector<1x512xf32> to vector<2x512xf32>
    %31 = arith.addf %28, %30 : vector<2x512xf32>
    %cst_17 = arith.constant 3.000000e+00 : f32
    %32 = vector.broadcast %cst_17 : f32 to vector<2x512xf32>
    %33 = arith.addf %31, %32 : vector<2x512xf32>
    %cst_18 = arith.constant 0.000000e+00 : f32
    %cst_19 = arith.constant 6.000000e+00 : f32
    %34 = vector.broadcast %cst_18 : f32 to vector<2x512xf32>
    %35 = arith.maximumf %34, %33 : vector<2x512xf32>
    %36 = vector.broadcast %cst_19 : f32 to vector<2x512xf32>
    %37 = arith.minimumf %36, %35 : vector<2x512xf32>
    %cst_20 = arith.constant 0.166666672 : f32
    %38 = vector.broadcast %cst_20 : f32 to vector<2x512xf32>
    %39 = arith.mulf %37, %38 : vector<2x512xf32>
    %40 = vector.shape_cast %39 : vector<2x512xf32> to vector<2x1x512xf32>
    %41 = arith.mulf %22, %40 : vector<2x1x512xf32>
    %c0_21 = arith.constant 0 : index
    %c0_22 = arith.constant 0 : index
    %c0_23 = arith.constant 0 : index
    %42 = vector.load %arg7[%c0_21, %c0_22, %c0_23] : memref<2x1x512xf32, #tpu.memory_space<vmem>>, vector<2x1x512xf32>
    tpu.vector_store %arg7[%c0_21, %c0_22, %c0_23], %41 {strides = array<i32>} : memref<2x1x512xf32, #tpu.memory_space<vmem>>, vector<2x1x512xf32>,
    return
  }
  func.func @transform_0(%arg0: i32) -> (i32, i32, i32, i32) {
    %c0_i32 = arith.constant 0 : i32
    %c0_i32_0 = arith.constant 0 : i32
    %c0_i32_1 = arith.constant 0 : i32
    %c0_i32_2 = arith.constant 0 : i32
    return %arg0, %c0_i32, %c0_i32_0, %c0_i32_1 : i32, i32, i32, i32
  }
  func.func @transform_1(%arg0: i32) -> (i32, i32) {
    %c0_i32 = arith.constant 0 : i32
    %c0_i32_0 = arith.constant 0 : i32
    %c0_i32_1 = arith.constant 0 : i32
    return %c0_i32, %c0_i32_0 : i32, i32
  }
  func.func @transform_2(%arg0: i32) -> (i32, i32) {
    %c0_i32 = arith.constant 0 : i32
    %c0_i32_0 = arith.constant 0 : i32
    %c0_i32_1 = arith.constant 0 : i32
    return %c0_i32, %c0_i32_0 : i32, i32
  }
  func.func @transform_3(%arg0: i32) -> (i32, i32) {
    %c0_i32 = arith.constant 0 : i32
    %c0_i32_0 = arith.constant 0 : i32
    %c0_i32_1 = arith.constant 0 : i32
    return %c0_i32, %c0_i32_0 : i32, i32
  }
  func.func @transform_4(%arg0: i32) -> (i32, i32) {
    %c0_i32 = arith.constant 0 : i32
    %c0_i32_0 = arith.constant 0 : i32
    %c0_i32_1 = arith.constant 0 : i32
    return %c0_i32, %c0_i32_0 : i32, i32
  }
  func.func @transform_5(%arg0: i32) -> (i32, i32) {
    %c0_i32 = arith.constant 0 : i32
    %c0_i32_0 = arith.constant 0 : i32
    %c0_i32_1 = arith.constant 0 : i32
    return %c0_i32, %c0_i32_0 : i32, i32
  }
  func.func @transform_6(%arg0: i32) -> (i32, i32, i32) {
    %c0_i32 = arith.constant 0 : i32
    %c0_i32_0 = arith.constant 0 : i32
    %c0_i32_1 = arith.constant 0 : i32
    return %arg0, %c0_i32, %c0_i32_0 : i32, i32, i32
  }
}

module attributes {stable_mosaic.version = 11 : i64} {
  func.func @skip_attn_kernel(%arg0: i32, %arg1: memref<2x10x10x16xbf16, #tpu.memory_space<vmem>>, %arg2: memref<144x64xbf16, #tpu.memory_space<vmem>>, %arg3: memref<1x64xf32, #tpu.memory_space<vmem>>, %arg4: memref<1x64xf32, #tpu.memory_space<vmem>>, %arg5: memref<64x64xbf16, #tpu.memory_space<vmem>>, %arg6: memref<1x64xf32, #tpu.memory_space<vmem>>, %arg7: memref<2x64x64xf32, #tpu.memory_space<vmem>>) attributes {dimension_semantics = [#tpu.dimension_semantics<parallel>], iteration_bounds = array<i64: 1>, scalar_prefetch = 0 : i64, scratch_operands = 0 : i64, tpu.core_type = #tpu.core_type<tc>, window_params = [{transform_indices = @transform_0, window_bounds = array<i64: 2, 10, 10, 16>}, {pipeline_mode = #tpu.pipeline_mode<synchronous>, transform_indices = @transform_1, window_bounds = array<i64: 144, 64>}, {pipeline_mode = #tpu.pipeline_mode<synchronous>, transform_indices = @transform_2, window_bounds = array<i64: 1, 64>}, {pipeline_mode = #tpu.pipeline_mode<synchronous>, transform_indices = @transform_3, window_bounds = array<i64: 1, 64>}, {pipeline_mode = #tpu.pipeline_mode<synchronous>, transform_indices = @transform_4, window_bounds = array<i64: 64, 64>}, {pipeline_mode = #tpu.pipeline_mode<synchronous>, transform_indices = @transform_5, window_bounds = array<i64: 1, 64>}, {transform_indices = @transform_6, window_bounds = array<i64: 2, 64, 64>}]} {
    %c0 = arith.constant 0 : index
    %c0_0 = arith.constant 0 : index
    %c0_1 = arith.constant 0 : index
    %c0_2 = arith.constant 0 : index
    %0 = vector.load %arg1[%c0, %c0_0, %c0_1, %c0_2] : memref<2x10x10x16xbf16, #tpu.memory_space<vmem>>, vector<2x10x10x16xbf16>
    %1 = vector.extract_strided_slice %0 {offsets = [0, 0, 0, 0], sizes = [2, 8, 8, 16], strides = [1, 1, 1, 1]} : vector<2x10x10x16xbf16> to vector<2x8x8x16xbf16>
    %2 = vector.extract_strided_slice %0 {offsets = [0, 0, 1, 0], sizes = [2, 8, 8, 16], strides = [1, 1, 1, 1]} : vector<2x10x10x16xbf16> to vector<2x8x8x16xbf16>
    %3 = vector.extract_strided_slice %0 {offsets = [0, 0, 2, 0], sizes = [2, 8, 8, 16], strides = [1, 1, 1, 1]} : vector<2x10x10x16xbf16> to vector<2x8x8x16xbf16>
    %4 = vector.extract_strided_slice %0 {offsets = [0, 1, 0, 0], sizes = [2, 8, 8, 16], strides = [1, 1, 1, 1]} : vector<2x10x10x16xbf16> to vector<2x8x8x16xbf16>
    %5 = vector.extract_strided_slice %0 {offsets = [0, 1, 1, 0], sizes = [2, 8, 8, 16], strides = [1, 1, 1, 1]} : vector<2x10x10x16xbf16> to vector<2x8x8x16xbf16>
    %6 = vector.extract_strided_slice %0 {offsets = [0, 1, 2, 0], sizes = [2, 8, 8, 16], strides = [1, 1, 1, 1]} : vector<2x10x10x16xbf16> to vector<2x8x8x16xbf16>
    %7 = vector.extract_strided_slice %0 {offsets = [0, 2, 0, 0], sizes = [2, 8, 8, 16], strides = [1, 1, 1, 1]} : vector<2x10x10x16xbf16> to vector<2x8x8x16xbf16>
    %8 = vector.extract_strided_slice %0 {offsets = [0, 2, 1, 0], sizes = [2, 8, 8, 16], strides = [1, 1, 1, 1]} : vector<2x10x10x16xbf16> to vector<2x8x8x16xbf16>
    %9 = vector.extract_strided_slice %0 {offsets = [0, 2, 2, 0], sizes = [2, 8, 8, 16], strides = [1, 1, 1, 1]} : vector<2x10x10x16xbf16> to vector<2x8x8x16xbf16>
    %10 = tpu.concatenate %1, %2, %3, %4, %5, %6, %7, %8, %9 in 3 : vector<2x8x8x16xbf16>, vector<2x8x8x16xbf16>, vector<2x8x8x16xbf16>, vector<2x8x8x16xbf16>, vector<2x8x8x16xbf16>, vector<2x8x8x16xbf16>, vector<2x8x8x16xbf16>, vector<2x8x8x16xbf16>, vector<2x8x8x16xbf16> -> vector<2x8x8x144xbf16>
    %11 = vector.shape_cast %10 : vector<2x8x8x144xbf16> to vector<128x144xbf16>
    %c0_3 = arith.constant 0 : index
    %c0_4 = arith.constant 0 : index
    %12 = vector.load %arg2[%c0_3, %c0_4] : memref<144x64xbf16, #tpu.memory_space<vmem>>, vector<144x64xbf16>
    %cst = arith.constant dense<0.000000e+00> : vector<128x64xf32>
    %13 = tpu.matmul %11, %12, %cst {dimension_numbers = #tpu.dot_dimension_numbers<[1], [0], [0], [1], [0, 0, 1, 1], [], []>} : vector<128x144xbf16>, vector<144x64xbf16>, vector<128x64xf32> -> vector<128x64xf32>
    %c0_5 = arith.constant 0 : index
    %c0_6 = arith.constant 0 : index
    %14 = vector.load %arg3[%c0_5, %c0_6] : memref<1x64xf32, #tpu.memory_space<vmem>>, vector<1x64xf32>
    %15 = vector.broadcast %14 : vector<1x64xf32> to vector<128x64xf32>
    %16 = arith.mulf %13, %15 : vector<128x64xf32>
    %c0_7 = arith.constant 0 : index
    %c0_8 = arith.constant 0 : index
    %17 = vector.load %arg4[%c0_7, %c0_8] : memref<1x64xf32, #tpu.memory_space<vmem>>, vector<1x64xf32>
    %18 = vector.broadcast %17 : vector<1x64xf32> to vector<128x64xf32>
    %19 = arith.addf %16, %18 : vector<128x64xf32>
    %cst_9 = arith.constant 0.000000e+00 : f32
    %20 = vector.broadcast %cst_9 : f32 to vector<128x64xf32>
    %21 = arith.maximumf %19, %20 : vector<128x64xf32>
    %22 = vector.shape_cast %21 : vector<128x64xf32> to vector<2x64x64xf32>
    %cst_10 = arith.constant dense<0.000000e+00> : vector<2x64xf32>
    %23 = vector.multi_reduction <add>, %22, %cst_10 [1] : vector<2x64x64xf32> to vector<2x64xf32>
    %cst_11 = arith.constant 1.562500e-02 : f32
    %24 = vector.broadcast %cst_11 : f32 to vector<2x64xf32>
    %25 = arith.mulf %23, %24 : vector<2x64xf32>
    %26 = arith.truncf %25 : vector<2x64xf32> to vector<2x64xbf16>
    %c0_12 = arith.constant 0 : index
    %c0_13 = arith.constant 0 : index
    %27 = vector.load %arg5[%c0_12, %c0_13] : memref<64x64xbf16, #tpu.memory_space<vmem>>, vector<64x64xbf16>
    %cst_14 = arith.constant dense<0.000000e+00> : vector<2x64xf32>
    %28 = tpu.matmul %26, %27, %cst_14 {dimension_numbers = #tpu.dot_dimension_numbers<[1], [0], [0], [1], [0, 0, 1, 1], [], []>} : vector<2x64xbf16>, vector<64x64xbf16>, vector<2x64xf32> -> vector<2x64xf32>
    %c0_15 = arith.constant 0 : index
    %c0_16 = arith.constant 0 : index
    %29 = vector.load %arg6[%c0_15, %c0_16] : memref<1x64xf32, #tpu.memory_space<vmem>>, vector<1x64xf32>
    %30 = vector.broadcast %29 : vector<1x64xf32> to vector<2x64xf32>
    %31 = arith.addf %28, %30 : vector<2x64xf32>
    %cst_17 = arith.constant 3.000000e+00 : f32
    %32 = vector.broadcast %cst_17 : f32 to vector<2x64xf32>
    %33 = arith.addf %31, %32 : vector<2x64xf32>
    %cst_18 = arith.constant 0.000000e+00 : f32
    %cst_19 = arith.constant 6.000000e+00 : f32
    %34 = vector.broadcast %cst_18 : f32 to vector<2x64xf32>
    %35 = arith.maximumf %34, %33 : vector<2x64xf32>
    %36 = vector.broadcast %cst_19 : f32 to vector<2x64xf32>
    %37 = arith.minimumf %36, %35 : vector<2x64xf32>
    %cst_20 = arith.constant 0.166666672 : f32
    %38 = vector.broadcast %cst_20 : f32 to vector<2x64xf32>
    %39 = arith.mulf %37, %38 : vector<2x64xf32>
    %40 = vector.shape_cast %39 : vector<2x64xf32> to vector<2x1x64xf32>
    %41 = vector.broadcast %40 : vector<2x1x64xf32> to vector<2x64x64xf32>
    %42 = arith.mulf %22, %41 : vector<2x64x64xf32>
    %c0_21 = arith.constant 0 : index
    %c0_22 = arith.constant 0 : index
    %c0_23 = arith.constant 0 : index
    %43 = vector.load %arg7[%c0_21, %c0_22, %c0_23] : memref<2x64x64xf32, #tpu.memory_space<vmem>>, vector<2x64x64xf32>
    tpu.vector_store %arg7[%c0_21, %c0_22, %c0_23], %42 {strides = array<i32>} : memref<2x64x64xf32, #tpu.memory_space<vmem>>, vector<2x64x64xf32>,
    return
  }
  func.func @transform_0(%arg0: i32) -> (i32, i32, i32, i32) {
    %c0_i32 = arith.constant 0 : i32
    %c0_i32_0 = arith.constant 0 : i32
    %c0_i32_1 = arith.constant 0 : i32
    %c0_i32_2 = arith.constant 0 : i32
    return %arg0, %c0_i32, %c0_i32_0, %c0_i32_1 : i32, i32, i32, i32
  }
  func.func @transform_1(%arg0: i32) -> (i32, i32) {
    %c0_i32 = arith.constant 0 : i32
    %c0_i32_0 = arith.constant 0 : i32
    %c0_i32_1 = arith.constant 0 : i32
    return %c0_i32, %c0_i32_0 : i32, i32
  }
  func.func @transform_2(%arg0: i32) -> (i32, i32) {
    %c0_i32 = arith.constant 0 : i32
    %c0_i32_0 = arith.constant 0 : i32
    %c0_i32_1 = arith.constant 0 : i32
    return %c0_i32, %c0_i32_0 : i32, i32
  }
  func.func @transform_3(%arg0: i32) -> (i32, i32) {
    %c0_i32 = arith.constant 0 : i32
    %c0_i32_0 = arith.constant 0 : i32
    %c0_i32_1 = arith.constant 0 : i32
    return %c0_i32, %c0_i32_0 : i32, i32
  }
  func.func @transform_4(%arg0: i32) -> (i32, i32) {
    %c0_i32 = arith.constant 0 : i32
    %c0_i32_0 = arith.constant 0 : i32
    %c0_i32_1 = arith.constant 0 : i32
    return %c0_i32, %c0_i32_0 : i32, i32
  }
  func.func @transform_5(%arg0: i32) -> (i32, i32) {
    %c0_i32 = arith.constant 0 : i32
    %c0_i32_0 = arith.constant 0 : i32
    %c0_i32_1 = arith.constant 0 : i32
    return %c0_i32, %c0_i32_0 : i32, i32
  }
  func.func @transform_6(%arg0: i32) -> (i32, i32, i32) {
    %c0_i32 = arith.constant 0 : i32
    %c0_i32_0 = arith.constant 0 : i32
    %c0_i32_1 = arith.constant 0 : i32
    return %arg0, %c0_i32, %c0_i32_0 : i32, i32, i32
  }
}

module attributes {stable_mosaic.version = 11 : i64} {
  func.func @skip_attn_kernel(%arg0: i32, %arg1: memref<2x4x4x16xbf16, #tpu.memory_space<vmem>>, %arg2: memref<144x256xbf16, #tpu.memory_space<vmem>>, %arg3: memref<1x256xf32, #tpu.memory_space<vmem>>, %arg4: memref<1x256xf32, #tpu.memory_space<vmem>>, %arg5: memref<256x256xbf16, #tpu.memory_space<vmem>>, %arg6: memref<1x256xf32, #tpu.memory_space<vmem>>, %arg7: memref<2x4x256xf32, #tpu.memory_space<vmem>>) attributes {dimension_semantics = [#tpu.dimension_semantics<parallel>], iteration_bounds = array<i64: 1>, scalar_prefetch = 0 : i64, scratch_operands = 0 : i64, tpu.core_type = #tpu.core_type<tc>, window_params = [{transform_indices = @transform_0, window_bounds = array<i64: 2, 4, 4, 16>}, {pipeline_mode = #tpu.pipeline_mode<synchronous>, transform_indices = @transform_1, window_bounds = array<i64: 144, 256>}, {pipeline_mode = #tpu.pipeline_mode<synchronous>, transform_indices = @transform_2, window_bounds = array<i64: 1, 256>}, {pipeline_mode = #tpu.pipeline_mode<synchronous>, transform_indices = @transform_3, window_bounds = array<i64: 1, 256>}, {pipeline_mode = #tpu.pipeline_mode<synchronous>, transform_indices = @transform_4, window_bounds = array<i64: 256, 256>}, {pipeline_mode = #tpu.pipeline_mode<synchronous>, transform_indices = @transform_5, window_bounds = array<i64: 1, 256>}, {transform_indices = @transform_6, window_bounds = array<i64: 2, 4, 256>}]} {
    %c0 = arith.constant 0 : index
    %c0_0 = arith.constant 0 : index
    %c0_1 = arith.constant 0 : index
    %c0_2 = arith.constant 0 : index
    %0 = vector.load %arg1[%c0, %c0_0, %c0_1, %c0_2] : memref<2x4x4x16xbf16, #tpu.memory_space<vmem>>, vector<2x4x4x16xbf16>
    %1 = vector.extract_strided_slice %0 {offsets = [0, 0, 0, 0], sizes = [2, 2, 2, 16], strides = [1, 1, 1, 1]} : vector<2x4x4x16xbf16> to vector<2x2x2x16xbf16>
    %2 = vector.extract_strided_slice %0 {offsets = [0, 0, 1, 0], sizes = [2, 2, 2, 16], strides = [1, 1, 1, 1]} : vector<2x4x4x16xbf16> to vector<2x2x2x16xbf16>
    %3 = vector.extract_strided_slice %0 {offsets = [0, 0, 2, 0], sizes = [2, 2, 2, 16], strides = [1, 1, 1, 1]} : vector<2x4x4x16xbf16> to vector<2x2x2x16xbf16>
    %4 = vector.extract_strided_slice %0 {offsets = [0, 1, 0, 0], sizes = [2, 2, 2, 16], strides = [1, 1, 1, 1]} : vector<2x4x4x16xbf16> to vector<2x2x2x16xbf16>
    %5 = vector.extract_strided_slice %0 {offsets = [0, 1, 1, 0], sizes = [2, 2, 2, 16], strides = [1, 1, 1, 1]} : vector<2x4x4x16xbf16> to vector<2x2x2x16xbf16>
    %6 = vector.extract_strided_slice %0 {offsets = [0, 1, 2, 0], sizes = [2, 2, 2, 16], strides = [1, 1, 1, 1]} : vector<2x4x4x16xbf16> to vector<2x2x2x16xbf16>
    %7 = vector.extract_strided_slice %0 {offsets = [0, 2, 0, 0], sizes = [2, 2, 2, 16], strides = [1, 1, 1, 1]} : vector<2x4x4x16xbf16> to vector<2x2x2x16xbf16>
    %8 = vector.extract_strided_slice %0 {offsets = [0, 2, 1, 0], sizes = [2, 2, 2, 16], strides = [1, 1, 1, 1]} : vector<2x4x4x16xbf16> to vector<2x2x2x16xbf16>
    %9 = vector.extract_strided_slice %0 {offsets = [0, 2, 2, 0], sizes = [2, 2, 2, 16], strides = [1, 1, 1, 1]} : vector<2x4x4x16xbf16> to vector<2x2x2x16xbf16>
    %10 = tpu.concatenate %1, %2, %3, %4, %5, %6, %7, %8, %9 in 3 : vector<2x2x2x16xbf16>, vector<2x2x2x16xbf16>, vector<2x2x2x16xbf16>, vector<2x2x2x16xbf16>, vector<2x2x2x16xbf16>, vector<2x2x2x16xbf16>, vector<2x2x2x16xbf16>, vector<2x2x2x16xbf16>, vector<2x2x2x16xbf16> -> vector<2x2x2x144xbf16>
    %11 = vector.shape_cast %10 : vector<2x2x2x144xbf16> to vector<8x144xbf16>
    %c0_3 = arith.constant 0 : index
    %c0_4 = arith.constant 0 : index
    %12 = vector.load %arg2[%c0_3, %c0_4] : memref<144x256xbf16, #tpu.memory_space<vmem>>, vector<144x256xbf16>
    %cst = arith.constant dense<0.000000e+00> : vector<8x256xf32>
    %13 = tpu.matmul %11, %12, %cst {dimension_numbers = #tpu.dot_dimension_numbers<[1], [0], [0], [1], [0, 0, 1, 1], [], []>} : vector<8x144xbf16>, vector<144x256xbf16>, vector<8x256xf32> -> vector<8x256xf32>
    %c0_5 = arith.constant 0 : index
    %c0_6 = arith.constant 0 : index
    %14 = vector.load %arg3[%c0_5, %c0_6] : memref<1x256xf32, #tpu.memory_space<vmem>>, vector<1x256xf32>
    %15 = vector.broadcast %14 : vector<1x256xf32> to vector<8x256xf32>
    %16 = arith.mulf %13, %15 : vector<8x256xf32>
    %c0_7 = arith.constant 0 : index
    %c0_8 = arith.constant 0 : index
    %17 = vector.load %arg4[%c0_7, %c0_8] : memref<1x256xf32, #tpu.memory_space<vmem>>, vector<1x256xf32>
    %18 = vector.broadcast %17 : vector<1x256xf32> to vector<8x256xf32>
    %19 = arith.addf %16, %18 : vector<8x256xf32>
    %cst_9 = arith.constant 0.000000e+00 : f32
    %20 = vector.broadcast %cst_9 : f32 to vector<8x256xf32>
    %21 = arith.maximumf %19, %20 : vector<8x256xf32>
    %22 = vector.shape_cast %21 : vector<8x256xf32> to vector<2x4x256xf32>
    %cst_10 = arith.constant dense<0.000000e+00> : vector<2x256xf32>
    %23 = vector.multi_reduction <add>, %22, %cst_10 [1] : vector<2x4x256xf32> to vector<2x256xf32>
    %cst_11 = arith.constant 2.500000e-01 : f32
    %24 = vector.broadcast %cst_11 : f32 to vector<2x256xf32>
    %25 = arith.mulf %23, %24 : vector<2x256xf32>
    %26 = arith.truncf %25 : vector<2x256xf32> to vector<2x256xbf16>
    %c0_12 = arith.constant 0 : index
    %c0_13 = arith.constant 0 : index
    %27 = vector.load %arg5[%c0_12, %c0_13] : memref<256x256xbf16, #tpu.memory_space<vmem>>, vector<256x256xbf16>
    %cst_14 = arith.constant dense<0.000000e+00> : vector<2x256xf32>
    %28 = tpu.matmul %26, %27, %cst_14 {dimension_numbers = #tpu.dot_dimension_numbers<[1], [0], [0], [1], [0, 0, 1, 1], [], []>} : vector<2x256xbf16>, vector<256x256xbf16>, vector<2x256xf32> -> vector<2x256xf32>
    %c0_15 = arith.constant 0 : index
    %c0_16 = arith.constant 0 : index
    %29 = vector.load %arg6[%c0_15, %c0_16] : memref<1x256xf32, #tpu.memory_space<vmem>>, vector<1x256xf32>
    %30 = vector.broadcast %29 : vector<1x256xf32> to vector<2x256xf32>
    %31 = arith.addf %28, %30 : vector<2x256xf32>
    %cst_17 = arith.constant 3.000000e+00 : f32
    %32 = vector.broadcast %cst_17 : f32 to vector<2x256xf32>
    %33 = arith.addf %31, %32 : vector<2x256xf32>
    %cst_18 = arith.constant 0.000000e+00 : f32
    %cst_19 = arith.constant 6.000000e+00 : f32
    %34 = vector.broadcast %cst_18 : f32 to vector<2x256xf32>
    %35 = arith.maximumf %34, %33 : vector<2x256xf32>
    %36 = vector.broadcast %cst_19 : f32 to vector<2x256xf32>
    %37 = arith.minimumf %36, %35 : vector<2x256xf32>
    %cst_20 = arith.constant 0.166666672 : f32
    %38 = vector.broadcast %cst_20 : f32 to vector<2x256xf32>
    %39 = arith.mulf %37, %38 : vector<2x256xf32>
    %40 = vector.shape_cast %39 : vector<2x256xf32> to vector<2x1x256xf32>
    %41 = vector.broadcast %40 : vector<2x1x256xf32> to vector<2x4x256xf32>
    %42 = arith.mulf %22, %41 : vector<2x4x256xf32>
    %c0_21 = arith.constant 0 : index
    %c0_22 = arith.constant 0 : index
    %c0_23 = arith.constant 0 : index
    %43 = vector.load %arg7[%c0_21, %c0_22, %c0_23] : memref<2x4x256xf32, #tpu.memory_space<vmem>>, vector<2x4x256xf32>
    tpu.vector_store %arg7[%c0_21, %c0_22, %c0_23], %42 {strides = array<i32>} : memref<2x4x256xf32, #tpu.memory_space<vmem>>, vector<2x4x256xf32>,
    return
  }
  func.func @transform_0(%arg0: i32) -> (i32, i32, i32, i32) {
    %c0_i32 = arith.constant 0 : i32
    %c0_i32_0 = arith.constant 0 : i32
    %c0_i32_1 = arith.constant 0 : i32
    %c0_i32_2 = arith.constant 0 : i32
    return %arg0, %c0_i32, %c0_i32_0, %c0_i32_1 : i32, i32, i32, i32
  }
  func.func @transform_1(%arg0: i32) -> (i32, i32) {
    %c0_i32 = arith.constant 0 : i32
    %c0_i32_0 = arith.constant 0 : i32
    %c0_i32_1 = arith.constant 0 : i32
    return %c0_i32, %c0_i32_0 : i32, i32
  }
  func.func @transform_2(%arg0: i32) -> (i32, i32) {
    %c0_i32 = arith.constant 0 : i32
    %c0_i32_0 = arith.constant 0 : i32
    %c0_i32_1 = arith.constant 0 : i32
    return %c0_i32, %c0_i32_0 : i32, i32
  }
  func.func @transform_3(%arg0: i32) -> (i32, i32) {
    %c0_i32 = arith.constant 0 : i32
    %c0_i32_0 = arith.constant 0 : i32
    %c0_i32_1 = arith.constant 0 : i32
    return %c0_i32, %c0_i32_0 : i32, i32
  }
  func.func @transform_4(%arg0: i32) -> (i32, i32) {
    %c0_i32 = arith.constant 0 : i32
    %c0_i32_0 = arith.constant 0 : i32
    %c0_i32_1 = arith.constant 0 : i32
    return %c0_i32, %c0_i32_0 : i32, i32
  }
  func.func @transform_5(%arg0: i32) -> (i32, i32) {
    %c0_i32 = arith.constant 0 : i32
    %c0_i32_0 = arith.constant 0 : i32
    %c0_i32_1 = arith.constant 0 : i32
    return %c0_i32, %c0_i32_0 : i32, i32
  }
  func.func @transform_6(%arg0: i32) -> (i32, i32, i32) {
    %c0_i32 = arith.constant 0 : i32
    %c0_i32_0 = arith.constant 0 : i32
    %c0_i32_1 = arith.constant 0 : i32
    return %arg0, %c0_i32, %c0_i32_0 : i32, i32, i32
  }
}

module attributes {stable_mosaic.version = 11 : i64} {
  func.func @skip_attn_kernel(%arg0: i32, %arg1: memref<2x6x6x16xbf16, #tpu.memory_space<vmem>>, %arg2: memref<144x128xbf16, #tpu.memory_space<vmem>>, %arg3: memref<1x128xf32, #tpu.memory_space<vmem>>, %arg4: memref<1x128xf32, #tpu.memory_space<vmem>>, %arg5: memref<128x128xbf16, #tpu.memory_space<vmem>>, %arg6: memref<1x128xf32, #tpu.memory_space<vmem>>, %arg7: memref<2x16x128xf32, #tpu.memory_space<vmem>>) attributes {dimension_semantics = [#tpu.dimension_semantics<parallel>], iteration_bounds = array<i64: 1>, scalar_prefetch = 0 : i64, scratch_operands = 0 : i64, tpu.core_type = #tpu.core_type<tc>, window_params = [{transform_indices = @transform_0, window_bounds = array<i64: 2, 6, 6, 16>}, {pipeline_mode = #tpu.pipeline_mode<synchronous>, transform_indices = @transform_1, window_bounds = array<i64: 144, 128>}, {pipeline_mode = #tpu.pipeline_mode<synchronous>, transform_indices = @transform_2, window_bounds = array<i64: 1, 128>}, {pipeline_mode = #tpu.pipeline_mode<synchronous>, transform_indices = @transform_3, window_bounds = array<i64: 1, 128>}, {pipeline_mode = #tpu.pipeline_mode<synchronous>, transform_indices = @transform_4, window_bounds = array<i64: 128, 128>}, {pipeline_mode = #tpu.pipeline_mode<synchronous>, transform_indices = @transform_5, window_bounds = array<i64: 1, 128>}, {transform_indices = @transform_6, window_bounds = array<i64: 2, 16, 128>}]} {
    %c0 = arith.constant 0 : index
    %c0_0 = arith.constant 0 : index
    %c0_1 = arith.constant 0 : index
    %c0_2 = arith.constant 0 : index
    %0 = vector.load %arg1[%c0, %c0_0, %c0_1, %c0_2] : memref<2x6x6x16xbf16, #tpu.memory_space<vmem>>, vector<2x6x6x16xbf16>
    %1 = vector.extract_strided_slice %0 {offsets = [0, 0, 0, 0], sizes = [2, 4, 4, 16], strides = [1, 1, 1, 1]} : vector<2x6x6x16xbf16> to vector<2x4x4x16xbf16>
    %2 = vector.extract_strided_slice %0 {offsets = [0, 0, 1, 0], sizes = [2, 4, 4, 16], strides = [1, 1, 1, 1]} : vector<2x6x6x16xbf16> to vector<2x4x4x16xbf16>
    %3 = vector.extract_strided_slice %0 {offsets = [0, 0, 2, 0], sizes = [2, 4, 4, 16], strides = [1, 1, 1, 1]} : vector<2x6x6x16xbf16> to vector<2x4x4x16xbf16>
    %4 = vector.extract_strided_slice %0 {offsets = [0, 1, 0, 0], sizes = [2, 4, 4, 16], strides = [1, 1, 1, 1]} : vector<2x6x6x16xbf16> to vector<2x4x4x16xbf16>
    %5 = vector.extract_strided_slice %0 {offsets = [0, 1, 1, 0], sizes = [2, 4, 4, 16], strides = [1, 1, 1, 1]} : vector<2x6x6x16xbf16> to vector<2x4x4x16xbf16>
    %6 = vector.extract_strided_slice %0 {offsets = [0, 1, 2, 0], sizes = [2, 4, 4, 16], strides = [1, 1, 1, 1]} : vector<2x6x6x16xbf16> to vector<2x4x4x16xbf16>
    %7 = vector.extract_strided_slice %0 {offsets = [0, 2, 0, 0], sizes = [2, 4, 4, 16], strides = [1, 1, 1, 1]} : vector<2x6x6x16xbf16> to vector<2x4x4x16xbf16>
    %8 = vector.extract_strided_slice %0 {offsets = [0, 2, 1, 0], sizes = [2, 4, 4, 16], strides = [1, 1, 1, 1]} : vector<2x6x6x16xbf16> to vector<2x4x4x16xbf16>
    %9 = vector.extract_strided_slice %0 {offsets = [0, 2, 2, 0], sizes = [2, 4, 4, 16], strides = [1, 1, 1, 1]} : vector<2x6x6x16xbf16> to vector<2x4x4x16xbf16>
    %10 = tpu.concatenate %1, %2, %3, %4, %5, %6, %7, %8, %9 in 3 : vector<2x4x4x16xbf16>, vector<2x4x4x16xbf16>, vector<2x4x4x16xbf16>, vector<2x4x4x16xbf16>, vector<2x4x4x16xbf16>, vector<2x4x4x16xbf16>, vector<2x4x4x16xbf16>, vector<2x4x4x16xbf16>, vector<2x4x4x16xbf16> -> vector<2x4x4x144xbf16>
    %11 = vector.shape_cast %10 : vector<2x4x4x144xbf16> to vector<32x144xbf16>
    %c0_3 = arith.constant 0 : index
    %c0_4 = arith.constant 0 : index
    %12 = vector.load %arg2[%c0_3, %c0_4] : memref<144x128xbf16, #tpu.memory_space<vmem>>, vector<144x128xbf16>
    %cst = arith.constant dense<0.000000e+00> : vector<32x128xf32>
    %13 = tpu.matmul %11, %12, %cst {dimension_numbers = #tpu.dot_dimension_numbers<[1], [0], [0], [1], [0, 0, 1, 1], [], []>} : vector<32x144xbf16>, vector<144x128xbf16>, vector<32x128xf32> -> vector<32x128xf32>
    %c0_5 = arith.constant 0 : index
    %c0_6 = arith.constant 0 : index
    %14 = vector.load %arg3[%c0_5, %c0_6] : memref<1x128xf32, #tpu.memory_space<vmem>>, vector<1x128xf32>
    %15 = vector.broadcast %14 : vector<1x128xf32> to vector<32x128xf32>
    %16 = arith.mulf %13, %15 : vector<32x128xf32>
    %c0_7 = arith.constant 0 : index
    %c0_8 = arith.constant 0 : index
    %17 = vector.load %arg4[%c0_7, %c0_8] : memref<1x128xf32, #tpu.memory_space<vmem>>, vector<1x128xf32>
    %18 = vector.broadcast %17 : vector<1x128xf32> to vector<32x128xf32>
    %19 = arith.addf %16, %18 : vector<32x128xf32>
    %cst_9 = arith.constant 0.000000e+00 : f32
    %20 = vector.broadcast %cst_9 : f32 to vector<32x128xf32>
    %21 = arith.maximumf %19, %20 : vector<32x128xf32>
    %22 = vector.shape_cast %21 : vector<32x128xf32> to vector<2x16x128xf32>
    %cst_10 = arith.constant dense<0.000000e+00> : vector<2x128xf32>
    %23 = vector.multi_reduction <add>, %22, %cst_10 [1] : vector<2x16x128xf32> to vector<2x128xf32>
    %cst_11 = arith.constant 6.250000e-02 : f32
    %24 = vector.broadcast %cst_11 : f32 to vector<2x128xf32>
    %25 = arith.mulf %23, %24 : vector<2x128xf32>
    %26 = arith.truncf %25 : vector<2x128xf32> to vector<2x128xbf16>
    %c0_12 = arith.constant 0 : index
    %c0_13 = arith.constant 0 : index
    %27 = vector.load %arg5[%c0_12, %c0_13] : memref<128x128xbf16, #tpu.memory_space<vmem>>, vector<128x128xbf16>
    %cst_14 = arith.constant dense<0.000000e+00> : vector<2x128xf32>
    %28 = tpu.matmul %26, %27, %cst_14 {dimension_numbers = #tpu.dot_dimension_numbers<[1], [0], [0], [1], [0, 0, 1, 1], [], []>} : vector<2x128xbf16>, vector<128x128xbf16>, vector<2x128xf32> -> vector<2x128xf32>
    %c0_15 = arith.constant 0 : index
    %c0_16 = arith.constant 0 : index
    %29 = vector.load %arg6[%c0_15, %c0_16] : memref<1x128xf32, #tpu.memory_space<vmem>>, vector<1x128xf32>
    %30 = vector.broadcast %29 : vector<1x128xf32> to vector<2x128xf32>
    %31 = arith.addf %28, %30 : vector<2x128xf32>
    %cst_17 = arith.constant 3.000000e+00 : f32
    %32 = vector.broadcast %cst_17 : f32 to vector<2x128xf32>
    %33 = arith.addf %31, %32 : vector<2x128xf32>
    %cst_18 = arith.constant 0.000000e+00 : f32
    %cst_19 = arith.constant 6.000000e+00 : f32
    %34 = vector.broadcast %cst_18 : f32 to vector<2x128xf32>
    %35 = arith.maximumf %34, %33 : vector<2x128xf32>
    %36 = vector.broadcast %cst_19 : f32 to vector<2x128xf32>
    %37 = arith.minimumf %36, %35 : vector<2x128xf32>
    %cst_20 = arith.constant 0.166666672 : f32
    %38 = vector.broadcast %cst_20 : f32 to vector<2x128xf32>
    %39 = arith.mulf %37, %38 : vector<2x128xf32>
    %40 = vector.shape_cast %39 : vector<2x128xf32> to vector<2x1x128xf32>
    %41 = vector.broadcast %40 : vector<2x1x128xf32> to vector<2x16x128xf32>
    %42 = arith.mulf %22, %41 : vector<2x16x128xf32>
    %c0_21 = arith.constant 0 : index
    %c0_22 = arith.constant 0 : index
    %c0_23 = arith.constant 0 : index
    %43 = vector.load %arg7[%c0_21, %c0_22, %c0_23] : memref<2x16x128xf32, #tpu.memory_space<vmem>>, vector<2x16x128xf32>
    tpu.vector_store %arg7[%c0_21, %c0_22, %c0_23], %42 {strides = array<i32>} : memref<2x16x128xf32, #tpu.memory_space<vmem>>, vector<2x16x128xf32>,
    return
  }
  func.func @transform_0(%arg0: i32) -> (i32, i32, i32, i32) {
    %c0_i32 = arith.constant 0 : i32
    %c0_i32_0 = arith.constant 0 : i32
    %c0_i32_1 = arith.constant 0 : i32
    %c0_i32_2 = arith.constant 0 : i32
    return %arg0, %c0_i32, %c0_i32_0, %c0_i32_1 : i32, i32, i32, i32
  }
  func.func @transform_1(%arg0: i32) -> (i32, i32) {
    %c0_i32 = arith.constant 0 : i32
    %c0_i32_0 = arith.constant 0 : i32
    %c0_i32_1 = arith.constant 0 : i32
    return %c0_i32, %c0_i32_0 : i32, i32
  }
  func.func @transform_2(%arg0: i32) -> (i32, i32) {
    %c0_i32 = arith.constant 0 : i32
    %c0_i32_0 = arith.constant 0 : i32
    %c0_i32_1 = arith.constant 0 : i32
    return %c0_i32, %c0_i32_0 : i32, i32
  }
  func.func @transform_3(%arg0: i32) -> (i32, i32) {
    %c0_i32 = arith.constant 0 : i32
    %c0_i32_0 = arith.constant 0 : i32
    %c0_i32_1 = arith.constant 0 : i32
    return %c0_i32, %c0_i32_0 : i32, i32
  }
  func.func @transform_4(%arg0: i32) -> (i32, i32) {
    %c0_i32 = arith.constant 0 : i32
    %c0_i32_0 = arith.constant 0 : i32
    %c0_i32_1 = arith.constant 0 : i32
    return %c0_i32, %c0_i32_0 : i32, i32
  }
  func.func @transform_5(%arg0: i32) -> (i32, i32) {
    %c0_i32 = arith.constant 0 : i32
    %c0_i32_0 = arith.constant 0 : i32
    %c0_i32_1 = arith.constant 0 : i32
    return %c0_i32, %c0_i32_0 : i32, i32
  }
  func.func @transform_6(%arg0: i32) -> (i32, i32, i32) {
    %c0_i32 = arith.constant 0 : i32
    %c0_i32_0 = arith.constant 0 : i32
    %c0_i32_1 = arith.constant 0 : i32
    return %arg0, %c0_i32, %c0_i32_0 : i32, i32, i32
  }
}

</mosaic_0001>

<bundles_post_ra>
// kernel: skip_module_apply.5
= control target key start
LH: loop header
LB: loop body
LE: loop exit
PB: predicated region body
PF: predicated region fallthrough
CT: control target
= control target key end

     0   :  { %s3174_s15 = smov 0   ;;  %s3609_s0 = inlined_call_operand.vmem [shape: f32[2,32,32], index: 0, kind: input, shape index: {}]   ;;  %s3610_s1 = inlined_call_operand.vmem [shape: f32[2,4,64], index: 1, kind: output, shape index: {0}]   ;;  %s3611_s2 = inlined_call_operand.vmem [shape: f32[2,4,16], index: 2, kind: output, shape index: {1}]   ;;  %s3612_s3 = inlined_call_operand.vmem [shape: f32[2,4,4], index: 3, kind: output, shape index: {2}]   ;;  %s3613_s4 = inlined_call_operand.vmem [shape: f32[2,4,1], index: 4, kind: output, shape index: {3}]  }
   0x1 LB: > { %s3089_s16 = sadd.s32 4294967295, %s3134_s15   ;;  %p3093_p0 = scmp.ge.s32.totalorder %s3134_s15, 1  ;;  %s3134_s15 = sphi %s3174_s15, %s15_s15  }
   0x2   : > { %p169_p1 = scmp.lt.s32.totalorder %s3134_s15, 3 }
   0x4   : > { %p170_p2 = pnand %p3093_p0, %p169_p1 }
   0x5   : > { %p206_p3 = scmp.lt.s32.totalorder (!%p170_p2), %s3089_s16, 1  ;;  %vm275_vm0 = vcmask (!%p170_p2), 257024   ;;  %vm340_vm1 = vcmask (!%p170_p2), 1041409   ;;  %vm342_vm2 = vcmask (!%p170_p2), 1042434   ;;  %vm344_vm3 = vcmask (!%p170_p2), 1043459   ;;  %s3138_s21 = smov (!%p170_p2), 16  }
   0x6   : > { %173 = sbr.rel (%p170_p2) target bundleno = 1341 (0x53d), region = 24  ;;  %vm346_vm4 = vcmask (!%p170_p2), 1044484   ;;  %vm348_vm5 = vcmask (!%p170_p2), 1045509   ;;  %vm350_vm6 = vcmask (!%p170_p2), 1046534   ;;  %vm352_vm7 = vcmask (!%p170_p2), 1047559   ;;  %s3140_s22 = smov (!%p170_p2), 8  }
   0x7   : > { %vm399_vm8 = vcmask (!%p170_p2), 60416   ;;  %vm1402_vm9 = vcmask (!%p170_p2), 58368   ;;  %s3141_s23 = smov (!%p170_p2), 32   ;;  %s3142_s24 = smov (!%p170_p2), 24   ;;  %vm1298_vm10 = vcmask (!%p170_p2), 64512   ;;  %vm1300_vm11 = vcmask (!%p170_p2), 130048  }
   0x8   : > { %s3143_s25 = smov (!%p170_p2), 40   ;;  %vm1763_vm12 = vcmask (!%p170_p2), 25600   ;;  %vm1302_vm13 = vcmask (!%p170_p2), 195584   ;;  %vm1304_vm14 = vcmask (!%p170_p2), 261120   ;;  %s3144_s26 = smov (!%p170_p2), 48   ;;  %vm2379_vm15 = vcmask (!%p170_p2), 9216  }
   0x9   : > { %s3145_s27 = smov (!%p170_p2), 4   ;;  %s3146_s28 = smov (!%p170_p2), 56  }
   0xa   : > { %s3147_s30 = smov (!%p170_p2), 2   ;;  %s3148_s8 = smov (!%p170_p2), 12  }
   0xd   : > { %s3615_s16 = smov (!%p206_p3, %s3089_s16), 1 }
   0xe   : > { %s3106_s17 = sshll.u32 %s3615_s16, 5  ;;  %s3573_s29 = sshll.u32 %s3615_s16, 2 }
   0xf   : > { %s210_s20 = scalar_lea.vmem %s3609_s0, %s3106_s17  ;;  %s214_s7 = scalar_lea.vmem %s3610_s1, %s3573_s29 }
  0x10   : > { %v227_v0 = vld [vmem:[%s210_s20] sm:$0xff]  ;;  %v228_v1 = vld [vmem:[%s210_s20 + $0x8] sm:$0xff]  ;;  %v229_v2 = vld [vmem:[%s210_s20 + $0x10] sm:$0xff]  ;;  %s222_s11 = scalar_lea.vmem %s3612_s3, %s3573_s29  ;;  %s218_s14 = scalar_lea.vmem %s3611_s2, %s3573_s29 }
  0x11   : > { %v230_v3 = vld [vmem:[%s210_s20 + $0x18] sm:$0xff]  ;;  %v243_v4 = vsub.f32 0.25, %v227_v0  ;;  %v244_v5 = vsub.f32 0.25, %v228_v1  ;;  %v245_v6 = vsub.f32 0.25, %v229_v2  ;;  %v3100_v7 = vadd.f32 -0.75, %v227_v0  ;;  %s226_s18 = scalar_lea.vmem %s3613_s4, %s3573_s29 }
  0x12   : > { %v246_v8 = vsub.f32 0.25, %v230_v3  ;;  %v3101_v9 = vadd.f32 -0.75, %v228_v1  ;;  %v3102_v10 = vadd.f32 -0.75, %v229_v2  ;;  %v3103_v11 = vadd.f32 -0.75, %v230_v3 }
  0x13   : > { %v247_v12 = vmax.f32 %v243_v4, 0.0  ;;  %v248_v13 = vmax.f32 %v244_v5, 0.0  ;;  %v249_v14 = vmax.f32 %v245_v6, 0.0  ;;  %v235_v15 = vmax.f32 %v3100_v7, 0.0 }
  0x14   : > { %v250_v16 = vmax.f32 %v246_v8, 0.0  ;;  %v236_v17 = vmax.f32 %v3101_v9, 0.0  ;;  %v237_v18 = vmax.f32 %v3102_v10, 0.0  ;;  %v238_v19 = vmax.f32 %v3103_v11, 0.0 }
  0x15   : > { %v3188_v20 = vmul.f32 4.0, %v247_v12  ;;  %v3190_v21 = vmul.f32 4.0, %v248_v13  ;;  %v3192_v22 = vmul.f32 4.0, %v249_v14  ;;  %v3194_v23 = vmul.f32 4.0, %v235_v15 }
  0x16   : > { %v3196_v24 = vmul.f32 4.0, %v250_v16  ;;  %v3198_v25 = vmul.f32 4.0, %v236_v17  ;;  %v3200_v26 = vmul.f32 4.0, %v237_v18  ;;  %v3202_v27 = vmul.f32 4.0, %v238_v19 }
  0x17   : > { %v740_v28 = vcombine.high %v3188_v20, %v3188_v20  ;;  %v741_v29 = vcombine.high %v3190_v21, %v3190_v21  ;;  %v742_v30 = vcombine.high %v3192_v22, %v3192_v22  ;;  %v748_v31 = vsel %vm275_vm0, %v3188_v20, -inf }
  0x18   : > { %v743_v32 = vcombine.high %v3196_v24, %v3196_v24  ;;  %v749_v33 = vrot.slane %v748_v31, 4  ;;  %v762_v34 = vsel %vm275_vm0, %v3190_v21, -inf  ;;  %v776_v35 = vsel %vm275_vm0, %v3192_v22, -inf }
  0x19   : > { %v755_v36 = vsel %vm275_vm0, %v740_v28, -inf  ;;  %v763_v37 = vrot.slane %v762_v34, 4  ;;  %v769_v38 = vsel %vm275_vm0, %v741_v29, -inf  ;;  %v777_v39 = vrot.slane %v776_v35, 4 }
  0x1a   : > { %v750_v40 = vmax.f32 %v748_v31, %v749_v33  ;;  %v756_v41 = vrot.slane %v755_v36, 4  ;;  %v770_v42 = vrot.slane %v769_v38, 4  ;;  %v783_v43 = vsel %vm275_vm0, %v742_v30, -inf }
  0x1b   : > { %v764_v44 = vmax.f32 %v762_v34, %v763_v37  ;;  %v778_v45 = vmax.f32 %v776_v35, %v777_v39  ;;  %v784_v46 = vrot.slane %v783_v43, 4  ;;  %v790_v47 = vsel %vm275_vm0, %v3196_v24, -inf }
  0x1c   : > { %v751_v48 = vrot.slane %v750_v40, 2  ;;  %v757_v49 = vmax.f32 %v755_v36, %v756_v41  ;;  %v771_v50 = vmax.f32 %v769_v38, %v770_v42  ;;  %v791_v51 = vrot.slane %v790_v47, 4 }
  0x1d   : > { %v765_v52 = vrot.slane %v764_v44, 2  ;;  %v779_v53 = vrot.slane %v778_v45, 2  ;;  %v785_v54 = vmax.f32 %v783_v43, %v784_v46  ;;  %v797_v55 = vsel %vm275_vm0, %v743_v32, -inf }
  0x1e   : > { %v752_v56 = vmax.f32 %v750_v40, %v751_v48  ;;  %v758_v57 = vrot.slane %v757_v49, 2  ;;  %v772_v58 = vrot.slane %v771_v50, 2  ;;  %v792_v59 = vmax.f32 %v790_v47, %v791_v51 }
  0x1f   : > { %v766_v60 = vmax.f32 %v764_v44, %v765_v52  ;;  %v780_v61 = vmax.f32 %v778_v45, %v779_v53  ;;  %v786_v62 = vrot.slane %v785_v54, 2  ;;  %v798_v63 = vrot.slane %v797_v55, 4 }
  0x20   : > { %v753_v0 = vrot.slane %v752_v56, 1  ;;  %v759_v1 = vmax.f32 %v757_v49, %v758_v57  ;;  %v773_v2 = vmax.f32 %v771_v50, %v772_v58  ;;  %v793_v3 = vrot.slane %v792_v59, 2 }
  0x21   : > { %v767_v4 = vrot.slane %v766_v60, 1  ;;  %v781_v5 = vrot.slane %v780_v61, 1  ;;  %v787_v6 = vmax.f32 %v785_v54, %v786_v62  ;;  %v799_v7 = vmax.f32 %v797_v55, %v798_v63 }
  0x22   : > { %v754_v8 = vmax.f32 %v752_v56, %v753_v0  ;;  %v760_v9 = vrot.slane %v759_v1, 1  ;;  %v774_v10 = vrot.slane %v773_v2, 1  ;;  %v794_v11 = vmax.f32 %v792_v59, %v793_v3 }
  0x23   : > { %v768_v12 = vmax.f32 %v766_v60, %v767_v4  ;;  %v782_v13 = vmax.f32 %v780_v61, %v781_v5  ;;  %v788_v14 = vrot.slane %v787_v6, 1  ;;  %v800_v15 = vrot.slane %v799_v7, 2 }
  0x24   : > { %v761_v16 = vmax.f32 %v759_v1, %v760_v9  ;;  %v775_v17 = vmax.f32 %v773_v2, %v774_v10  ;;  %v795_v18 = vrot.slane %v794_v11, 1  ;;  %v267_v19 = vcombine.high %v3194_v23, %v3194_v23 }
  0x25   : > { %v789_v28 = vmax.f32 %v787_v6, %v788_v14  ;;  %v801_v29 = vmax.f32 %v799_v7, %v800_v15  ;;  %v268_v30 = vcombine.high %v3198_v25, %v3198_v25  ;;  %v269_v31 = vcombine.high %v3200_v26, %v3200_v26 }
  0x26   : > { %v796_v32 = vmax.f32 %v794_v11, %v795_v18  ;;  %v812_v33 = vsel %vm340_vm1, %v761_v16, %v754_v8  ;;  %v270_v34 = vcombine.high %v3202_v27, %v3202_v27  ;;  %v276_v35 = vsel %vm275_vm0, %v3194_v23, -inf }
  0x27   : > { %v802_v36 = vrot.slane %v801_v29, 1  ;;  %v813_v37 = vsel %vm342_vm2, %v768_v12, %v812_v33  ;;  %v277_v38 = vrot.slane %v276_v35, 4  ;;  %v283_v39 = vsel %vm275_vm0, %v267_v19, -inf }
  0x28   : > { %v814_v40 = vsel %vm344_vm3, %v775_v17, %v813_v37  ;;  %v284_v41 = vrot.slane %v283_v39, 4  ;;  %v290_v42 = vsel %vm275_vm0, %v3198_v25, -inf  ;;  %v297_v43 = vsel %vm275_vm0, %v268_v30, -inf }
  0x29   : > { %v803_v44 = vmax.f32 %v801_v29, %v802_v36  ;;  %v815_v45 = vsel %vm346_vm4, %v782_v13, %v814_v40  ;;  %v278_v46 = vmax.f32 %v276_v35, %v277_v38  ;;  %v291_v47 = vrot.slane %v290_v42, 4 }
  0x2a   : > { %v816_v48 = vsel %vm348_vm5, %v789_v28, %v815_v45  ;;  %v285_v49 = vmax.f32 %v283_v39, %v284_v41  ;;  %v298_v50 = vrot.slane %v297_v43, 4  ;;  %v304_v51 = vsel %vm275_vm0, %v3200_v26, -inf }
  0x2b   : > { %v817_v52 = vsel %vm350_vm6, %v796_v32, %v816_v48  ;;  %v279_v53 = vrot.slane %v278_v46, 2  ;;  %v292_v54 = vmax.f32 %v290_v42, %v291_v47  ;;  %v305_v55 = vrot.slane %v304_v51, 4 }
  0x2c   : > { %v818_v56 = vsel %vm352_vm7, %v803_v44, %v817_v52  ;;  %v286_v57 = vrot.slane %v285_v49, 2  ;;  %v299_v58 = vmax.f32 %v297_v43, %v298_v50  ;;  %v311_v59 = vsel %vm275_vm0, %v269_v31, -inf }
  0x2d   : > { %820 = vxpose.xlu1.b32.start.end [1/1] (short) (narrow) %v818_v56, 32  ;;  %v280_v60 = vmax.f32 %v278_v46, %v279_v53  ;;  %v293_v61 = vrot.slane %v292_v54, 2  ;;  %v306_v62 = vmax.f32 %v304_v51, %v305_v55  ;;  %v312_v63 = vrot.slane %v311_v59, 4 }
  0x2e   : > { %v287_v0 = vmax.f32 %v285_v49, %v286_v57  ;;  %v300_v1 = vrot.slane %v299_v58, 2  ;;  %v318_v2 = vsel %vm275_vm0, %v3202_v27, -inf  ;;  %v325_v3 = vsel %vm275_vm0, %v270_v34, -inf }
  0x2f   : > { %v281_v4 = vrot.slane %v280_v60, 1  ;;  %v294_v5 = vmax.f32 %v292_v54, %v293_v61  ;;  %v307_v6 = vrot.slane %v306_v62, 2  ;;  %v313_v7 = vmax.f32 %v311_v59, %v312_v63 }
  0x30   : > { %v288_v8 = vrot.slane %v287_v0, 1  ;;  %v301_v9 = vmax.f32 %v299_v58, %v300_v1  ;;  %v319_v10 = vrot.slane %v318_v2, 4  ;;  %v326_v11 = vrot.slane %v325_v3, 4 }
  0x31   : > { %v282_v12 = vmax.f32 %v280_v60, %v281_v4  ;;  %v295_v13 = vrot.slane %v294_v5, 1  ;;  %v308_v14 = vmax.f32 %v306_v62, %v307_v6  ;;  %v314_v15 = vrot.slane %v313_v7, 2 }
  0x32   : > { %v289_v16 = vmax.f32 %v287_v0, %v288_v8  ;;  %v302_v17 = vrot.slane %v301_v9, 1  ;;  %v320_v18 = vmax.f32 %v318_v2, %v319_v10  ;;  %v327_v19 = vmax.f32 %v325_v3, %v326_v11 }
  0x33   : > { %v296_v28 = vmax.f32 %v294_v5, %v295_v13  ;;  %v309_v29 = vrot.slane %v308_v14, 1  ;;  %v315_v30 = vmax.f32 %v313_v7, %v314_v15  ;;  %v259_v31 = vsub.f32 1.0, %v3188_v20 }
  0x34   : > { %v303_v32 = vmax.f32 %v301_v9, %v302_v17  ;;  %v321_v33 = vrot.slane %v320_v18, 2  ;;  %v328_v34 = vrot.slane %v327_v19, 2  ;;  %v341_v35 = vsel %vm340_vm1, %v289_v16, %v282_v12 }
  0x35   : > { %v310_v36 = vmax.f32 %v308_v14, %v309_v29  ;;  %v316_v37 = vrot.slane %v315_v30, 1  ;;  %v343_v38 = vsel %vm342_vm2, %v296_v28, %v341_v35  ;;  %v260_v39 = vsub.f32 1.0, %v3190_v21 }
  0x36   : > { %v322_v40 = vmax.f32 %v320_v18, %v321_v33  ;;  %v329_v41 = vmax.f32 %v327_v19, %v328_v34  ;;  %v345_v42 = vsel %vm344_vm3, %v303_v32, %v343_v38  ;;  %v261_v43 = vsub.f32 1.0, %v3192_v22 }
  0x37   : > { %v317_v44 = vmax.f32 %v315_v30, %v316_v37  ;;  %v347_v20 = vsel %vm346_vm4, %v310_v36, %v345_v42  ;;  %v262_v45 = vsub.f32 1.0, %v3196_v24  ;;  %v972_v46 = vcombine.high %v259_v31, %v259_v31 }
  0x38   : > { %v323_v47 = vrot.slane %v322_v40, 1  ;;  %v330_v48 = vrot.slane %v329_v41, 1  ;;  %v973_v49 = vcombine.high %v260_v39, %v260_v39  ;;  %v974_v50 = vcombine.high %v261_v43, %v261_v43 }
  0x39   : > { %v349_v51 = vsel %vm348_vm5, %v317_v44, %v347_v20  ;;  %v975_v52 = vcombine.high %v262_v45, %v262_v45  ;;  %v980_v21 = vsel %vm275_vm0, %v259_v31, -inf  ;;  %v987_v53 = vsel %vm275_vm0, %v972_v46, -inf }
  0x3a   : > { %v324_v54 = vmax.f32 %v322_v40, %v323_v47  ;;  %v331_v55 = vmax.f32 %v329_v41, %v330_v48  ;;  %v981_v22 = vrot.slane %v980_v21, 4  ;;  %v988_v56 = vrot.slane %v987_v53, 4 }
  0x3b   : > { %v994_v57 = vsel %vm275_vm0, %v260_v39, -inf  ;;  %v1001_v24 = vsel %vm275_vm0, %v973_v49, -inf  ;;  %v1008_v58 = vsel %vm275_vm0, %v261_v43, -inf  ;;  %v1015_v59 = vsel %vm275_vm0, %v974_v50, -inf }
  0x3c   : > { %v351_v60 = vsel %vm350_vm6, %v324_v54, %v349_v51  ;;  %v982_v61 = vmax.f32 %v980_v21, %v981_v22  ;;  %v989_v62 = vmax.f32 %v987_v53, %v988_v56  ;;  %v995_v63 = vrot.slane %v994_v57, 4 }
  0x3d   : > { %v353_v0 = vsel %vm352_vm7, %v331_v55, %v351_v60  ;;  %v1002_v1 = vrot.slane %v1001_v24, 4  ;;  %v1009_v2 = vrot.slane %v1008_v58, 4  ;;  %v1016_v3 = vrot.slane %v1015_v59, 4 }
  0x3e   : > { %355 = vxpose.xlu0.b32.start.end [1/1] (short) (narrow) %v353_v0, 32  ;;  %v983_v4 = vrot.slane %v982_v61, 2  ;;  %v990_v5 = vrot.slane %v989_v62, 2  ;;  %v996_v6 = vmax.f32 %v994_v57, %v995_v63  ;;  %v1022_v7 = vsel %vm275_vm0, %v262_v45, -inf }
  0x3f   : > { %v1003_v8 = vmax.f32 %v1001_v24, %v1002_v1  ;;  %v1010_v9 = vmax.f32 %v1008_v58, %v1009_v2  ;;  %v1017_v10 = vmax.f32 %v1015_v59, %v1016_v3  ;;  %v1023_v11 = vrot.slane %v1022_v7, 4 }
  0x40   : > { %v984_v12 = vmax.f32 %v982_v61, %v983_v4  ;;  %v991_v13 = vmax.f32 %v989_v62, %v990_v5  ;;  %v997_v14 = vrot.slane %v996_v6, 2  ;;  %v1029_v15 = vsel %vm275_vm0, %v975_v52, -inf }
  0x41   : > { %v1004_v16 = vrot.slane %v1003_v8, 2  ;;  %v1011_v17 = vrot.slane %v1010_v9, 2  ;;  %v1018_v18 = vrot.slane %v1017_v10, 2  ;;  %v1024_v19 = vmax.f32 %v1022_v7, %v1023_v11 }
  0x42   : > { %v985_v28 = vrot.slane %v984_v12, 1  ;;  %v992_v29 = vrot.slane %v991_v13, 1  ;;  %v998_v30 = vmax.f32 %v996_v6, %v997_v14  ;;  %v1030_v31 = vrot.slane %v1029_v15, 4 }
  0x43   : > { %v1005_v32 = vmax.f32 %v1003_v8, %v1004_v16  ;;  %v1012_v33 = vmax.f32 %v1010_v9, %v1011_v17  ;;  %v1019_v34 = vmax.f32 %v1017_v10, %v1018_v18  ;;  %v1025_v35 = vrot.slane %v1024_v19, 2 }
  0x44   : > { %v986_v36 = vmax.f32 %v984_v12, %v985_v28  ;;  %v993_v37 = vmax.f32 %v991_v13, %v992_v29  ;;  %v999_v38 = vrot.slane %v998_v30, 1  ;;  %v1031_v39 = vmax.f32 %v1029_v15, %v1030_v31 }
  0x45   : > { %v1006_v40 = vrot.slane %v1005_v32, 1  ;;  %v1013_v41 = vrot.slane %v1012_v33, 1  ;;  %v1020_v42 = vrot.slane %v1019_v34, 1  ;;  %v1026_v43 = vmax.f32 %v1024_v19, %v1025_v35 }
  0x46   : > { %v1000_v44 = vmax.f32 %v998_v30, %v999_v38  ;;  %v1032_v20 = vrot.slane %v1031_v39, 2  ;;  %v1044_v45 = vsel %vm340_vm1, %v993_v37, %v986_v36  ;;  %v255_v46 = vsub.f32 1.0, %v3194_v23 }
  0x47   : > { %v1007_v47 = vmax.f32 %v1005_v32, %v1006_v40  ;;  %v1014_v48 = vmax.f32 %v1012_v33, %v1013_v41  ;;  %v1021_v49 = vmax.f32 %v1019_v34, %v1020_v42  ;;  %v1027_v50 = vrot.slane %v1026_v43, 1 }
  0x48   : > { %v1033_v51 = vmax.f32 %v1031_v39, %v1032_v20  ;;  %v1045_v52 = vsel %vm342_vm2, %v1000_v44, %v1044_v45  ;;  %v256_v21 = vsub.f32 1.0, %v3198_v25  ;;  %v257_v53 = vsub.f32 1.0, %v3200_v26 }
  0x49   : > { %v1028_v54 = vmax.f32 %v1026_v43, %v1027_v50  ;;  %v1046_v55 = vsel %vm344_vm3, %v1007_v47, %v1045_v52  ;;  %v258_v22 = vsub.f32 1.0, %v3202_v27  ;;  %v508_v56 = vcombine.high %v255_v46, %v255_v46 }
  0x4a   : > { %v1034_v57 = vrot.slane %v1033_v51, 1  ;;  %v1047_v23 = vsel %vm346_vm4, %v1014_v48, %v1046_v55  ;;  %v509_v24 = vcombine.high %v256_v21, %v256_v21  ;;  %v510_v58 = vcombine.high %v257_v53, %v257_v53 }
  0x4b   : > { %v1048_v59 = vsel %vm348_vm5, %v1021_v49, %v1047_v23  ;;  %v511_v60 = vcombine.high %v258_v22, %v258_v22  ;;  %v516_v61 = vsel %vm275_vm0, %v255_v46, -inf  ;;  %v523_v25 = vsel %vm275_vm0, %v508_v56, -inf }
  0x4c   : > { %v1035_v62 = vmax.f32 %v1033_v51, %v1034_v57  ;;  %v1049_v26 = vsel %vm350_vm6, %v1028_v54, %v1048_v59  ;;  %v517_v63 = vrot.slane %v516_v61, 4  ;;  %v524_v0 = vrot.slane %v523_v25, 4 }
  0x4d   : > { %v530_v27 = vsel %vm275_vm0, %v256_v21, -inf  ;;  %v537_v1 = vsel %vm275_vm0, %v509_v24, -inf  ;;  %v544_v2 = vsel %vm275_vm0, %v257_v53, -inf  ;;  %v551_v3 = vsel %vm275_vm0, %v510_v58, -inf }
  0x4e   : > { %v1050_v4 = vsel %vm352_vm7, %v1035_v62, %v1049_v26  ;;  %v518_v5 = vmax.f32 %v516_v61, %v517_v63  ;;  %v525_v6 = vmax.f32 %v523_v25, %v524_v0  ;;  %v531_v7 = vrot.slane %v530_v27, 4 }
  0x4f   : > { %1052 = vxpose.xlu0.b32.start.end [1/1] (short) (narrow) %v1050_v4, 32  ;;  %v538_v8 = vrot.slane %v537_v1, 4  ;;  %v545_v9 = vrot.slane %v544_v2, 4  ;;  %v552_v10 = vrot.slane %v551_v3, 4  ;;  %v558_v11 = vsel %vm275_vm0, %v258_v22, -inf }
  0x50   : > { %v519_v12 = vrot.slane %v518_v5, 2  ;;  %v526_v13 = vrot.slane %v525_v6, 2  ;;  %v532_v14 = vmax.f32 %v530_v27, %v531_v7  ;;  %v559_v15 = vrot.slane %v558_v11, 4 }
  0x51   : > { %v539_v16 = vmax.f32 %v537_v1, %v538_v8  ;;  %v546_v17 = vmax.f32 %v544_v2, %v545_v9  ;;  %v553_v18 = vmax.f32 %v551_v3, %v552_v10  ;;  %v565_v19 = vsel %vm275_vm0, %v511_v60, -inf }
  0x52   : > { %v520_v28 = vmax.f32 %v518_v5, %v519_v12  ;;  %v527_v29 = vmax.f32 %v525_v6, %v526_v13  ;;  %v533_v30 = vrot.slane %v532_v14, 2  ;;  %v560_v31 = vmax.f32 %v558_v11, %v559_v15 }
  0x53   : > { %v540_v32 = vrot.slane %v539_v16, 2  ;;  %v547_v33 = vrot.slane %v546_v17, 2  ;;  %v554_v34 = vrot.slane %v553_v18, 2  ;;  %v566_v35 = vrot.slane %v565_v19, 4 }
  0x54   : > { %v521_v36 = vrot.slane %v520_v28, 1  ;;  %v528_v37 = vrot.slane %v527_v29, 1  ;;  %v534_v38 = vmax.f32 %v532_v14, %v533_v30  ;;  %v561_v39 = vrot.slane %v560_v31, 2 }
  0x55   : > { %v541_v40 = vmax.f32 %v539_v16, %v540_v32  ;;  %v548_v41 = vmax.f32 %v546_v17, %v547_v33  ;;  %v555_v42 = vmax.f32 %v553_v18, %v554_v34  ;;  %v567_v43 = vmax.f32 %v565_v19, %v566_v35 }
  0x56   : > { %v522_v44 = vmax.f32 %v520_v28, %v521_v36  ;;  %v529_v20 = vmax.f32 %v527_v29, %v528_v37  ;;  %v535_v45 = vrot.slane %v534_v38, 1  ;;  %v562_v46 = vmax.f32 %v560_v31, %v561_v39 }
  0x57   : > { %v542_v47 = vrot.slane %v541_v40, 1  ;;  %v549_v48 = vrot.slane %v548_v41, 1  ;;  %v556_v49 = vrot.slane %v555_v42, 1  ;;  %v568_v50 = vrot.slane %v567_v43, 2 }
  0x58   : > { %v536_v51 = vmax.f32 %v534_v38, %v535_v45  ;;  %v563_v52 = vrot.slane %v562_v46, 1  ;;  %v580_v21 = vsel %vm340_vm1, %v529_v20, %v522_v44  ;;  %vm1306_vm0 = vcmask 326656  }
  0x59   : > { %v543_v53 = vmax.f32 %v541_v40, %v542_v47  ;;  %v550_v54 = vmax.f32 %v548_v41, %v549_v48  ;;  %v557_v55 = vmax.f32 %v555_v42, %v556_v49  ;;  %v569_v22 = vmax.f32 %v567_v43, %v568_v50 }
  0x5a   : > { %v564_v56 = vmax.f32 %v562_v46, %v563_v52  ;;  %v581_v57 = vsel %vm342_vm2, %v536_v51, %v580_v21 }
  0x5b   : > { %v570_v23 = vrot.slane %v569_v22, 1  ;;  %v582_v24 = vsel %vm344_vm3, %v543_v53, %v581_v57 }
  0x5c   : > { %v583_v58 = vsel %vm346_vm4, %v550_v54, %v582_v24 }
  0x5d   : > { %v571_v59 = vmax.f32 %v569_v22, %v570_v23  ;;  %v584_v60 = vsel %vm348_vm5, %v557_v55, %v583_v58 }
  0x5e   : > { %v585_v61 = vsel %vm350_vm6, %v564_v56, %v584_v60 }
  0x5f   : > { %v586_v25 = vsel %vm352_vm7, %v571_v59, %v585_v61 }
  0x60   : > { %588 = vxpose.xlu1.b32.start.end [1/1] (short) (narrow) %v586_v25, 32 }
  0xad   : > { %v836_v62 = vpop.trf.xlu1 }
  0xae   : > { %v856_v26 = vcombine.high %v836_v62, %v836_v62  ;;  %v864_v63 = vsel %vm399_vm8, %v836_v62, -inf }
  0xaf   : > { %v865_v0 = vrot.slane %v864_v63, 4 }
  0xb0   : > { %v871_v27 = vsel %vm399_vm8, %v856_v26, -inf }
  0xb1   : > { %v866_v1 = vmax.f32 %v864_v63, %v865_v0  ;;  %v872_v2 = vrot.slane %v871_v27, 4  ;;  %v837_v3 = vpop.trf.xlu1 }
  0xb2   : > { %v857_v4 = vcombine.high %v837_v3, %v837_v3  ;;  %v878_v5 = vsel %vm399_vm8, %v837_v3, -inf }
  0xb3   : > { %v867_v6 = vrot.slane %v866_v1, 2  ;;  %v873_v7 = vmax.f32 %v871_v27, %v872_v2  ;;  %v879_v8 = vrot.slane %v878_v5, 4 }
  0xb4   : > { %v885_v9 = vsel %vm399_vm8, %v857_v4, -inf }
  0xb5   : > { %v868_v10 = vmax.f32 %v866_v1, %v867_v6  ;;  %v874_v11 = vrot.slane %v873_v7, 2  ;;  %v880_v12 = vmax.f32 %v878_v5, %v879_v8  ;;  %v886_v13 = vrot.slane %v885_v9, 4  ;;  %v838_v14 = vpop.trf.xlu1 }
  0xb6   : > { %v858_v15 = vcombine.high %v838_v14, %v838_v14  ;;  %v892_v16 = vsel %vm399_vm8, %v838_v14, -inf }
  0xb7   : > { %v869_v17 = vrot.slane %v868_v10, 1  ;;  %v875_v18 = vmax.f32 %v873_v7, %v874_v11  ;;  %v881_v19 = vrot.slane %v880_v12, 2  ;;  %v887_v28 = vmax.f32 %v885_v9, %v886_v13 }
  0xb8   : > { %v893_v29 = vrot.slane %v892_v16, 4  ;;  %v899_v30 = vsel %vm399_vm8, %v858_v15, -inf }
  0xb9   : > { %v870_v31 = vmax.f32 %v868_v10, %v869_v17  ;;  %v876_v32 = vrot.slane %v875_v18, 1  ;;  %v882_v33 = vmax.f32 %v880_v12, %v881_v19  ;;  %v888_v34 = vrot.slane %v887_v28, 2  ;;  %v839_v35 = vpop.trf.xlu1 }
  0xba   : > { %v894_v36 = vmax.f32 %v892_v16, %v893_v29  ;;  %v900_v37 = vrot.slane %v899_v30, 4  ;;  %v859_v38 = vcombine.high %v839_v35, %v839_v35  ;;  %v906_v39 = vsel %vm399_vm8, %v839_v35, -inf }
  0xbb   : > { %v877_v40 = vmax.f32 %v875_v18, %v876_v32  ;;  %v883_v41 = vrot.slane %v882_v33, 1  ;;  %v889_v42 = vmax.f32 %v887_v28, %v888_v34  ;;  %v907_v43 = vrot.slane %v906_v39, 4 }
  0xbc   : > { %v895_v44 = vrot.slane %v894_v36, 2  ;;  %v901_v20 = vmax.f32 %v899_v30, %v900_v37  ;;  %v913_v45 = vsel %vm399_vm8, %v859_v38, -inf }
  0xbd   : > { %v928_v46 = vsel %vm340_vm1, %v877_v40, %v870_v31  ;;  %v884_v47 = vmax.f32 %v882_v33, %v883_v41  ;;  %v890_v48 = vrot.slane %v889_v42, 1  ;;  %v908_v49 = vmax.f32 %v906_v39, %v907_v43 }
  0xbe   : > { %v371_v50 = vpop.trf.xlu0  ;;  %v896_v51 = vmax.f32 %v894_v36, %v895_v44  ;;  %v902_v52 = vrot.slane %v901_v20, 2  ;;  %v914_v21 = vrot.slane %v913_v45, 4 }
  0xbf   : > { %v391_v53 = vcombine.high %v371_v50, %v371_v50  ;;  %v400_v54 = vsel %vm399_vm8, %v371_v50, -inf  ;;  %v891_v55 = vmax.f32 %v889_v42, %v890_v48  ;;  %v929_v22 = vsel %vm342_vm2, %v884_v47, %v928_v46 }
  0xc0   : > { %v401_v56 = vrot.slane %v400_v54, 4  ;;  %v897_v57 = vrot.slane %v896_v51, 1  ;;  %v903_v23 = vmax.f32 %v901_v20, %v902_v52  ;;  %v909_v24 = vrot.slane %v908_v49, 2 }
  0xc1   : > { %v407_v58 = vsel %vm399_vm8, %v391_v53, -inf  ;;  %v915_v59 = vmax.f32 %v913_v45, %v914_v21  ;;  %v930_v60 = vsel %vm344_vm3, %v891_v55, %v929_v22 }
  0xc2   : > { %v402_v61 = vmax.f32 %v400_v54, %v401_v56  ;;  %v408_v25 = vrot.slane %v407_v58, 4  ;;  %v372_v62 = vpop.trf.xlu0  ;;  %v898_v26 = vmax.f32 %v896_v51, %v897_v57  ;;  %v904_v63 = vrot.slane %v903_v23, 1 }
  0xc3   : > { %v392_v0 = vcombine.high %v372_v62, %v372_v62  ;;  %v414_v27 = vsel %vm399_vm8, %v372_v62, -inf  ;;  %v910_v1 = vmax.f32 %v908_v49, %v909_v24  ;;  %v916_v2 = vrot.slane %v915_v59, 2 }
  0xc4   : > { %v403_v3 = vrot.slane %v402_v61, 2  ;;  %v409_v4 = vmax.f32 %v407_v58, %v408_v25  ;;  %v415_v5 = vrot.slane %v414_v27, 4  ;;  %v905_v6 = vmax.f32 %v903_v23, %v904_v63 }
  0xc5   : > { %v421_v7 = vsel %vm399_vm8, %v392_v0, -inf  ;;  %v911_v8 = vrot.slane %v910_v1, 1  ;;  %v917_v9 = vmax.f32 %v915_v59, %v916_v2  ;;  %v931_v10 = vsel %vm346_vm4, %v898_v26, %v930_v60 }
  0xc6   : > { %v404_v11 = vmax.f32 %v402_v61, %v403_v3  ;;  %v410_v12 = vrot.slane %v409_v4, 2  ;;  %v416_v13 = vmax.f32 %v414_v27, %v415_v5  ;;  %v422_v14 = vrot.slane %v421_v7, 4  ;;  %v373_v15 = vpop.trf.xlu0 }
  0xc7   : > { %v393_v16 = vcombine.high %v373_v15, %v373_v15  ;;  %v428_v17 = vsel %vm399_vm8, %v373_v15, -inf  ;;  %v912_v18 = vmax.f32 %v910_v1, %v911_v8  ;;  %v918_v33 = vrot.slane %v917_v9, 1 }
  0xc8   : > { %v405_v19 = vrot.slane %v404_v11, 1  ;;  %v411_v28 = vmax.f32 %v409_v4, %v410_v12  ;;  %v417_v29 = vrot.slane %v416_v13, 2  ;;  %v423_v30 = vmax.f32 %v421_v7, %v422_v14 }
  0xc9   : > { %v429_v31 = vrot.slane %v428_v17, 4  ;;  %v435_v32 = vsel %vm399_vm8, %v393_v16, -inf  ;;  %v932_v34 = vsel %vm348_vm5, %v905_v6, %v931_v10  ;;  %v3317_v50 = vmax.f32 %v917_v9, %v918_v33 }
  0xca   : > { %v406_v35 = vmax.f32 %v404_v11, %v405_v19  ;;  %v412_v36 = vrot.slane %v411_v28, 1  ;;  %v418_v37 = vmax.f32 %v416_v13, %v417_v29  ;;  %v424_v38 = vrot.slane %v423_v30, 2  ;;  %v374_v39 = vpop.trf.xlu0 }
  0xcb   : > { %v430_v40 = vmax.f32 %v428_v17, %v429_v31  ;;  %v436_v41 = vrot.slane %v435_v32, 4  ;;  %v394_v42 = vcombine.high %v374_v39, %v374_v39  ;;  %v442_v43 = vsel %vm399_vm8, %v374_v39, -inf }
  0xcc   : > { %v413_v44 = vmax.f32 %v411_v28, %v412_v36  ;;  %v419_v20 = vrot.slane %v418_v37, 1  ;;  %v425_v45 = vmax.f32 %v423_v30, %v424_v38  ;;  %v443_v46 = vrot.slane %v442_v43, 4 }
  0xcd   : > { %v431_v47 = vrot.slane %v430_v40, 2  ;;  %v437_v48 = vmax.f32 %v435_v32, %v436_v41  ;;  %v449_v49 = vsel %vm399_vm8, %v394_v42, -inf  ;;  %v3321_v57 = vsel %vm350_vm6, %v912_v18, %v932_v34 }
  0xce   : > { %v464_v51 = vsel %vm340_vm1, %v413_v44, %v406_v35  ;;  %v420_v52 = vmax.f32 %v418_v37, %v419_v20  ;;  %v426_v21 = vrot.slane %v425_v45, 1  ;;  %v444_v53 = vmax.f32 %v442_v43, %v443_v46 }
  0xcf   : > { %v432_v54 = vmax.f32 %v430_v40, %v431_v47  ;;  %v438_v55 = vrot.slane %v437_v48, 2  ;;  %v450_v22 = vrot.slane %v449_v49, 4  ;;  %v1068_v56 = vpop.trf.xlu0 }
  0xd0   : > { %v427_v23 = vmax.f32 %v425_v45, %v426_v21  ;;  %v465_v24 = vsel %vm342_vm2, %v420_v52, %v464_v51  ;;  %v445_v58 = vrot.slane %v444_v53, 2  ;;  %v1088_v59 = vcombine.high %v1068_v56, %v1068_v56 }
  0xd1   : > { %v433_v60 = vrot.slane %v432_v54, 1  ;;  %v439_v61 = vmax.f32 %v437_v48, %v438_v55  ;;  %v451_v25 = vmax.f32 %v449_v49, %v450_v22  ;;  %v1096_v62 = vsel %vm399_vm8, %v1068_v56, -inf }
  0xd2   : > { %v446_v26 = vmax.f32 %v444_v53, %v445_v58  ;;  %v1097_v63 = vrot.slane %v1096_v62, 4  ;;  %v1103_v0 = vsel %vm399_vm8, %v1088_v59, -inf  ;;  %v466_v27 = vsel %vm344_vm3, %v427_v23, %v465_v24 }
  0xd3   : > { %v434_v1 = vmax.f32 %v432_v54, %v433_v60  ;;  %v440_v2 = vrot.slane %v439_v61, 1  ;;  %v452_v3 = vrot.slane %v451_v25, 2  ;;  %v1104_v4 = vrot.slane %v1103_v0, 4  ;;  %v1069_v5 = vpop.trf.xlu0 }
  0xd4   : > { %v447_v6 = vrot.slane %v446_v26, 1  ;;  %v1098_v7 = vmax.f32 %v1096_v62, %v1097_v63  ;;  %v1089_v8 = vcombine.high %v1069_v5, %v1069_v5  ;;  %v1110_v9 = vsel %vm399_vm8, %v1069_v5, -inf }
  0xd5   : > { %v441_v10 = vmax.f32 %v439_v61, %v440_v2  ;;  %v453_v11 = vmax.f32 %v451_v25, %v452_v3  ;;  %v1105_v12 = vmax.f32 %v1103_v0, %v1104_v4  ;;  %v1111_v13 = vrot.slane %v1110_v9, 4 }
  0xd6   : > { %v448_v14 = vmax.f32 %v446_v26, %v447_v6  ;;  %v1099_v15 = vrot.slane %v1098_v7, 2  ;;  %v1117_v16 = vsel %vm399_vm8, %v1089_v8, -inf  ;;  %v467_v17 = vsel %vm346_vm4, %v434_v1, %v466_v27 }
  0xd7   : > { %v1106_v18 = vrot.slane %v1105_v12, 2  ;;  %v1112_v19 = vmax.f32 %v1110_v9, %v1111_v13  ;;  %v1118_v28 = vrot.slane %v1117_v16, 4  ;;  %v1070_v29 = vpop.trf.xlu0  ;;  %v454_v30 = vrot.slane %v453_v11, 1 }
  0xd8   : > { %v1100_v31 = vmax.f32 %v1098_v7, %v1099_v15  ;;  %v1090_v32 = vcombine.high %v1070_v29, %v1070_v29  ;;  %v1124_v33 = vsel %vm399_vm8, %v1070_v29, -inf  ;;  %v468_v34 = vsel %vm348_vm5, %v441_v10, %v467_v17 }
  0xd9   : > { %v1107_v35 = vmax.f32 %v1105_v12, %v1106_v18  ;;  %v1113_v36 = vrot.slane %v1112_v19, 2  ;;  %v1119_v37 = vmax.f32 %v1117_v16, %v1118_v28  ;;  %v1125_v38 = vrot.slane %v1124_v33, 4 }
  0xda   : > { %v1101_v39 = vrot.slane %v1100_v31, 1  ;;  %v1131_v40 = vsel %vm399_vm8, %v1090_v32, -inf  ;;  %v455_v41 = vmax.f32 %v453_v11, %v454_v30  ;;  %v469_v42 = vsel %vm350_vm6, %v448_v14, %v468_v34 }
  0xdb   : > { %v1108_v43 = vrot.slane %v1107_v35, 1  ;;  %v1114_v44 = vmax.f32 %v1112_v19, %v1113_v36  ;;  %v1120_v20 = vrot.slane %v1119_v37, 2  ;;  %v1126_v45 = vmax.f32 %v1124_v33, %v1125_v38  ;;  %v1071_v46 = vpop.trf.xlu0 }
  0xdc   : > { %v1102_v47 = vmax.f32 %v1100_v31, %v1101_v39  ;;  %v1132_v48 = vrot.slane %v1131_v40, 4  ;;  %v1091_v49 = vcombine.high %v1071_v46, %v1071_v46  ;;  %v1138_v51 = vsel %vm399_vm8, %v1071_v46, -inf }
  0xdd   : > { %v1109_v52 = vmax.f32 %v1107_v35, %v1108_v43  ;;  %v1115_v21 = vrot.slane %v1114_v44, 1  ;;  %v1121_v53 = vmax.f32 %v1119_v37, %v1120_v20  ;;  %v1127_v54 = vrot.slane %v1126_v45, 2 }
  0xde   : > { %v1133_v55 = vmax.f32 %v1131_v40, %v1132_v48  ;;  %v1139_v22 = vrot.slane %v1138_v51, 4  ;;  %v1145_v56 = vsel %vm399_vm8, %v1091_v49, -inf  ;;  %v470_v23 = vsel %vm352_vm7, %v455_v41, %v469_v42 }
  0xdf   : > { %v1160_v24 = vsel %vm340_vm1, %v1109_v52, %v1102_v47  ;;  %v1116_v58 = vmax.f32 %v1114_v44, %v1115_v21  ;;  %v1122_v59 = vrot.slane %v1121_v53, 1  ;;  %v1128_v60 = vmax.f32 %v1126_v45, %v1127_v54  ;;  %472 = vxpose.xlu1.b32.start.end [1/1] (short) (narrow) %v470_v23, 8 }
  0xe0   : > { %v604_v61 = vpop.trf.xlu1  ;;  %v1134_v25 = vrot.slane %v1133_v55, 2  ;;  %v1140_v62 = vmax.f32 %v1138_v51, %v1139_v22  ;;  %v1146_v26 = vrot.slane %v1145_v56, 4  ;;  %v934_v63 = vsel %vm352_vm7, %v3317_v50, %v3321_v57 }
  0xe1   : > { %v624_v0 = vcombine.high %v604_v61, %v604_v61  ;;  %v632_v27 = vsel %vm399_vm8, %v604_v61, -inf  ;;  %v1123_v1 = vmax.f32 %v1121_v53, %v1122_v59  ;;  %v1161_v2 = vsel %vm342_vm2, %v1116_v58, %v1160_v24 }
  0xe2   : > { %v633_v3 = vrot.slane %v632_v27, 4  ;;  %v1129_v4 = vrot.slane %v1128_v60, 1  ;;  %v1135_v5 = vmax.f32 %v1133_v55, %v1134_v25  ;;  %v1141_v6 = vrot.slane %v1140_v62, 2 }
  0xe3   : > { %v639_v7 = vsel %vm399_vm8, %v624_v0, -inf  ;;  %v1147_v8 = vmax.f32 %v1145_v56, %v1146_v26  ;;  %936 = vxpose.xlu1.b32.start.end [1/1] (short) (narrow) %v934_v63, 8  ;;  %v1162_v9 = vsel %vm344_vm3, %v1123_v1, %v1161_v2 }
  0xe4   : > { %v634_v10 = vmax.f32 %v632_v27, %v633_v3  ;;  %v640_v11 = vrot.slane %v639_v7, 4  ;;  %v605_v12 = vpop.trf.xlu1  ;;  %v1130_v50 = vmax.f32 %v1128_v60, %v1129_v4  ;;  %v1136_v57 = vrot.slane %v1135_v5, 1 }
  0xe5   : > { %v625_v13 = vcombine.high %v605_v12, %v605_v12  ;;  %v646_v14 = vsel %vm399_vm8, %v605_v12, -inf  ;;  %v1142_v15 = vmax.f32 %v1140_v62, %v1141_v6  ;;  %v1148_v16 = vrot.slane %v1147_v8, 2 }
  0xe6   : > { %v635_v17 = vrot.slane %v634_v10, 2  ;;  %v641_v18 = vmax.f32 %v639_v7, %v640_v11  ;;  %v647_v19 = vrot.slane %v646_v14, 4  ;;  %v1137_v28 = vmax.f32 %v1135_v5, %v1136_v57 }
  0xe7   : > { %v653_v29 = vsel %vm399_vm8, %v625_v13, -inf  ;;  %v1143_v30 = vrot.slane %v1142_v15, 1  ;;  %v1149_v31 = vmax.f32 %v1147_v8, %v1148_v16  ;;  %v1163_v32 = vsel %vm346_vm4, %v1130_v50, %v1162_v9 }
  0xe8   : > { %v636_v33 = vmax.f32 %v634_v10, %v635_v17  ;;  %v642_v34 = vrot.slane %v641_v18, 2  ;;  %v648_v35 = vmax.f32 %v646_v14, %v647_v19  ;;  %v654_v36 = vrot.slane %v653_v29, 4  ;;  %v606_v37 = vpop.trf.xlu1 }
  0xe9   : > { %v626_v38 = vcombine.high %v606_v37, %v606_v37  ;;  %v660_v39 = vsel %vm399_vm8, %v606_v37, -inf  ;;  %v1144_v40 = vmax.f32 %v1142_v15, %v1143_v30  ;;  %v1150_v41 = vrot.slane %v1149_v31, 1 }
  0xea   : > { %v637_v42 = vrot.slane %v636_v33, 1  ;;  %v643_v43 = vmax.f32 %v641_v18, %v642_v34  ;;  %v649_v44 = vrot.slane %v648_v35, 2  ;;  %v655_v20 = vmax.f32 %v653_v29, %v654_v36 }
  0xeb   : > { %v661_v45 = vrot.slane %v660_v39, 4  ;;  %v667_v46 = vsel %vm399_vm8, %v626_v38, -inf  ;;  %v1151_v47 = vmax.f32 %v1149_v31, %v1150_v41  ;;  %v1164_v48 = vsel %vm348_vm5, %v1137_v28, %v1163_v32 }
  0xec   : > { %v638_v49 = vmax.f32 %v636_v33, %v637_v42  ;;  %v644_v51 = vrot.slane %v643_v43, 1  ;;  %v650_v52 = vmax.f32 %v648_v35, %v649_v44  ;;  %v656_v21 = vrot.slane %v655_v20, 2  ;;  %v607_v53 = vpop.trf.xlu1 }
  0xed   : > { %v662_v54 = vmax.f32 %v660_v39, %v661_v45  ;;  %v668_v55 = vrot.slane %v667_v46, 4  ;;  %v627_v22 = vcombine.high %v607_v53, %v607_v53  ;;  %v674_v56 = vsel %vm399_vm8, %v607_v53, -inf }
  0xee   : > { %v645_v23 = vmax.f32 %v643_v43, %v644_v51  ;;  %v651_v24 = vrot.slane %v650_v52, 1  ;;  %v657_v58 = vmax.f32 %v655_v20, %v656_v21  ;;  %v675_v59 = vrot.slane %v674_v56, 4 }
  0xef   : > { %v663_v60 = vrot.slane %v662_v54, 2  ;;  %v669_v61 = vmax.f32 %v667_v46, %v668_v55  ;;  %v681_v25 = vsel %vm399_vm8, %v627_v22, -inf  ;;  %v1165_v62 = vsel %vm350_vm6, %v1144_v40, %v1164_v48 }
  0xf0   : > { %v696_v26 = vsel %vm340_vm1, %v645_v23, %v638_v49  ;;  %v652_v63 = vmax.f32 %v650_v52, %v651_v24  ;;  %v658_v0 = vrot.slane %v657_v58, 1  ;;  %v676_v27 = vmax.f32 %v674_v56, %v675_v59 }
  0xf1   : > { %v664_v1 = vmax.f32 %v662_v54, %v663_v60  ;;  %v670_v2 = vrot.slane %v669_v61, 2  ;;  %v682_v3 = vrot.slane %v681_v25, 4  ;;  %v1166_v4 = vsel %vm352_vm7, %v1151_v47, %v1165_v62 }
  0xf2   : > { %v659_v5 = vmax.f32 %v657_v58, %v658_v0  ;;  %v697_v6 = vsel %vm342_vm2, %v652_v63, %v696_v26  ;;  %v677_v7 = vrot.slane %v676_v27, 2  ;;  %1168 = vxpose.xlu0.b32.start.end [1/1] (short) (narrow) %v1166_v4, 8  ;;  %v3136_v32 = vmov 1983009808  }
  0xf3   : > { %v665_v8 = vrot.slane %v664_v1, 1  ;;  %v671_v9 = vmax.f32 %v669_v61, %v670_v2  ;;  %v683_v10 = vmax.f32 %v681_v25, %v682_v3  ;;  %v1205_v33 = vunpack.c.l.s4 %v3136_v32 }
  0xf4   : > { %v678_v11 = vmax.f32 %v676_v27, %v677_v7  ;;  %v698_v12 = vsel %vm344_vm3, %v659_v5, %v697_v6  ;;  %v1207_v34 = vlaneseq  ;;  %v3137_v39 = vmov 1934713408  }
  0xf5   : > { %v666_v50 = vmax.f32 %v664_v1, %v665_v8  ;;  %v672_v57 = vrot.slane %v671_v9, 1  ;;  %v684_v13 = vrot.slane %v683_v10, 2  ;;  %v1206_v36 = vunpack.c.0.s8 %v1205_v33 }
  0xf6   : > { %v679_v14 = vrot.slane %v678_v11, 1  ;;  %v1208_v37 = vshrl.u32 %v1207_v34, 7  ;;  %v1237_v40 = vunpack.c.l.s4 %v3137_v39  ;;  %v3139_v5 = vmov 0.0  }
  0xf7   : > { %v673_v15 = vmax.f32 %v671_v9, %v672_v57  ;;  %v685_v16 = vmax.f32 %v683_v10, %v684_v13  ;;  %v699_v17 = vsel %vm346_vm4, %v666_v50, %v698_v12  ;;  %vm1308_vm4 = vcmask 392192  }
  0xf8   : > { %v680_v18 = vmax.f32 %v678_v11, %v679_v14  ;;  %v3362_v41 = vsub.s32 %v1206_v36, %v1208_v37  ;;  %v1238_v47 = vunpack.c.0.s8 %v1237_v40  ;;  %vm2611_vm8 = vcmask 15360  }
  0xf9   : > { %v686_v19 = vrot.slane %v685_v16, 1  ;;  %v700_v28 = vsel %vm348_vm5, %v673_v15, %v699_v17  ;;  %vm1310_vm5 = vcmask 457728  }
  0xfa   : > { %v701_v29 = vsel %vm350_vm6, %v680_v18, %v700_v28  ;;  %v3375_v56 = vsub.s32 %v1238_v47, %v1208_v37  ;;  %vm1312_vm6 = vcmask 519168  }
  0xfb   : > { %v687_v30 = vmax.f32 %v685_v16, %v686_v19 }
  0xfd   : > { %v702_v31 = vsel %vm352_vm7, %v687_v30, %v701_v29  ;;  %vm2771_vm7 = vcmask 1024  }
  0xfe   : > { %704 = vxpose.xlu0.b32.start.end [1/1] (short) (narrow) %v702_v31, 8 }
 0x15f   : > { %v488_v38 = vpop.trf.xlu1 }
 0x160   : > { %v1318_v0 = vcombine.high %v488_v38, %v488_v38  ;;  %v1325_v27 = vrot.slane %v488_v38, %v3362_v41 }
 0x162   : > { %v1332_v11 = vrot.slane %v1318_v0, %v3362_v41  ;;  %v1333_v12 = vcombine.high %v1325_v27, %v1325_v27  ;;  %v1403_v50 = vsel %vm1402_vm9, %v1325_v27, -inf }
 0x163   : > { %v3364_v43 = vpop.trf.xlu1  ;;  %v1404_v29 = vrot.slane %v1403_v50, 4 }
 0x164   : > { %v1218_v46 = vcombine.low %v488_v38, %v3364_v43  ;;  %v1219_v48 = vcombine.high %v488_v38, %v3364_v43  ;;  %v1359_v9 = vrot.slane %v3364_v43, %v3362_v41  ;;  %v1352_v17 = vcombine.high %v3364_v43, %v3364_v43 }
 0x165   : > { %v1410_v31 = vsel %vm1402_vm9, %v1333_v12, -inf  ;;  %v1417_v39 = vsel %vm1402_vm9, %v1332_v11, -inf }
 0x166   : > { %v1226_v54 = vrot.slane %v1218_v46, %v3362_v41  ;;  %v3378_v23 = vrot.slane %v1219_v48, %v3362_v41  ;;  %v1367_v30 = vcombine.high %v1359_v9, %v1359_v9  ;;  %v1366_v40 = vrot.slane %v1352_v17, %v3362_v41 }
 0x172   : > { %v1184_v35 = vpop.trf.xlu0 }
 0x173   : > { %v1201_v44 = vsub.f32 1.0, %v1184_v35  ;;  %v1376_v20 = vrot.slane %v1184_v35, %v3362_v41  ;;  %v1369_v52 = vcombine.high %v1184_v35, %v1184_v35  ;;  %v1334_v35 = vcombine.high %v1332_v11, %v1332_v11 }
 0x175   : > { %v1384_v21 = vcombine.high %v1376_v20, %v1376_v20  ;;  %v1383_v24 = vrot.slane %v1369_v52, %v3362_v41  ;;  %v1487_v3 = vsel %vm1402_vm9, %v1376_v20, -inf  ;;  %v1459_v20 = vsel %vm1402_vm9, %v1359_v9, -inf }
 0x176   : > { %v1488_v57 = vrot.slane %v1487_v3, 4  ;;  %v1418_v52 = vrot.slane %v1417_v39, 4 }
 0x177   : > { %v1494_v61 = vsel %vm1402_vm9, %v1384_v21, -inf  ;;  %v1385_v2 = vcombine.high %v1383_v24, %v1383_v24  ;;  %v1501_v8 = vsel %vm1402_vm9, %v1383_v24, -inf }
 0x178   : > { %v1495_v7 = vrot.slane %v1494_v61, 4  ;;  %v1502_v13 = vrot.slane %v1501_v8, 4  ;;  %v1489_v32 = vmax.f32 %v1487_v3, %v1488_v57 }
 0x179   : > { %v1508_v14 = vsel %vm1402_vm9, %v1385_v2, -inf }
 0x17a   : > { %v1496_v18 = vmax.f32 %v1494_v61, %v1495_v7  ;;  %v1509_v33 = vrot.slane %v1508_v14, 4  ;;  %v1503_v36 = vmax.f32 %v1501_v8, %v1502_v13  ;;  %v1490_v46 = vrot.slane %v1489_v32, 2 }
 0x17c   : > { %v1504_v21 = vrot.slane %v1503_v36, 2  ;;  %v1491_v0 = vmax.f32 %v1489_v32, %v1490_v46 }
 0x17e   : > { %v720_v42 = vpop.trf.xlu0  ;;  %v1505_v7 = vmax.f32 %v1503_v36, %v1504_v21 }
 0x17f   : > { %v1200_v45 = vsub.f32 1.0, %v720_v42  ;;  %v1342_v22 = vrot.slane %v720_v42, %v3362_v41  ;;  %v1335_v58 = vcombine.high %v720_v42, %v720_v42  ;;  %v1497_v42 = vrot.slane %v1496_v18, 2 }
 0x181   : > { %v1202_v49 = vcombine.low %v1200_v45, %v1201_v44  ;;  %v1203_v51 = vcombine.high %v1200_v45, %v1201_v44  ;;  %v1350_v25 = vcombine.high %v1342_v22, %v1342_v22  ;;  %v1349_v4 = vrot.slane %v1335_v58, %v3362_v41 }
 0x182   : > { %v1431_v16 = vsel %vm1402_vm9, %v1342_v22, -inf  ;;  %v1411_v44 = vrot.slane %v1410_v31, 4  ;;  %v1466_v45 = vsel %vm1402_vm9, %v1367_v30, -inf  ;;  %v1498_v22 = vmax.f32 %v1496_v18, %v1497_v42 }
 0x183   : > { %v1210_v53 = vrot.slane %v1202_v49, %v3362_v41  ;;  %v3372_v55 = vrot.slane %v1203_v51, %v3362_v41  ;;  %v1438_v10 = vsel %vm1402_vm9, %v1350_v25, -inf  ;;  %v1351_v15 = vcombine.high %v1349_v4, %v1349_v4 }
 0x184   : > { %v1439_v19 = vrot.slane %v1438_v10, 4  ;;  %v1445_v28 = vsel %vm1402_vm9, %v1349_v4, -inf  ;;  %v1432_v34 = vrot.slane %v1431_v16, 4  ;;  %v1510_v49 = vmax.f32 %v1508_v14, %v1509_v33 }
 0x185   : > { %v1235_v59 = vcombine.high %v1210_v53, %v1226_v54  ;;  %v1234_v60 = vcombine.low %v1210_v53, %v1226_v54  ;;  %v1250_v63 = vcombine.low %v3372_v55, %v3378_v23  ;;  %v1251_v1 = vcombine.high %v3372_v55, %v3378_v23 }
 0x186   : > { %v1446_v37 = vrot.slane %v1445_v28, 4  ;;  %v1452_v38 = vsel %vm1402_vm9, %v1351_v15, -inf  ;;  %v1440_v43 = vmax.f32 %v1438_v10, %v1439_v19  ;;  %v1433_v47 = vmax.f32 %v1431_v16, %v1432_v34 }
 0x187   : > { %v3383_v62 = vrot.slane %v1235_v59, %v3375_v56  ;;  %v3386_v26 = vrot.slane %v1234_v60, %v3375_v56  ;;  %v1453_v48 = vrot.slane %v1452_v38, 4  ;;  %v1405_v51 = vmax.f32 %v1403_v50, %v1404_v29 }
 0x188   : > { %v1447_v53 = vmax.f32 %v1445_v28, %v1446_v37  ;;  %v1368_v54 = vcombine.high %v1366_v40, %v1366_v40  ;;  %v1441_v24 = vrot.slane %v1440_v43, 2  ;;  %v1424_v58 = vsel %vm1402_vm9, %v1334_v35, -inf }
 0x189   : > { %1275 = vrot.lane.b32.xlu1 %v3383_v62, %s3138_s21  ;;  %v1266_v6 = vcombine.high %v3386_v26, %v3139_v5  ;;  %v1412_v59 = vmax.f32 %v1410_v31, %v1411_v44  ;;  %v1460_v60 = vrot.slane %v1459_v20, 4  ;;  %v1467_v61 = vrot.slane %v1466_v45, 4 }
 0x18a   : > { %v1473_v25 = vsel %vm1402_vm9, %v1366_v40, -inf  ;;  %v1434_v27 = vrot.slane %v1433_v47, 2  ;;  %v1511_v2 = vrot.slane %v1510_v49, 2  ;;  %v1454_v3 = vmax.f32 %v1452_v38, %v1453_v48 }
 0x18b   : > { %1271 = vrot.lane.b32.xlu0 %v1266_v6, %s3140_s22  ;;  %v1419_v4 = vmax.f32 %v1417_v39, %v1418_v52  ;;  %v1448_v6 = vrot.slane %v1447_v53, 2  ;;  %v1425_v8 = vrot.slane %v1424_v58, 4  ;;  %v1474_v9 = vrot.slane %v1473_v25, 4 }
 0x18c   : > { %v1499_v10 = vrot.slane %v1498_v22, 1  ;;  %v1442_v11 = vmax.f32 %v1440_v43, %v1441_v24  ;;  %v1480_v12 = vsel %vm1402_vm9, %v1368_v54, -inf  ;;  %v1406_v50 = vrot.slane %v1405_v51, 2 }
 0x18d   : > { %v1413_v57 = vrot.slane %v1412_v59, 2  ;;  %v1461_v13 = vmax.f32 %v1459_v20, %v1460_v60  ;;  %v1468_v14 = vmax.f32 %v1466_v45, %v1467_v61  ;;  %v1492_v15 = vrot.slane %v1491_v0, 1 }
 0x18e   : > { %v1435_v16 = vmax.f32 %v1433_v47, %v1434_v27  ;;  %v1512_v17 = vmax.f32 %v1510_v49, %v1511_v2  ;;  %v1455_v18 = vrot.slane %v1454_v3, 2  ;;  %v1506_v19 = vrot.slane %v1505_v7, 1 }
 0x18f   : > { %v1449_v28 = vmax.f32 %v1447_v53, %v1448_v6  ;;  %v1426_v29 = vmax.f32 %v1424_v58, %v1425_v8  ;;  %v1481_v30 = vrot.slane %v1480_v12, 4  ;;  %v1475_v31 = vmax.f32 %v1473_v25, %v1474_v9 }
 0x190   : > { %v1500_v32 = vmax.f32 %v1498_v22, %v1499_v10  ;;  %v1443_v33 = vrot.slane %v1442_v11, 1  ;;  %v1420_v34 = vrot.slane %v1419_v4, 2  ;;  %v1407_v35 = vmax.f32 %v1405_v51, %v1406_v50 }
 0x191   : > { %v1462_v36 = vrot.slane %v1461_v13, 2  ;;  %v1469_v37 = vrot.slane %v1468_v14, 2  ;;  %v1414_v38 = vmax.f32 %v1412_v59, %v1413_v57  ;;  %v1493_v39 = vmax.f32 %v1491_v0, %v1492_v15 }
 0x192   : > { %v1436_v40 = vrot.slane %v1435_v16, 1  ;;  %v1513_v42 = vrot.slane %v1512_v17, 1  ;;  %v1456_v43 = vmax.f32 %v1454_v3, %v1455_v18  ;;  %v1507_v44 = vmax.f32 %v1505_v7, %v1506_v19 }
 0x193   : > { %v1450_v20 = vrot.slane %v1449_v28, 1  ;;  %v1427_v45 = vrot.slane %v1426_v29, 2  ;;  %v1482_v46 = vmax.f32 %v1480_v12, %v1481_v30  ;;  %v1540_v47 = vsel %vm340_vm1, %v1500_v32, %v1493_v39 }
 0x194   : > { %v1444_v48 = vmax.f32 %v1442_v11, %v1443_v33  ;;  %v1421_v49 = vmax.f32 %v1419_v4, %v1420_v34  ;;  %v1476_v52 = vrot.slane %v1475_v31, 2  ;;  %v1463_v21 = vmax.f32 %v1461_v13, %v1462_v36 }
 0x195   : > { %v1408_v53 = vrot.slane %v1407_v35, 1  ;;  %v1415_v54 = vrot.slane %v1414_v38, 1  ;;  %v1470_v51 = vmax.f32 %v1468_v14, %v1469_v37  ;;  %v1514_v22 = vmax.f32 %v1512_v17, %v1513_v42 }
 0x196   : > { %v1437_v24 = vmax.f32 %v1435_v16, %v1436_v40  ;;  %v1457_v58 = vrot.slane %v1456_v43, 1  ;;  %v1541_v59 = vsel %vm342_vm2, %v1507_v44, %v1540_v47  ;;  %v1451_v60 = vmax.f32 %v1449_v28, %v1450_v20 }
 0x197   : > { %v1428_v61 = vmax.f32 %v1426_v29, %v1427_v45  ;;  %v1483_v25 = vrot.slane %v1482_v46, 2  ;;  %v1422_v27 = vrot.slane %v1421_v49, 1  ;;  %v1477_v2 = vmax.f32 %v1475_v31, %v1476_v52 }
 0x198   : > { %v1534_v0 = vsel %vm340_vm1, %v1444_v48, %v1437_v24  ;;  %v1409_v3 = vmax.f32 %v1407_v35, %v1408_v53  ;;  %v1416_v6 = vmax.f32 %v1414_v38, %v1415_v54  ;;  %v1464_v4 = vrot.slane %v1463_v21, 1 }
 0x199   : > { %v1471_v7 = vrot.slane %v1470_v51, 1  ;;  %v1542_v8 = vsel %vm344_vm3, %v1514_v22, %v1541_v59  ;;  %v1458_v9 = vmax.f32 %v1456_v43, %v1457_v58  ;;  %v1535_v10 = vsel %vm342_vm2, %v1451_v60, %v1534_v0 }
 0x19a   : > { %v1429_v11 = vrot.slane %v1428_v61, 1  ;;  %v1484_v12 = vmax.f32 %v1482_v46, %v1483_v25  ;;  %v1423_v50 = vmax.f32 %v1421_v49, %v1422_v27  ;;  %v1478_v57 = vrot.slane %v1477_v2, 1 }
 0x19b   : > { %v1531_v13 = vsel %vm340_vm1, %v1416_v6, %v1409_v3  ;;  %v1465_v14 = vmax.f32 %v1463_v21, %v1464_v4  ;;  %v1472_v15 = vmax.f32 %v1470_v51, %v1471_v7  ;;  %v1536_v16 = vsel %vm344_vm3, %v1458_v9, %v1535_v10 }
 0x19c   : > { %v1430_v17 = vmax.f32 %v1428_v61, %v1429_v11  ;;  %v1485_v18 = vrot.slane %v1484_v12, 1  ;;  %v1532_v19 = vsel %vm342_vm2, %v1423_v50, %v1531_v13  ;;  %v1479_v28 = vmax.f32 %v1477_v2, %v1478_v57 }
 0x19d   : > { %v1537_v29 = vsel %vm340_vm1, %v1472_v15, %v1465_v14  ;;  %v1258_v34 = vrot.slane %v1250_v63, %v3375_v56  ;;  %v1267_v35 = vcombine.high %v3383_v62, %v3139_v5  ;;  %vm2613_vm9 = vcmask 27648  }
 0x19e   : > { %v1533_v30 = vsel %vm344_vm3, %v1430_v17, %v1532_v19  ;;  %v1486_v31 = vmax.f32 %v1484_v12, %v1485_v18  ;;  %v1538_v32 = vsel %vm342_vm2, %v1479_v28, %v1537_v29 }
 0x19f   : > { %v1268_v36 = vcombine.high %v1258_v34, %v3139_v5 }
 0x1a0   : > { %v1539_v33 = vsel %vm344_vm3, %v1486_v31, %v1538_v32 }
 0x1a9   : > { %1643 = vxpose.xlu0.b32.start.end [1/1] (short) (narrow) %v1542_v8, 8 }
 0x1ad   : > { %1579 = vxpose.xlu0.b32.start.end [1/1] (short) (narrow) %v1536_v16, 8 }
 0x1b2   : > { %1547 = vxpose.xlu1.b32.start.end [1/1] (short) (narrow) %v1533_v30, 8 }
 0x1b6   : > { %1611 = vxpose.xlu1.b32.start.end [1/1] (short) (narrow) %v1539_v33, 8 }
 0x1d4   : > { %1283 = vrot.lane.b32.xlu1 %v1258_v34, %s3141_s23 }
 0x1d6   : > { %1279 = vrot.lane.b32.xlu0 %v1267_v35, %s3142_s24 }
 0x1d8   : > { %1287 = vrot.lane.b32.xlu1 %v1268_v36, %s3143_s25 }
 0x1fb   : > { %v1276_v38 = vpop.permute.xlu1 %1275 }
 0x1fd   : > { %v1272_v37 = vpop.permute.xlu0 %1271 }
 0x1fe   : > { %v1299_v39 = vsel %vm1298_vm10, %v3386_v26, %v1272_v37 }
 0x1ff   : > { %v3440_v40 = vsel %vm1300_vm11, %v1299_v39, %v1276_v38  ;;  %vm2084_vm11 = vcmask 31744  }
 0x229   : > { %v1659_v63 = vpop.trf.xlu0 }
 0x22a   : > { %v1730_v42 = vcombine.high %v1659_v63, %v1659_v63  ;;  %v1737_v62 = vrot.slane %v1659_v63, %v3362_v41 }
 0x22c   : > { %v1744_v43 = vrot.slane %v1730_v42, %v3362_v41  ;;  %v1745_v44 = vcombine.high %v1737_v62, %v1737_v62  ;;  %v1848_v20 = vsel %vm1763_vm12, %v1737_v62, -inf }
 0x22d   : > { %v1849_v45 = vrot.slane %v1848_v20, 4  ;;  %v1595_v46 = vpop.trf.xlu0 }
 0x22e   : > { %v1746_v47 = vcombine.high %v1744_v43, %v1744_v43  ;;  %v1855_v48 = vsel %vm1763_vm12, %v1745_v44, -inf  ;;  %v1862_v49 = vsel %vm1763_vm12, %v1744_v43, -inf  ;;  %v1696_v26 = vcombine.high %v1595_v46, %v1595_v46 }
 0x22f   : > { %v1850_v52 = vmax.f32 %v1848_v20, %v1849_v45  ;;  %v1856_v21 = vrot.slane %v1855_v48, 4  ;;  %v1863_v53 = vrot.slane %v1862_v49, 4  ;;  %v1703_v54 = vrot.slane %v1595_v46, %v3362_v41 }
 0x230   : > { %v1869_v51 = vsel %vm1763_vm12, %v1746_v47, -inf  ;;  %v1710_v22 = vrot.slane %v1696_v26, %v3362_v41 }
 0x231   : > { %v1851_v24 = vrot.slane %v1850_v52, 2  ;;  %v1857_v58 = vmax.f32 %v1855_v48, %v1856_v21  ;;  %v1864_v59 = vmax.f32 %v1862_v49, %v1863_v53  ;;  %v1870_v60 = vrot.slane %v1869_v51, 4 }
 0x232   : > { %v1711_v61 = vcombine.high %v1703_v54, %v1703_v54  ;;  %v1712_v25 = vcombine.high %v1710_v22, %v1710_v22  ;;  %v1792_v0 = vsel %vm1763_vm12, %v1703_v54, -inf  ;;  %v1806_v27 = vsel %vm1763_vm12, %v1710_v22, -inf  ;;  %v1563_v2 = vpop.trf.xlu1 }
 0x233   : > { %v1852_v3 = vmax.f32 %v1850_v52, %v1851_v24  ;;  %v1858_v6 = vrot.slane %v1857_v58, 2  ;;  %v1865_v4 = vrot.slane %v1864_v59, 2  ;;  %v1793_v7 = vrot.slane %v1792_v0, 4 }
 0x234   : > { %v1799_v8 = vsel %vm1763_vm12, %v1711_v61, -inf  ;;  %v1807_v9 = vrot.slane %v1806_v27, 4  ;;  %v1813_v10 = vsel %vm1763_vm12, %v1712_v25, -inf  ;;  %v3454_v50 = vmax.f32 %v1869_v51, %v1870_v60 }
 0x235   : > { %v1853_v11 = vrot.slane %v1852_v3, 1  ;;  %v1859_v12 = vmax.f32 %v1857_v58, %v1858_v6  ;;  %v1800_v57 = vrot.slane %v1799_v8, 4  ;;  %v1794_v13 = vmax.f32 %v1792_v0, %v1793_v7 }
 0x236   : > { %v1808_v14 = vmax.f32 %v1806_v27, %v1807_v9  ;;  %v1814_v15 = vrot.slane %v1813_v10, 4  ;;  %v1679_v16 = vcombine.high %v1563_v2, %v1563_v2  ;;  %v1627_v17 = vpop.trf.xlu1  ;;  %v1866_v19 = vmax.f32 %v1864_v59, %v1865_v4 }
 0x237   : > { %v3456_v18 = vmax.f32 %v1852_v3, %v1853_v11  ;;  %v1801_v28 = vmax.f32 %v1799_v8, %v1800_v57  ;;  %v1686_v29 = vrot.slane %v1563_v2, %v3362_v41  ;;  %v1860_v30 = vrot.slane %v1859_v12, 1 }
 0x238   : > { %v1795_v31 = vrot.slane %v1794_v13, 2  ;;  %v1809_v32 = vrot.slane %v1808_v14, 2  ;;  %v1693_v33 = vrot.slane %v1679_v16, %v3362_v41  ;;  %v1713_v37 = vcombine.high %v1627_v17, %v1627_v17 }
 0x239   : > { %v1802_v34 = vrot.slane %v1801_v28, 2  ;;  %v1694_v35 = vcombine.high %v1686_v29, %v1686_v29  ;;  %v1764_v36 = vsel %vm1763_vm12, %v1686_v29, -inf  ;;  %v3461_v39 = vmax.f32 %v1813_v10, %v1814_v15 }
 0x23a   : > { %v1796_v38 = vmax.f32 %v1794_v13, %v1795_v31  ;;  %v1695_v63 = vcombine.high %v1693_v33, %v1693_v33  ;;  %v1765_v42 = vrot.slane %v1764_v36, 4  ;;  %v1778_v44 = vsel %vm1763_vm12, %v1693_v33, -inf }
 0x23b   : > { %v1803_v62 = vmax.f32 %v1801_v28, %v1802_v34  ;;  %v1771_v43 = vsel %vm1763_vm12, %v1694_v35, -inf  ;;  %v1720_v20 = vrot.slane %v1627_v17, %v3362_v41  ;;  %v1810_v45 = vmax.f32 %v1808_v14, %v1809_v32 }
 0x23c   : > { %v1766_v46 = vmax.f32 %v1764_v36, %v1765_v42  ;;  %v1772_v47 = vrot.slane %v1771_v43, 4  ;;  %v1779_v48 = vrot.slane %v1778_v44, 4  ;;  %v1797_v49 = vrot.slane %v1796_v38, 1 }
 0x23d   : > { %v1785_v26 = vsel %vm1763_vm12, %v1695_v63, -inf  ;;  %v1727_v52 = vrot.slane %v1713_v37, %v3362_v41  ;;  %v1728_v21 = vcombine.high %v1720_v20, %v1720_v20  ;;  %v1804_v53 = vrot.slane %v1803_v62, 1 }
 0x23e   : > { %v1767_v54 = vrot.slane %v1766_v46, 2  ;;  %v1773_v51 = vmax.f32 %v1771_v43, %v1772_v47  ;;  %v1780_v22 = vmax.f32 %v1778_v44, %v1779_v48  ;;  %v1786_v24 = vrot.slane %v1785_v26, 4 }
 0x23f   : > { %v1729_v58 = vcombine.high %v1727_v52, %v1727_v52  ;;  %v1820_v59 = vsel %vm1763_vm12, %v1720_v20, -inf  ;;  %v1827_v60 = vsel %vm1763_vm12, %v1728_v21, -inf  ;;  %v1798_v2 = vmax.f32 %v1796_v38, %v1797_v49 }
 0x240   : > { %v1768_v61 = vmax.f32 %v1766_v46, %v1767_v54  ;;  %v1774_v25 = vrot.slane %v1773_v51, 2  ;;  %v1781_v0 = vrot.slane %v1780_v22, 2  ;;  %v1821_v27 = vrot.slane %v1820_v59, 4 }
 0x241   : > { %v1828_v3 = vrot.slane %v1827_v60, 4  ;;  %v1834_v6 = vsel %vm1763_vm12, %v1727_v52, -inf  ;;  %v1841_v4 = vsel %vm1763_vm12, %v1729_v58, -inf  ;;  %v1787_v9 = vmax.f32 %v1785_v26, %v1786_v24 }
 0x242   : > { %v1769_v7 = vrot.slane %v1768_v61, 1  ;;  %v1775_v8 = vmax.f32 %v1773_v51, %v1774_v25  ;;  %v1822_v10 = vmax.f32 %v1820_v59, %v1821_v27  ;;  %v1782_v11 = vmax.f32 %v1780_v22, %v1781_v0 }
 0x243   : > { %v1829_v57 = vmax.f32 %v1827_v60, %v1828_v3  ;;  %v1835_v13 = vrot.slane %v1834_v6, 4  ;;  %v1861_v14 = vmax.f32 %v1859_v12, %v1860_v30  ;;  %v1842_v17 = vrot.slane %v1841_v4, 4 }
 0x244   : > { %v1770_v15 = vmax.f32 %v1768_v61, %v1769_v7  ;;  %v1823_v16 = vrot.slane %v1822_v10, 2  ;;  %v1867_v28 = vrot.slane %v1866_v19, 1  ;;  %v1776_v29 = vrot.slane %v1775_v8, 1 }
 0x245   : > { %v1830_v31 = vrot.slane %v1829_v57, 2  ;;  %v1836_v32 = vmax.f32 %v1834_v6, %v1835_v13  ;;  %v1872_v33 = vrot.slane %v3454_v50, 2  ;;  %v1901_v36 = vsel %vm340_vm1, %v1861_v14, %v3456_v18 }
 0x246   : > { %v1824_v34 = vmax.f32 %v1822_v10, %v1823_v16  ;;  %v1868_v35 = vmax.f32 %v1866_v19, %v1867_v28  ;;  %v1805_v37 = vmax.f32 %v1803_v62, %v1804_v53  ;;  %v1811_v12 = vrot.slane %v1810_v45, 1 }
 0x247   : > { %v1831_v38 = vmax.f32 %v1829_v57, %v1830_v31  ;;  %v1837_v63 = vrot.slane %v1836_v32, 2  ;;  %v1873_v42 = vmax.f32 %v3454_v50, %v1872_v33  ;;  %v1843_v43 = vmax.f32 %v1841_v4, %v1842_v17  ;;  %v1284_v50 = vpop.permute.xlu1 %1283 }
 0x248   : > { %v1825_v30 = vrot.slane %v1824_v34, 1  ;;  %v1902_v44 = vsel %vm342_vm2, %v1868_v35, %v1901_v36  ;;  %v1816_v20 = vrot.slane %v3461_v39, 2  ;;  %v1280_v46 = vpop.permute.xlu0 %1279  ;;  %v1812_v49 = vmax.f32 %v1810_v45, %v1811_v12 }
 0x249   : > { %v1832_v47 = vrot.slane %v1831_v38, 1  ;;  %v1874_v48 = vrot.slane %v1873_v42, 1  ;;  %v1895_v19 = vsel %vm340_vm1, %v1805_v37, %v1798_v2  ;;  %v1838_v26 = vmax.f32 %v1836_v32, %v1837_v63 }
 0x24a   : > { %v1817_v18 = vmax.f32 %v3461_v39, %v1816_v20  ;;  %v1777_v62 = vmax.f32 %v1775_v8, %v1776_v29  ;;  %v1783_v52 = vrot.slane %v1782_v11, 1  ;;  %v1788_v53 = vrot.slane %v1787_v9, 2 }
 0x24b   : > { %v1875_v21 = vmax.f32 %v1873_v42, %v1874_v48  ;;  %v1303_v54 = vsel %vm1302_vm13, %v3440_v40, %v1280_v46  ;;  %v1896_v59 = vsel %vm342_vm2, %v1812_v49, %v1895_v19  ;;  %v1833_v60 = vmax.f32 %v1831_v38, %v1832_v47  ;;  %v3501_v16 = vpop.permute.xlu1 %1287 }
 0x24c   : > { %v1818_v51 = vrot.slane %v1817_v18, 1  ;;  %v1784_v22 = vmax.f32 %v1782_v11, %v1783_v52  ;;  %v1892_v24 = vsel %vm340_vm1, %v1777_v62, %v1770_v15  ;;  %v3484_v58 = vsel %vm1304_vm14, %v1303_v54, %v1284_v50 }
 0x24d   : > { %v1903_v45 = vsel %vm344_vm3, %v1875_v21, %v1902_v44  ;;  %v1789_v39 = vmax.f32 %v1787_v9, %v1788_v53  ;;  %v1826_v61 = vmax.f32 %v1824_v34, %v1825_v30  ;;  %v1839_v0 = vrot.slane %v1838_v26, 1 }
 0x24e   : > { %2004 = vxpose.xlu0.b32.start.end [1/1] (short) (narrow) %v1903_v45, 8  ;;  %v1819_v25 = vmax.f32 %v1817_v18, %v1818_v51  ;;  %v1844_v27 = vrot.slane %v1843_v43, 2  ;;  %v1893_v40 = vsel %vm342_vm2, %v1784_v22, %v1892_v24  ;;  %v3498_v14 = vrot.slane %v1251_v1, %v3375_v56 }
 0x24f   : > { %v1790_v2 = vrot.slane %v1789_v39, 1  ;;  %v1840_v6 = vmax.f32 %v1838_v26, %v1839_v0  ;;  %v1898_v7 = vsel %vm340_vm1, %v1833_v60, %v1826_v61  ;;  %vm2089_vm13 = vcmask 125952  }
 0x250   : > { %v1897_v3 = vsel %vm344_vm3, %v1819_v25, %v1896_v59  ;;  %v1845_v4 = vmax.f32 %v1843_v43, %v1844_v27  ;;  %vm2941_vm14 = vcmask 3072  }
 0x251   : > { %v1791_v8 = vmax.f32 %v1789_v39, %v1790_v2  ;;  %v1899_v11 = vsel %vm342_vm2, %v1840_v6, %v1898_v7 }
 0x252   : > { %1940 = vxpose.xlu0.b32.start.end [1/1] (short) (narrow) %v1897_v3, 8  ;;  %v1846_v10 = vrot.slane %v1845_v4, 1 }
 0x253   : > { %v1894_v9 = vsel %vm344_vm3, %v1791_v8, %v1893_v40 }
 0x254   : > { %1908 = vxpose.xlu1.b32.start.end [1/1] (short) (narrow) %v1894_v9, 8  ;;  %v1847_v57 = vmax.f32 %v1845_v4, %v1846_v10 }
 0x256   : > { %v1900_v13 = vsel %vm344_vm3, %v1847_v57, %v1899_v11 }
 0x258   : > { %1972 = vxpose.xlu1.b32.start.end [1/1] (short) (narrow) %v1900_v13, 8 }
 0x276   : > { %1291 = vrot.lane.b32.xlu1 %v3498_v14, %s3144_s26 }
 0x2ce   : > { %v2020_v15 = vpop.trf.xlu0 }
 0x2cf   : > { %v2037_v17 = vsub.f32 1.0, %v2020_v15  ;;  %v2125_v44 = vrot.slane %v2020_v15, %v3362_v41 }
 0x2d1   : > { %v2126_v51 = vcombine.high %v2125_v44, %v2125_v44  ;;  %v2177_v2 = vsel %vm1763_vm12, %v2125_v44, -inf }
 0x2d2   : > { %v1956_v28 = vpop.trf.xlu0  ;;  %v2178_v7 = vrot.slane %v2177_v2, 4 }
 0x2d3   : > { %v2036_v29 = vsub.f32 1.0, %v1956_v28  ;;  %v2109_v22 = vrot.slane %v1956_v28, %v3362_v41  ;;  %v2184_v40 = vsel %vm1763_vm12, %v2126_v51, -inf }
 0x2d4   : > { %v1924_v31 = vpop.trf.xlu1  ;;  %v2185_v8 = vrot.slane %v2184_v40, 4  ;;  %v2179_v15 = vmax.f32 %v2177_v2, %v2178_v7 }
 0x2d5   : > { %v2101_v32 = vrot.slane %v1924_v31, %v3362_v41  ;;  %v2038_v33 = vcombine.low %v2036_v29, %v2037_v17  ;;  %v2110_v3 = vcombine.high %v2109_v22, %v2109_v22  ;;  %v2149_v11 = vsel %vm1763_vm12, %v2109_v22, -inf }
 0x2d6   : > { %v2186_v17 = vmax.f32 %v2184_v40, %v2185_v8  ;;  %v2150_v28 = vrot.slane %v2149_v11, 4 }
 0x2d7   : > { %v2102_v34 = vcombine.high %v2101_v32, %v2101_v32  ;;  %v2135_v35 = vsel %vm1763_vm12, %v2101_v32, -inf  ;;  %v3508_v38 = vrot.slane %v2038_v33, %v3362_v41  ;;  %v2156_v57 = vsel %vm1763_vm12, %v2110_v3, -inf }
 0x2d8   : > { %v1988_v36 = vpop.trf.xlu1  ;;  %v2136_v55 = vrot.slane %v2135_v35, 4  ;;  %v2157_v29 = vrot.slane %v2156_v57, 4  ;;  %v2187_v32 = vrot.slane %v2186_v17, 2  ;;  %v2151_v33 = vmax.f32 %v2149_v11, %v2150_v28 }
 0x2d9   : > { %v2142_v23 = vsel %vm1763_vm12, %v2102_v34, -inf  ;;  %v2046_v1 = vcombine.low %v1924_v31, %v1988_v36  ;;  %v2117_v37 = vrot.slane %v1988_v36, %v3362_v41  ;;  %v2180_v31 = vrot.slane %v2179_v15, 2 }
 0x2da   : > { %v2143_v63 = vrot.slane %v2142_v23, 4  ;;  %v2137_v42 = vmax.f32 %v2135_v35, %v2136_v55  ;;  %v2158_v34 = vmax.f32 %v2156_v57, %v2157_v29  ;;  %v2152_v36 = vrot.slane %v2151_v33, 2 }
 0x2db   : > { %v3511_v12 = vrot.slane %v2046_v1, %v3362_v41  ;;  %v2118_v30 = vcombine.high %v2117_v37, %v2117_v37  ;;  %v2163_v43 = vsel %vm1763_vm12, %v2117_v37, -inf  ;;  %v2181_v35 = vmax.f32 %v2179_v15, %v2180_v31 }
 0x2dc   : > { %v2144_v20 = vmax.f32 %v2142_v23, %v2143_v63  ;;  %v2164_v46 = vrot.slane %v2163_v43, 4  ;;  %v2138_v47 = vrot.slane %v2137_v42, 2  ;;  %v2159_v55 = vrot.slane %v2158_v34, 2 }
 0x2dd   : > { %v2054_v48 = vcombine.low %v3508_v38, %v3511_v12  ;;  %v2055_v49 = vcombine.high %v3508_v38, %v3511_v12  ;;  %v2170_v19 = vsel %vm1763_vm12, %v2118_v30, -inf  ;;  %v2188_v23 = vmax.f32 %v2186_v17, %v2187_v32 }
 0x2de   : > { %v2145_v26 = vrot.slane %v2144_v20, 2  ;;  %v2165_v18 = vmax.f32 %v2163_v43, %v2164_v46  ;;  %v2171_v62 = vrot.slane %v2170_v19, 4  ;;  %v2139_v52 = vmax.f32 %v2137_v42, %v2138_v47 }
 0x2df   : > { %v3521_v21 = vrot.slane %v2054_v48, %v3375_v56  ;;  %v2153_v1 = vmax.f32 %v2151_v33, %v2152_v36  ;;  %v2182_v37 = vrot.slane %v2181_v35, 1  ;;  %v2189_v63 = vrot.slane %v2188_v23, 1 }
 0x2e0   : > { %v2166_v50 = vrot.slane %v2165_v18, 2  ;;  %v2172_v53 = vmax.f32 %v2170_v19, %v2171_v62  ;;  %v2146_v54 = vmax.f32 %v2144_v20, %v2145_v26  ;;  %v2140_v45 = vrot.slane %v2139_v52, 1 }
 0x2e1   : > { %v2070_v24 = vcombine.high %v3521_v21, %v3139_v5  ;;  %v2160_v42 = vmax.f32 %v2158_v34, %v2159_v55  ;;  %v2183_v30 = vmax.f32 %v2181_v35, %v2182_v37  ;;  %v2190_v43 = vmax.f32 %v2188_v23, %v2189_v63 }
 0x2e2   : > { %v2167_v59 = vmax.f32 %v2165_v18, %v2166_v50  ;;  %v2173_v39 = vrot.slane %v2172_v53, 2  ;;  %v2147_v60 = vrot.slane %v2146_v54, 1  ;;  %v2141_v61 = vmax.f32 %v2139_v52, %v2140_v45 }
 0x2e3   : > { %2073 = vrot.lane.b32.xlu0 %v2070_v24, %s3145_s27  ;;  %v2154_v44 = vrot.slane %v2153_v1, 1  ;;  %v2161_v20 = vrot.slane %v2160_v42, 1  ;;  %v2202_v46 = vsel %vm340_vm1, %v2190_v43, %v2183_v30  ;;  %v3538_v26 = vrot.slane %v2055_v49, %v3375_v56 }
 0x2e4   : > { %v2148_v25 = vmax.f32 %v2146_v54, %v2147_v60  ;;  %v2168_v0 = vrot.slane %v2167_v59, 1  ;;  %v2174_v27 = vmax.f32 %v2172_v53, %v2173_v39  ;;  %vm2087_vm12 = vcmask 97280  }
 0x2e5   : > { %v2155_v47 = vmax.f32 %v2153_v1, %v2154_v44  ;;  %v2162_v48 = vmax.f32 %v2160_v42, %v2161_v20 }
 0x2e6   : > { %v2199_v6 = vsel %vm340_vm1, %v2148_v25, %v2141_v61  ;;  %v2175_v4 = vrot.slane %v2174_v27, 1  ;;  %v2169_v10 = vmax.f32 %v2167_v59, %v2168_v0 }
 0x2e7   : > { %2207 = vxpose.xlu1.b32.start.end [1/1] (short) (narrow) %v2199_v6, 8  ;;  %v2200_v19 = vsel %vm340_vm1, %v2162_v48, %v2155_v47 }
 0x2e8   : > { %v2176_v9 = vmax.f32 %v2174_v27, %v2175_v4  ;;  %v3542_v18 = vpop.permute.xlu1 %1291 }
 0x2ea   : > { %v2201_v13 = vsel %vm340_vm1, %v2176_v9, %v2169_v10 }
 0x2eb   : > { %2271 = vxpose.xlu1.b32.start.end [1/1] (short) (narrow) %v2201_v13, 8 }
 0x301   : > { %2303 = vxpose.xlu0.b32.start.end [1/1] (short) (narrow) %v2202_v46, 8 }
 0x305   : > { %2239 = vxpose.xlu0.b32.start.end [1/1] (short) (narrow) %v2200_v19, 8 }
 0x32e   : > { %2077 = vrot.lane.b32.xlu0 %v3538_v26, %s3140_s22 }
 0x355   : > { %v3551_v31 = vpop.permute.xlu0 %2073 }
 0x367   : > { %v2223_v62 = vpop.trf.xlu1 }
 0x368   : > { %v2345_v52 = vrot.slane %v2223_v62, %v3362_v41 }
 0x36a   : > { %v2346_v50 = vcombine.high %v2345_v52, %v2345_v52  ;;  %v2380_v53 = vsel %vm2379_vm15, %v2345_v52, -inf }
 0x36b   : > { %v2381_v54 = vrot.slane %v2380_v53, 4  ;;  %v2287_v51 = vpop.trf.xlu1 }
 0x36c   : > { %v2387_v22 = vsel %vm2379_vm15, %v2346_v50, -inf  ;;  %v2361_v38 = vrot.slane %v2287_v51, %v3362_v41 }
 0x36d   : > { %v2382_v12 = vmax.f32 %v2380_v53, %v2381_v54  ;;  %v2388_v49 = vrot.slane %v2387_v22, 4 }
 0x36e   : > { %v2362_v24 = vcombine.high %v2361_v38, %v2361_v38  ;;  %v2408_v45 = vsel %vm2379_vm15, %v2361_v38, -inf }
 0x36f   : > { %v2383_v59 = vrot.slane %v2382_v12, 2  ;;  %v2389_v39 = vmax.f32 %v2387_v22, %v2388_v49  ;;  %v2409_v60 = vrot.slane %v2408_v45, 4 }
 0x370   : > { %v2415_v61 = vsel %vm2379_vm15, %v2362_v24, -inf }
 0x371   : > { %v2384_v25 = vmax.f32 %v2382_v12, %v2383_v59  ;;  %v2390_v0 = vrot.slane %v2389_v39, 2  ;;  %v2410_v27 = vmax.f32 %v2408_v45, %v2409_v60  ;;  %v2416_v2 = vrot.slane %v2415_v61, 4 }
 0x373   : > { %v2411_v40 = vrot.slane %v2410_v27, 2  ;;  %v2417_v3 = vmax.f32 %v2415_v61, %v2416_v2  ;;  %v2385_v6 = vrot.slane %v2384_v25, 1  ;;  %v2391_v4 = vmax.f32 %v2389_v39, %v2390_v0 }
 0x375   : > { %v2412_v7 = vmax.f32 %v2410_v27, %v2411_v40  ;;  %v2418_v8 = vrot.slane %v2417_v3, 2  ;;  %v2386_v10 = vmax.f32 %v2384_v25, %v2385_v6  ;;  %v2392_v9 = vrot.slane %v2391_v4, 1 }
 0x376   : > { %v1269_v27 = vcombine.high %v3498_v14, %v3139_v5 }
 0x377   : > { %v2393_v11 = vmax.f32 %v2391_v4, %v2392_v9  ;;  %v2413_v57 = vrot.slane %v2412_v7, 1  ;;  %v2419_v13 = vmax.f32 %v2417_v3, %v2418_v8 }
 0x379   : > { %v2444_v15 = vsel %vm340_vm1, %v2393_v11, %v2386_v10  ;;  %v2414_v17 = vmax.f32 %v2412_v7, %v2413_v57  ;;  %v2420_v28 = vrot.slane %v2419_v13, 1 }
 0x37a   : > { %2452 = vxpose.xlu1.b32.start.end [1/1] (short) (narrow) %v2444_v15, 8 }
 0x37b   : > { %v2421_v29 = vmax.f32 %v2419_v13, %v2420_v28 }
 0x37d   : > { %v2446_v32 = vsel %vm340_vm1, %v2421_v29, %v2414_v17 }
 0x37e   : > { %2516 = vxpose.xlu1.b32.start.end [1/1] (short) (narrow) %v2446_v32, 8 }
 0x381   : > { %v2319_v33 = vpop.trf.xlu0 }
 0x382   : > { %v2369_v34 = vrot.slane %v2319_v33, %v3362_v41 }
 0x384   : > { %v2370_v35 = vcombine.high %v2369_v34, %v2369_v34  ;;  %v2422_v36 = vsel %vm2379_vm15, %v2369_v34, -inf }
 0x385   : > { %v2423_v55 = vrot.slane %v2422_v36, 4  ;;  %v2255_v23 = vpop.trf.xlu0 }
 0x386   : > { %v2429_v1 = vsel %vm2379_vm15, %v2370_v35, -inf  ;;  %v2353_v37 = vrot.slane %v2255_v23, %v3362_v41 }
 0x387   : > { %v2424_v63 = vmax.f32 %v2422_v36, %v2423_v55  ;;  %v2430_v42 = vrot.slane %v2429_v1, 4 }
 0x388   : > { %v2354_v30 = vcombine.high %v2353_v37, %v2353_v37  ;;  %v2394_v43 = vsel %vm2379_vm15, %v2353_v37, -inf }
 0x389   : > { %v2425_v44 = vrot.slane %v2424_v63, 2  ;;  %v2431_v20 = vmax.f32 %v2429_v1, %v2430_v42  ;;  %v2395_v46 = vrot.slane %v2394_v43, 4 }
 0x38a   : > { %v2401_v47 = vsel %vm2379_vm15, %v2354_v30, -inf }
 0x38b   : > { %v2426_v48 = vmax.f32 %v2424_v63, %v2425_v44  ;;  %v2432_v19 = vrot.slane %v2431_v20, 2  ;;  %v2396_v62 = vmax.f32 %v2394_v43, %v2395_v46  ;;  %v2402_v52 = vrot.slane %v2401_v47, 4 }
 0x38d   : > { %v2397_v50 = vrot.slane %v2396_v62, 2  ;;  %v2403_v53 = vmax.f32 %v2401_v47, %v2402_v52  ;;  %v2427_v54 = vrot.slane %v2426_v48, 1  ;;  %v2433_v51 = vmax.f32 %v2431_v20, %v2432_v19 }
 0x38f   : > { %v2398_v22 = vmax.f32 %v2396_v62, %v2397_v50  ;;  %v2404_v38 = vrot.slane %v2403_v53, 2  ;;  %v2434_v12 = vrot.slane %v2433_v51, 1  ;;  %v2428_v49 = vmax.f32 %v2426_v48, %v2427_v54 }
 0x391   : > { %v2435_v24 = vmax.f32 %v2433_v51, %v2434_v12  ;;  %v2399_v45 = vrot.slane %v2398_v22, 1  ;;  %v2405_v59 = vmax.f32 %v2403_v53, %v2404_v38  ;;  %v2071_v38 = vcombine.high %v3538_v26, %v3139_v5 }
 0x393   : > { %v2447_v39 = vsel %vm340_vm1, %v2435_v24, %v2428_v49  ;;  %v2406_v60 = vrot.slane %v2405_v59, 1  ;;  %v2400_v61 = vmax.f32 %v2398_v22, %v2399_v45 }
 0x394   : > { %2548 = vxpose.xlu1.b32.start.end [1/1] (short) (narrow) %v2447_v39, 8 }
 0x395   : > { %v2407_v25 = vmax.f32 %v2405_v59, %v2406_v60 }
 0x397   : > { %v2445_v0 = vsel %vm340_vm1, %v2407_v25, %v2400_v61 }
 0x398   : > { %2484 = vxpose.xlu1.b32.start.end [1/1] (short) (narrow) %v2445_v0, 8 }
 0x3b6   : > { %1295 = vrot.lane.b32.xlu1 %v1269_v27, %s3146_s28 }
 0x3fa   : > { %v2468_v2 = vpop.trf.xlu1 }
 0x3fb   : > { %v2615_v40 = vsel %vm2379_vm15, %v2468_v2, -inf }
 0x3fc   : > { %v2616_v3 = vrot.slane %v2615_v40, 4 }
 0x3fe   : > { %v2617_v6 = vmax.f32 %v2615_v40, %v2616_v3  ;;  %v2532_v4 = vpop.trf.xlu1 }
 0x3ff   : > { %v2629_v7 = vsel %vm2379_vm15, %v2532_v4, -inf  ;;  %v2590_v36 = vcombine.low %v2468_v2, %v2532_v4 }
 0x400   : > { %v2618_v8 = vrot.slane %v2617_v6, 2  ;;  %v2630_v10 = vrot.slane %v2629_v7, 4 }
 0x401   : > { %v2597_v44 = vrot.slane %v2590_v36, %v3362_v41 }
 0x402   : > { %v2619_v9 = vmax.f32 %v2617_v6, %v2618_v8  ;;  %v2631_v11 = vmax.f32 %v2629_v7, %v2630_v10 }
 0x404   : > { %v2620_v57 = vrot.slane %v2619_v9, 1  ;;  %v2632_v13 = vrot.slane %v2631_v11, 2 }
 0x406   : > { %v2621_v15 = vmax.f32 %v2619_v9, %v2620_v57  ;;  %v2633_v17 = vmax.f32 %v2631_v11, %v2632_v13 }
 0x408   : > { %2643 = vxpose.xlu1.b32.start.end [1/1] (short) (narrow) %v2621_v15, 8  ;;  %v2634_v14 = vrot.slane %v2633_v17, 1 }
 0x40a   : > { %v2635_v28 = vmax.f32 %v2633_v17, %v2634_v14 }
 0x40c   : > { %2707 = vxpose.xlu0.b32.start.end [1/1] (short) (narrow) %v2635_v28, 8 }
 0x414   : > { %v2564_v29 = vpop.trf.xlu1 }
 0x415   : > { %v2636_v32 = vsel %vm2379_vm15, %v2564_v29, -inf  ;;  %v2581_v55 = vsub.f32 1.0, %v2564_v29 }
 0x416   : > { %v2637_v33 = vrot.slane %v2636_v32, 4 }
 0x418   : > { %v2638_v34 = vmax.f32 %v2636_v32, %v2637_v33  ;;  %v2500_v35 = vpop.trf.xlu1 }
 0x419   : > { %v2580_v23 = vsub.f32 1.0, %v2500_v35  ;;  %v2622_v1 = vsel %vm2379_vm15, %v2500_v35, -inf }
 0x41a   : > { %v2639_v37 = vrot.slane %v2638_v34, 2  ;;  %v2623_v63 = vrot.slane %v2622_v1, 4 }
 0x41b   : > { %v2582_v42 = vcombine.low %v2580_v23, %v2581_v55 }
 0x41c   : > { %v2624_v30 = vmax.f32 %v2622_v1, %v2623_v63  ;;  %v2640_v43 = vmax.f32 %v2638_v34, %v2639_v37  ;;  %v2085_v34 = vsel %vm2084_vm11, %v3521_v21, %v3551_v31 }
 0x41d   : > { %v2589_v20 = vrot.slane %v2582_v42, %v3362_v41  ;;  %v1307_v41 = vsel %vm1306_vm0, %v3484_v58, %v3501_v16 }
 0x41e   : > { %v2625_v46 = vrot.slane %v2624_v30, 2  ;;  %v2641_v47 = vrot.slane %v2640_v43, 1 }
 0x41f   : > { %v2598_v48 = vcombine.low %v2589_v20, %v2597_v44 }
 0x420   : > { %v2642_v19 = vmax.f32 %v2640_v43, %v2641_v47  ;;  %v2626_v62 = vmax.f32 %v2624_v30, %v2625_v46 }
 0x421   : > { %v2605_v52 = vrot.slane %v2598_v48, %v3375_v56  ;;  %v1309_v56 = vsel %vm1308_vm4, %v1307_v41, %v3542_v18 }
 0x422   : > { %2739 = vxpose.xlu0.b32.start.end [1/1] (short) (narrow) %v2642_v19, 8  ;;  %v2627_v50 = vrot.slane %v2626_v62, 1 }
 0x423   : > { %v2606_v53 = vcombine.high %v2605_v52, %v3139_v5  ;;  %v2078_v5 = vpop.permute.xlu0 %2077 }
 0x424   : > { %v2628_v54 = vmax.f32 %v2626_v62, %v2627_v50  ;;  %v2086_v35 = vsel %vm1298_vm10, %v2085_v34, %v2078_v5 }
 0x426   : > { %2675 = vxpose.xlu0.b32.start.end [1/1] (short) (narrow) %v2628_v54, 8  ;;  %2608 = vrot.lane.b32.xlu1 %v2606_v53, %s3147_s30 }
 0x428   : > { %v1296_v51 = vpop.permute.xlu1 %1295 }
 0x429   : > { %v1311_v22 = vsel %vm1310_vm5, %v1309_v56, %v1296_v51 }
 0x42a   : > { %1313 = vst.msk [vmem:[%s214_s7] sm:$0xf] %vm1312_vm6, %v1311_v22 }
 0x44f   : > { %2081 = vrot.lane.b32.xlu0 %v2071_v38, %s3148_s8 }
 0x488   : > { %v2659_v12 = vpop.trf.xlu1 }
 0x489   : > { %v2772_v58 = vsel %vm2771_vm7, %v2659_v12, -inf }
 0x48a   : > { %v2773_v16 = vrot.slane %v2772_v58, 4 }
 0x48c   : > { %v2774_v49 = vmax.f32 %v2772_v58, %v2773_v16  ;;  %v2723_v60 = vpop.trf.xlu0 }
 0x48d   : > { %v2786_v61 = vsel %vm2771_vm7, %v2723_v60, -inf }
 0x48e   : > { %v2775_v24 = vrot.slane %v2774_v49, 2  ;;  %v2787_v25 = vrot.slane %v2786_v61, 4 }
 0x490   : > { %v2776_v45 = vmax.f32 %v2774_v49, %v2775_v24  ;;  %v2788_v40 = vmax.f32 %v2786_v61, %v2787_v25 }
 0x492   : > { %v2777_v59 = vrot.slane %v2776_v45, 1  ;;  %v2789_v10 = vrot.slane %v2788_v40, 2 }
 0x494   : > { %v2778_v39 = vmax.f32 %v2776_v45, %v2777_v59  ;;  %v2790_v14 = vmax.f32 %v2788_v40, %v2789_v10 }
 0x496   : > { %2800 = vxpose.xlu1.b32.start.end [1/1] (short) (narrow) %v2778_v39, 8  ;;  %v2791_v32 = vrot.slane %v2790_v14, 1 }
 0x498   : > { %v2609_v26 = vpop.permute.xlu1 %2608  ;;  %v2792_v33 = vmax.f32 %v2790_v14, %v2791_v32 }
 0x499   : > { %v2612_v18 = vsel %vm2611_vm8, %v2605_v52, %v2609_v26 }
 0x49a   : > { %2614 = vst.msk [vmem:[%s222_s11] sm:$0xf] %vm2613_vm9, %v2612_v18 }
 0x4a2   : > { %v2755_v0 = vpop.trf.xlu0 }
 0x4a3   : > { %v2793_v27 = vsel %vm2771_vm7, %v2755_v0, -inf }
 0x4a4   : > { %v2794_v2 = vrot.slane %v2793_v27, 4 }
 0x4a6   : > { %v2795_v3 = vmax.f32 %v2793_v27, %v2794_v2  ;;  %v2691_v6 = vpop.trf.xlu0 }
 0x4a7   : > { %v2779_v4 = vsel %vm2771_vm7, %v2691_v6, -inf }
 0x4a8   : > { %v2796_v7 = vrot.slane %v2795_v3, 2  ;;  %v2780_v8 = vrot.slane %v2779_v4, 4 }
 0x4aa   : > { %v2797_v9 = vmax.f32 %v2795_v3, %v2796_v7  ;;  %v2781_v11 = vmax.f32 %v2779_v4, %v2780_v8 }
 0x4ac   : > { %v2798_v57 = vrot.slane %v2797_v9, 1  ;;  %v2782_v13 = vrot.slane %v2781_v11, 2 }
 0x4ae   : > { %v2799_v15 = vmax.f32 %v2797_v9, %v2798_v57  ;;  %v2783_v17 = vmax.f32 %v2781_v11, %v2782_v13 }
 0x4b0   : > { %2896 = vxpose.xlu0.b32.start.end [1/1] (short) (narrow) %v2799_v15, 8  ;;  %v2784_v28 = vrot.slane %v2783_v17, 1 }
 0x4b2   : > { %v2785_v29 = vmax.f32 %v2783_v17, %v2784_v28 }
 0x4b4   : > { %2832 = vxpose.xlu0.b32.start.end [1/1] (short) (narrow) %v2785_v29, 8 }
 0x4b8   : > { %2864 = vxpose.xlu0.b32.start.end [1/1] (short) (narrow) %v2792_v33, 8 }
 0x4c1   : > { %v2082_v36 = vpop.permute.xlu0 %2081 }
 0x4c2   : > { %v2088_v55 = vsel %vm2087_vm12, %v2086_v35, %v2082_v36 }
 0x4c3   : > { %2090 = vst.msk [vmem:[%s218_s14] sm:$0xf] %vm2089_vm13, %v2088_v55 }
 0x516   : > { %v2816_v1 = vpop.trf.xlu1 }
 0x517   : > { %v2934_v37 = vrot.slane %v2816_v1, 7 }
 0x530   : > { %v2912_v23 = vpop.trf.xlu0 }
 0x531   : > { %v2929_v63 = vsub.f32 1.0, %v2912_v23 }
 0x533   : > { %v2936_v21 = vrot.slane %v2929_v63, 6 }
 0x534   : > { %v2848_v42 = vpop.trf.xlu0 }
 0x535   : > { %v2928_v30 = vsub.f32 1.0, %v2848_v42 }
 0x537   : > { %v2935_v43 = vsel %vm340_vm1, %v2934_v37, %v2928_v30 }
 0x538   : > { %v2880_v31 = vpop.trf.xlu0  ;;  %v2937_v20 = vsel %vm342_vm2, %v2936_v21, %v2935_v43 }
 0x539   : > { %v2938_v44 = vrot.slane %v2880_v31, 5 }
 0x53b   : > { %v2939_v46 = vsel %vm344_vm3, %v2938_v44, %v2937_v20 }
 0x53c   : > { %2942 = vst.msk [vmem:[%s226_s18] sm:$0xf] %vm2941_vm14, %v2939_v46 }
 0x53d PF: > { %s15_s15 = sadd.s32 1, %s3134_s15  }
 0x53e   : > { %p12_p4 = scmp.ge.s32.totalorder %s15_s15, 4  }
 0x540   :  { %14 = sbr.rel (!%p12_p4) target bundleno = 1 (0x1), region = 90 }

// kernel: skip_module_apply.9
= control target key start
LH: loop header
LB: loop body
LE: loop exit
PB: predicated region body
PF: predicated region fallthrough
CT: control target
= control target key end

     0   :  { %v36_v1 = vlaneseq  ;;  %s2068_s23 = smov 48   ;;  %v2069_v3 = vmov 1983009808   ;;  %s2070_s24 = smov 64   ;;  %vm211_vm0 = vcmask 1041409   ;;  %vm131_vm1 = vcmask 130048   ;;  %s2742_s0 = inlined_call_operand.vmem [shape: bf16[2,3,3,16], index: 0, kind: input, shape index: {}]   ;;  %s2743_s1 = inlined_call_operand.vmem [shape: bf16[144,512], index: 1, kind: input, shape index: {}]   ;;  %s2744_s2 = inlined_call_operand.vmem [shape: f32[1,512], index: 2, kind: input, shape index: {}]   ;;  %s2745_s3 = inlined_call_operand.vmem [shape: f32[1,512], index: 3, kind: input, shape index: {}]   ;;  %s2746_s4 = inlined_call_operand.vmem [shape: bf16[512,512], index: 4, kind: input, shape index: {}]   ;;  %s2747_s5 = inlined_call_operand.vmem [shape: f32[1,512], index: 5, kind: input, shape index: {}]   ;;  %s2748_s6 = inlined_call_operand.hbm [shape: f32[2,1,512], index: 6, kind: output, shape index: {}]  }
   0x1   :  { %v1618_v0 = vld.sshfl [vmem:[%s2742_s0 + $0x8] sm:$0x3 pattern:$0x76325410]  ;;  %v34_v4 = vunpack.c.l.s4 %v2069_v3  ;;  %v2125_v7 = vld [vmem:[%s2742_s0 + $0x6] sm:$0x3] }
   0x2   :  { %81 = vrot.lane.b32.xlu1 %v1618_v0, %s2068_s23  ;;  %v87_v2 = vshrl.u32 %v1618_v0, 16  ;;  %v2119_v5 = vshrl.u32 %v36_v1, 7  ;;  %v2130_v8 = vld [vmem:[%s2742_s0] sm:$0x3]  ;;  %v1798_v10 = vld [vmem:[%s2743_s1 + $0x4] ss:$16 sps:$4 sm:$0xff]  }
   0x3   :  { %v35_v6 = vunpack.c.0.s8 %v34_v4  ;;  %v1800_v11 = vld [vmem:[%s2743_s1 + $0xc] ss:$16 sps:$4 sm:$0xff]   ;;  %401 = vmatprep.subr.bf16.mxu0 %v1798_v10  ;;  %v1802_v14 = vld [vmem:[%s2743_s1] ss:$16 sps:$4 sm:$0xff]   ;;  %v1803_v15 = vld [vmem:[%s2743_s1 + $0x8] ss:$16 sps:$4 sm:$0xff]  }
   0x4   :  { %442 = vmatprep.subr.bf16.mxu1 %v1800_v11  ;;  %v1804_v16 = vld [vmem:[%s2743_s1 + $0x24] ss:$16 sps:$4 sm:$0xff]   ;;  %402 = vmatpush1.bf16.msra.mxu0 %v1802_v14  ;;  %v1620_v19 = vld.sshfl [vmem:[%s2742_s0 + $0xa] sm:$0x3 pattern:$0x76325410] }
   0x5   :  { %v38_v9 = vsub.s32 %v35_v6, %v2119_v5  ;;  %443 = vmatpush1.bf16.msra.mxu1 %v1803_v15  ;;  %403 = vmatprep.subr.bf16.mxu0 %v1804_v16  ;;  %v1806_v20 = vld [vmem:[%s2743_s1 + $0x2c] ss:$16 sps:$4 sm:$0xff]   ;;  %v1808_v21 = vld [vmem:[%s2743_s1 + $0x20] ss:$16 sps:$4 sm:$0xff]   ;;  %v1809_v22 = vld [vmem:[%s2743_s1 + $0x28] ss:$16 sps:$4 sm:$0xff]  }
   0x6   :  { %91 = vrot.lane.b32.xlu1 %v87_v2, %s2070_s24  ;;  %s2071_s25 = smov 16   ;;  %v94_v24 = vrot.slane %v1618_v0, 1  ;;  %v1810_v25 = vld [vmem:[%s2743_s1 + $0x44] ss:$16 sps:$4 sm:$0xff]   ;;  %444 = vmatprep.subr.bf16.mxu1 %v1806_v20  ;;  %v1812_v26 = vld [vmem:[%s2743_s1 + $0x4c] ss:$16 sps:$4 sm:$0xff]  }
   0x7   :  { %v46_v12 = vrot.slane %v2125_v7, %v38_v9  ;;  %v39_v13 = vrot.slane %v2130_v8, %v38_v9  ;;  %v130_v27 = vrot.slane %v1620_v19, 1  ;;  %v1814_v28 = vld [vmem:[%s2743_s1 + $0x40] ss:$16 sps:$4 sm:$0xff]   ;;  %v1815_v29 = vld [vmem:[%s2743_s1 + $0x48] ss:$16 sps:$4 sm:$0xff]   ;;  %s2072_s14 = smov 32  }
   0x8   :  { %404 = vmatpush1.bf16.msra.mxu0 %v1808_v21  ;;  %v2177_v30 = vld.sshfl [vmem:[%s2742_s0 + $0x4] sm:$0x3 pattern:$0x76325410]  ;;  %s2073_s15 = smov 80   ;;  %s2074_s28 = smov 96  }
   0x9   :  { %v51_v17 = vshrl.u32 %v46_v12, 16  ;;  %v48_v18 = vshrl.u32 %v39_v13, 16  ;;  %v58_v23 = vrot.slane %v46_v12, 1  ;;  %445 = vmatpush1.bf16.msra.mxu1 %v1809_v22  ;;  %405 = vmatprep.subr.bf16.mxu0 %v1810_v25  ;;  %v1816_v31 = vld [vmem:[%s2743_s1 + $0x64] ss:$16 sps:$4 sm:$0xff]   ;;  %v57_v32 = vrot.slane %v39_v13, 1 }
   0xa   :  { %446 = vmatprep.subr.bf16.mxu1 %v1812_v26  ;;  %v1818_v33 = vld [vmem:[%s2743_s1 + $0x6c] ss:$16 sps:$4 sm:$0xff]   ;;  %v1820_v34 = vld [vmem:[%s2743_s1 + $0x60] ss:$16 sps:$4 sm:$0xff]   ;;  %v209_v35 = vunpack.c.l.b16 %v130_v27  ;;  %v129_v36 = vrot.slane %v2177_v30, 1  ;;  %v123_v41 = vshrl.u32 %v1620_v19, 16 }
   0xb   :  { %55 = vrot.lane.b32.xlu0 %v51_v17, %s2071_s25  ;;  %53 = vrot.lane.b32.xlu1 %v48_v18, %s2071_s25  ;;  %v1821_v37 = vld [vmem:[%s2743_s1 + $0x68] ss:$16 sps:$4 sm:$0xff]   ;;  %v1822_v38 = vld [vmem:[%s2743_s1 + $0x84] ss:$16 sps:$4 sm:$0xff]   ;;  %v120_v49 = vshrl.u32 %v2177_v30, 16 }
   0xc   :  { %406 = vmatpush1.bf16.msra.mxu0 %v1814_v28  ;;  %v1824_v39 = vld [vmem:[%s2743_s1 + $0x8c] ss:$16 sps:$4 sm:$0xff]   ;;  %v1617_v40 = vld.sshfl [vmem:[%s2742_s0 + $0x2] sm:$0x3 pattern:$0x76325410]  ;;  %v207_v44 = vunpack.c.l.b16 %v129_v36 }
   0xd   :  { %447 = vmatpush1.bf16.msra.mxu1 %v1815_v29  ;;  %407 = vmatprep.subr.bf16.mxu0 %v1816_v31  ;;  %v1826_v42 = vld [vmem:[%s2743_s1 + $0x80] ss:$16 sps:$4 sm:$0xff]   ;;  %v213_v43 = vrot.slane %v209_v35, 7  ;;  %v1827_v45 = vld [vmem:[%s2743_s1 + $0x88] ss:$16 sps:$4 sm:$0xff]   ;;  %v84_v48 = vshrl.u32 %v1617_v40, 16 }
   0xe   :  { %448 = vmatprep.subr.bf16.mxu1 %v1818_v33  ;;  %v1828_v46 = vld [vmem:[%s2743_s1 + $0xa4] ss:$16 sps:$4 sm:$0xff]   ;;  %v1830_v47 = vld [vmem:[%s2743_s1 + $0xac] ss:$16 sps:$4 sm:$0xff]   ;;  %v1832_v50 = vld [vmem:[%s2743_s1 + $0xa0] ss:$16 sps:$4 sm:$0xff]  }
   0xf   :  { %61 = vrot.lane.b32.xlu0 %v58_v23, %s2072_s14  ;;  %97 = vrot.lane.b32.xlu1 %v94_v24, %s2073_s15  ;;  %v1833_v51 = vld [vmem:[%s2743_s1 + $0xa8] ss:$16 sps:$4 sm:$0xff]   ;;  %v1834_v52 = vld [vmem:[%s2743_s1 + $0xc4] ss:$16 sps:$4 sm:$0xff]   ;;  %v214_v53 = vsel %vm211_vm0, %v213_v43, %v207_v44  ;;  %v93_v56 = vrot.slane %v1617_v40, 1 }
  0x10   :  { %408 = vmatpush1.bf16.msra.mxu0 %v1820_v34  ;;  %v1836_v54 = vld [vmem:[%s2743_s1 + $0xcc] ss:$16 sps:$4 sm:$0xff]   ;;  %v216_v55 = vpack.c.b16 %v214_v53, %v214_v53  ;;  %v1838_v57 = vld [vmem:[%s2743_s1 + $0xc0] ss:$16 sps:$4 sm:$0xff]   ;;  %v1839_v58 = vld [vmem:[%s2743_s1 + $0xc8] ss:$16 sps:$4 sm:$0xff]  }
  0x11   :  { %449 = vmatpush1.bf16.msra.mxu1 %v1821_v37  ;;  %409 = vmatprep.subr.bf16.mxu0 %v1822_v38  ;;  %v1840_v59 = vld [vmem:[%s2743_s1 + $0xe4] ss:$16 sps:$4 sm:$0xff]   ;;  %v1842_v60 = vld [vmem:[%s2743_s1 + $0xec] ss:$16 sps:$4 sm:$0xff]   ;;  %v1844_v61 = vld [vmem:[%s2743_s1 + $0xe0] ss:$16 sps:$4 sm:$0xff]  }
  0x12   :  { %450 = vmatprep.subr.bf16.mxu1 %v1824_v39  ;;  %1657 = vmatprep.mubr.msk.bf16.mxu0 %vm131_vm1, %v216_v55  ;;  %v1845_v62 = vld [vmem:[%s2743_s1 + $0xe8] ss:$16 sps:$4 sm:$0xff]   ;;  %v1846_v63 = vld [vmem:[%s2743_s1 + $0x104] ss:$16 sps:$4 sm:$0xff]   ;;  %v1848_v0 = vld [vmem:[%s2743_s1 + $0x10c] ss:$16 sps:$4 sm:$0xff]  }
  0x13   :  { %59 = vrot.lane.b32.xlu0 %v57_v32, %s2072_s14  ;;  %117 = vrot.lane.b32.xlu1 %v1620_v19, %s2074_s28  ;;  %s2075_s14 = smov 112   ;;  %v1850_v2 = vld [vmem:[%s2743_s1 + $0x100] ss:$16 sps:$4 sm:$0xff]   ;;  %v1851_v3 = vld [vmem:[%s2743_s1 + $0x108] ss:$16 sps:$4 sm:$0xff]  }
  0x14   :  { %410 = vmatpush1.bf16.msra.mxu0 %v1826_v42  ;;  %1658 = vmatprep.mubr.msk.bf16.mxu1 %vm131_vm1, %v216_v55  ;;  %v1854_v4 = vld [vmem:[%s2746_s4 + $0x4] ss:$16 sps:$4 sm:$0xff]  }
  0x15   :  { %451 = vmatpush1.bf16.msra.mxu1 %v1827_v45  ;;  %411 = vmatprep.subr.bf16.mxu0 %v1828_v46  ;;  %v1857_v6 = vld [vmem:[%s2746_s4 + $0x204] ss:$16 sps:$4 sm:$0xff]  }
  0x16   :  { %452 = vmatprep.subr.bf16.mxu1 %v1830_v47 }
  0x17   :  { %79 = vrot.lane.b32.xlu0 %v1617_v40, %s2068_s23  ;;  %127 = vrot.lane.b32.xlu1 %v123_v41, %s2075_s14 }
  0x18   :  { %412 = vmatpush1.bf16.msra.mxu0 %v1832_v50 }
  0x19   :  { %453 = vmatpush1.bf16.msra.mxu1 %v1833_v51  ;;  %413 = vmatprep.subr.bf16.mxu0 %v1834_v52 }
  0x1a   :  { %454 = vmatprep.subr.bf16.mxu1 %v1836_v54 }
  0x1b   :  { %89 = vrot.lane.b32.xlu0 %v84_v48, %s2070_s24  ;;  %125 = vrot.lane.b32.xlu1 %v120_v49, %s2075_s14 }
  0x1c   :  { %414 = vmatpush1.bf16.msra.mxu0 %v1838_v57 }
  0x1d   :  { %455 = vmatpush1.bf16.msra.mxu1 %v1839_v58  ;;  %415 = vmatprep.subr.bf16.mxu0 %v1840_v59 }
  0x1e   :  { %456 = vmatprep.subr.bf16.mxu1 %v1842_v60 }
  0x1f   :  { %95 = vrot.lane.b32.xlu0 %v93_v56, %s2073_s15 }
  0x20   :  { %416 = vmatpush1.bf16.msra.mxu0 %v1844_v61 }
  0x21   :  { %457 = vmatpush1.bf16.msra.mxu1 %v1845_v62  ;;  %417 = vmatprep.subr.bf16.mxu0 %v1846_v63 }
  0x22   :  { %458 = vmatprep.subr.bf16.mxu1 %v1848_v0 }
  0x23   :  { %115 = vrot.lane.b32.xlu0 %v2177_v30, %s2074_s28 }
  0x24   :  { %418 = vmatpush1.bf16.msra.mxu0 %v1850_v2 }
  0x25   :  { %459 = vmatpush1.bf16.msra.mxu1 %v1851_v3  ;;  %1375 = vmatprep.subr.bf16.mxu0 %v1854_v4 }
  0x26   :  { %1416 = vmatprep.subr.bf16.mxu1 %v1857_v6 }
  0x27   :  { %11 = vsyncpa [#allocation3], 0  ;;  %vm138_vm2 = vcmask 261120   ;;  %vm143_vm3 = vcmask 392192   ;;  %vm148_vm4 = vcmask 523264   ;;  %vm153_vm5 = vcmask 654336  }
  0x28   :  { %vm158_vm6 = vcmask 785408   ;;  %vm163_vm7 = vcmask 916480   ;;  %v1855_v40 = vld [vmem:[%s2746_s4 + $0x200] ss:$16 sps:$4 sm:$0xff]   ;;  %v1860_v42 = vld [vmem:[%s2746_s4 + $0x24] ss:$16 sps:$4 sm:$0xff]  }
  0x29   :  { %v1863_v43 = vld [vmem:[%s2746_s4 + $0x224] ss:$16 sps:$4 sm:$0xff]   ;;  %v1858_v44 = vld [vmem:[%s2746_s4 + $0x20] ss:$16 sps:$4 sm:$0xff]   ;;  %vm1597_vm8 = vcmp.lt.s32.totalorder %v36_v1, 512 }
  0x2a   :  { %v1861_v45 = vld [vmem:[%s2746_s4 + $0x220] ss:$16 sps:$4 sm:$0xff]   ;;  %v1866_v46 = vld [vmem:[%s2746_s4 + $0x44] ss:$16 sps:$4 sm:$0xff]  }
  0x2b   :  { %v1869_v47 = vld [vmem:[%s2746_s4 + $0x244] ss:$16 sps:$4 sm:$0xff]   ;;  %v1864_v48 = vld [vmem:[%s2746_s4 + $0x40] ss:$16 sps:$4 sm:$0xff]  }
  0x2c   :  { %v1867_v49 = vld [vmem:[%s2746_s4 + $0x240] ss:$16 sps:$4 sm:$0xff]   ;;  %v1872_v50 = vld [vmem:[%s2746_s4 + $0x64] ss:$16 sps:$4 sm:$0xff]  }
  0x2d   :  { %v1875_v51 = vld [vmem:[%s2746_s4 + $0x264] ss:$16 sps:$4 sm:$0xff]   ;;  %v1870_v52 = vld [vmem:[%s2746_s4 + $0x60] ss:$16 sps:$4 sm:$0xff]  }
  0x2e   :  { %v1873_v53 = vld [vmem:[%s2746_s4 + $0x260] ss:$16 sps:$4 sm:$0xff]   ;;  %v1878_v54 = vld [vmem:[%s2746_s4 + $0x84] ss:$16 sps:$4 sm:$0xff]  }
  0x2f   :  { %v1881_v55 = vld [vmem:[%s2746_s4 + $0x284] ss:$16 sps:$4 sm:$0xff]   ;;  %v1876_v56 = vld [vmem:[%s2746_s4 + $0x80] ss:$16 sps:$4 sm:$0xff]  }
  0x30   :  { %v1879_v57 = vld [vmem:[%s2746_s4 + $0x280] ss:$16 sps:$4 sm:$0xff]   ;;  %v1884_v58 = vld [vmem:[%s2746_s4 + $0xa4] ss:$16 sps:$4 sm:$0xff]  }
  0x31   :  { %v1887_v59 = vld [vmem:[%s2746_s4 + $0x2a4] ss:$16 sps:$4 sm:$0xff]   ;;  %v1882_v60 = vld [vmem:[%s2746_s4 + $0xa0] ss:$16 sps:$4 sm:$0xff]  }
  0x32   :  { %v1885_v61 = vld [vmem:[%s2746_s4 + $0x2a0] ss:$16 sps:$4 sm:$0xff]   ;;  %v1890_v62 = vld [vmem:[%s2746_s4 + $0xc4] ss:$16 sps:$4 sm:$0xff]  }
  0x33   :  { %v1893_v63 = vld [vmem:[%s2746_s4 + $0x2c4] ss:$16 sps:$4 sm:$0xff]   ;;  %v1888_v0 = vld [vmem:[%s2746_s4 + $0xc0] ss:$16 sps:$4 sm:$0xff]  }
  0x34   :  { %v1891_v2 = vld [vmem:[%s2746_s4 + $0x2c0] ss:$16 sps:$4 sm:$0xff]   ;;  %v1896_v3 = vld [vmem:[%s2746_s4 + $0xe4] ss:$16 sps:$4 sm:$0xff]  }
  0x35   :  { %v1899_v4 = vld [vmem:[%s2746_s4 + $0x2e4] ss:$16 sps:$4 sm:$0xff]   ;;  %v1894_v6 = vld [vmem:[%s2746_s4 + $0xe0] ss:$16 sps:$4 sm:$0xff]  }
  0x74   :  { %v82_v9 = vpop.permute.xlu1 %81 }
  0x78   :  { %v92_v10 = vpop.permute.xlu1 %91 }
  0x7d   :  { %v56_v11 = vpop.permute.xlu0 %55  ;;  %v54_v12 = vpop.permute.xlu1 %53 }
  0x7e   :  { %v137_v15 = vsel %vm131_vm1, %v2125_v7, %v56_v11  ;;  %v134_v7 = vsel %vm131_vm1, %v2130_v8, %v54_v12  ;;  %v1852_v8 = vld [vmem:[%s2746_s4] ss:$16 sps:$4 sm:$0xff]   ;;  %v1905_v11 = vld [vmem:[%s2746_s4 + $0x304] ss:$16 sps:$4 sm:$0xff]  }
  0x7f   :  { %v1900_v12 = vld [vmem:[%s2746_s4 + $0x100] ss:$16 sps:$4 sm:$0xff]  }
  0x81   :  { %v62_v13 = vpop.permute.xlu0 %61  ;;  %v98_v14 = vpop.permute.xlu1 %97 }
  0x82   :  { %v142_v16 = vsel %vm138_vm2, %v137_v15, %v62_v13  ;;  %v1903_v13 = vld [vmem:[%s2746_s4 + $0x300] ss:$16 sps:$4 sm:$0xff]   ;;  %v1911_v15 = vld [vmem:[%s2746_s4 + $0x324] ss:$16 sps:$4 sm:$0xff]  }
  0x83   :  { %v147_v18 = vsel %vm143_vm3, %v142_v16, %v82_v9  ;;  %v1897_v9 = vld [vmem:[%s2746_s4 + $0x2e0] ss:$16 sps:$4 sm:$0xff]  }
  0x84   :  { %v152_v21 = vsel %vm148_vm4, %v147_v18, %v92_v10  ;;  %v1902_v10 = vld [vmem:[%s2746_s4 + $0x104] ss:$16 sps:$4 sm:$0xff]   ;;  %v1906_v16 = vld [vmem:[%s2746_s4 + $0x120] ss:$16 sps:$4 sm:$0xff]  }
  0x85   :  { %v60_v17 = vpop.permute.xlu0 %59  ;;  %v118_v19 = vpop.permute.xlu1 %117  ;;  %v157_v22 = vsel %vm153_vm5, %v152_v21, %v98_v14  ;;  %v1908_v14 = vld [vmem:[%s2746_s4 + $0x124] ss:$16 sps:$4 sm:$0xff]   ;;  %v1915_v21 = vld [vmem:[%s2746_s4 + $0x340] ss:$16 sps:$4 sm:$0xff]  }
  0x86   :  { %v162_v25 = vsel %vm158_vm6, %v157_v22, %v118_v19  ;;  %v140_v28 = vsel %vm138_vm2, %v134_v7, %v60_v17  ;;  %v1909_v17 = vld [vmem:[%s2746_s4 + $0x320] ss:$16 sps:$4 sm:$0xff]   ;;  %v1914_v18 = vld [vmem:[%s2746_s4 + $0x144] ss:$16 sps:$4 sm:$0xff]  }
  0x87   :  { %v1917_v19 = vld [vmem:[%s2746_s4 + $0x344] ss:$16 sps:$4 sm:$0xff]   ;;  %v1921_v7 = vld [vmem:[%s2746_s4 + $0x360] ss:$16 sps:$4 sm:$0xff]  }
  0x88   :  { %v1920_v22 = vld [vmem:[%s2746_s4 + $0x164] ss:$16 sps:$4 sm:$0xff]  }
  0x89   :  { %v80_v20 = vpop.permute.xlu0 %79  ;;  %v128_v24 = vpop.permute.xlu1 %127 }
  0x8a   :  { %v167_v26 = vsel %vm163_vm7, %v162_v25, %v128_v24  ;;  %v145_v29 = vsel %vm143_vm3, %v140_v28, %v80_v20  ;;  %v1912_v20 = vld [vmem:[%s2746_s4 + $0x140] ss:$16 sps:$4 sm:$0xff]   ;;  %v1926_v25 = vld [vmem:[%s2746_s4 + $0x184] ss:$16 sps:$4 sm:$0xff]  }
  0x8b   :  { %v208_v30 = vunpack.c.l.b16 %v167_v26  ;;  %v1918_v24 = vld [vmem:[%s2746_s4 + $0x160] ss:$16 sps:$4 sm:$0xff]   ;;  %v1929_v26 = vld [vmem:[%s2746_s4 + $0x384] ss:$16 sps:$4 sm:$0xff]  }
  0x8c   :  { %v1927_v28 = vld [vmem:[%s2746_s4 + $0x380] ss:$16 sps:$4 sm:$0xff]  }
  0x8d   :  { %v90_v23 = vpop.permute.xlu0 %89  ;;  %v126_v32 = vpop.permute.xlu1 %125  ;;  %v210_v37 = vrot.slane %v208_v30, 7  ;;  %v1935_v30 = vld [vmem:[%s2746_s4 + $0x3a4] ss:$16 sps:$4 sm:$0xff]  }
  0x8e   :  { %v150_v31 = vsel %vm148_vm4, %v145_v29, %v90_v23  ;;  %v1923_v23 = vld [vmem:[%s2746_s4 + $0x364] ss:$16 sps:$4 sm:$0xff]  }
  0x8f   :  { %v1932_v29 = vld [vmem:[%s2746_s4 + $0x1a4] ss:$16 sps:$4 sm:$0xff]  }
  0x91   :  { %v96_v27 = vpop.permute.xlu0 %95 }
  0x92   :  { %v155_v33 = vsel %vm153_vm5, %v150_v31, %v96_v27  ;;  %v1924_v27 = vld [vmem:[%s2746_s4 + $0x180] ss:$16 sps:$4 sm:$0xff]  }
  0x93   :  { %v1930_v31 = vld [vmem:[%s2746_s4 + $0x1a0] ss:$16 sps:$4 sm:$0xff]  }
  0x95   :  { %v116_v34 = vpop.permute.xlu0 %115 }
  0x96   :  { %v160_v35 = vsel %vm158_vm6, %v155_v33, %v116_v34  ;;  %v1938_v33 = vld [vmem:[%s2746_s4 + $0x1c4] ss:$16 sps:$4 sm:$0xff]  }
  0x97   :  { %v165_v36 = vsel %vm163_vm7, %v160_v35, %v126_v32  ;;  %v1933_v32 = vld [vmem:[%s2746_s4 + $0x3a0] ss:$16 sps:$4 sm:$0xff]   ;;  %v1941_v34 = vld [vmem:[%s2746_s4 + $0x3c4] ss:$16 sps:$4 sm:$0xff]  }
  0x98   :  { %v206_v38 = vunpack.c.l.b16 %v165_v36  ;;  %v1936_v35 = vld [vmem:[%s2746_s4 + $0x1c0] ss:$16 sps:$4 sm:$0xff]  }
  0x99   :  { %v1939_v36 = vld [vmem:[%s2746_s4 + $0x3c0] ss:$16 sps:$4 sm:$0xff]  }
  0x9a   :  { %v212_v39 = vsel %vm211_vm0, %v210_v37, %v206_v38  ;;  %v1944_v37 = vld [vmem:[%s2746_s4 + $0x1e4] ss:$16 sps:$4 sm:$0xff]  }
  0x9b   :  { %v215_v41 = vpack.c.b16 %v212_v39, %v212_v39  ;;  %v1947_v38 = vld [vmem:[%s2746_s4 + $0x3e4] ss:$16 sps:$4 sm:$0xff]   ;;  %v1942_v39 = vld [vmem:[%s2746_s4 + $0x1e0] ss:$16 sps:$4 sm:$0xff]  }
  0x9d   :  { %434 = vmatmul.mubr.bf16.vlgmr.msra.gmra.mrb[0].mxu0 %v215_v41  ;;  %475 = vmatmul.mubr.bf16.vlgmr.msra.gmra.mrb[0].mxu1 %v215_v41  ;;  %v1953_v41 = vld [vmem:[%s2746_s4 + $0x20c] ss:$16 sps:$4 sm:$0xff]  }
  0x9e   :  { %1376 = vmatpush1.bf16.msra.mxu0 %v1852_v8  ;;  %1417 = vmatpush1.bf16.msra.mxu1 %v1855_v40  ;;  %v1945_v8 = vld [vmem:[%s2746_s4 + $0x3e0] ss:$16 sps:$4 sm:$0xff]   ;;  %v1950_v40 = vld [vmem:[%s2746_s4 + $0xc] ss:$16 sps:$4 sm:$0xff]  }
  0x9f   :  { %1377 = vmatprep.subr.bf16.mxu0 %v1860_v42  ;;  %1418 = vmatprep.subr.bf16.mxu1 %v1863_v43  ;;  %v2476_v42 = vsub.s32 0, %v2119_v5  ;;  %v2479_v43 = vsub.s32 2, %v2119_v5 }
  0xa2   :  { %1378 = vmatpush1.bf16.msra.mxu0 %v1858_v44  ;;  %1419 = vmatpush1.bf16.msra.mxu1 %v1861_v45  ;;  %v483_v44 = vld [vmem:[%s2744_s2] sm:$0xf]  ;;  %v2485_v45 = vsub.s32 1, %v2119_v5 }
  0xa3   :  { %1379 = vmatprep.subr.bf16.mxu0 %v1866_v46  ;;  %1420 = vmatprep.subr.bf16.mxu1 %v1869_v47  ;;  %v2488_v46 = vsub.s32 3, %v2119_v5  ;;  %v509_v47 = vld [vmem:[%s2745_s3] sm:$0xf] }
  0xa6   :  { %1380 = vmatpush1.bf16.msra.mxu0 %v1864_v48  ;;  %1421 = vmatpush1.bf16.msra.mxu1 %v1867_v49  ;;  %v488_v48 = vrot.slane %v483_v44, %v2476_v42  ;;  %v496_v49 = vrot.slane %v483_v44, %v2479_v43 }
  0xa7   :  { %1381 = vmatprep.subr.bf16.mxu0 %v1872_v50  ;;  %1422 = vmatprep.subr.bf16.mxu1 %v1875_v51  ;;  %v492_v50 = vrot.slane %v483_v44, %v2485_v45  ;;  %v2076_v51 = vmov 1966171168  }
  0xaa   :  { %1382 = vmatpush1.bf16.msra.mxu0 %v1870_v52  ;;  %1423 = vmatpush1.bf16.msra.mxu1 %v1873_v53  ;;  %v546_v52 = vunpack.c.l.s4 %v2076_v51  ;;  %v500_v53 = vrot.slane %v483_v44, %v2488_v46  ;;  %v1977_v44 = vld [vmem:[%s2746_s4 + $0x28c] ss:$16 sps:$4 sm:$0xff]   ;;  %v1978_v51 = vld [vmem:[%s2746_s4 + $0xa8] ss:$16 sps:$4 sm:$0xff]  }
  0xab   :  { %1383 = vmatprep.subr.bf16.mxu0 %v1878_v54  ;;  %1424 = vmatprep.subr.bf16.mxu1 %v1881_v55  ;;  %v514_v54 = vrot.slane %v509_v47, %v2476_v42  ;;  %v522_v55 = vrot.slane %v509_v47, %v2479_v43 }
  0xae   :  { %1384 = vmatpush1.bf16.msra.mxu0 %v1876_v56  ;;  %1425 = vmatpush1.bf16.msra.mxu1 %v1879_v57 }
  0xaf   :  { %1385 = vmatprep.subr.bf16.mxu0 %v1884_v58  ;;  %1426 = vmatprep.subr.bf16.mxu1 %v1887_v59  ;;  %v518_v58 = vrot.slane %v509_v47, %v2485_v45  ;;  %v526_v59 = vrot.slane %v509_v47, %v2488_v46  ;;  %v1972_v47 = vld [vmem:[%s2746_s4 + $0x88] ss:$16 sps:$4 sm:$0xff]  }
  0xb2   :  { %1386 = vmatpush1.bf16.msra.mxu0 %v1882_v60  ;;  %1427 = vmatpush1.bf16.msra.mxu1 %v1885_v61 }
  0xb3   :  { %1387 = vmatprep.subr.bf16.mxu0 %v1890_v62  ;;  %1428 = vmatprep.subr.bf16.mxu1 %v1893_v63 }
  0xb6   :  { %1388 = vmatpush1.bf16.msra.mxu0 %v1888_v0  ;;  %1429 = vmatpush1.bf16.msra.mxu1 %v1891_v2  ;;  %v547_v2 = vunpack.c.0.s8 %v546_v52  ;;  %v1981_v52 = vld [vmem:[%s2746_s4 + $0x2a8] ss:$16 sps:$4 sm:$0xff]  }
  0xb7   :  { %1389 = vmatprep.subr.bf16.mxu0 %v1896_v3  ;;  %1430 = vmatprep.subr.bf16.mxu1 %v1899_v4 }
  0xba   :  { %1390 = vmatpush1.bf16.msra.mxu0 %v1894_v6  ;;  %1431 = vmatpush1.bf16.msra.mxu1 %v1897_v9 }
  0xbb   :  { %1391 = vmatprep.subr.bf16.mxu0 %v1902_v10  ;;  %1432 = vmatprep.subr.bf16.mxu1 %v1905_v11 }
  0xbe   :  { %1392 = vmatpush1.bf16.msra.mxu0 %v1900_v12  ;;  %1433 = vmatpush1.bf16.msra.mxu1 %v1903_v13 }
  0xbf   :  { %1393 = vmatprep.subr.bf16.mxu0 %v1908_v14  ;;  %1434 = vmatprep.subr.bf16.mxu1 %v1911_v15 }
  0xc2   :  { %1394 = vmatpush1.bf16.msra.mxu0 %v1906_v16  ;;  %1435 = vmatpush1.bf16.msra.mxu1 %v1909_v17 }
  0xc3   :  { %1395 = vmatprep.subr.bf16.mxu0 %v1914_v18  ;;  %1436 = vmatprep.subr.bf16.mxu1 %v1917_v19  ;;  %v2502_v18 = vsub.s32 %v547_v2, %v2119_v5  ;;  %v2004_v2 = vld [vmem:[%s2746_s4 + $0x12c] ss:$16 sps:$4 sm:$0xff]  }
  0xc6   :  { %1396 = vmatpush1.bf16.msra.mxu0 %v1912_v20  ;;  %1437 = vmatpush1.bf16.msra.mxu1 %v1915_v21 }
  0xc7   :  { %1397 = vmatprep.subr.bf16.mxu0 %v1920_v22  ;;  %1438 = vmatprep.subr.bf16.mxu1 %v1923_v23 }
  0xca   :  { %1398 = vmatpush1.bf16.msra.mxu0 %v1918_v24  ;;  %1439 = vmatpush1.bf16.msra.mxu1 %v1921_v7  ;;  %v1948_v24 = vld [vmem:[%s2746_s4 + $0x8] ss:$16 sps:$4 sm:$0xff]  }
  0xcb   :  { %1399 = vmatprep.subr.bf16.mxu0 %v1926_v25  ;;  %1440 = vmatprep.subr.bf16.mxu1 %v1929_v26  ;;  %v1951_v7 = vld [vmem:[%s2746_s4 + $0x208] ss:$16 sps:$4 sm:$0xff]  }
  0xce   :  { %1400 = vmatpush1.bf16.msra.mxu0 %v1924_v27  ;;  %1441 = vmatpush1.bf16.msra.mxu1 %v1927_v28  ;;  %v1956_v28 = vld [vmem:[%s2746_s4 + $0x2c] ss:$16 sps:$4 sm:$0xff]  }
  0xcf   :  { %1401 = vmatprep.subr.bf16.mxu0 %v1932_v29  ;;  %1442 = vmatprep.subr.bf16.mxu1 %v1935_v30  ;;  %v1959_v29 = vld [vmem:[%s2746_s4 + $0x22c] ss:$16 sps:$4 sm:$0xff]  }
  0xd2   :  { %1402 = vmatpush1.bf16.msra.mxu0 %v1930_v31  ;;  %1443 = vmatpush1.bf16.msra.mxu1 %v1933_v32  ;;  %v1954_v32 = vld [vmem:[%s2746_s4 + $0x28] ss:$16 sps:$4 sm:$0xff]  }
  0xd3   :  { %1403 = vmatprep.subr.bf16.mxu0 %v1938_v33  ;;  %1444 = vmatprep.subr.bf16.mxu1 %v1941_v34  ;;  %v1957_v33 = vld [vmem:[%s2746_s4 + $0x228] ss:$16 sps:$4 sm:$0xff]   ;;  %v1962_v34 = vld [vmem:[%s2746_s4 + $0x4c] ss:$16 sps:$4 sm:$0xff]  }
  0xd6   :  { %1404 = vmatpush1.bf16.msra.mxu0 %v1936_v35  ;;  %1445 = vmatpush1.bf16.msra.mxu1 %v1939_v36  ;;  %v1965_v35 = vld [vmem:[%s2746_s4 + $0x24c] ss:$16 sps:$4 sm:$0xff]   ;;  %v1960_v36 = vld [vmem:[%s2746_s4 + $0x48] ss:$16 sps:$4 sm:$0xff]  }
  0xd7   :  { %1405 = vmatprep.subr.bf16.mxu0 %v1944_v37  ;;  %1446 = vmatprep.subr.bf16.mxu1 %v1947_v38  ;;  %v1963_v37 = vld [vmem:[%s2746_s4 + $0x248] ss:$16 sps:$4 sm:$0xff]   ;;  %v1968_v38 = vld [vmem:[%s2746_s4 + $0x6c] ss:$16 sps:$4 sm:$0xff]  }
  0xda   :  { %1406 = vmatpush1.bf16.msra.mxu0 %v1942_v39  ;;  %1447 = vmatpush1.bf16.msra.mxu1 %v1945_v8  ;;  %v1971_v39 = vld [vmem:[%s2746_s4 + $0x26c] ss:$16 sps:$4 sm:$0xff]   ;;  %v1966_v8 = vld [vmem:[%s2746_s4 + $0x68] ss:$16 sps:$4 sm:$0xff]  }
  0xdb   :  { %1457 = vmatprep.subr.bf16.mxu0 %v1950_v40  ;;  %1498 = vmatprep.subr.bf16.mxu1 %v1953_v41  ;;  %v1969_v40 = vld [vmem:[%s2746_s4 + $0x268] ss:$16 sps:$4 sm:$0xff]   ;;  %v1974_v41 = vld [vmem:[%s2746_s4 + $0x8c] ss:$16 sps:$4 sm:$0xff]  }
 0x170   :  { %v435_v56 = vpop.f32.mrb[0].mxu0  ;;  %v476_v57 = vpop.f32.mrb[0].mxu1 }
 0x171   :  { %v505_v60 = vmul.f32 %v488_v48, %v435_v56  ;;  %v507_v61 = vmul.f32 %v496_v49, %v476_v57  ;;  %v437_v62 = vpop.f32.mrb[1].mxu0  ;;  %v478_v63 = vpop.f32.mrb[1].mxu1  ;;  %v1975_v48 = vld [vmem:[%s2746_s4 + $0x288] ss:$16 sps:$4 sm:$0xff]   ;;  %v1980_v49 = vld [vmem:[%s2746_s4 + $0xac] ss:$16 sps:$4 sm:$0xff]  }
 0x172   :  { %v506_v0 = vmul.f32 %v492_v50, %v437_v62  ;;  %v508_v3 = vmul.f32 %v500_v53, %v478_v63  ;;  %v439_v4 = vpop.f32.mrb[2].mxu0  ;;  %v480_v6 = vpop.f32.mrb[2].mxu1  ;;  %v1983_v50 = vld [vmem:[%s2746_s4 + $0x2ac] ss:$16 sps:$4 sm:$0xff]   ;;  %v1987_v56 = vld [vmem:[%s2746_s4 + $0x2c8] ss:$16 sps:$4 sm:$0xff]  }
 0x173   :  { %v531_v9 = vadd.f32 %v514_v54, %v505_v60  ;;  %v533_v10 = vadd.f32 %v522_v55, %v507_v61  ;;  %v440_v11 = vpop.f32.mrb[3].mxu0  ;;  %v481_v12 = vpop.f32.mrb[3].mxu1  ;;  %v1986_v53 = vld [vmem:[%s2746_s4 + $0xcc] ss:$16 sps:$4 sm:$0xff]   ;;  %v1984_v55 = vld [vmem:[%s2746_s4 + $0xc8] ss:$16 sps:$4 sm:$0xff]  }
 0x174   :  { %v532_v13 = vadd.f32 %v518_v58, %v506_v0  ;;  %v534_v14 = vadd.f32 %v526_v59, %v508_v3  ;;  %v1989_v54 = vld [vmem:[%s2746_s4 + $0x2cc] ss:$16 sps:$4 sm:$0xff]   ;;  %v1990_v59 = vld [vmem:[%s2746_s4 + $0xe8] ss:$16 sps:$4 sm:$0xff]  }
 0x175   :  { %v535_v15 = vmax.f32 %v531_v9, 0.0  ;;  %v537_v16 = vmax.f32 %v533_v10, 0.0  ;;  %v1992_v57 = vld [vmem:[%s2746_s4 + $0xec] ss:$16 sps:$4 sm:$0xff]   ;;  %v1993_v60 = vld [vmem:[%s2746_s4 + $0x2e8] ss:$16 sps:$4 sm:$0xff]  }
 0x176   :  { %v536_v17 = vmax.f32 %v532_v13, 0.0  ;;  %v538_v19 = vmax.f32 %v534_v14, 0.0  ;;  %v1995_v58 = vld [vmem:[%s2746_s4 + $0x2ec] ss:$16 sps:$4 sm:$0xff]   ;;  %v1996_v63 = vld [vmem:[%s2746_s4 + $0x108] ss:$16 sps:$4 sm:$0xff]  }
 0x177   :  { %v2510_v25 = vpack.c.bf16 %v535_v15, %v535_v15  ;;  %v2512_v26 = vpack.c.bf16 %v537_v16, %v537_v16  ;;  %v1998_v61 = vld [vmem:[%s2746_s4 + $0x10c] ss:$16 sps:$4 sm:$0xff]   ;;  %v1999_v0 = vld [vmem:[%s2746_s4 + $0x308] ss:$16 sps:$4 sm:$0xff]  }
 0x178   :  { %v543_v20 = vcombine.low %v535_v15, %v536_v17  ;;  %v544_v21 = vcombine.low %v537_v16, %v538_v19  ;;  %v582_v22 = vpack.c.bf16 %v536_v17, %v536_v17  ;;  %v584_v23 = vpack.c.bf16 %v538_v19, %v538_v19  ;;  %v2001_v62 = vld [vmem:[%s2746_s4 + $0x30c] ss:$16 sps:$4 sm:$0xff]   ;;  %v2002_v4 = vld [vmem:[%s2746_s4 + $0x128] ss:$16 sps:$4 sm:$0xff]  }
 0x179   :  { %v2007_v3 = vld [vmem:[%s2746_s4 + $0x32c] ss:$16 sps:$4 sm:$0xff]   ;;  %v2005_v6 = vld [vmem:[%s2746_s4 + $0x328] ss:$16 sps:$4 sm:$0xff]  }
 0x17a   :  { %v2515_v5 = vrot.slane %v543_v20, %v2502_v18  ;;  %v2518_v27 = vrot.slane %v544_v21, %v2502_v18  ;;  %1407 = vmatprep.mubr.bf16.mxu0 %v582_v22  ;;  %1448 = vmatprep.mubr.bf16.mxu1 %v584_v23  ;;  %v2010_v9 = vld [vmem:[%s2746_s4 + $0x14c] ss:$16 sps:$4 sm:$0xff]   ;;  %v2008_v11 = vld [vmem:[%s2746_s4 + $0x148] ss:$16 sps:$4 sm:$0xff]  }
 0x17b   :  { %1408 = vmatmul.mubr.bf16.vlgmr.msra.gmra.mrb[4].mxu0 %v2510_v25  ;;  %1449 = vmatmul.mubr.bf16.vlgmr.msra.gmra.mrb[4].mxu1 %v2512_v26  ;;  %v2013_v10 = vld [vmem:[%s2746_s4 + $0x34c] ss:$16 sps:$4 sm:$0xff]   ;;  %v2011_v12 = vld [vmem:[%s2746_s4 + $0x348] ss:$16 sps:$4 sm:$0xff]  }
 0x17c   :  { %v559_v30 = vcombine.low %v2515_v5, %v2518_v27  ;;  %v560_v31 = vcombine.high %v2515_v5, %v2518_v27  ;;  %1458 = vmatpush1.bf16.msra.mxu0 %v1948_v24  ;;  %1499 = vmatpush1.bf16.msra.mxu1 %v1951_v7  ;;  %v2016_v13 = vld [vmem:[%s2746_s4 + $0x16c] ss:$16 sps:$4 sm:$0xff]   ;;  %v2014_v15 = vld [vmem:[%s2746_s4 + $0x168] ss:$16 sps:$4 sm:$0xff]  }
 0x17d   :  { %1489 = vmatprep.mubr.bf16.mxu0 %v582_v22  ;;  %1530 = vmatprep.mubr.bf16.mxu1 %v584_v23  ;;  %v2019_v14 = vld [vmem:[%s2746_s4 + $0x36c] ss:$16 sps:$4 sm:$0xff]   ;;  %v2017_v16 = vld [vmem:[%s2746_s4 + $0x368] ss:$16 sps:$4 sm:$0xff]  }
 0x17e   :  { %1459 = vmatprep.subr.bf16.mxu0 %v1956_v28  ;;  %1500 = vmatprep.subr.bf16.mxu1 %v1959_v29  ;;  %v2022_v17 = vld [vmem:[%s2746_s4 + $0x18c] ss:$16 sps:$4 sm:$0xff]   ;;  %v2020_v20 = vld [vmem:[%s2746_s4 + $0x188] ss:$16 sps:$4 sm:$0xff]  }
 0x17f   :  { %v2025_v19 = vld [vmem:[%s2746_s4 + $0x38c] ss:$16 sps:$4 sm:$0xff]   ;;  %v2023_v21 = vld [vmem:[%s2746_s4 + $0x388] ss:$16 sps:$4 sm:$0xff]  }
 0x180   :  { %1460 = vmatpush1.bf16.msra.mxu0 %v1954_v32  ;;  %1501 = vmatpush1.bf16.msra.mxu1 %v1957_v33  ;;  %v2028_v22 = vld [vmem:[%s2746_s4 + $0x1ac] ss:$16 sps:$4 sm:$0xff]   ;;  %v2026_v24 = vld [vmem:[%s2746_s4 + $0x1a8] ss:$16 sps:$4 sm:$0xff]  }
 0x181   :  { %1461 = vmatprep.subr.bf16.mxu0 %v1962_v34  ;;  %1502 = vmatprep.subr.bf16.mxu1 %v1965_v35  ;;  %v2031_v23 = vld [vmem:[%s2746_s4 + $0x3ac] ss:$16 sps:$4 sm:$0xff]   ;;  %v2029_v7 = vld [vmem:[%s2746_s4 + $0x3a8] ss:$16 sps:$4 sm:$0xff]  }
 0x182   :  { %v2034_v28 = vld [vmem:[%s2746_s4 + $0x1cc] ss:$16 sps:$4 sm:$0xff]   ;;  %v2032_v32 = vld [vmem:[%s2746_s4 + $0x1c8] ss:$16 sps:$4 sm:$0xff]  }
 0x183   :  { %v2037_v29 = vld [vmem:[%s2746_s4 + $0x3cc] ss:$16 sps:$4 sm:$0xff]   ;;  %v2035_v33 = vld [vmem:[%s2746_s4 + $0x3c8] ss:$16 sps:$4 sm:$0xff]  }
 0x184   :  { %1462 = vmatpush1.bf16.msra.mxu0 %v1960_v36  ;;  %1503 = vmatpush1.bf16.msra.mxu1 %v1963_v37  ;;  %v2040_v34 = vld [vmem:[%s2746_s4 + $0x1ec] ss:$16 sps:$4 sm:$0xff]   ;;  %v2038_v36 = vld [vmem:[%s2746_s4 + $0x1e8] ss:$16 sps:$4 sm:$0xff]  }
 0x185   :  { %1463 = vmatprep.subr.bf16.mxu0 %v1968_v38  ;;  %1504 = vmatprep.subr.bf16.mxu1 %v1971_v39  ;;  %v2043_v35 = vld [vmem:[%s2746_s4 + $0x3ec] ss:$16 sps:$4 sm:$0xff]   ;;  %v2041_v37 = vld [vmem:[%s2746_s4 + $0x3e8] ss:$16 sps:$4 sm:$0xff]   ;;  %v713_v38 = vld [vmem:[%s2747_s5] sm:$0xf] }
 0x186   :  { %v718_v39 = vrot.slane %v713_v38, %v2476_v42  ;;  %s2077_s4 = smov [#allocation2]  }
 0x187   :  { %s1606_s5 = sshll.u32 %s2077_s4, 4  ;;  %s1607_s5 = int_to_ptr.vmem [resolvable:$true] %s1606_s5 }
 0x188   :  { %1464 = vmatpush1.bf16.msra.mxu0 %v1966_v8  ;;  %1505 = vmatpush1.bf16.msra.mxu1 %v1969_v40  ;;  %v722_v8 = vrot.slane %v713_v38, %v2485_v45  ;;  %s2044_s22 = scalar_lea.vmem %s1607_s5, 128  ;;  %p2049_p1 = scmp.lt.s32.totalorder %s1607_s5, %s1607_s5 }
 0x189   :  { %1465 = vmatprep.subr.bf16.mxu0 %v1974_v41  ;;  %1506 = vmatprep.subr.bf16.mxu1 %v1977_v44  ;;  %p2045_p0 = scmp.ne.s32.totalorder %s1607_s5, %s2044_s22  ;;  %p2050_p2 = scmp.lt.s32.totalorder %s2044_s22, %s2044_s22 }
 0x18b   :  { %p2051_p3 = por %p2050_p2, %p2049_p1 }
 0x18c   :  { %1466 = vmatpush1.bf16.msra.mxu0 %v1972_v47  ;;  %1507 = vmatpush1.bf16.msra.mxu1 %v1975_v48 }
 0x18d   :  { %1467 = vmatprep.subr.bf16.mxu0 %v1980_v49  ;;  %1508 = vmatprep.subr.bf16.mxu1 %v1983_v50  ;;  %p2052_p4 = pnand %p2051_p3, %p2045_p0 }
 0x190   :  { %1468 = vmatpush1.bf16.msra.mxu0 %v1978_v51  ;;  %1509 = vmatpush1.bf16.msra.mxu1 %v1981_v52 }
 0x191   :  { %1469 = vmatprep.subr.bf16.mxu0 %v1986_v53  ;;  %1510 = vmatprep.subr.bf16.mxu1 %v1989_v54 }
 0x194   :  { %1470 = vmatpush1.bf16.msra.mxu0 %v1984_v55  ;;  %1511 = vmatpush1.bf16.msra.mxu1 %v1987_v56 }
 0x195   :  { %1471 = vmatprep.subr.bf16.mxu0 %v1992_v57  ;;  %1512 = vmatprep.subr.bf16.mxu1 %v1995_v58 }
 0x198   :  { %1472 = vmatpush1.bf16.msra.mxu0 %v1990_v59  ;;  %1513 = vmatpush1.bf16.msra.mxu1 %v1993_v60 }
 0x199   :  { %1473 = vmatprep.subr.bf16.mxu0 %v1998_v61  ;;  %1514 = vmatprep.subr.bf16.mxu1 %v2001_v62  ;;  %v726_v61 = vrot.slane %v713_v38, %v2479_v43  ;;  %v730_v62 = vrot.slane %v713_v38, %v2488_v46 }
 0x19c   :  { %1474 = vmatpush1.bf16.msra.mxu0 %v1996_v63  ;;  %1515 = vmatpush1.bf16.msra.mxu1 %v1999_v0 }
 0x19d   :  { %1475 = vmatprep.subr.bf16.mxu0 %v2004_v2  ;;  %1516 = vmatprep.subr.bf16.mxu1 %v2007_v3 }
 0x1a0   :  { %1476 = vmatpush1.bf16.msra.mxu0 %v2002_v4  ;;  %1517 = vmatpush1.bf16.msra.mxu1 %v2005_v6 }
 0x1a1   :  { %1477 = vmatprep.subr.bf16.mxu0 %v2010_v9  ;;  %1518 = vmatprep.subr.bf16.mxu1 %v2013_v10 }
 0x1a4   :  { %1478 = vmatpush1.bf16.msra.mxu0 %v2008_v11  ;;  %1519 = vmatpush1.bf16.msra.mxu1 %v2011_v12 }
 0x1a5   :  { %1479 = vmatprep.subr.bf16.mxu0 %v2016_v13  ;;  %1520 = vmatprep.subr.bf16.mxu1 %v2019_v14 }
 0x1a8   :  { %1480 = vmatpush1.bf16.msra.mxu0 %v2014_v15  ;;  %1521 = vmatpush1.bf16.msra.mxu1 %v2017_v16 }
 0x1a9   :  { %1481 = vmatprep.subr.bf16.mxu0 %v2022_v17  ;;  %1522 = vmatprep.subr.bf16.mxu1 %v2025_v19 }
 0x1ac   :  { %1482 = vmatpush1.bf16.msra.mxu0 %v2020_v20  ;;  %1523 = vmatpush1.bf16.msra.mxu1 %v2023_v21 }
 0x1ad   :  { %1483 = vmatprep.subr.bf16.mxu0 %v2028_v22  ;;  %1524 = vmatprep.subr.bf16.mxu1 %v2031_v23 }
 0x1b0   :  { %1484 = vmatpush1.bf16.msra.mxu0 %v2026_v24  ;;  %1525 = vmatpush1.bf16.msra.mxu1 %v2029_v7 }
 0x1b1   :  { %1485 = vmatprep.subr.bf16.mxu0 %v2034_v28  ;;  %1526 = vmatprep.subr.bf16.mxu1 %v2037_v29  ;;  %v567_v29 = vrot.slane %v559_v30, %v2502_v18 }
 0x1b4   :  { %1486 = vmatpush1.bf16.msra.mxu0 %v2032_v32  ;;  %1527 = vmatpush1.bf16.msra.mxu1 %v2035_v33  ;;  %v574_v32 = vrot.slane %v560_v31, %v2502_v18 }
 0x1b5   :  { %1487 = vmatprep.subr.bf16.mxu0 %v2040_v34  ;;  %1528 = vmatprep.subr.bf16.mxu1 %v2043_v35 }
 0x1b8   :  { %1488 = vmatpush1.bf16.msra.mxu0 %v2038_v36  ;;  %1529 = vmatpush1.bf16.msra.mxu1 %v2041_v37 }
 0x1bb   :  { %1490 = vmatmul.mubr.bf16.vlgmr.msra.gmra.mrb[8].mxu0 %v2510_v25  ;;  %1531 = vmatmul.mubr.bf16.vlgmr.msra.gmra.mrb[8].mxu1 %v2512_v26 }
 0x24e   :  { %v1409_v40 = vpop.f32.mrb[4].mxu0  ;;  %v1450_v41 = vpop.f32.mrb[4].mxu1 }
 0x24f   :  { %v1410_v44 = vadd.f32 %v1409_v40, %v718_v39  ;;  %v1411_v47 = vpop.f32.mrb[5].mxu0  ;;  %v1452_v48 = vpop.f32.mrb[5].mxu1 }
 0x250   :  { %v1412_v49 = vadd.f32 %v1411_v47, %v722_v8  ;;  %v1413_v50 = vpop.f32.mrb[6].mxu0  ;;  %v1454_v51 = vpop.f32.mrb[6].mxu1 }
 0x251   :  { %v1451_v52 = vadd.f32 %v1450_v41, %v1410_v44  ;;  %v1414_v25 = vpop.f32.mrb[7].mxu0  ;;  %v1455_v53 = vpop.f32.mrb[7].mxu1 }
 0x252   :  { %v1453_v26 = vadd.f32 %v1452_v48, %v1412_v49 }
 0x253   :  { %v1539_v54 = vadd.f32 3.0, %v1451_v52 }
 0x254   :  { %v1540_v55 = vadd.f32 3.0, %v1453_v26 }
 0x255   :  { %v1543_v56 = vmax.f32 %v1539_v54, 0.0 }
 0x256   :  { %v1544_v57 = vmax.f32 %v1540_v55, 0.0 }
 0x257   :  { %v1547_v58 = vmin.f32 %v1543_v56, 6.0 }
 0x258   :  { %v1548_v42 = vmin.f32 %v1544_v57, 6.0 }
 0x259   :  { %v1551_v59 = vmul.f32 0.16666667, %v1547_v58 }
 0x25a   :  { %v1552_v45 = vmul.f32 0.16666667, %v1548_v42 }
 0x25c   :  { %v1559_v60 = vcombine.low %v1551_v59, %v1552_v45 }
 0x25e   :  { %v1567_v23 = vrot.slane %v1559_v60, %v2502_v18 }
 0x28e   :  { %v1491_v63 = vpop.f32.mrb[8].mxu0  ;;  %v1532_v0 = vpop.f32.mrb[8].mxu1 }
 0x28f   :  { %v1492_v2 = vadd.f32 %v1491_v63, %v726_v61  ;;  %v1493_v3 = vpop.f32.mrb[9].mxu0  ;;  %v1534_v4 = vpop.f32.mrb[9].mxu1 }
 0x290   :  { %v1494_v6 = vadd.f32 %v1493_v3, %v730_v62  ;;  %v1495_v9 = vpop.f32.mrb[10].mxu0  ;;  %v1536_v10 = vpop.f32.mrb[10].mxu1 }
 0x291   :  { %v1533_v11 = vadd.f32 %v1532_v0, %v1492_v2  ;;  %v1496_v12 = vpop.f32.mrb[11].mxu0  ;;  %v1537_v13 = vpop.f32.mrb[11].mxu1 }
 0x292   :  { %v1535_v14 = vadd.f32 %v1534_v4, %v1494_v6 }
 0x293   :  { %v1541_v15 = vadd.f32 3.0, %v1533_v11 }
 0x294   :  { %v1542_v16 = vadd.f32 3.0, %v1535_v14 }
 0x295   :  { %v1545_v17 = vmax.f32 %v1541_v15, 0.0 }
 0x296   :  { %v1546_v19 = vmax.f32 %v1542_v16, 0.0 }
 0x297   :  { %v1549_v20 = vmin.f32 %v1545_v17, 6.0 }
 0x298   :  { %v1550_v43 = vmin.f32 %v1546_v19, 6.0 }
 0x299   :  { %v1553_v21 = vmul.f32 0.16666667, %v1549_v20 }
 0x29a   :  { %v1554_v46 = vmul.f32 0.16666667, %v1550_v43 }
 0x29c   :  { %v1560_v22 = vcombine.low %v1553_v21, %v1554_v46 }
 0x29e   :  { %v1574_v24 = vrot.slane %v1560_v22, %v2502_v18 }
 0x2a0   :  { %v1575_v7 = vcombine.low %v1567_v23, %v1574_v24  ;;  %v1576_v28 = vcombine.high %v1567_v23, %v1574_v24 }
 0x2a2   :  { %v1583_v33 = vrot.slane %v1575_v7, %v2502_v18  ;;  %v1590_v34 = vrot.slane %v1576_v28, %v2502_v18 }
 0x2a4   :  { %v1593_v35 = vmul.f32 %v1583_v33, %v567_v29  ;;  %v1594_v36 = vmul.f32 %v1590_v34, %v574_v32 }
 0x2a6   :  { %1599 = vst.msk [vmem:[#allocation2] sm:$0xf] %vm1597_vm8, %v1593_v35  ;;  %1600 = vst.msk [vmem:[#allocation2 + $0x4] sm:$0xf] %vm1597_vm8, %v1594_v36 }
 0x2a7   :  { %2055 = shalt.err (!%p2052_p4)
}
 0x2a8   :  { %s2056_s28 = scalar_lea.hbm %s2748_s6, 128 }
 0x2a9   :  { %p2057_p5 = scmp.ne.s32.totalorder %s2748_s6, %s2056_s28  ;;  %p2060_p6 = scmp.lt.u32.totalorder %s2056_s28, %s2748_s6 }
 0x2ab   :  { %p2062_p7 = pnand %p2060_p6, %p2057_p5 }
 0x2ad   :  { %2065 = shalt.err (!%p2062_p7)
}
 0x2ae   :  { %s2078_s7 = smov 4  }
 0x2af   :  { %1612 = dma.vmem_to_hbm [thread:$0]  %s1607_s5, 128, %s2748_s6, [#allocation3], %s2070_s24, %s2070_s24, %s2078_s7  }
 0x2b0   :  { %2066 = dma.done.wait [#allocation3], 128  }
 0x2b1   :  { %2067 = vsyncadd [#allocation3], 4294967168 }
 0x2b2   :  { %1616 = vsyncpa [#allocation3], 1 }

// kernel: skip_module_apply.6
= control target key start
LH: loop header
LB: loop body
LE: loop exit
PB: predicated region body
PF: predicated region fallthrough
CT: control target
= control target key end

     0   :  { %s1564_s9 = smov 48   ;;  %s1565_s10 = smov 32   ;;  %v1568_v31 = vmov 0   ;;  %vm567_vm0 = vcmask 130048   ;;  %s2452_s0 = inlined_call_operand.vmem [shape: bf16[2,10,10,16], index: 0, kind: input, shape index: {}]   ;;  %s2453_s1 = inlined_call_operand.vmem [shape: bf16[144,64], index: 1, kind: input, shape index: {}]   ;;  %s2454_s2 = inlined_call_operand.vmem [shape: f32[1,64], index: 2, kind: input, shape index: {}]   ;;  %s2455_s3 = inlined_call_operand.vmem [shape: f32[1,64], index: 3, kind: input, shape index: {}]   ;;  %s2456_s4 = inlined_call_operand.vmem [shape: bf16[64,64], index: 4, kind: input, shape index: {}]   ;;  %s2457_s5 = inlined_call_operand.vmem [shape: f32[1,64], index: 5, kind: input, shape index: {}]   ;;  %s2458_s6 = inlined_call_operand.hbm [shape: f32[2,64,64], index: 6, kind: output, shape index: {}]  }
   0x1   :  { %v1616_v0 = vld [vmem:[%s2452_s0 + $0x8] sm:$0xf]  ;;  %v28_v1 = vld [vmem:[%s2452_s0 + $0xc] sm:$0x1]  ;;  %v1627_v4 = vld [vmem:[%s2452_s0] sm:$0xf]  ;;  %982 = vmatprep.subr.bf16.mxu0 %v1568_v31  ;;  %1457 = vmatprep.subr.bf16.mxu1 %v1568_v31 }
   0x2   :  { %v1377_v2 = vcombine.low %v1616_v0, %v1616_v0  ;;  %v1362_v3 = vcombine.low %v1616_v0, %v28_v1  ;;  %v26_v5 = vld [vmem:[%s2452_s0 + $0x4] sm:$0x1]  ;;  %v1636_v7 = vld [vmem:[%s2452_s0 + $0x10] sm:$0xf]  ;;  %v30_v8 = vld [vmem:[%s2452_s0 + $0x14] sm:$0x1] }
   0x3   :  { %v1361_v6 = vcombine.low %v1627_v4, %v26_v5  ;;  %v1363_v9 = vcombine.low %v1636_v7, %v30_v8  ;;  %s1566_s11 = smov 16   ;;  %v1378_v20 = vcombine.low %v1636_v7, %v1636_v7  ;;  %v1651_v24 = vld [vmem:[%s2452_s0 + $0x18] sm:$0xf]  ;;  %v32_v25 = vld [vmem:[%s2452_s0 + $0x1c] sm:$0x1]  ;;  %v1508_v28 = vld [vmem:[%s2453_s1] sm:$0xff]  }
   0x4   :  { %357 = vrot.lane.b32.xlu0 %v1377_v2, %s1564_s9  ;;  %v155_v13 = vshll.u32 %v1362_v3, 16  ;;  %v290_v14 = vrot.slane %v1362_v3, 1  ;;  %v153_v16 = vshrl.u32 %v1362_v3, 16  ;;  %v1364_v27 = vcombine.low %v1651_v24, %v32_v25  ;;  %s1567_s18 = smov 64   ;;  %983 = vmatpush1.bf16.msra.mxu0 %v1508_v28  ;;  %v1509_v32 = vld [vmem:[%s2453_s1 + $0x8] sm:$0xff]   ;;  %s1569_s21 = smov 80  }
   0x5   :  { %v289_v10 = vrot.slane %v1361_v6, 1  ;;  %v146_v11 = vshrl.u32 %v1361_v6, 16  ;;  %v148_v12 = vshll.u32 %v1361_v6, 16  ;;  %v162_v18 = vshll.u32 %v1363_v9, 16  ;;  %1466 = vmatpush1.bf16.msra.mxu1 %v1508_v28  ;;  %984 = vmatprep.subr.bf16.mxu0 %v1568_v31  ;;  %v1512_v37 = vld [vmem:[%s2453_s1 + $0x10] sm:$0xff]   ;;  %s1570_s24 = smov 96  }
   0x6   :  { %v157_v17 = vrot.slane %v155_v13, 1  ;;  %v160_v22 = vshrl.u32 %v1363_v9, 16  ;;  %v291_v29 = vrot.slane %v1363_v9, 1  ;;  %v169_v30 = vshll.u32 %v1364_v27, 16  ;;  %1458 = vmatprep.subr.bf16.mxu1 %v1568_v31  ;;  %v1688_v40 = vld [vmem:[%s2452_s0 + $0x20] sm:$0xf] }
   0x7   :  { %305 = vrot.lane.b32.xlu1 %v289_v10, %s1565_s10  ;;  %v150_v15 = vrot.slane %v148_v12, 1  ;;  %v164_v23 = vrot.slane %v162_v18, 1  ;;  %v1379_v33 = vcombine.low %v1651_v24, %v1651_v24  ;;  %v167_v34 = vshrl.u32 %v1364_v27, 16  ;;  %v34_v41 = vld [vmem:[%s2452_s0 + $0x24] sm:$0x1]  ;;  %v1516_v42 = vld [vmem:[%s2453_s1 + $0x18] sm:$0xff]  }
   0x8   :  { %v158_v21 = vor.u32 %v157_v17, %v153_v16  ;;  %v171_v35 = vrot.slane %v169_v30, 1  ;;  %v1675_v36 = vrot.slane %v1364_v27, 1  ;;  %985 = vmatpush1.bf16.msra.mxu0 %v1509_v32  ;;  %s1571_s7 = smov 112   ;;  %v1365_v43 = vcombine.low %v1688_v40, %v34_v41  ;;  %v1517_v44 = vld [vmem:[%s2453_s1 + $0x20] sm:$0xff]  }
   0x9   :  { %v151_v19 = vor.u32 %v150_v15, %v146_v11  ;;  %v165_v26 = vor.u32 %v164_v23, %v160_v22  ;;  %1467 = vmatpush1.bf16.msra.mxu1 %v1509_v32  ;;  %986 = vmatprep.subr.bf16.mxu0 %v1568_v31 }
   0xa   :  { %v1400_v38 = vcombine.low %v291_v29, %v1675_v36  ;;  %1459 = vmatprep.subr.bf16.mxu1 %v1568_v31  ;;  %v172_v39 = vor.u32 %v171_v35, %v167_v34  ;;  %v176_v45 = vshll.u32 %v1365_v43, 16 }
   0xb   :  { %307 = vrot.lane.b32.xlu1 %v290_v14, %s1565_s10  ;;  %257 = vrot.lane.b32.xlu0 %v151_v19, %s1566_s11 }
   0xc   :  { %1424 = vmatprep.mubr.msk.bf16.mxu0 %vm567_vm0, %v1400_v38  ;;  %987 = vmatpush1.bf16.msra.mxu0 %v1512_v37 }
   0xd   :  { %1468 = vmatpush1.bf16.msra.mxu1 %v1512_v37  ;;  %988 = vmatprep.subr.bf16.mxu0 %v1568_v31 }
   0xe   :  { %1460 = vmatprep.subr.bf16.mxu1 %v1568_v31 }
   0xf   :  { %359 = vrot.lane.b32.xlu1 %v1378_v20, %s1564_s9  ;;  %259 = vrot.lane.b32.xlu0 %v158_v21, %s1566_s11 }
  0x10   :  { %989 = vmatpush1.bf16.msra.mxu0 %v1516_v42 }
  0x11   :  { %1469 = vmatpush1.bf16.msra.mxu1 %v1516_v42  ;;  %990 = vmatprep.subr.bf16.mxu0 %v1568_v31 }
  0x12   :  { %1461 = vmatprep.subr.bf16.mxu1 %v1568_v31 }
  0x13   :  { %411 = vrot.lane.b32.xlu1 %v165_v26, %s1567_s18  ;;  %409 = vrot.lane.b32.xlu0 %v158_v21, %s1567_s18 }
  0x17   :  { %445 = vrot.lane.b32.xlu1 %v291_v29, %s1569_s21  ;;  %443 = vrot.lane.b32.xlu0 %v290_v14, %s1569_s21 }
  0x1b   :  { %483 = vrot.lane.b32.xlu1 %v1379_v33, %s1570_s24  ;;  %481 = vrot.lane.b32.xlu0 %v1378_v20, %s1570_s24 }
  0x1f   :  { %535 = vrot.lane.b32.xlu1 %v172_v39, %s1571_s7  ;;  %533 = vrot.lane.b32.xlu0 %v165_v26, %s1571_s7 }
  0x23   :  { %263 = vrot.lane.b32.xlu1 %v172_v39, %s1566_s11  ;;  %261 = vrot.lane.b32.xlu0 %v165_v26, %s1566_s11 }
  0x24   :  { %11 = vsyncpa [#allocation3], 0  ;;  %991 = vmatpush1.bf16.msra.mxu0 %v1517_v44  ;;  %v1518_v46 = vld [vmem:[%s2453_s1 + $0x28] sm:$0xff]   ;;  %1470 = vmatpush1.bf16.msra.mxu1 %v1517_v44  ;;  %v1380_v47 = vcombine.low %v1688_v40, %v1688_v40  ;;  %v174_v48 = vshrl.u32 %v1365_v43, 16  ;;  %v178_v49 = vrot.slane %v176_v45, 1  ;;  %v1521_v52 = vld [vmem:[%s2453_s1 + $0x30] sm:$0xff]  }
  0x25   :  { %992 = vmatprep.subr.bf16.mxu0 %v1568_v31  ;;  %1462 = vmatprep.subr.bf16.mxu1 %v1568_v31  ;;  %v1722_v50 = vld [vmem:[%s2452_s0 + $0x28] sm:$0xf]  ;;  %v36_v51 = vld [vmem:[%s2452_s0 + $0x2c] sm:$0x1]  ;;  %v1735_v55 = vrot.slane %v1365_v43, 1  ;;  %v1522_v57 = vld [vmem:[%s2453_s1 + $0x38] sm:$0xff]  }
  0x26   :  { %v1366_v53 = vcombine.low %v1722_v50, %v36_v51  ;;  %v179_v54 = vor.u32 %v178_v49, %v174_v48  ;;  %v1523_v60 = vld [vmem:[%s2453_s1 + $0x40] sm:$0xff]   ;;  %v1381_v61 = vcombine.low %v1722_v50, %v1722_v50  ;;  %v1764_v2 = vld [vmem:[%s2452_s0 + $0x30] sm:$0xf]  ;;  %v38_v3 = vld [vmem:[%s2452_s0 + $0x34] sm:$0x1]  ;;  %vm616_vm1 = vcmask 261120  }
  0x27   :  { %311 = vrot.lane.b32.xlu1 %v1675_v36, %s1565_s10  ;;  %309 = vrot.lane.b32.xlu0 %v291_v29, %s1565_s10  ;;  %v1367_v5 = vcombine.low %v1764_v2, %v38_v3  ;;  %v1382_v8 = vcombine.low %v1764_v2, %v1764_v2  ;;  %v1783_v11 = vld [vmem:[%s2452_s0 + $0x38] sm:$0xf]  ;;  %v40_v12 = vld [vmem:[%s2452_s0 + $0x3c] sm:$0x1]  ;;  %vm649_vm2 = vcmask 392192   ;;  %vm682_vm3 = vcmask 523264  }
  0x28   :  { %993 = vmatpush1.bf16.msra.mxu0 %v1518_v46  ;;  %1471 = vmatpush1.bf16.msra.mxu1 %v1518_v46  ;;  %v1737_v56 = vrot.slane %v1366_v53, 1  ;;  %v183_v59 = vshll.u32 %v1366_v53, 16  ;;  %v181_v62 = vshrl.u32 %v1366_v53, 16  ;;  %v1368_v13 = vcombine.low %v1783_v11, %v40_v12  ;;  %v41_v23 = vld [vmem:[%s2452_s0 + $0x40] sm:$0xf] }
  0x29   :  { %994 = vmatprep.subr.bf16.mxu0 %v1568_v31  ;;  %1463 = vmatprep.subr.bf16.mxu1 %v1568_v31  ;;  %v190_v6 = vshll.u32 %v1367_v5, 16  ;;  %v188_v9 = vshrl.u32 %v1367_v5, 16  ;;  %v1791_v15 = vrot.slane %v1367_v5, 1  ;;  %v1383_v19 = vcombine.low %v1783_v11, %v1783_v11  ;;  %v42_v25 = vld [vmem:[%s2452_s0 + $0x44] sm:$0x1] }
  0x2a   :  { %v1402_v58 = vcombine.low %v1735_v55, %v1737_v56  ;;  %v185_v63 = vrot.slane %v183_v59, 1  ;;  %v1793_v16 = vrot.slane %v1368_v13, 1  ;;  %v197_v18 = vshll.u32 %v1368_v13, 16  ;;  %v1820_v27 = vld [vmem:[%s2452_s0 + $0x68] sm:$0xf] }
  0x2b   :  { %363 = vrot.lane.b32.xlu1 %v1380_v47, %s1564_s9  ;;  %361 = vrot.lane.b32.xlu0 %v1379_v33, %s1564_s9  ;;  %v192_v10 = vrot.slane %v190_v6, 1  ;;  %v195_v20 = vshrl.u32 %v1368_v13, 16  ;;  %v1815_v26 = vcombine.low %v41_v23, %v42_v25  ;;  %v52_v28 = vld [vmem:[%s2452_s0 + $0x6c] sm:$0x1]  ;;  %v1828_v29 = vld [vmem:[%s2452_s0 + $0x60] sm:$0xf]  ;;  %v1384_v34 = vcombine.low %v41_v23, %v41_v23 }
  0x2c   :  { %995 = vmatpush1.bf16.msra.mxu0 %v1521_v52  ;;  %1472 = vmatpush1.bf16.msra.mxu1 %v1521_v52  ;;  %v186_v1 = vor.u32 %v185_v63, %v181_v62  ;;  %v1404_v17 = vcombine.low %v1791_v15, %v1793_v16  ;;  %v199_v21 = vrot.slane %v197_v18, 1  ;;  %v50_v30 = vld [vmem:[%s2452_s0 + $0x64] sm:$0x1]  ;;  %v1372_v32 = vcombine.low %v1820_v27, %v52_v28  ;;  %v44_v48 = vld [vmem:[%s2452_s0 + $0x4c] sm:$0x1] }
  0x2d   :  { %996 = vmatprep.subr.bf16.mxu0 %v1568_v31  ;;  %1464 = vmatprep.subr.bf16.mxu1 %v1568_v31  ;;  %v193_v14 = vor.u32 %v192_v10, %v188_v9  ;;  %v1371_v33 = vcombine.low %v1828_v29, %v50_v30  ;;  %v396_v35 = vshrl.u32 %v1815_v26, 16  ;;  %v43_v49 = vld [vmem:[%s2452_s0 + $0x48] sm:$0xf]  ;;  %v1890_v62 = vld [vmem:[%s2452_s0 + $0x58] sm:$0xf]  ;;  %v1909_v6 = vcombine.low %v1820_v27, %v1820_v27 }
  0x2e   :  { %v200_v22 = vor.u32 %v199_v21, %v195_v20  ;;  %v225_v37 = vshll.u32 %v1372_v32, 16  ;;  %v1867_v51 = vrot.slane %v1372_v32, 1  ;;  %v1871_v53 = vcombine.low %v43_v49, %v44_v48  ;;  %v48_v63 = vld [vmem:[%s2452_s0 + $0x5c] sm:$0x1]  ;;  %v46_v3 = vld [vmem:[%s2452_s0 + $0x54] sm:$0x1] }
  0x2f   :  { %415 = vrot.lane.b32.xlu1 %v179_v54, %s1567_s18  ;;  %413 = vrot.lane.b32.xlu0 %v172_v39, %s1567_s18  ;;  %v218_v38 = vshll.u32 %v1371_v33, 16  ;;  %v223_v39 = vshrl.u32 %v1372_v32, 16  ;;  %v216_v43 = vshrl.u32 %v1371_v33, 16  ;;  %v1869_v52 = vrot.slane %v1371_v33, 1 }
  0x30   :  { %997 = vmatpush1.bf16.msra.mxu0 %v1522_v57  ;;  %1473 = vmatpush1.bf16.msra.mxu1 %v1522_v57  ;;  %v227_v42 = vrot.slane %v225_v37, 1  ;;  %v1879_v57 = vld [vmem:[%s2452_s0 + $0x70] sm:$0xf]  ;;  %v520_v10 = vshrl.u32 %v1871_v53, 16  ;;  %v1915_v13 = vcombine.low %v1890_v62, %v48_v63  ;;  %vm715_vm4 = vcmask 654336  }
  0x31   :  { %998 = vmatprep.subr.bf16.mxu0 %v1568_v31  ;;  %1465 = vmatprep.subr.bf16.mxu1 %v1568_v31  ;;  %v398_v31 = vshll.u32 %v1815_v26, 16  ;;  %v220_v44 = vrot.slane %v218_v38, 1  ;;  %v1905_v5 = vcombine.low %v1879_v57, %v1879_v57  ;;  %vm748_vm5 = vcmask 785408  }
  0x32   :  { %v1847_v45 = vor.u32 %v227_v42, %v223_v39  ;;  %vm781_vm6 = vcmask 916480   ;;  %vm1573_vm7 = vmmov 0   ;;  %vm1206_vm8 = vcmask 1041409  }
  0x33   :  { %449 = vrot.lane.b32.xlu1 %v1735_v55, %s1569_s21  ;;  %447 = vrot.lane.b32.xlu0 %v1675_v36, %s1569_s21  ;;  %v400_v36 = vrot.slane %v398_v31, 1  ;;  %v1849_v46 = vor.u32 %v220_v44, %v216_v43  ;;  %v209_v31 = vshrl.u32 %v1915_v13, 16  ;;  %v56_v44 = vld [vmem:[%s2452_s0 + $0x7c] sm:$0x1] }
  0x34   :  { %999 = vmatpush1.bf16.msra.mxu0 %v1523_v60  ;;  %1474 = vmatpush1.bf16.msra.mxu1 %v1523_v60  ;;  %v1395_v60 = vcombine.low %v43_v49, %v43_v49 }
  0x35   :  { %v401_v41 = vor.u32 %v400_v36, %v396_v35 }
  0x37   :  { %487 = vrot.lane.b32.xlu1 %v1381_v61, %s1570_s24  ;;  %485 = vrot.lane.b32.xlu0 %v1380_v47, %s1570_s24  ;;  %v441_v47 = vrot.slane %v1815_v26, 1 }
  0x3b   :  { %539 = vrot.lane.b32.xlu1 %v186_v1, %s1571_s7  ;;  %537 = vrot.lane.b32.xlu0 %v179_v54, %s1571_s7 }
  0x3f   :  { %267 = vrot.lane.b32.xlu1 %v186_v1, %s1566_s11  ;;  %265 = vrot.lane.b32.xlu0 %v179_v54, %s1566_s11  ;;  %v54_v54 = vld [vmem:[%s2452_s0 + $0x74] sm:$0x1] }
  0x40   :  { %v1373_v59 = vcombine.low %v1879_v57, %v54_v54 }
  0x42   :  { %v1939_v43 = vrot.slane %v1373_v59, 1 }
  0x43   :  { %315 = vrot.lane.b32.xlu1 %v1737_v56, %s1565_s10  ;;  %313 = vrot.lane.b32.xlu0 %v1735_v55, %s1565_s10 }
  0x47   :  { %367 = vrot.lane.b32.xlu1 %v1382_v8, %s1564_s9  ;;  %365 = vrot.lane.b32.xlu0 %v1381_v61, %s1564_s9  ;;  %v522_v61 = vshll.u32 %v1871_v53, 16 }
  0x49   :  { %v524_v12 = vrot.slane %v522_v61, 1 }
  0x4b   :  { %419 = vrot.lane.b32.xlu1 %v193_v14, %s1567_s18  ;;  %417 = vrot.lane.b32.xlu0 %v186_v1, %s1567_s18  ;;  %v1898_v1 = vld [vmem:[%s2452_s0 + $0x50] sm:$0xf]  ;;  %v525_v21 = vor.u32 %v524_v12, %v520_v10 }
  0x4f   :  { %453 = vrot.lane.b32.xlu1 %v1791_v15, %s1569_s21  ;;  %451 = vrot.lane.b32.xlu0 %v1737_v56, %s1569_s21 }
  0x53   :  { %491 = vrot.lane.b32.xlu1 %v1383_v19, %s1570_s24  ;;  %489 = vrot.lane.b32.xlu0 %v1382_v8, %s1570_s24  ;;  %v232_v8 = vshll.u32 %v1373_v59, 16 }
  0x55   :  { %v234_v20 = vrot.slane %v232_v8, 1 }
  0x57   :  { %543 = vrot.lane.b32.xlu1 %v200_v22, %s1571_s7  ;;  %541 = vrot.lane.b32.xlu0 %v193_v14, %s1571_s7 }
  0x5b   :  { %271 = vrot.lane.b32.xlu1 %v200_v22, %s1566_s11  ;;  %269 = vrot.lane.b32.xlu0 %v193_v14, %s1566_s11  ;;  %v1369_v14 = vcombine.low %v1898_v1, %v46_v3 }
  0x5d   :  { %v204_v23 = vshll.u32 %v1369_v14, 16  ;;  %v202_v33 = vshrl.u32 %v1369_v14, 16  ;;  %v297_v63 = vrot.slane %v1369_v14, 1 }
  0x5f   :  { %319 = vrot.lane.b32.xlu1 %v1793_v16, %s1565_s10  ;;  %317 = vrot.lane.b32.xlu0 %v1791_v15, %s1565_s10 }
  0x63   :  { %371 = vrot.lane.b32.xlu1 %v1384_v34, %s1564_s9  ;;  %369 = vrot.lane.b32.xlu0 %v1383_v19, %s1564_s9  ;;  %v230_v19 = vshrl.u32 %v1373_v59, 16 }
  0x65   :  { %v1923_v30 = vor.u32 %v234_v20, %v230_v19 }
  0x67   :  { %423 = vrot.lane.b32.xlu1 %v401_v41, %s1567_s18  ;;  %421 = vrot.lane.b32.xlu0 %v200_v22, %s1567_s18  ;;  %v211_v22 = vshll.u32 %v1915_v13, 16 }
  0x69   :  { %v213_v32 = vrot.slane %v211_v22, 1 }
  0x6b   :  { %279 = vrot.lane.b32.xlu1 %v1847_v45, %s1566_s11  ;;  %277 = vrot.lane.b32.xlu0 %v1849_v46, %s1566_s11  ;;  %v1932_v37 = vor.u32 %v213_v32, %v209_v31 }
  0x6f   :  { %457 = vrot.lane.b32.xlu1 %v441_v47, %s1569_s21  ;;  %455 = vrot.lane.b32.xlu0 %v1793_v16, %s1569_s21 }
  0x73   :  { %327 = vrot.lane.b32.xlu1 %v1867_v51, %s1565_s10  ;;  %325 = vrot.lane.b32.xlu0 %v1869_v52, %s1565_s10 }
  0x76   :  { %v358_v9 = vpop.permute.xlu0 %357 }
  0x77   :  { %495 = vrot.lane.b32.xlu1 %v1395_v60, %s1570_s24  ;;  %493 = vrot.lane.b32.xlu0 %v1384_v34, %s1570_s24  ;;  %v206_v34 = vrot.slane %v204_v23, 1 }
  0x79   :  { %v306_v18 = vpop.permute.xlu1 %305  ;;  %v207_v38 = vor.u32 %v206_v34, %v202_v33  ;;  %v1386_v34 = vcombine.low %v1828_v29, %v1828_v29 }
  0x7b   :  { %379 = vrot.lane.b32.xlu1 %v1905_v5, %s1564_s9  ;;  %377 = vrot.lane.b32.xlu0 %v1909_v6, %s1564_s9 }
  0x7d   :  { %v308_v25 = vpop.permute.xlu1 %307  ;;  %v258_v28 = vpop.permute.xlu0 %257 }
  0x7e   :  { %v570_v48 = vsel %vm567_vm0, %v1627_v4, %v258_v28  ;;  %v298_v4 = vrot.slane %v1915_v13, 1 }
  0x7f   :  { %547 = vrot.lane.b32.xlu1 %v525_v21, %s1571_s7  ;;  %545 = vrot.lane.b32.xlu0 %v401_v41, %s1571_s7  ;;  %v618_v61 = vsel %vm616_vm1, %v570_v48, %v306_v18 }
  0x80   :  { %v651_v18 = vsel %vm649_vm2, %v618_v61, %v358_v9  ;;  %v58_v61 = vld [vmem:[%s2452_s0 + $0x84] sm:$0x1] }
  0x81   :  { %v360_v35 = vpop.permute.xlu1 %359  ;;  %v260_v36 = vpop.permute.xlu0 %259 }
  0x82   :  { %v573_v41 = vsel %vm567_vm0, %v1616_v0, %v260_v36  ;;  %v1950_v0 = vld [vmem:[%s2452_s0 + $0x78] sm:$0xf]  ;;  %v1385_v36 = vcombine.low %v1890_v62, %v1890_v62 }
  0x83   :  { %431 = vrot.lane.b32.xlu1 %v1923_v30, %s1567_s18  ;;  %429 = vrot.lane.b32.xlu0 %v1847_v45, %s1567_s18  ;;  %v620_v49 = vsel %vm616_vm1, %v573_v41, %v308_v25  ;;  %v1374_v59 = vcombine.low %v1950_v0, %v56_v44  ;;  %v1971_v14 = vcombine.low %v1950_v0, %v1950_v0 }
  0x84   :  { %v653_v3 = vsel %vm649_vm2, %v620_v49, %v360_v35 }
  0x85   :  { %v412_v39 = vpop.permute.xlu1 %411  ;;  %v410_v42 = vpop.permute.xlu0 %409  ;;  %v1960_v8 = vrot.slane %v1374_v59, 1  ;;  %v239_v21 = vshll.u32 %v1374_v59, 16 }
  0x86   :  { %v686_v20 = vsel %vm682_vm3, %v653_v3, %v412_v39  ;;  %v684_v13 = vsel %vm682_vm3, %v651_v18, %v410_v42 }
  0x87   :  { %275 = vrot.lane.b32.xlu1 %v1932_v37, %s1566_s11  ;;  %273 = vrot.lane.b32.xlu0 %v207_v38, %s1566_s11  ;;  %v1410_v19 = vcombine.low %v1939_v43, %v1960_v8  ;;  %v237_v38 = vshrl.u32 %v1374_v59, 16  ;;  %v241_v39 = vrot.slane %v239_v21, 1 }
  0x89   :  { %v446_v54 = vpop.permute.xlu1 %445  ;;  %v444_v60 = vpop.permute.xlu0 %443  ;;  %1429 = vmatprep.mubr.msk.bf16.mxu1 %vm567_vm0, %v1410_v19  ;;  %v1994_v44 = vor.u32 %v241_v39, %v237_v38  ;;  %v60_v39 = vld [vmem:[%s2452_s0 + $0x8c] sm:$0x1] }
  0x8a   :  { %v719_v9 = vsel %vm715_vm4, %v686_v20, %v446_v54  ;;  %v717_v22 = vsel %vm715_vm4, %v684_v13, %v444_v60 }
  0x8b   :  { %465 = vrot.lane.b32.xlu1 %v1939_v43, %s1569_s21  ;;  %463 = vrot.lane.b32.xlu0 %v1867_v51, %s1569_s21 }
  0x8d   :  { %v484_v10 = vpop.permute.xlu1 %483  ;;  %v482_v12 = vpop.permute.xlu0 %481 }
  0x8e   :  { %v752_v23 = vsel %vm748_vm5, %v719_v9, %v484_v10  ;;  %v750_v25 = vsel %vm748_vm5, %v717_v22, %v482_v12 }
  0x8f   :  { %323 = vrot.lane.b32.xlu1 %v298_v4, %s1565_s10  ;;  %321 = vrot.lane.b32.xlu0 %v297_v63, %s1565_s10 }
  0x91   :  { %v536_v28 = vpop.permute.xlu1 %535  ;;  %v534_v31 = vpop.permute.xlu0 %533 }
  0x92   :  { %v785_v32 = vsel %vm781_vm6, %v752_v23, %v536_v28  ;;  %v783_v33 = vsel %vm781_vm6, %v750_v25, %v534_v31 }
  0x93   :  { %v1399_v35 = vcombine.low %v783_v33, %v785_v32  ;;  %503 = vrot.lane.b32.xlu1 %v1971_v14, %s1570_s24  ;;  %501 = vrot.lane.b32.xlu0 %v1905_v5, %s1570_s24 }
  0x95   :  { %v264_v42 = vpop.permute.xlu1 %263  ;;  %1015 = vmatmul.mubr.bf16.vlgmr.msra.gmra.mrb[0].mxu0 %v1399_v35  ;;  %v262_v41 = vpop.permute.xlu0 %261 }
  0x96   :  { %1425 = vmatprep.mubr.msk.bf16.mxu0 %vm567_vm0, %v1402_v58  ;;  %v579_v59 = vsel %vm567_vm0, %v1651_v24, %v264_v42  ;;  %v2025_v24 = vld [vmem:[%s2452_s0 + $0x80] sm:$0xf] }
  0x97   :  { %375 = vrot.lane.b32.xlu1 %v1386_v34, %s1564_s9  ;;  %373 = vrot.lane.b32.xlu0 %v1385_v36, %s1564_s9  ;;  %v1375_v20 = vcombine.low %v2025_v24, %v58_v61 }
  0x99   :  { %v312_v5 = vpop.permute.xlu1 %311  ;;  %v310_v48 = vpop.permute.xlu0 %309  ;;  %v246_v33 = vshll.u32 %v1375_v20, 16 }
  0x9a   :  { %v624_v63 = vsel %vm616_vm1, %v579_v59, %v312_v5 }
  0x9b   :  { %555 = vrot.lane.b32.xlu1 %v1994_v44, %s1571_s7  ;;  %553 = vrot.lane.b32.xlu0 %v1923_v30, %s1571_s7  ;;  %v248_v38 = vrot.slane %v246_v33, 1 }
  0x9d   :  { %v364_v49 = vpop.permute.xlu1 %363  ;;  %v362_v54 = vpop.permute.xlu0 %361 }
  0x9e   :  { %v657_v12 = vsel %vm649_vm2, %v624_v63, %v364_v49  ;;  %v62_v63 = vld [vmem:[%s2452_s0 + $0x94] sm:$0x1] }
  0x9f   :  { %427 = vrot.lane.b32.xlu1 %v1849_v46, %s1567_s18  ;;  %425 = vrot.lane.b32.xlu0 %v1932_v37, %s1567_s18  ;;  %v576_v37 = vsel %vm567_vm0, %v1636_v7, %v262_v41  ;;  %v1408_v7 = vcombine.low %v1869_v52, %v1867_v51 }
  0xa1   :  { %v416_v55 = vpop.permute.xlu1 %415  ;;  %v414_v56 = vpop.permute.xlu0 %413 }
  0xa2   :  { %v690_v18 = vsel %vm682_vm3, %v657_v12, %v416_v55 }
  0xa3   :  { %283 = vrot.lane.b32.xlu1 %v1994_v44, %s1566_s11  ;;  %281 = vrot.lane.b32.xlu0 %v1923_v30, %s1566_s11  ;;  %v622_v30 = vsel %vm616_vm1, %v576_v37, %v310_v48 }
  0xa5   :  { %v450_v58 = vpop.permute.xlu1 %449  ;;  %v448_v60 = vpop.permute.xlu0 %447 }
  0xa6   :  { %v723_v13 = vsel %vm715_vm4, %v690_v18, %v450_v58 }
  0xa7   :  { %461 = vrot.lane.b32.xlu1 %v1869_v52, %s1569_s21  ;;  %459 = vrot.lane.b32.xlu0 %v298_v4, %s1569_s21  ;;  %v655_v4 = vsel %vm649_vm2, %v622_v30, %v362_v54 }
  0xa8   :  { %v688_v19 = vsel %vm682_vm3, %v655_v4, %v414_v56 }
  0xa9   :  { %v488_v3 = vpop.permute.xlu1 %487  ;;  %v486_v10 = vpop.permute.xlu0 %485  ;;  %v721_v21 = vsel %vm715_vm4, %v688_v19, %v448_v60 }
  0xaa   :  { %v756_v9 = vsel %vm748_vm5, %v723_v13, %v488_v3  ;;  %v754_v22 = vsel %vm748_vm5, %v721_v21, %v486_v10 }
  0xab   :  { %331 = vrot.lane.b32.xlu1 %v1960_v8, %s1565_s10  ;;  %329 = vrot.lane.b32.xlu0 %v1939_v43, %s1565_s10  ;;  %v1390_v43 = vcombine.low %v2025_v24, %v2025_v24 }
  0xad   :  { %v540_v23 = vpop.permute.xlu1 %539  ;;  %v538_v25 = vpop.permute.xlu0 %537 }
  0xae   :  { %v789_v28 = vsel %vm781_vm6, %v756_v9, %v540_v23  ;;  %v787_v31 = vsel %vm781_vm6, %v754_v22, %v538_v25 }
  0xaf   :  { %v1401_v32 = vcombine.low %v787_v31, %v789_v28  ;;  %499 = vrot.lane.b32.xlu1 %v1909_v6, %s1570_s24  ;;  %497 = vrot.lane.b32.xlu0 %v1386_v34, %s1570_s24  ;;  %v244_v6 = vshrl.u32 %v1375_v20, 16  ;;  %v2057_v34 = vld [vmem:[%s2452_s0 + $0x88] sm:$0xf] }
  0xb0   :  { %v1376_v16 = vcombine.low %v2057_v34, %v60_v39 }
  0xb1   :  { %v268_v35 = vpop.permute.xlu1 %267  ;;  %1023 = vmatmul.mubr.bf16.gmra.mrb[4].mxu0 %v1401_v32  ;;  %v266_v36 = vpop.permute.xlu0 %265 }
  0xb2   :  { %1426 = vmatprep.mubr.msk.bf16.mxu0 %vm567_vm0, %v1404_v17  ;;  %v249_v17 = vor.u32 %v248_v38, %v244_v6  ;;  %v2069_v41 = vrot.slane %v1376_v16, 1  ;;  %v253_v54 = vshll.u32 %v1376_v16, 16  ;;  %v251_v56 = vshrl.u32 %v1376_v16, 16  ;;  %v63_v6 = vld [vmem:[%s2452_s0 + $0x98] sm:$0xf] }
  0xb3   :  { %383 = vrot.lane.b32.xlu1 %v1390_v43, %s1564_s9  ;;  %381 = vrot.lane.b32.xlu0 %v1971_v14, %s1564_s9  ;;  %v2067_v14 = vrot.slane %v1375_v20, 1  ;;  %v585_v37 = vsel %vm567_vm0, %v1722_v50, %v268_v35  ;;  %v582_v61 = vsel %vm567_vm0, %v1688_v40, %v266_v36  ;;  %v565_v40 = vrot.slane %v1871_v53, 1  ;;  %v64_v38 = vld [vmem:[%s2452_s0 + $0x9c] sm:$0x1] }
  0xb4   :  { %v255_v58 = vrot.slane %v253_v54, 1  ;;  %v2130_v16 = vcombine.low %v63_v6, %v64_v38 }
  0xb5   :  { %v316_v42 = vpop.permute.xlu1 %315  ;;  %v314_v15 = vpop.permute.xlu0 %313  ;;  %v1412_v49 = vcombine.low %v2067_v14, %v2069_v41  ;;  %v1406_v31 = vcombine.low %v441_v47, %v565_v40 }
  0xb6   :  { %v628_v30 = vsel %vm616_vm1, %v585_v37, %v316_v42  ;;  %v626_v3 = vsel %vm616_vm1, %v582_v61, %v314_v15  ;;  %v529_v54 = vshll.u32 %v2130_v16, 16 }
  0xb7   :  { %551 = vrot.lane.b32.xlu1 %v1847_v45, %s1571_s7  ;;  %549 = vrot.lane.b32.xlu0 %v1849_v46, %s1571_s7  ;;  %v1391_v46 = vcombine.low %v2057_v34, %v2057_v34 }
  0xb9   :  { %v368_v5 = vpop.permute.xlu1 %367  ;;  %v366_v48 = vpop.permute.xlu0 %365 }
  0xba   :  { %v661_v4 = vsel %vm649_vm2, %v628_v30, %v368_v5  ;;  %v659_v50 = vsel %vm649_vm2, %v626_v3, %v366_v48 }
  0xbb   :  { %435 = vrot.lane.b32.xlu1 %v249_v17, %s1567_s18  ;;  %433 = vrot.lane.b32.xlu0 %v1994_v44, %s1567_s18  ;;  %v256_v44 = vor.u32 %v255_v58, %v251_v56  ;;  %v527_v56 = vshrl.u32 %v2130_v16, 16  ;;  %v531_v58 = vrot.slane %v529_v54, 1 }
  0xbd   :  { %v420_v45 = vpop.permute.xlu1 %419  ;;  %v418_v55 = vpop.permute.xlu0 %417 }
  0xbe   :  { %v694_v18 = vsel %vm682_vm3, %v661_v4, %v420_v45  ;;  %v692_v19 = vsel %vm682_vm3, %v659_v50, %v418_v55 }
  0xbf   :  { %469 = vrot.lane.b32.xlu1 %v2067_v14, %s1569_s21  ;;  %467 = vrot.lane.b32.xlu0 %v1960_v8, %s1569_s21  ;;  %v61_v8 = vld [vmem:[%s2452_s0 + $0x90] sm:$0xf] }
  0xc0   :  { %v2103_v20 = vcombine.low %v61_v8, %v62_v63  ;;  %v1392_v26 = vcombine.low %v61_v8, %v61_v8 }
  0xc1   :  { %v454_v60 = vpop.permute.xlu1 %453  ;;  %v452_v59 = vpop.permute.xlu0 %451 }
  0xc2   :  { %v727_v13 = vsel %vm715_vm4, %v694_v18, %v454_v60  ;;  %v725_v21 = vsel %vm715_vm4, %v692_v19, %v452_v59  ;;  %v403_v47 = vshrl.u32 %v2103_v20, 16  ;;  %v442_v48 = vrot.slane %v2103_v20, 1 }
  0xc3   :  { %507 = vrot.lane.b32.xlu1 %v1391_v46, %s1570_s24  ;;  %505 = vrot.lane.b32.xlu0 %v1390_v43, %s1570_s24  ;;  %v405_v43 = vshll.u32 %v2103_v20, 16 }
  0xc5   :  { %v492_v10 = vpop.permute.xlu1 %491  ;;  %v490_v12 = vpop.permute.xlu0 %489  ;;  %v407_v36 = vrot.slane %v405_v43, 1 }
  0xc6   :  { %v760_v9 = vsel %vm748_vm5, %v727_v13, %v492_v10  ;;  %v758_v22 = vsel %vm748_vm5, %v725_v21, %v490_v12 }
  0xc7   :  { %559 = vrot.lane.b32.xlu1 %v256_v44, %s1571_s7  ;;  %557 = vrot.lane.b32.xlu0 %v249_v17, %s1571_s7  ;;  %v408_v15 = vor.u32 %v407_v36, %v403_v47 }
  0xc9   :  { %v544_v23 = vpop.permute.xlu1 %543  ;;  %v542_v53 = vpop.permute.xlu0 %541 }
  0xca   :  { %v793_v25 = vsel %vm781_vm6, %v760_v9, %v544_v23  ;;  %v791_v28 = vsel %vm781_vm6, %v758_v22, %v542_v53 }
  0xcb   :  { %v1403_v32 = vcombine.low %v791_v28, %v793_v25  ;;  %287 = vrot.lane.b32.xlu1 %v256_v44, %s1566_s11  ;;  %285 = vrot.lane.b32.xlu0 %v249_v17, %s1566_s11 }
  0xcd   :  { %v272_v33 = vpop.permute.xlu1 %271  ;;  %1031 = vmatmul.mubr.bf16.gmra.mrb[8].mxu0 %v1403_v32  ;;  %v270_v35 = vpop.permute.xlu0 %269 }
  0xce   :  { %1427 = vmatprep.mubr.msk.bf16.mxu0 %vm567_vm0, %v1406_v31  ;;  %v591_v10 = vsel %vm567_vm0, %v1783_v11, %v272_v33  ;;  %v588_v12 = vsel %vm567_vm0, %v1764_v2, %v270_v35 }
  0xcf   :  { %335 = vrot.lane.b32.xlu1 %v2069_v41, %s1565_s10  ;;  %333 = vrot.lane.b32.xlu0 %v2067_v14, %s1565_s10 }
  0xd1   :  { %v320_v39 = vpop.permute.xlu1 %319  ;;  %v318_v42 = vpop.permute.xlu0 %317 }
  0xd2   :  { %v632_v4 = vsel %vm616_vm1, %v591_v10, %v320_v39  ;;  %v630_v50 = vsel %vm616_vm1, %v588_v12, %v318_v42 }
  0xd3   :  { %387 = vrot.lane.b32.xlu1 %v1392_v26, %s1564_s9  ;;  %385 = vrot.lane.b32.xlu0 %v1391_v46, %s1564_s9  ;;  %v1396_v46 = vcombine.low %v63_v6, %v63_v6 }
  0xd5   :  { %v372_v17 = vpop.permute.xlu1 %371  ;;  %v370_v5 = vpop.permute.xlu0 %369 }
  0xd6   :  { %v665_v19 = vsel %vm649_vm2, %v632_v4, %v372_v17  ;;  %v663_v13 = vsel %vm649_vm2, %v630_v50, %v370_v5 }
  0xd7   :  { %439 = vrot.lane.b32.xlu1 %v408_v15, %s1567_s18  ;;  %437 = vrot.lane.b32.xlu0 %v256_v44, %s1567_s18  ;;  %v532_v44 = vor.u32 %v531_v58, %v527_v56 }
  0xd9   :  { %v424_v45 = vpop.permute.xlu1 %423  ;;  %v422_v55 = vpop.permute.xlu0 %421 }
  0xda   :  { %v698_v21 = vsel %vm682_vm3, %v665_v19, %v424_v45  ;;  %v696_v9 = vsel %vm682_vm3, %v663_v13, %v422_v55 }
  0xdb   :  { %473 = vrot.lane.b32.xlu1 %v442_v48, %s1569_s21  ;;  %471 = vrot.lane.b32.xlu0 %v2069_v41, %s1569_s21 }
  0xdd   :  { %v280_v60 = vpop.permute.xlu1 %279  ;;  %v278_v59 = vpop.permute.xlu0 %277 }
  0xde   :  { %v600_v17 = vsel %vm567_vm0, %v1828_v29, %v278_v59 }
  0xdf   :  { %511 = vrot.lane.b32.xlu1 %v1396_v46, %s1570_s24  ;;  %509 = vrot.lane.b32.xlu0 %v1392_v26, %s1570_s24 }
  0xe1   :  { %v458_v37 = vpop.permute.xlu1 %457  ;;  %v456_v61 = vpop.permute.xlu0 %455 }
  0xe2   :  { %v731_v22 = vsel %vm715_vm4, %v698_v21, %v458_v37  ;;  %v729_v11 = vsel %vm715_vm4, %v696_v9, %v456_v61 }
  0xe3   :  { %563 = vrot.lane.b32.xlu1 %v532_v44, %s1571_s7  ;;  %561 = vrot.lane.b32.xlu0 %v408_v15, %s1571_s7  ;;  %v603_v15 = vsel %vm567_vm0, %v1820_v27, %v280_v60 }
  0xe5   :  { %v328_v8 = vpop.permute.xlu1 %327  ;;  %v326_v63 = vpop.permute.xlu0 %325 }
  0xe6   :  { %v640_v5 = vsel %vm616_vm1, %v603_v15, %v328_v8  ;;  %v638_v51 = vsel %vm616_vm1, %v600_v17, %v326_v63 }
  0xe9   :  { %v496_v30 = vpop.permute.xlu1 %495  ;;  %v494_v3 = vpop.permute.xlu0 %493 }
  0xea   :  { %v764_v2 = vsel %vm748_vm5, %v731_v22, %v496_v30  ;;  %v762_v23 = vsel %vm748_vm5, %v729_v11, %v494_v3 }
  0xed   :  { %v380_v40 = vpop.permute.xlu1 %379  ;;  %v378_v18 = vpop.permute.xlu0 %377 }
  0xee   :  { %v673_v54 = vsel %vm649_vm2, %v640_v5, %v380_v40  ;;  %v671_v45 = vsel %vm649_vm2, %v638_v51, %v378_v18  ;;  %v566_v51 = vrot.slane %v2130_v16, 1 }
  0xf0   :  { %v1414_v16 = vcombine.low %v442_v48, %v566_v51 }
  0xf1   :  { %v548_v53 = vpop.permute.xlu1 %547  ;;  %v546_v25 = vpop.permute.xlu0 %545 }
  0xf2   :  { %v797_v28 = vsel %vm781_vm6, %v764_v2, %v548_v53  ;;  %v795_v31 = vsel %vm781_vm6, %v762_v23, %v546_v25 }
  0xf3   :  { %v1405_v32 = vcombine.low %v795_v31, %v797_v28 }
  0xf5   :  { %v432_v43 = vpop.permute.xlu1 %431  ;;  %1039 = vmatmul.mubr.bf16.gmra.mrb[12].mxu0 %v1405_v32  ;;  %v430_v33 = vpop.permute.xlu0 %429 }
  0xf6   :  { %1428 = vmatprep.mubr.msk.bf16.mxu0 %vm567_vm0, %v1408_v7  ;;  %v706_v55 = vsel %vm682_vm3, %v673_v54, %v432_v43  ;;  %v704_v46 = vsel %vm682_vm3, %v671_v45, %v430_v33 }
  0xf9   :  { %v276_v35 = vpop.permute.xlu1 %275  ;;  %v274_v26 = vpop.permute.xlu0 %273 }
  0xfa   :  { %v597_v19 = vsel %vm567_vm0, %v1890_v62, %v276_v35  ;;  %v594_v13 = vsel %vm567_vm0, %v1898_v1, %v274_v26 }
  0xfd   :  { %v466_v47 = vpop.permute.xlu1 %465  ;;  %v464_v36 = vpop.permute.xlu0 %463 }
  0xfe   :  { %v739_v56 = vsel %vm715_vm4, %v706_v55, %v466_v47  ;;  %v737_v27 = vsel %vm715_vm4, %v704_v46, %v464_v36 }
 0x101   :  { %v324_v6 = vpop.permute.xlu1 %323  ;;  %v322_v38 = vpop.permute.xlu0 %321 }
 0x102   :  { %v636_v21 = vsel %vm616_vm1, %v597_v19, %v324_v6  ;;  %v634_v14 = vsel %vm616_vm1, %v594_v13, %v322_v38 }
 0x105   :  { %v504_v39 = vpop.permute.xlu1 %503  ;;  %v502_v42 = vpop.permute.xlu0 %501 }
 0x106   :  { %v772_v29 = vsel %vm748_vm5, %v739_v56, %v504_v39  ;;  %v770_v58 = vsel %vm748_vm5, %v737_v27, %v502_v42 }
 0x109   :  { %v376_v52 = vpop.permute.xlu1 %375  ;;  %v374_v7 = vpop.permute.xlu0 %373 }
 0x10a   :  { %v669_v9 = vsel %vm649_vm2, %v636_v21, %v376_v52  ;;  %v667_v22 = vsel %vm649_vm2, %v634_v14, %v374_v7 }
 0x10d   :  { %v556_v60 = vpop.permute.xlu1 %555  ;;  %v554_v59 = vpop.permute.xlu0 %553 }
 0x10e   :  { %v805_v44 = vsel %vm781_vm6, %v772_v29, %v556_v60  ;;  %v803_v37 = vsel %vm781_vm6, %v770_v58, %v554_v59 }
 0x10f   :  { %v1409_v61 = vcombine.low %v803_v37, %v805_v44 }
 0x111   :  { %v428_v8 = vpop.permute.xlu1 %427  ;;  %1055 = vmatmul.mubr.bf16.vlgmr.msra.gmra.mrb[0].mxu1 %v1409_v61  ;;  %v426_v63 = vpop.permute.xlu0 %425 }
 0x112   :  { %1430 = vmatprep.mubr.msk.bf16.mxu1 %vm567_vm0, %v1412_v49  ;;  %v702_v11 = vsel %vm682_vm3, %v669_v9, %v428_v8  ;;  %v700_v2 = vsel %vm682_vm3, %v667_v22, %v426_v63 }
 0x115   :  { %v284_v30 = vpop.permute.xlu1 %283  ;;  %v282_v3 = vpop.permute.xlu0 %281 }
 0x116   :  { %v609_v36 = vsel %vm567_vm0, %v1950_v0, %v284_v30  ;;  %v606_v6 = vsel %vm567_vm0, %v1879_v57, %v282_v3 }
 0x119   :  { %v462_v10 = vpop.permute.xlu1 %461  ;;  %v460_v12 = vpop.permute.xlu0 %459 }
 0x11a   :  { %v735_v23 = vsel %vm715_vm4, %v702_v11, %v462_v10  ;;  %v733_v62 = vsel %vm715_vm4, %v700_v2, %v460_v12 }
 0x11d   :  { %v332_v4 = vpop.permute.xlu1 %331  ;;  %v330_v50 = vpop.permute.xlu0 %329 }
 0x11e   :  { %v644_v38 = vsel %vm616_vm1, %v609_v36, %v332_v4  ;;  %v642_v39 = vsel %vm616_vm1, %v606_v6, %v330_v50  ;;  %v1537_v36 = vld [vmem:[%s2456_s4 + $0x8] sm:$0xff]   ;;  %v1538_v6 = vld [vmem:[%s2456_s4 + $0x10] sm:$0xff]  }
 0x121   :  { %v500_v40 = vpop.permute.xlu1 %499  ;;  %v498_v18 = vpop.permute.xlu0 %497 }
 0x122   :  { %v768_v1 = vsel %vm748_vm5, %v735_v23, %v500_v40  ;;  %v766_v53 = vsel %vm748_vm5, %v733_v62, %v498_v18 }
 0x125   :  { %v384_v41 = vpop.permute.xlu1 %383  ;;  %v382_v49 = vpop.permute.xlu0 %381 }
 0x126   :  { %v677_v17 = vsel %vm649_vm2, %v644_v38, %v384_v41  ;;  %v675_v5 = vsel %vm649_vm2, %v642_v39, %v382_v49  ;;  %v1539_v39 = vld [vmem:[%s2456_s4 + $0x18] sm:$0xff]  }
 0x129   :  { %v552_v25 = vpop.permute.xlu1 %551  ;;  %v550_v28 = vpop.permute.xlu0 %549 }
 0x12a   :  { %v801_v31 = vsel %vm781_vm6, %v768_v1, %v552_v25  ;;  %v799_v32 = vsel %vm781_vm6, %v766_v53, %v550_v28 }
 0x12b   :  { %v1407_v43 = vcombine.low %v799_v32, %v801_v31 }
 0x12d   :  { %v436_v33 = vpop.permute.xlu1 %435  ;;  %1047 = vmatmul.mubr.bf16.gmra.mrb[16].mxu0 %v1407_v43  ;;  %v434_v35 = vpop.permute.xlu0 %433 }
 0x12e   :  { %v710_v52 = vsel %vm682_vm3, %v677_v17, %v436_v33  ;;  %v708_v7 = vsel %vm682_vm3, %v675_v5, %v434_v35 }
 0x131   :  { %v470_v26 = vpop.permute.xlu1 %469  ;;  %v468_v47 = vpop.permute.xlu0 %467 }
 0x132   :  { %v743_v0 = vsel %vm715_vm4, %v710_v52, %v470_v26  ;;  %v741_v57 = vsel %vm715_vm4, %v708_v7, %v468_v47  ;;  %v1536_v26 = vld [vmem:[%s2456_s4] sm:$0xff]   ;;  %v1572_v47 = vmov 0.0  }
 0x133   :  { %1445 = vmatprep.subr.bf16.mxu1 %v1572_v47 }
 0x134   :  { %1446 = vmatpush3.bf16.msra.mxu1 %v1536_v26 }
 0x135   :  { %v508_v42 = vpop.permute.xlu1 %507  ;;  %v506_v15 = vpop.permute.xlu0 %505  ;;  %1447 = vmatprep.subr.bf16.mxu1 %v1572_v47 }
 0x136   :  { %v776_v54 = vsel %vm748_vm5, %v743_v0, %v508_v42  ;;  %v774_v45 = vsel %vm748_vm5, %v741_v57, %v506_v15 }
 0x138   :  { %1448 = vmatpush3.bf16.msra.mxu1 %v1537_v36 }
 0x139   :  { %v560_v55 = vpop.permute.xlu1 %559  ;;  %v558_v46 = vpop.permute.xlu0 %557  ;;  %1449 = vmatprep.subr.bf16.mxu1 %v1572_v47 }
 0x13a   :  { %v809_v56 = vsel %vm781_vm6, %v776_v54, %v560_v55  ;;  %v807_v27 = vsel %vm781_vm6, %v774_v45, %v558_v46  ;;  %v2253_v54 = vld [vmem:[%s2454_s2] ss:$0 sm:$0xff] }
 0x13b   :  { %v1411_v29 = vcombine.low %v807_v27, %v809_v56 }
 0x13c   :  { %1450 = vmatpush3.bf16.msra.mxu1 %v1538_v6 }
 0x13d   :  { %v288_v58 = vpop.permute.xlu1 %287  ;;  %1063 = vmatmul.mubr.bf16.gmra.mrb[4].mxu1 %v1411_v29  ;;  %v286_v60 = vpop.permute.xlu0 %285  ;;  %1451 = vmatprep.subr.bf16.mxu1 %v1572_v47 }
 0x13e   :  { %1431 = vmatprep.mubr.msk.bf16.mxu1 %vm567_vm0, %v1414_v16  ;;  %v615_v10 = vsel %vm567_vm0, %v2057_v34, %v288_v58  ;;  %v612_v20 = vsel %vm567_vm0, %v2025_v24, %v286_v60  ;;  %v2261_v16 = vld [vmem:[%s2455_s3] ss:$0 sm:$0xff] }
 0x140   :  { %1452 = vmatpush3.bf16.msra.mxu1 %v1539_v39 }
 0x141   :  { %v336_v59 = vpop.permute.xlu1 %335  ;;  %v334_v44 = vpop.permute.xlu0 %333 }
 0x142   :  { %v648_v48 = vsel %vm616_vm1, %v615_v10, %v336_v59  ;;  %v646_v12 = vsel %vm616_vm1, %v612_v20, %v334_v44 }
 0x145   :  { %v388_v37 = vpop.permute.xlu1 %387  ;;  %v386_v61 = vpop.permute.xlu0 %385 }
 0x146   :  { %v681_v40 = vsel %vm649_vm2, %v648_v48, %v388_v37  ;;  %v679_v18 = vsel %vm649_vm2, %v646_v12, %v386_v61 }
 0x149   :  { %v440_v8 = vpop.permute.xlu1 %439  ;;  %v438_v63 = vpop.permute.xlu0 %437 }
 0x14a   :  { %v714_v19 = vsel %vm682_vm3, %v681_v40, %v440_v8  ;;  %v712_v13 = vsel %vm682_vm3, %v679_v18, %v438_v63 }
 0x14d   :  { %v474_v30 = vpop.permute.xlu1 %473  ;;  %v472_v3 = vpop.permute.xlu0 %471 }
 0x14e   :  { %v747_v21 = vsel %vm715_vm4, %v714_v19, %v474_v30  ;;  %v745_v34 = vsel %vm715_vm4, %v712_v13, %v472_v3 }
 0x151   :  { %v512_v4 = vpop.permute.xlu1 %511  ;;  %v510_v50 = vpop.permute.xlu0 %509 }
 0x152   :  { %v780_v24 = vsel %vm748_vm5, %v747_v21, %v512_v4  ;;  %v778_v14 = vsel %vm748_vm5, %v745_v34, %v510_v50 }
 0x155   :  { %v564_v41 = vpop.permute.xlu1 %563  ;;  %v562_v49 = vpop.permute.xlu0 %561 }
 0x156   :  { %v813_v9 = vsel %vm781_vm6, %v780_v24, %v564_v41  ;;  %v811_v22 = vsel %vm781_vm6, %v778_v14, %v562_v49 }
 0x157   :  { %v1413_v11 = vcombine.low %v811_v22, %v813_v9 }
 0x159   :  { %1071 = vmatmul.mubr.bf16.gmra.mrb[8].mxu1 %v1413_v11 }
 0x15a   :  { %1453 = vmatprep.mubr.msk.bf16.mxu1 %vm1573_vm7, %v1572_v47 }
 0x168   :  { %v1016_v2 = vpop.f32.mrb[0].mxu0 }
 0x169   :  { %v1018_v23 = vpop.f32.mrb[1].mxu0  ;;  %v1086_v56 = vmul.f32 %v2253_v54, %v1016_v2 }
 0x16a   :  { %v1019_v62 = vpop.f32.mrb[2].mxu0 }
 0x16b   :  { %v1021_v1 = vpop.f32.mrb[3].mxu0  ;;  %v1087_v55 = vmul.f32 %v2253_v54, %v1019_v62  ;;  %v2267_v58 = vadd.f32 %v2261_v16, %v1086_v56 }
 0x16d   :  { %v2264_v29 = vadd.f32 %v2261_v16, %v1087_v55  ;;  %v1125_v61 = vmax.f32 %v2267_v58, 0.0 }
 0x16f   :  { %v1126_v44 = vmax.f32 %v2264_v29, 0.0  ;;  %v1141_v48 = vsel %vm682_vm3, %v1125_v61, 0.0 }
 0x171   :  { %v1142_v30 = vsel %vm682_vm3, %v1126_v44, 0.0 }
 0x172   :  { %v1143_v18 = vadd.f32 %v1142_v30, %v1141_v48 }
 0x184   :  { %v1024_v53 = vpop.f32.mrb[4].mxu0 }
 0x185   :  { %v1026_v25 = vpop.f32.mrb[5].mxu0  ;;  %v1088_v27 = vmul.f32 %v2253_v54, %v1024_v53 }
 0x186   :  { %v1027_v28 = vpop.f32.mrb[6].mxu0 }
 0x187   :  { %v1029_v31 = vpop.f32.mrb[7].mxu0  ;;  %v2270_v60 = vadd.f32 %v2261_v16, %v1088_v27  ;;  %v1089_v59 = vmul.f32 %v2253_v54, %v1027_v28 }
 0x189   :  { %v1127_v8 = vmax.f32 %v2270_v60, 0.0  ;;  %v2278_v63 = vadd.f32 %v2261_v16, %v1089_v59 }
 0x18b   :  { %v1144_v12 = vsel %vm682_vm3, %v1127_v8, 0.0  ;;  %v1128_v4 = vmax.f32 %v2278_v63, 0.0 }
 0x18c   :  { %v1145_v24 = vadd.f32 %v1144_v12, %v1143_v18 }
 0x18d   :  { %v1146_v14 = vsel %vm682_vm3, %v1128_v4, 0.0 }
 0x18e   :  { %v1147_v23 = vadd.f32 %v1146_v14, %v1145_v24 }
 0x1a0   :  { %v1032_v32 = vpop.f32.mrb[8].mxu0 }
 0x1a1   :  { %v1034_v43 = vpop.f32.mrb[9].mxu0  ;;  %v1090_v37 = vmul.f32 %v2253_v54, %v1032_v32 }
 0x1a2   :  { %v1035_v33 = vpop.f32.mrb[10].mxu0 }
 0x1a3   :  { %v1037_v35 = vpop.f32.mrb[11].mxu0  ;;  %v2284_v3 = vadd.f32 %v2261_v16, %v1090_v37  ;;  %v1091_v10 = vmul.f32 %v2253_v54, %v1035_v33 }
 0x1a5   :  { %v1129_v13 = vmax.f32 %v2284_v3, 0.0  ;;  %v2297_v21 = vadd.f32 %v2261_v16, %v1091_v10 }
 0x1a7   :  { %v1148_v22 = vsel %vm682_vm3, %v1129_v13, 0.0  ;;  %v1130_v11 = vmax.f32 %v2297_v21, 0.0 }
 0x1a8   :  { %v1149_v25 = vadd.f32 %v1148_v22, %v1147_v23 }
 0x1a9   :  { %v1150_v31 = vsel %vm682_vm3, %v1130_v11, 0.0 }
 0x1aa   :  { %v1151_v26 = vadd.f32 %v1150_v31, %v1149_v25 }
 0x1c8   :  { %v1040_v38 = vpop.f32.mrb[12].mxu0 }
 0x1c9   :  { %v1042_v42 = vpop.f32.mrb[13].mxu0  ;;  %v1092_v50 = vmul.f32 %v2253_v54, %v1040_v38 }
 0x1ca   :  { %v1043_v15 = vpop.f32.mrb[14].mxu0 }
 0x1cb   :  { %v1045_v17 = vpop.f32.mrb[15].mxu0  ;;  %v2303_v41 = vadd.f32 %v2261_v16, %v1092_v50  ;;  %v1093_v49 = vmul.f32 %v2253_v54, %v1043_v15 }
 0x1cd   :  { %v1131_v62 = vmax.f32 %v2303_v41, 0.0  ;;  %v2314_v1 = vadd.f32 %v2261_v16, %v1093_v49 }
 0x1cf   :  { %v1152_v43 = vsel %vm682_vm3, %v1131_v62, 0.0  ;;  %v1132_v33 = vmax.f32 %v2314_v1, 0.0 }
 0x1d0   :  { %v1153_v39 = vadd.f32 %v1152_v43, %v1151_v26 }
 0x1d1   :  { %v1154_v42 = vsel %vm682_vm3, %v1132_v33, 0.0 }
 0x1e4   :  { %v1056_v5 = vpop.f32.mrb[0].mxu1 }
 0x1e5   :  { %v1058_v51 = vpop.f32.mrb[1].mxu1  ;;  %v1096_v28 = vmul.f32 %v2253_v54, %v1056_v5 }
 0x1e6   :  { %v1059_v52 = vpop.f32.mrb[2].mxu1 }
 0x1e7   :  { %v1061_v7 = vpop.f32.mrb[3].mxu1  ;;  %v2332_v47 = vadd.f32 %v2261_v16, %v1096_v28  ;;  %v1097_v36 = vmul.f32 %v2253_v54, %v1059_v52 }
 0x1e9   :  { %v1135_v17 = vmax.f32 %v2332_v47, 0.0  ;;  %v2345_v5 = vadd.f32 %v2261_v16, %v1097_v36 }
 0x1eb   :  { %v1136_v55 = vmax.f32 %v2345_v5, 0.0 }
 0x1ed   :  { %v1167_v37 = vsel %vm682_vm3, %v1136_v55, 0.0 }
 0x200   :  { %v1048_v0 = vpop.f32.mrb[16].mxu0 }
 0x201   :  { %v1050_v57 = vpop.f32.mrb[17].mxu0  ;;  %v1094_v2 = vmul.f32 %v2253_v54, %v1048_v0  ;;  %v1155_v0 = vadd.f32 %v1154_v42, %v1153_v39 }
 0x202   :  { %v1051_v45 = vpop.f32.mrb[18].mxu0 }
 0x203   :  { %v1053_v46 = vpop.f32.mrb[19].mxu0  ;;  %v1095_v9 = vmul.f32 %v2253_v54, %v1051_v45  ;;  %v2324_v32 = vadd.f32 %v2261_v16, %v1094_v2  ;;  %v1165_v45 = vsel %vm682_vm3, %v1135_v17, 0.0  ;;  %v1156_v27 = vrot.slane %v1155_v0, 4 }
 0x205   :  { %v2317_v53 = vadd.f32 %v2261_v16, %v1095_v9  ;;  %v1133_v6 = vmax.f32 %v2324_v32, 0.0 }
 0x207   :  { %v1134_v35 = vmax.f32 %v2317_v53, 0.0  ;;  %v1162_v51 = vsel %vm682_vm3, %v1133_v6, 0.0 }
 0x209   :  { %v1163_v15 = vsel %vm682_vm3, %v1134_v35, 0.0 }
 0x20a   :  { %v1164_v57 = vadd.f32 %v1163_v15, %v1162_v51 }
 0x20c   :  { %v1166_v59 = vadd.f32 %v1165_v45, %v1164_v57 }
 0x20e   :  { %v1168_v48 = vadd.f32 %v1167_v37, %v1166_v59 }
 0x210   :  { %v1064_v20 = vpop.f32.mrb[4].mxu1 }
 0x211   :  { %v1066_v40 = vpop.f32.mrb[5].mxu1  ;;  %v1098_v38 = vmul.f32 %v2253_v54, %v1064_v20  ;;  %v1157_v20 = vadd.f32 %v1156_v27, %v1155_v0 }
 0x212   :  { %v1067_v19 = vpop.f32.mrb[6].mxu1 }
 0x213   :  { %v1069_v34 = vpop.f32.mrb[7].mxu1  ;;  %v2351_v52 = vadd.f32 %v2261_v16, %v1098_v38  ;;  %v1099_v7 = vmul.f32 %v2253_v54, %v1067_v19  ;;  %v1158_v9 = vrot.slane %v1157_v20, 2 }
 0x215   :  { %v1137_v46 = vmax.f32 %v2351_v52, 0.0  ;;  %v2360_v56 = vadd.f32 %v2261_v16, %v1099_v7  ;;  %v1159_v31 = vadd.f32 %v1158_v9, %v1157_v20 }
 0x217   :  { %v1169_v30 = vsel %vm682_vm3, %v1137_v46, 0.0  ;;  %v1138_v10 = vmax.f32 %v2360_v56, 0.0  ;;  %v1160_v36 = vrot.slane %v1159_v31, 1 }
 0x218   :  { %v1170_v18 = vadd.f32 %v1169_v30, %v1168_v48  ;;  %v1434_v48 = vld [vmem:[%s2457_s5] ss:$0 sm:$0xff]  ;;  %s1575_s5 = smov [#allocation2]  }
 0x219   :  { %v1171_v34 = vsel %vm682_vm3, %v1138_v10, 0.0  ;;  %v1161_v42 = vadd.f32 %v1160_v36, %v1159_v31  ;;  %s1350_s12 = sshll.u32 %s1575_s5, 4  ;;  %s1351_s12 = int_to_ptr.vmem [resolvable:$true] %s1350_s12 }
 0x21a   :  { %v1172_v23 = vadd.f32 %v1171_v34, %v1170_v18  ;;  %s1540_s13 = scalar_lea.vmem %s1351_s12, 2048  ;;  %p1545_p1 = scmp.lt.s32.totalorder %s1351_s12, %s1351_s12 }
 0x21b   :  { %v1183_v51 = vmul.f32 0.015625, %v1161_v42  ;;  %p1541_p0 = scmp.ne.s32.totalorder %s1351_s12, %s1540_s13  ;;  %p1546_p2 = scmp.lt.s32.totalorder %s1540_s13, %s1540_s13 }
 0x21d   :  { %v1185_v57 = vpack.c.bf16 %v1183_v51, %v1183_v51  ;;  %p1547_p3 = por %p1546_p2, %p1545_p1 }
 0x21f   :  { %v1204_v59 = vunpack.c.l.b16 %v1185_v57  ;;  %p1548_p4 = pnand %p1547_p3, %p1541_p0 }
 0x22c   :  { %v1072_v12 = vpop.f32.mrb[8].mxu1 }
 0x22d   :  { %v1100_v50 = vmul.f32 %v2253_v54, %v1072_v12  ;;  %v1074_v40 = vpop.f32.mrb[9].mxu1  ;;  %v1574_v12 = vmov 1966171168  }
 0x22e   :  { %v1075_v19 = vpop.f32.mrb[10].mxu1  ;;  %v1284_v40 = vlaneseq }
 0x22f   :  { %v2374_v24 = vadd.f32 %v2261_v16, %v1100_v50  ;;  %v1101_v14 = vmul.f32 %v2253_v54, %v1075_v19  ;;  %v1077_v49 = vpop.f32.mrb[11].mxu1  ;;  %v1282_v50 = vunpack.c.l.s4 %v1574_v12 }
 0x231   :  { %v1139_v22 = vmax.f32 %v2374_v24, 0.0  ;;  %v2379_v2 = vadd.f32 %v2261_v16, %v1101_v14  ;;  %v1283_v9 = vunpack.c.0.s8 %v1282_v50 }
 0x233   :  { %v1173_v25 = vsel %vm682_vm3, %v1139_v22, 0.0  ;;  %v1140_v28 = vmax.f32 %v2379_v2, 0.0 }
 0x234   :  { %v1174_v43 = vadd.f32 %v1173_v25, %v1172_v23  ;;  %v1285_v23 = vshrl.u32 %v1284_v40, 7 }
 0x235   :  { %v1175_v54 = vsel %vm682_vm3, %v1140_v28, 0.0 }
 0x236   :  { %v1176_v26 = vadd.f32 %v1175_v54, %v1174_v43  ;;  %v1286_v54 = vsub.s32 %v1283_v9, %v1285_v23 }
 0x238   :  { %v1177_v38 = vrot.slane %v1176_v26, 4 }
 0x23a   :  { %v1178_v39 = vadd.f32 %v1177_v38, %v1176_v26  ;;  %v1305_v38 = vsub.s32 0, %v1285_v23 }
 0x23c   :  { %v1179_v16 = vrot.slane %v1178_v39, 2 }
 0x23e   :  { %v1180_v15 = vadd.f32 %v1179_v16, %v1178_v39 }
 0x240   :  { %v1181_v7 = vrot.slane %v1180_v15, 1 }
 0x242   :  { %v1182_v0 = vadd.f32 %v1181_v7, %v1180_v15 }
 0x244   :  { %v1184_v45 = vmul.f32 0.015625, %v1182_v0 }
 0x246   :  { %v1186_v27 = vpack.c.bf16 %v1184_v45, %v1184_v45 }
 0x248   :  { %v1205_v37 = vunpack.c.l.b16 %v1186_v27 }
 0x24a   :  { %v1207_v30 = vsel %vm1206_vm8, %v1205_v37, %v1204_v59 }
 0x24b   :  { %v1208_v20 = vpack.c.b16 %v1207_v30, %v1207_v30 }
 0x24d   :  { %1454 = vmatmul.mubr.msk.bf16.vlgmr.msra.gmra.mrb[12].mxu1 %vm682_vm3, %v1208_v20 }
 0x320   :  { %v1270_v18 = vpop.f32.mrb[12].mxu1 }
 0x321   :  { %v1271_v19 = vadd.f32 %v1434_v48, %v1270_v18  ;;  %v1455_v34 = vpop.f32.mrb[13].mxu1 }
 0x322   :  { %v1273_v14 = vpop.f32.mrb[14].mxu1 }
 0x323   :  { %v1276_v49 = vadd.f32 3.0, %v1271_v19  ;;  %v1456_v25 = vpop.f32.mrb[15].mxu1 }
 0x325   :  { %v1277_v31 = vmax.f32 %v1276_v49, 0.0 }
 0x327   :  { %v1278_v43 = vmin.f32 %v1277_v31, 6.0 }
 0x329   :  { %v1279_v26 = vmul.f32 0.16666667, %v1278_v43 }
 0x32b   :  { %v1287_v36 = vrot.slane %v1279_v26, %v1286_v54 }
 0x32d   :  { %v1288_v39 = vcombine.high %v1287_v36, %v1287_v36  ;;  %v1295_v42 = vrot.slane %v1287_v36, %v1286_v54 }
 0x32f   :  { %v1302_v16 = vrot.slane %v1288_v39, %v1286_v54  ;;  %v1306_v15 = vrot.slane %v1295_v42, %v1305_v38 }
 0x331   :  { %v1310_v51 = vrot.slane %v1302_v16, %v1305_v38  ;;  %v1313_v7 = vmul.f32 %v1306_v15, %v1125_v61  ;;  %v1314_v0 = vmul.f32 %v1306_v15, %v1126_v44  ;;  %v1315_v57 = vmul.f32 %v1306_v15, %v1127_v8 }
 0x332   :  { %v1316_v45 = vmul.f32 %v1306_v15, %v1128_v4  ;;  %v1317_v27 = vmul.f32 %v1306_v15, %v1129_v13  ;;  %v1318_v59 = vmul.f32 %v1306_v15, %v1130_v11  ;;  %v1319_v58 = vmul.f32 %v1306_v15, %v1131_v62 }
 0x333   :  { %v1320_v29 = vmul.f32 %v1306_v15, %v1132_v33  ;;  %v1321_v60 = vmul.f32 %v1310_v51, %v1133_v6  ;;  %v1322_v44 = vmul.f32 %v1310_v51, %v1134_v35  ;;  %v1323_v61 = vmul.f32 %v1310_v51, %v1135_v17  ;;  %1329 = vst.msk [vmem:[#allocation2] sm:$0xff] %vm682_vm3, %v1313_v7 }
 0x334   :  { %1330 = vst.msk [vmem:[#allocation2 + $0x8] sm:$0xff] %vm682_vm3, %v1314_v0  ;;  %1331 = vst.msk [vmem:[#allocation2 + $0x10] sm:$0xff] %vm682_vm3, %v1315_v57  ;;  %v1324_v8 = vmul.f32 %v1310_v51, %v1136_v55  ;;  %v1325_v63 = vmul.f32 %v1310_v51, %v1137_v46  ;;  %v1326_v3 = vmul.f32 %v1310_v51, %v1138_v10 }
 0x335   :  { %v1327_v4 = vmul.f32 %v1310_v51, %v1139_v22  ;;  %1332 = vst.msk [vmem:[#allocation2 + $0x18] sm:$0xff] %vm682_vm3, %v1316_v45  ;;  %1333 = vst.msk [vmem:[#allocation2 + $0x20] sm:$0xff] %vm682_vm3, %v1317_v27  ;;  %v1328_v13 = vmul.f32 %v1310_v51, %v1140_v28 }
 0x336   :  { %1334 = vst.msk [vmem:[#allocation2 + $0x28] sm:$0xff] %vm682_vm3, %v1318_v59  ;;  %1335 = vst.msk [vmem:[#allocation2 + $0x30] sm:$0xff] %vm682_vm3, %v1319_v58 }
 0x337   :  { %1336 = vst.msk [vmem:[#allocation2 + $0x38] sm:$0xff] %vm682_vm3, %v1320_v29  ;;  %1337 = vst.msk [vmem:[#allocation2 + $0x40] sm:$0xff] %vm682_vm3, %v1321_v60 }
 0x338   :  { %1338 = vst.msk [vmem:[#allocation2 + $0x48] sm:$0xff] %vm682_vm3, %v1322_v44  ;;  %1339 = vst.msk [vmem:[#allocation2 + $0x50] sm:$0xff] %vm682_vm3, %v1323_v61 }
 0x339   :  { %1340 = vst.msk [vmem:[#allocation2 + $0x58] sm:$0xff] %vm682_vm3, %v1324_v8  ;;  %1341 = vst.msk [vmem:[#allocation2 + $0x60] sm:$0xff] %vm682_vm3, %v1325_v63 }
 0x33a   :  { %1342 = vst.msk [vmem:[#allocation2 + $0x68] sm:$0xff] %vm682_vm3, %v1326_v3  ;;  %1343 = vst.msk [vmem:[#allocation2 + $0x70] sm:$0xff] %vm682_vm3, %v1327_v4 }
 0x33b   :  { %1344 = vst.msk [vmem:[#allocation2 + $0x78] sm:$0xff] %vm682_vm3, %v1328_v13 }
 0x33c   :  { %1551 = shalt.err (!%p1548_p4)
}
 0x33d   :  { %s1552_s16 = scalar_lea.hbm %s2458_s6, 2048 }
 0x33e   :  { %p1553_p5 = scmp.ne.s32.totalorder %s2458_s6, %s1552_s16  ;;  %p1556_p6 = scmp.lt.u32.totalorder %s1552_s16, %s2458_s6 }
 0x340   :  { %p1558_p7 = pnand %p1556_p6, %p1553_p5 }
 0x342   :  { %1561 = shalt.err (!%p1558_p7)
}
 0x343   :  { %s1576_s23 = smov 128   ;;  %s1577_s25 = smov 8  }
 0x344   :  { %1356 = dma.vmem_to_hbm [thread:$0]  %s1351_s12, 2048, %s2458_s6, [#allocation3], %s1576_s23, %s1576_s23, %s1577_s25  }
 0x345   :  { %1562 = dma.done.wait [#allocation3], 2048  }
 0x346   :  { %1563 = vsyncadd [#allocation3], 4294965248 }
 0x347   :  { %1360 = vsyncpa [#allocation3], 1 }

// kernel: skip_module_apply.8
= control target key start
LH: loop header
LB: loop body
LE: loop exit
PB: predicated region body
PF: predicated region fallthrough
CT: control target
= control target key end

     0   :  { %v39_v0 = vlaneseq  ;;  %v1071_v1 = vmov 1983009808   ;;  %s1072_s29 = smov 32   ;;  %s1073_s30 = smov 16   ;;  %vm216_vm0 = vcmask 130048   ;;  %vm229_vm1 = vcmask 261120   ;;  %s1448_s0 = inlined_call_operand.vmem [shape: bf16[2,4,4,16], index: 0, kind: input, shape index: {}]   ;;  %s1449_s1 = inlined_call_operand.vmem [shape: bf16[144,256], index: 1, kind: input, shape index: {}]   ;;  %s1450_s4 = inlined_call_operand.vmem [shape: bf16[256,256], index: 4, kind: input, shape index: {}]   ;;  %s1451_s2 = inlined_call_operand.vmem [shape: f32[1,256], index: 2, kind: input, shape index: {}]   ;;  %s1452_s3 = inlined_call_operand.vmem [shape: f32[1,256], index: 3, kind: input, shape index: {}]   ;;  %s1453_s5 = inlined_call_operand.vmem [shape: f32[1,256], index: 5, kind: input, shape index: {}]   ;;  %s1454_s6 = inlined_call_operand.vmem [shape: f32[2,4,256], index: 6, kind: output, shape index: {}]  }
   0x1   :  { %v37_v2 = vunpack.c.l.s4 %v1071_v1  ;;  %v1120_v4 = vld [vmem:[%s1448_s0 + $0x2] sm:$0x3]  ;;  %v1125_v6 = vld [vmem:[%s1448_s0] sm:$0x3]  ;;  %v1130_v7 = vld [vmem:[%s1448_s0 + $0xa] sm:$0x3] }
   0x2   :  { %v1115_v3 = vshrl.u32 %v39_v0, 7  ;;  %v1135_v8 = vld [vmem:[%s1448_s0 + $0x8] sm:$0x3]  ;;  %s1074_s11 = smov 48   ;;  %v996_v40 = vld [vmem:[%s1449_s1 + $0x4] ss:$8 sps:$4 sm:$0xff]  }
   0x3   :  { %v38_v5 = vunpack.c.0.s8 %v37_v2  ;;  %v1159_v34 = vld.sshfl [vmem:[%s1448_s0 + $0x4] sm:$0x3 pattern:$0x76325410]  ;;  %v998_v41 = vld [vmem:[%s1449_s1] ss:$8 sps:$4 sm:$0xff]   ;;  %491 = vmatprep.subr.bf16.mxu0 %v996_v40 }
   0x4   :  { %v139_v35 = vshll.u32 %v1159_v34, 16  ;;  %v1165_v36 = vld.sshfl [vmem:[%s1448_s0 + $0xc] sm:$0x3 pattern:$0x76325410]  ;;  %v137_v37 = vshrl.u32 %v1159_v34, 16  ;;  %492 = vmatpush1.bf16.msra.mxu0 %v998_v41 }
   0x5   :  { %v41_v9 = vsub.s32 %v38_v5, %v1115_v3  ;;  %v146_v39 = vshll.u32 %v1165_v36, 16  ;;  %v144_v43 = vshrl.u32 %v1165_v36, 16  ;;  %v999_v45 = vld [vmem:[%s1449_s1 + $0x14] ss:$8 sps:$4 sm:$0xff]   ;;  %v1001_v46 = vld [vmem:[%s1449_s1 + $0x10] ss:$8 sps:$4 sm:$0xff]  }
   0x6   :  { %v141_v38 = vrot.slane %v139_v35, 1  ;;  %493 = vmatprep.subr.bf16.mxu0 %v999_v45  ;;  %s1075_s20 = smov 64   ;;  %v1002_v48 = vld [vmem:[%s1449_s1 + $0x24] ss:$8 sps:$4 sm:$0xff]   ;;  %v1004_v49 = vld [vmem:[%s1449_s1 + $0x20] ss:$8 sps:$4 sm:$0xff]  }
   0x7   :  { %v1139_v10 = vrot.slane %v1120_v4, %v41_v9  ;;  %v42_v11 = vrot.slane %v1125_v6, %v41_v9  ;;  %v1143_v12 = vrot.slane %v1130_v7, %v41_v9  ;;  %v56_v13 = vrot.slane %v1135_v8, %v41_v9  ;;  %v1005_v51 = vld [vmem:[%s1449_s1 + $0x34] ss:$8 sps:$4 sm:$0xff]   ;;  %v1007_v52 = vld [vmem:[%s1449_s1 + $0x30] ss:$8 sps:$4 sm:$0xff]   ;;  %v1008_v54 = vld [vmem:[%s1449_s1 + $0x44] ss:$8 sps:$4 sm:$0xff]  }
   0x8   :  { %v142_v42 = vor.u32 %v141_v38, %v137_v37  ;;  %v148_v44 = vrot.slane %v146_v39, 1  ;;  %494 = vmatpush1.bf16.msra.mxu0 %v1001_v46  ;;  %v158_v50 = vrot.slane %v1159_v34, 1  ;;  %v159_v53 = vrot.slane %v1165_v36, 1  ;;  %v1010_v55 = vld [vmem:[%s1449_s1 + $0x40] ss:$8 sps:$4 sm:$0xff]   ;;  %s1077_s18 = smov 96  }
   0x9   :  { %v101_v14 = vrot.slane %v1139_v10, 1  ;;  %v100_v15 = vrot.slane %v42_v11, 1  ;;  %v103_v16 = vrot.slane %v1143_v12, 1  ;;  %v102_v17 = vrot.slane %v56_v13, 1  ;;  %495 = vmatprep.subr.bf16.mxu0 %v1002_v48  ;;  %v1011_v58 = vld [vmem:[%s1449_s1 + $0x54] ss:$8 sps:$4 sm:$0xff]  }
   0xa   :  { %v81_v18 = vshll.u32 %v56_v13, 16  ;;  %v67_v19 = vshll.u32 %v42_v11, 16  ;;  %v79_v20 = vshrl.u32 %v56_v13, 16  ;;  %v65_v21 = vshrl.u32 %v42_v11, 16  ;;  %v1013_v59 = vld [vmem:[%s1449_s1 + $0x50] ss:$8 sps:$4 sm:$0xff]  }
   0xb   :  { %106 = vrot.lane.b32.xlu1 %v101_v14, %s1072_s29  ;;  %104 = vrot.lane.b32.xlu0 %v100_v15, %s1072_s29  ;;  %v88_v22 = vshll.u32 %v1143_v12, 16  ;;  %v74_v23 = vshll.u32 %v1139_v10, 16  ;;  %v86_v26 = vshrl.u32 %v1143_v12, 16  ;;  %v72_v27 = vshrl.u32 %v1139_v10, 16  ;;  %v1014_v0 = vld [vmem:[%s1449_s1 + $0x64] ss:$8 sps:$4 sm:$0xff]  }
   0xc   :  { %v83_v24 = vrot.slane %v81_v18, 1  ;;  %v69_v25 = vrot.slane %v67_v19, 1  ;;  %v149_v47 = vor.u32 %v148_v44, %v144_v43  ;;  %496 = vmatpush1.bf16.msra.mxu0 %v1004_v49  ;;  %v1213_v56 = vld.sshfl [vmem:[%s1448_s0 + $0x6] sm:$0x3 pattern:$0x76325410] }
   0xd   :  { %v90_v30 = vrot.slane %v88_v22, 1  ;;  %v76_v31 = vrot.slane %v74_v23, 1  ;;  %497 = vmatprep.subr.bf16.mxu0 %v1005_v51  ;;  %v195_v57 = vshll.u32 %v1213_v56, 16  ;;  %v193_v61 = vshrl.u32 %v1213_v56, 16  ;;  %v1016_v1 = vld [vmem:[%s1449_s1 + $0x60] ss:$8 sps:$4 sm:$0xff]  }
   0xe   :  { %v84_v28 = vor.u32 %v83_v24, %v79_v20  ;;  %v70_v29 = vor.u32 %v69_v25, %v65_v21  ;;  %v1229_v60 = vld.sshfl [vmem:[%s1448_s0 + $0xe] sm:$0x3 pattern:$0x76325410]  ;;  %v1019_v11 = vld [vmem:[%s1449_s1 + $0x70] ss:$8 sps:$4 sm:$0xff]  }
   0xf   :  { %110 = vrot.lane.b32.xlu1 %v103_v16, %s1072_s29  ;;  %108 = vrot.lane.b32.xlu0 %v102_v17, %s1072_s29  ;;  %v91_v32 = vor.u32 %v90_v30, %v86_v26  ;;  %v77_v33 = vor.u32 %v76_v31, %v72_v27  ;;  %s1076_s29 = smov 80   ;;  %v197_v62 = vrot.slane %v195_v57, 1  ;;  %v202_v63 = vshll.u32 %v1229_v60, 16  ;;  %s1078_s28 = smov 112   ;;  %v1023_v15 = vld [vmem:[%s1450_s4 + $0x4] ss:$8 sps:$4 sm:$0xff]  }
  0x10   :  { %498 = vmatpush1.bf16.msra.mxu0 %v1007_v52  ;;  %v200_v5 = vshrl.u32 %v1229_v60, 16  ;;  %828 = vmatprep.subr.bf16.mxu1 %v1023_v15  ;;  %v1026_v17 = vld [vmem:[%s1450_s4 + $0x14] ss:$8 sps:$4 sm:$0xff]   ;;  %v1028_v18 = vld [vmem:[%s1450_s4 + $0x10] ss:$8 sps:$4 sm:$0xff]   ;;  %vm238_vm2 = vcmask 392192  }
  0x11   :  { %499 = vmatprep.subr.bf16.mxu0 %v1008_v54  ;;  %v198_v2 = vor.u32 %v197_v62, %v193_v61  ;;  %v204_v9 = vrot.slane %v202_v63, 1  ;;  %v1029_v19 = vld [vmem:[%s1450_s4 + $0x24] ss:$8 sps:$4 sm:$0xff]   ;;  %v1031_v20 = vld [vmem:[%s1450_s4 + $0x20] ss:$8 sps:$4 sm:$0xff]   ;;  %vm247_vm3 = vcmask 523264  }
  0x12   :  { %v1032_v21 = vld [vmem:[%s1450_s4 + $0x34] ss:$8 sps:$4 sm:$0xff]   ;;  %v1034_v22 = vld [vmem:[%s1450_s4 + $0x30] ss:$8 sps:$4 sm:$0xff]   ;;  %v1035_v23 = vld [vmem:[%s1450_s4 + $0x44] ss:$8 sps:$4 sm:$0xff]  }
  0x13   :  { %96 = vrot.lane.b32.xlu1 %v84_v28, %s1073_s30  ;;  %92 = vrot.lane.b32.xlu0 %v70_v29, %s1073_s30  ;;  %v205_v13 = vor.u32 %v204_v9, %v200_v5  ;;  %v1037_v24 = vld [vmem:[%s1450_s4 + $0x40] ss:$8 sps:$4 sm:$0xff]   ;;  %v1038_v25 = vld [vmem:[%s1450_s4 + $0x54] ss:$8 sps:$4 sm:$0xff]   ;;  %vm256_vm4 = vcmask 654336   ;;  %vm265_vm5 = vcmask 785408  }
  0x14   :  { %500 = vmatpush1.bf16.msra.mxu0 %v1010_v55  ;;  %v1040_v26 = vld [vmem:[%s1450_s4 + $0x50] ss:$8 sps:$4 sm:$0xff]   ;;  %v1041_v27 = vld [vmem:[%s1450_s4 + $0x64] ss:$8 sps:$4 sm:$0xff]   ;;  %v1043_v28 = vld [vmem:[%s1450_s4 + $0x60] ss:$8 sps:$4 sm:$0xff]  }
  0x15   :  { %501 = vmatprep.subr.bf16.mxu0 %v1011_v58  ;;  %v1044_v29 = vld [vmem:[%s1450_s4 + $0x74] ss:$8 sps:$4 sm:$0xff]   ;;  %v1046_v30 = vld [vmem:[%s1450_s4 + $0x70] ss:$8 sps:$4 sm:$0xff]   ;;  %v1079_v55 = vmov 1966171168  }
  0x16   :  { %v289_v57 = vunpack.c.l.s4 %v1079_v55  ;;  %vm274_vm6 = vcmask 916480   ;;  %v1049_v55 = vld [vmem:[%s1450_s4 + $0x80] ss:$8 sps:$4 sm:$0xff]   ;;  %vm572_vm7 = vcmask 1043456   ;;  %vm661_vm8 = vcmask 1041409  }
  0x17   :  { %98 = vrot.lane.b32.xlu1 %v91_v32, %s1073_s30  ;;  %94 = vrot.lane.b32.xlu0 %v77_v33, %s1073_s30 }
  0x18   :  { %502 = vmatpush1.bf16.msra.mxu0 %v1013_v59  ;;  %v290_v63 = vunpack.c.0.s8 %v289_v57  ;;  %v1050_v57 = vld [vmem:[%s1450_s4 + $0x94] ss:$8 sps:$4 sm:$0xff]  }
  0x19   :  { %503 = vmatprep.subr.bf16.mxu0 %v1014_v0 }
  0x1b   :  { %130 = vrot.lane.b32.xlu1 %v1159_v34, %s1074_s11  ;;  %128 = vrot.lane.b32.xlu0 %v1139_v10, %s1074_s11  ;;  %v1017_v10 = vld [vmem:[%s1449_s1 + $0x74] ss:$8 sps:$4 sm:$0xff]  }
  0x1c   :  { %504 = vmatpush1.bf16.msra.mxu0 %v1016_v1 }
  0x1d   :  { %505 = vmatprep.subr.bf16.mxu0 %v1017_v10 }
  0x1f   :  { %134 = vrot.lane.b32.xlu1 %v1165_v36, %s1074_s11  ;;  %132 = vrot.lane.b32.xlu0 %v1143_v12, %s1074_s11  ;;  %v1020_v12 = vld [vmem:[%s1449_s1 + $0x84] ss:$8 sps:$4 sm:$0xff]  }
  0x20   :  { %506 = vmatpush1.bf16.msra.mxu0 %v1019_v11 }
  0x21   :  { %507 = vmatprep.subr.bf16.mxu0 %v1020_v12 }
  0x23   :  { %152 = vrot.lane.b32.xlu1 %v142_v42, %s1075_s20  ;;  %150 = vrot.lane.b32.xlu0 %v77_v33, %s1075_s20 }
  0x27   :  { %156 = vrot.lane.b32.xlu1 %v149_v47, %s1075_s20  ;;  %154 = vrot.lane.b32.xlu0 %v91_v32, %s1075_s20 }
  0x2b   :  { %162 = vrot.lane.b32.xlu1 %v158_v50, %s1076_s29  ;;  %160 = vrot.lane.b32.xlu0 %v101_v14, %s1076_s29  ;;  %v1022_v14 = vld [vmem:[%s1449_s1 + $0x80] ss:$8 sps:$4 sm:$0xff]  }
  0x2c   :  { %508 = vmatpush1.bf16.msra.mxu0 %v1022_v14  ;;  %v1320_v14 = vsub.s32 %v290_v63, %v1115_v3  ;;  %v1058_v63 = vld [vmem:[%s1450_s4 + $0xb0] ss:$8 sps:$4 sm:$0xff]  }
  0x2f   :  { %166 = vrot.lane.b32.xlu1 %v159_v53, %s1076_s29  ;;  %164 = vrot.lane.b32.xlu0 %v103_v16, %s1076_s29  ;;  %v1025_v16 = vld [vmem:[%s1450_s4] ss:$8 sps:$4 sm:$0xff]  }
  0x30   :  { %829 = vmatpush1.bf16.msra.mxu1 %v1025_v16 }
  0x31   :  { %830 = vmatprep.subr.bf16.mxu1 %v1026_v17 }
  0x33   :  { %186 = vrot.lane.b32.xlu1 %v1213_v56, %s1077_s18  ;;  %184 = vrot.lane.b32.xlu0 %v1159_v34, %s1077_s18 }
  0x34   :  { %831 = vmatpush1.bf16.msra.mxu1 %v1028_v18 }
  0x35   :  { %832 = vmatprep.subr.bf16.mxu1 %v1029_v19 }
  0x37   :  { %190 = vrot.lane.b32.xlu1 %v1229_v60, %s1077_s18  ;;  %188 = vrot.lane.b32.xlu0 %v1165_v36, %s1077_s18 }
  0x38   :  { %833 = vmatpush1.bf16.msra.mxu1 %v1031_v20 }
  0x39   :  { %834 = vmatprep.subr.bf16.mxu1 %v1032_v21 }
  0x3b   :  { %208 = vrot.lane.b32.xlu1 %v198_v2, %s1078_s28  ;;  %206 = vrot.lane.b32.xlu0 %v142_v42, %s1078_s28 }
  0x3c   :  { %835 = vmatpush1.bf16.msra.mxu1 %v1034_v22 }
  0x3d   :  { %836 = vmatprep.subr.bf16.mxu1 %v1035_v23 }
  0x3f   :  { %212 = vrot.lane.b32.xlu1 %v205_v13, %s1078_s28  ;;  %210 = vrot.lane.b32.xlu0 %v149_v47, %s1078_s28  ;;  %v214_v13 = vrot.slane %v1213_v56, 1 }
  0x40   :  { %837 = vmatpush1.bf16.msra.mxu1 %v1037_v24 }
  0x41   :  { %838 = vmatprep.subr.bf16.mxu1 %v1038_v25 }
  0x44   :  { %839 = vmatpush1.bf16.msra.mxu1 %v1040_v26 }
  0x45   :  { %840 = vmatprep.subr.bf16.mxu1 %v1041_v27 }
  0x48   :  { %841 = vmatpush1.bf16.msra.mxu1 %v1043_v28 }
  0x49   :  { %842 = vmatprep.subr.bf16.mxu1 %v1044_v29 }
  0x4c   :  { %843 = vmatpush1.bf16.msra.mxu1 %v1046_v30 }
  0x7d   :  { %v107_v31 = vpop.permute.xlu1 %106  ;;  %v105_v32 = vpop.permute.xlu0 %104 }
  0x81   :  { %v111_v33 = vpop.permute.xlu1 %110  ;;  %v109_v35 = vpop.permute.xlu0 %108 }
  0x85   :  { %v97_v37 = vpop.permute.xlu1 %96  ;;  %v93_v38 = vpop.permute.xlu0 %92 }
  0x86   :  { %v219_v61 = vsel %vm216_vm0, %v1125_v6, %v93_v38  ;;  %v225_v9 = vsel %vm216_vm0, %v1135_v8, %v97_v37 }
  0x87   :  { %v231_v1 = vsel %vm229_vm1, %v219_v61, %v105_v32  ;;  %v235_v17 = vsel %vm229_vm1, %v225_v9, %v109_v35  ;;  %v1055_v61 = vld [vmem:[%s1450_s4 + $0xa0] ss:$8 sps:$4 sm:$0xff]   ;;  %v1065_v9 = vld [vmem:[%s1450_s4 + $0xe4] ss:$8 sps:$4 sm:$0xff]  }
  0x89   :  { %v99_v39 = vpop.permute.xlu1 %98  ;;  %v95_v40 = vpop.permute.xlu0 %94 }
  0x8a   :  { %v222_v62 = vsel %vm216_vm0, %v1120_v4, %v95_v40  ;;  %v228_v6 = vsel %vm216_vm0, %v1130_v7, %v99_v39  ;;  %v215_v7 = vrot.slane %v1229_v60, 1 }
  0x8b   :  { %v233_v0 = vsel %vm229_vm1, %v222_v62, %v107_v31  ;;  %v237_v16 = vsel %vm229_vm1, %v228_v6, %v111_v33  ;;  %v1056_v62 = vld [vmem:[%s1450_s4 + $0xb4] ss:$8 sps:$4 sm:$0xff]   ;;  %v1067_v6 = vld [vmem:[%s1450_s4 + $0xe0] ss:$8 sps:$4 sm:$0xff]  }
  0x8d   :  { %v131_v41 = vpop.permute.xlu1 %130  ;;  %v129_v42 = vpop.permute.xlu0 %128 }
  0x8e   :  { %v242_v4 = vsel %vm238_vm2, %v233_v0, %v131_v41  ;;  %v240_v10 = vsel %vm238_vm2, %v231_v1, %v129_v42  ;;  %v1059_v0 = vld [vmem:[%s1450_s4 + $0xc4] ss:$8 sps:$4 sm:$0xff]   ;;  %v1061_v1 = vld [vmem:[%s1450_s4 + $0xc0] ss:$8 sps:$4 sm:$0xff]  }
  0x91   :  { %v135_v43 = vpop.permute.xlu1 %134  ;;  %v133_v44 = vpop.permute.xlu0 %132 }
  0x92   :  { %v246_v21 = vsel %vm238_vm2, %v237_v16, %v135_v43  ;;  %v244_v22 = vsel %vm238_vm2, %v235_v17, %v133_v44 }
  0x95   :  { %v153_v45 = vpop.permute.xlu1 %152  ;;  %v151_v46 = vpop.permute.xlu0 %150 }
  0x96   :  { %v251_v11 = vsel %vm247_vm3, %v242_v4, %v153_v45  ;;  %v249_v12 = vsel %vm247_vm3, %v240_v10, %v151_v46  ;;  %v1068_v4 = vld [vmem:[%s1450_s4 + $0xf4] ss:$8 sps:$4 sm:$0xff]   ;;  %v1070_v10 = vld [vmem:[%s1450_s4 + $0xf0] ss:$8 sps:$4 sm:$0xff]  }
  0x99   :  { %v157_v47 = vpop.permute.xlu1 %156  ;;  %v155_v48 = vpop.permute.xlu0 %154 }
  0x9a   :  { %v255_v60 = vsel %vm247_vm3, %v246_v21, %v157_v47  ;;  %v253_v25 = vsel %vm247_vm3, %v244_v22, %v155_v48 }
  0x9d   :  { %v163_v49 = vpop.permute.xlu1 %162  ;;  %v161_v51 = vpop.permute.xlu0 %160 }
  0x9e   :  { %v260_v15 = vsel %vm256_vm4, %v251_v11, %v163_v49  ;;  %v258_v8 = vsel %vm256_vm4, %v249_v12, %v161_v51  ;;  %v1407_v11 = vsub.s32 0, %v1115_v3  ;;  %v532_v12 = vld [vmem:[%s1451_s2] sm:$0x3] }
  0xa1   :  { %v167_v52 = vpop.permute.xlu1 %166  ;;  %v165_v54 = vpop.permute.xlu0 %164 }
  0xa2   :  { %v264_v28 = vsel %vm256_vm4, %v255_v60, %v167_v52  ;;  %v262_v29 = vsel %vm256_vm4, %v253_v25, %v165_v54 }
  0xa5   :  { %v187_v58 = vpop.permute.xlu1 %186  ;;  %v185_v59 = vpop.permute.xlu0 %184 }
  0xa6   :  { %v269_v18 = vsel %vm265_vm5, %v260_v15, %v187_v58  ;;  %v267_v19 = vsel %vm265_vm5, %v258_v8, %v185_v59  ;;  %v1052_v58 = vld [vmem:[%s1450_s4 + $0x90] ss:$8 sps:$4 sm:$0xff]   ;;  %v1053_v59 = vld [vmem:[%s1450_s4 + $0xa4] ss:$8 sps:$4 sm:$0xff]   ;;  %v546_v15 = vld [vmem:[%s1452_s3] sm:$0x3]  ;;  %v537_v8 = vrot.slane %v532_v12, %v1407_v11 }
  0xa7   :  { %v551_v16 = vrot.slane %v546_v15, %v1407_v11 }
  0xa9   :  { %v191_v2 = vpop.permute.xlu1 %190  ;;  %v189_v5 = vpop.permute.xlu0 %188 }
  0xaa   :  { %v273_v30 = vsel %vm265_vm5, %v264_v28, %v191_v2  ;;  %v271_v31 = vsel %vm265_vm5, %v262_v29, %v189_v5  ;;  %v1062_v2 = vld [vmem:[%s1450_s4 + $0xd4] ss:$8 sps:$4 sm:$0xff]   ;;  %v1064_v5 = vld [vmem:[%s1450_s4 + $0xd0] ss:$8 sps:$4 sm:$0xff]  }
  0xad   :  { %v209_v20 = vpop.permute.xlu1 %208  ;;  %v207_v56 = vpop.permute.xlu0 %206 }
  0xae   :  { %v278_v23 = vsel %vm274_vm6, %v269_v18, %v209_v20  ;;  %v276_v24 = vsel %vm274_vm6, %v267_v19, %v207_v56 }
  0xaf   :  { %v302_v26 = vcombine.low %v278_v23, %v214_v13  ;;  %v287_v27 = vcombine.low %v276_v24, %v158_v50  ;;  %v1413_v13 = vsub.s32 1, %v1115_v3 }
  0xb1   :  { %v309_v32 = vrot.slane %v302_v26, %v1320_v14  ;;  %v294_v33 = vrot.slane %v287_v27, %v1320_v14  ;;  %v213_v35 = vpop.permute.xlu1 %212  ;;  %v211_v37 = vpop.permute.xlu0 %210  ;;  %v555_v18 = vrot.slane %v546_v15, %v1413_v13 }
  0xb2   :  { %v282_v38 = vsel %vm274_vm6, %v273_v30, %v213_v35  ;;  %v280_v39 = vsel %vm274_vm6, %v271_v31, %v211_v37 }
  0xb3   :  { %v316_v34 = vrot.slane %v309_v32, %v1320_v14  ;;  %v301_v50 = vrot.slane %v294_v33, %v1320_v14  ;;  %v332_v40 = vcombine.low %v282_v38, %v215_v7  ;;  %v317_v41 = vcombine.low %v280_v39, %v159_v53  ;;  %v1047_v53 = vld [vmem:[%s1450_s4 + $0x84] ss:$8 sps:$4 sm:$0xff]  }
  0xb4   :  { %844 = vmatprep.subr.bf16.mxu1 %v1047_v53  ;;  %v541_v7 = vrot.slane %v532_v12, %v1413_v13 }
  0xb5   :  { %v339_v42 = vrot.slane %v332_v40, %v1320_v14  ;;  %v324_v43 = vrot.slane %v317_v41, %v1320_v14  ;;  %v365_v46 = vcombine.low %v301_v50, %v316_v34  ;;  %845 = vmatpush1.bf16.msra.mxu1 %v1049_v55 }
  0xb6   :  { %846 = vmatprep.subr.bf16.mxu1 %v1050_v57 }
  0xb7   :  { %v346_v44 = vrot.slane %v339_v42, %v1320_v14  ;;  %v331_v45 = vrot.slane %v324_v43, %v1320_v14  ;;  %v373_v48 = vrot.slane %v365_v46, %v1320_v14 }
  0xb9   :  { %v366_v47 = vcombine.low %v331_v45, %v346_v44  ;;  %847 = vmatpush1.bf16.msra.mxu1 %v1052_v58 }
  0xba   :  { %848 = vmatprep.subr.bf16.mxu1 %v1053_v59 }
  0xbb   :  { %v380_v49 = vrot.slane %v366_v47, %v1320_v14 }
  0xbd   :  { %v382_v51 = vcombine.high %v373_v48, %v380_v49  ;;  %v381_v52 = vcombine.low %v373_v48, %v380_v49  ;;  %849 = vmatpush1.bf16.msra.mxu1 %v1055_v61 }
  0xbe   :  { %850 = vmatprep.subr.bf16.mxu1 %v1056_v62 }
  0xbf   :  { %v396_v54 = vrot.slane %v382_v51, %v1320_v14  ;;  %v389_v36 = vrot.slane %v381_v52, %v1320_v14 }
  0xc1   :  { %952 = vmatprep.mubr.msk.bf16.mxu0 %vm216_vm0, %v396_v54  ;;  %851 = vmatpush1.bf16.msra.mxu1 %v1058_v63 }
  0xc2   :  { %524 = vmatmul.mubr.bf16.vlgmr.msra.gmra.mrb[0].mxu0 %v389_v36  ;;  %852 = vmatprep.subr.bf16.mxu1 %v1059_v0 }
  0xc5   :  { %853 = vmatpush1.bf16.msra.mxu1 %v1061_v1 }
  0xc6   :  { %854 = vmatprep.subr.bf16.mxu1 %v1062_v2 }
  0xc9   :  { %855 = vmatpush1.bf16.msra.mxu1 %v1064_v5 }
  0xca   :  { %856 = vmatprep.subr.bf16.mxu1 %v1065_v9 }
  0xcd   :  { %857 = vmatpush1.bf16.msra.mxu1 %v1067_v6 }
  0xce   :  { %858 = vmatprep.subr.bf16.mxu1 %v1068_v4 }
  0xd1   :  { %859 = vmatpush1.bf16.msra.mxu1 %v1070_v10 }
 0x195   :  { %v525_v17 = vpop.f32.mrb[0].mxu0 }
 0x196   :  { %v544_v19 = vmul.f32 %v537_v8, %v525_v17  ;;  %v527_v20 = vpop.f32.mrb[1].mxu0 }
 0x197   :  { %v545_v56 = vmul.f32 %v541_v7, %v527_v20  ;;  %v529_v21 = vpop.f32.mrb[2].mxu0  ;;  %v641_v7 = vld [vmem:[%s1453_s5] sm:$0x3] }
 0x198   :  { %v558_v22 = vadd.f32 %v551_v16, %v544_v19  ;;  %v530_v3 = vpop.f32.mrb[3].mxu0  ;;  %v646_v16 = vrot.slane %v641_v7, %v1407_v11  ;;  %v650_v17 = vrot.slane %v641_v7, %v1413_v13 }
 0x199   :  { %v559_v23 = vadd.f32 %v555_v18, %v545_v56 }
 0x19a   :  { %v560_v24 = vmax.f32 %v558_v22, 0.0 }
 0x19b   :  { %v561_v60 = vmax.f32 %v559_v23, 0.0 }
 0x19d   :  { %v1422_v25 = vcombine.low %v560_v24, %v561_v60  ;;  %v1424_v26 = vcombine.high %v560_v24, %v561_v60  ;;  %v953_v27 = vcombine.low %v561_v60, %v561_v60  ;;  %v954_v28 = vcombine.high %v561_v60, %v561_v60 }
 0x19f   :  { %v573_v29 = vsel %vm572_vm7, %v1422_v25, 0.0  ;;  %v587_v30 = vsel %vm572_vm7, %v1424_v26, 0.0  ;;  %v580_v31 = vsel %vm572_vm7, %v953_v27, 0.0  ;;  %v594_v32 = vsel %vm572_vm7, %v954_v28, 0.0 }
 0x1a0   :  { %v574_v33 = vrot.slane %v573_v29, 4  ;;  %v588_v35 = vrot.slane %v587_v30, 4  ;;  %v581_v37 = vrot.slane %v580_v31, 4  ;;  %v595_v38 = vrot.slane %v594_v32, 4 }
 0x1a2   :  { %v575_v39 = vadd.f32 %v574_v33, %v573_v29  ;;  %v589_v34 = vadd.f32 %v588_v35, %v587_v30  ;;  %v582_v50 = vadd.f32 %v581_v37, %v580_v31  ;;  %v596_v40 = vadd.f32 %v595_v38, %v594_v32 }
 0x1a4   :  { %v583_v41 = vrot.slane %v582_v50, 2  ;;  %v597_v42 = vrot.slane %v596_v40, 2  ;;  %v576_v43 = vrot.slane %v575_v39, 2  ;;  %v590_v44 = vrot.slane %v589_v34, 2 }
 0x1a6   :  { %v584_v45 = vadd.f32 %v583_v41, %v582_v50  ;;  %v598_v46 = vadd.f32 %v597_v42, %v596_v40  ;;  %v577_v47 = vadd.f32 %v576_v43, %v575_v39  ;;  %v591_v48 = vadd.f32 %v590_v44, %v589_v34 }
 0x1a8   :  { %v585_v49 = vrot.slane %v584_v45, 1  ;;  %v599_v51 = vrot.slane %v598_v46, 1  ;;  %v578_v52 = vrot.slane %v577_v47, 1  ;;  %v592_v54 = vrot.slane %v591_v48, 1 }
 0x1aa   :  { %v586_v36 = vadd.f32 %v585_v49, %v584_v45  ;;  %v600_v53 = vadd.f32 %v599_v51, %v598_v46  ;;  %v579_v55 = vadd.f32 %v578_v52, %v577_v47  ;;  %v593_v57 = vadd.f32 %v592_v54, %v591_v48 }
 0x1ac   :  { %v602_v58 = vmul.f32 0.25, %v586_v36  ;;  %v604_v59 = vmul.f32 0.25, %v600_v53  ;;  %v601_v61 = vmul.f32 0.25, %v579_v55  ;;  %v603_v62 = vmul.f32 0.25, %v593_v57 }
 0x1ae   :  { %v606_v63 = vpack.c.bf16 %v602_v58, %v602_v58  ;;  %v608_v0 = vpack.c.bf16 %v604_v59, %v604_v59  ;;  %v605_v1 = vpack.c.bf16 %v601_v61, %v601_v61  ;;  %v607_v2 = vpack.c.bf16 %v603_v62, %v603_v62 }
 0x1b0   :  { %v658_v5 = vunpack.c.l.b16 %v606_v63  ;;  %v660_v9 = vunpack.c.l.b16 %v608_v0  ;;  %v657_v6 = vunpack.c.l.b16 %v605_v1  ;;  %v659_v4 = vunpack.c.l.b16 %v607_v2 }
 0x1b2   :  { %v663_v10 = vsel %vm661_vm8, %v660_v9, %v658_v5  ;;  %v662_v12 = vsel %vm661_vm8, %v659_v4, %v657_v6 }
 0x1b3   :  { %v665_v15 = vpack.c.b16 %v663_v10, %v663_v10  ;;  %v664_v8 = vpack.c.b16 %v662_v12, %v662_v12 }
 0x1b5   :  { %860 = vmatprep.mubr.bf16.mxu1 %v665_v15 }
 0x1b6   :  { %861 = vmatmul.mubr.bf16.vlgmr.msra.gmra.mrb[0].mxu1 %v664_v8 }
 0x289   :  { %v862_v18 = vpop.f32.mrb[0].mxu1 }
 0x28a   :  { %v863_v19 = vadd.f32 %v862_v18, %v646_v16  ;;  %v864_v20 = vpop.f32.mrb[1].mxu1 }
 0x28b   :  { %v865_v56 = vadd.f32 %v864_v20, %v650_v17  ;;  %v866_v21 = vpop.f32.mrb[2].mxu1 }
 0x28c   :  { %v869_v22 = vadd.f32 3.0, %v863_v19  ;;  %v867_v3 = vpop.f32.mrb[3].mxu1 }
 0x28d   :  { %v870_v23 = vadd.f32 3.0, %v865_v56 }
 0x28e   :  { %v871_v24 = vmax.f32 %v869_v22, 0.0 }
 0x28f   :  { %v872_v60 = vmax.f32 %v870_v23, 0.0 }
 0x290   :  { %v873_v27 = vmin.f32 %v871_v24, 6.0 }
 0x291   :  { %v874_v28 = vmin.f32 %v872_v60, 6.0 }
 0x292   :  { %v875_v29 = vmul.f32 0.16666667, %v873_v27 }
 0x293   :  { %v876_v30 = vmul.f32 0.16666667, %v874_v28 }
 0x295   :  { %v879_v31 = vcombine.low %v875_v29, %v876_v30 }
 0x297   :  { %v886_v32 = vrot.slane %v879_v31, %v1320_v14 }
 0x299   :  { %v887_v33 = vcombine.high %v886_v32, %v886_v32  ;;  %v894_v35 = vrot.slane %v886_v32, %v1320_v14 }
 0x29b   :  { %v901_v37 = vrot.slane %v887_v33, %v1320_v14  ;;  %v905_v38 = vrot.slane %v894_v35, %v1407_v11  ;;  %v909_v39 = vrot.slane %v894_v35, %v1413_v13 }
 0x29d   :  { %v913_v34 = vrot.slane %v901_v37, %v1407_v11  ;;  %v917_v50 = vrot.slane %v901_v37, %v1413_v13  ;;  %v918_v40 = vcombine.low %v905_v38, %v909_v39 }
 0x29f   :  { %v919_v41 = vcombine.low %v913_v34, %v917_v50  ;;  %v922_v42 = vmul.f32 %v918_v40, %v1422_v25 }
 0x2a1   :  { %v923_v43 = vmul.f32 %v919_v41, %v1424_v26  ;;  %924 = vst [vmem:[%s1454_s6] sm:$0xff] %v922_v42 }
 0x2a3   :  { %925 = vst [vmem:[%s1454_s6 + $0x8] sm:$0xff] %v923_v43 }

// kernel: skip_module_apply.7
= control target key start
LH: loop header
LB: loop body
LE: loop exit
PB: predicated region body
PF: predicated region fallthrough
CT: control target
= control target key end

     0   :  { %s1000_s29 = smov 32   ;;  %s1001_s30 = smov 16   ;;  %v1003_v32 = vmov 0   ;;  %s1424_s0 = inlined_call_operand.vmem [shape: bf16[2,6,6,16], index: 0, kind: input, shape index: {}]   ;;  %s1425_s1 = inlined_call_operand.vmem [shape: bf16[144,128], index: 1, kind: input, shape index: {}]   ;;  %s1426_s2 = inlined_call_operand.vmem [shape: f32[1,128], index: 2, kind: input, shape index: {}]   ;;  %s1427_s3 = inlined_call_operand.vmem [shape: f32[1,128], index: 3, kind: input, shape index: {}]   ;;  %s1428_s4 = inlined_call_operand.vmem [shape: bf16[128,128], index: 4, kind: input, shape index: {}]   ;;  %s1429_s5 = inlined_call_operand.vmem [shape: f32[1,128], index: 5, kind: input, shape index: {}]   ;;  %s1430_s6 = inlined_call_operand.hbm [shape: f32[2,16,128], index: 6, kind: output, shape index: {}]  }
   0x1   :  { %v1053_v0 = vld [vmem:[%s1424_s0 + $0x4] sm:$0x7]  ;;  %v1058_v1 = vld [vmem:[%s1424_s0] sm:$0x7]  ;;  %v1069_v4 = vld [vmem:[%s1424_s0 + $0x8] sm:$0x7]  ;;  %596 = vmatprep.subr.bf16.mxu0 %v1003_v32 }
   0x2   :  { %v1062_v2 = vcombine.low %v1053_v0, %v1053_v0  ;;  %v869_v3 = vcombine.low %v1058_v1, %v1058_v1  ;;  %v1074_v5 = vld [vmem:[%s1424_s0 + $0xc] sm:$0x7]  ;;  %v1078_v6 = vcombine.low %v1069_v4, %v1069_v4  ;;  %v1112_v28 = vld [vmem:[%s1424_s0 + $0x10] ss:$0 sps:$4 sm:$0x77]   ;;  %v959_v30 = vld [vmem:[%s1425_s1] sm:$0xff]  }
   0x3   :  { %v1082_v7 = vcombine.low %v1074_v5, %v1074_v5  ;;  %v182_v29 = vshll.u32 %v1112_v28, 16  ;;  %s1002_s11 = smov 48   ;;  %v180_v31 = vshrl.u32 %v1112_v28, 16  ;;  %597 = vmatpush1.bf16.msra.mxu0 %v959_v30  ;;  %v960_v34 = vld [vmem:[%s1425_s1 + $0x8] sm:$0xff]   ;;  %v961_v35 = vld [vmem:[%s1425_s1 + $0x10] sm:$0xff]  }
   0x4   :  { %v134_v8 = vrot.slane %v1062_v2, 1  ;;  %v133_v9 = vrot.slane %v869_v3, 1  ;;  %v62_v10 = vshrl.u32 %v869_v3, 16  ;;  %v64_v11 = vshll.u32 %v869_v3, 16  ;;  %598 = vmatprep.subr.bf16.mxu0 %v1003_v32 }
   0x5   :  { %v76_v12 = vshrl.u32 %v1078_v6, 16  ;;  %v78_v13 = vshll.u32 %v1078_v6, 16  ;;  %v85_v14 = vshll.u32 %v1082_v7, 16  ;;  %v69_v16 = vshrl.u32 %v1062_v2, 16 }
   0x6   :  { %143 = vrot.lane.b32.xlu1 %v134_v8, %s1000_s29  ;;  %141 = vrot.lane.b32.xlu0 %v133_v9, %s1000_s29  ;;  %v66_v15 = vrot.slane %v64_v11, 1  ;;  %v71_v17 = vshll.u32 %v1062_v2, 16  ;;  %v83_v19 = vshrl.u32 %v1082_v7, 16  ;;  %v1102_v26 = vrot.slane %v1078_v6, 1 }
   0x7   :  { %v80_v18 = vrot.slane %v78_v13, 1  ;;  %v87_v20 = vrot.slane %v85_v14, 1  ;;  %v1107_v27 = vrot.slane %v1082_v7, 1  ;;  %v184_v33 = vrot.slane %v182_v29, 1  ;;  %599 = vmatpush1.bf16.msra.mxu0 %v960_v34 }
   0x8   :  { %v67_v21 = vor.u32 %v66_v15, %v62_v10  ;;  %v73_v22 = vrot.slane %v71_v17, 1  ;;  %600 = vmatprep.subr.bf16.mxu0 %v1003_v32 }
   0x9   :  { %v1093_v23 = vor.u32 %v80_v18, %v76_v12  ;;  %v1098_v25 = vor.u32 %v87_v20, %v83_v19 }
   0xa   :  { %117 = vrot.lane.b32.xlu0 %v67_v21, %s1001_s30  ;;  %v74_v24 = vor.u32 %v73_v22, %v69_v16 }
   0xb   :  { %121 = vrot.lane.b32.xlu1 %v1093_v23, %s1001_s30 }
   0xe   :  { %119 = vrot.lane.b32.xlu0 %v74_v24, %s1001_s30 }
   0xf   :  { %123 = vrot.lane.b32.xlu1 %v1098_v25, %s1001_s30 }
  0x12   :  { %145 = vrot.lane.b32.xlu0 %v1102_v26, %s1000_s29 }
  0x13   :  { %147 = vrot.lane.b32.xlu1 %v1107_v27, %s1000_s29 }
  0x16   :  { %163 = vrot.lane.b32.xlu0 %v1062_v2, %s1002_s11 }
  0x17   :  { %165 = vrot.lane.b32.xlu1 %v1078_v6, %s1002_s11 }
  0x1a   :  { %167 = vrot.lane.b32.xlu0 %v1082_v7, %s1002_s11 }
  0x1b   :  { %169 = vrot.lane.b32.xlu1 %v1112_v28, %s1002_s11 }
  0x1c   :  { %11 = vsyncpa [#allocation3], 0  ;;  %s1004_s16 = smov 64   ;;  %v185_v36 = vor.u32 %v184_v33, %v180_v31  ;;  %601 = vmatpush1.bf16.msra.mxu0 %v961_v35  ;;  %v962_v37 = vld [vmem:[%s1425_s1 + $0x18] sm:$0xff]   ;;  %v963_v38 = vld [vmem:[%s1425_s1 + $0x20] sm:$0xff]   ;;  %s1005_s21 = smov 80  }
  0x1d   :  { %602 = vmatprep.subr.bf16.mxu0 %v1003_v32  ;;  %v209_v39 = vrot.slane %v1112_v28, 1  ;;  %v964_v40 = vld [vmem:[%s1425_s1 + $0x28] sm:$0xff]   ;;  %v1164_v41 = vld [vmem:[%s1424_s0 + $0x18] sm:$0x7]  ;;  %v1169_v42 = vld [vmem:[%s1424_s0 + $0x1c] sm:$0x7] }
  0x1e   :  { %193 = vrot.lane.b32.xlu0 %v74_v24, %s1004_s16  ;;  %v1174_v43 = vld [vmem:[%s1424_s0 + $0x14] ss:$0 sps:$4 sm:$0x77]   ;;  %s1006_s10 = smov 96   ;;  %v873_v45 = vcombine.low %v1164_v41, %v1164_v41  ;;  %v1188_v47 = vcombine.low %v1169_v42, %v1169_v42  ;;  %v1193_v48 = vld [vmem:[%s1424_s0 + $0x20] sm:$0x7] }
  0x1f   :  { %195 = vrot.lane.b32.xlu1 %v1093_v23, %s1004_s16  ;;  %v965_v44 = vld [vmem:[%s1425_s1 + $0x30] sm:$0xff]   ;;  %v252_v46 = vshll.u32 %v1174_v43, 16  ;;  %v1198_v49 = vld [vmem:[%s1424_s0 + $0x24] sm:$0x7]  ;;  %v966_v50 = vld [vmem:[%s1425_s1 + $0x38] sm:$0xff]   ;;  %v875_v52 = vcombine.low %v1193_v48, %v1193_v48  ;;  %v250_v53 = vshrl.u32 %v1174_v43, 16 }
  0x20   :  { %603 = vmatpush1.bf16.msra.mxu0 %v962_v37  ;;  %v92_v51 = vshll.u32 %v873_v45, 16  ;;  %v99_v55 = vshll.u32 %v1188_v47, 16  ;;  %v876_v56 = vcombine.low %v1198_v49, %v1198_v49  ;;  %v967_v57 = vld [vmem:[%s1425_s1 + $0x40] sm:$0xff]   ;;  %s1007_s22 = smov 112   ;;  %v90_v58 = vshrl.u32 %v873_v45, 16 }
  0x21   :  { %604 = vmatprep.subr.bf16.mxu0 %v1003_v32  ;;  %v254_v54 = vrot.slane %v252_v46, 1  ;;  %v106_v60 = vshll.u32 %v875_v52, 16  ;;  %v97_v62 = vshrl.u32 %v1188_v47, 16  ;;  %v137_v13 = vrot.slane %v873_v45, 1 }
  0x22   :  { %197 = vrot.lane.b32.xlu0 %v1098_v25, %s1004_s16  ;;  %v94_v59 = vrot.slane %v92_v51, 1  ;;  %v101_v63 = vrot.slane %v99_v55, 1  ;;  %v113_v2 = vshll.u32 %v876_v56, 16  ;;  %v111_v9 = vshrl.u32 %v876_v56, 16 }
  0x23   :  { %199 = vrot.lane.b32.xlu1 %v185_v36, %s1004_s16  ;;  %v255_v61 = vor.u32 %v254_v54, %v250_v53  ;;  %v138_v14 = vrot.slane %v1188_v47, 1  ;;  %v1229_v15 = vrot.slane %v875_v52, 1  ;;  %v1232_v16 = vrot.slane %v876_v56, 1  ;;  %v1241_v17 = vld [vmem:[%s1424_s0 + $0x28] ss:$0 sps:$4 sm:$0x77]  }
  0x24   :  { %605 = vmatpush1.bf16.msra.mxu0 %v963_v38  ;;  %v95_v3 = vor.u32 %v94_v59, %v90_v58  ;;  %v115_v10 = vrot.slane %v113_v2, 1  ;;  %v189_v18 = vshll.u32 %v1241_v17, 16  ;;  %v187_v19 = vshrl.u32 %v1241_v17, 16 }
  0x25   :  { %606 = vmatprep.subr.bf16.mxu0 %v1003_v32  ;;  %v210_v22 = vrot.slane %v1241_v17, 1  ;;  %vm281_vm0 = vcmask 130048   ;;  %v420_v59 = vlaneseq  ;;  %vm306_vm1 = vcmask 261120  }
  0x26   :  { %211 = vrot.lane.b32.xlu0 %v134_v8, %s1005_s21  ;;  %v102_v8 = vor.u32 %v101_v63, %v97_v62  ;;  %v116_v12 = vor.u32 %v115_v10, %v111_v9  ;;  %v191_v20 = vrot.slane %v189_v18, 1  ;;  %vm323_vm2 = vcmask 392192  }
  0x27   :  { %213 = vrot.lane.b32.xlu1 %v1102_v26, %s1005_s21  ;;  %vm340_vm3 = vcmask 523264   ;;  %vm357_vm4 = vcmask 654336   ;;  %vm374_vm5 = vcmask 785408   ;;  %vm391_vm6 = vcmask 916480  }
  0x28   :  { %607 = vmatpush1.bf16.msra.mxu0 %v964_v40  ;;  %v192_v21 = vor.u32 %v191_v20, %v187_v19  ;;  %vm1010_vm7 = vmmov 0   ;;  %vm716_vm8 = vcmask 1041409  }
  0x29   :  { %608 = vmatprep.subr.bf16.mxu0 %v1003_v32 }
  0x2a   :  { %215 = vrot.lane.b32.xlu0 %v1107_v27, %s1005_s21 }
  0x2b   :  { %217 = vrot.lane.b32.xlu1 %v209_v39, %s1005_s21 }
  0x2c   :  { %609 = vmatpush1.bf16.msra.mxu0 %v965_v44 }
  0x2d   :  { %610 = vmatprep.subr.bf16.mxu0 %v1003_v32 }
  0x2e   :  { %233 = vrot.lane.b32.xlu0 %v1078_v6, %s1006_s10  ;;  %v104_v6 = vshrl.u32 %v875_v52, 16 }
  0x2f   :  { %235 = vrot.lane.b32.xlu1 %v1082_v7, %s1006_s10  ;;  %v108_v7 = vrot.slane %v106_v60, 1 }
  0x30   :  { %611 = vmatpush1.bf16.msra.mxu0 %v966_v50 }
  0x31   :  { %612 = vmatprep.subr.bf16.mxu0 %v1003_v32  ;;  %v109_v11 = vor.u32 %v108_v7, %v104_v6 }
  0x32   :  { %237 = vrot.lane.b32.xlu0 %v1112_v28, %s1006_s10 }
  0x33   :  { %239 = vrot.lane.b32.xlu1 %v1174_v43, %s1006_s10 }
  0x34   :  { %613 = vmatpush1.bf16.msra.mxu0 %v967_v57  ;;  %v1008_v57 = vmov 1983009808  }
  0x35   :  { %v418_v58 = vunpack.c.l.s4 %v1008_v57 }
  0x36   :  { %263 = vrot.lane.b32.xlu0 %v1093_v23, %s1007_s22  ;;  %v1267_v23 = vld [vmem:[%s1424_s0 + $0x2c] ss:$0 sps:$4 sm:$0x77]  }
  0x37   :  { %265 = vrot.lane.b32.xlu1 %v1098_v25, %s1007_s22  ;;  %v259_v24 = vshll.u32 %v1267_v23, 16  ;;  %v257_v25 = vshrl.u32 %v1267_v23, 16  ;;  %v419_v2 = vunpack.c.0.s8 %v418_v58 }
  0x39   :  { %v261_v29 = vrot.slane %v259_v24, 1 }
  0x3a   :  { %267 = vrot.lane.b32.xlu0 %v185_v36, %s1007_s22 }
  0x3b   :  { %269 = vrot.lane.b32.xlu1 %v255_v61, %s1007_s22  ;;  %v262_v30 = vor.u32 %v261_v29, %v257_v25 }
  0x3e   :  { %125 = vrot.lane.b32.xlu0 %v95_v3, %s1001_s30  ;;  %v1285_v3 = vshrl.u32 %v420_v59, 7 }
  0x3f   :  { %127 = vrot.lane.b32.xlu1 %v102_v8, %s1001_s30 }
  0x42   :  { %129 = vrot.lane.b32.xlu0 %v109_v11, %s1001_s30 }
  0x43   :  { %131 = vrot.lane.b32.xlu1 %v116_v12, %s1001_s30 }
  0x46   :  { %149 = vrot.lane.b32.xlu0 %v137_v13, %s1000_s29 }
  0x47   :  { %151 = vrot.lane.b32.xlu1 %v138_v14, %s1000_s29 }
  0x4a   :  { %153 = vrot.lane.b32.xlu0 %v1229_v15, %s1000_s29 }
  0x4b   :  { %155 = vrot.lane.b32.xlu1 %v1232_v16, %s1000_s29 }
  0x4e   :  { %171 = vrot.lane.b32.xlu0 %v1188_v47, %s1002_s11 }
  0x4f   :  { %173 = vrot.lane.b32.xlu1 %v875_v52, %s1002_s11 }
  0x52   :  { %175 = vrot.lane.b32.xlu0 %v876_v56, %s1002_s11 }
  0x53   :  { %177 = vrot.lane.b32.xlu1 %v1241_v17, %s1002_s11 }
  0x56   :  { %201 = vrot.lane.b32.xlu0 %v102_v8, %s1004_s16 }
  0x57   :  { %203 = vrot.lane.b32.xlu1 %v109_v11, %s1004_s16 }
  0x5a   :  { %205 = vrot.lane.b32.xlu0 %v116_v12, %s1004_s16 }
  0x5b   :  { %207 = vrot.lane.b32.xlu1 %v192_v21, %s1004_s16 }
  0x5e   :  { %219 = vrot.lane.b32.xlu0 %v138_v14, %s1005_s21  ;;  %v1297_v14 = vsub.s32 %v419_v2, %v1285_v3 }
  0x5f   :  { %221 = vrot.lane.b32.xlu1 %v1229_v15, %s1005_s21 }
  0x62   :  { %223 = vrot.lane.b32.xlu0 %v1232_v16, %s1005_s21 }
  0x63   :  { %225 = vrot.lane.b32.xlu1 %v210_v22, %s1005_s21 }
  0x66   :  { %241 = vrot.lane.b32.xlu0 %v875_v52, %s1006_s10 }
  0x67   :  { %243 = vrot.lane.b32.xlu1 %v876_v56, %s1006_s10 }
  0x6a   :  { %245 = vrot.lane.b32.xlu0 %v1241_v17, %s1006_s10  ;;  %v968_v17 = vld [vmem:[%s1428_s4] sm:$0xff]  }
  0x6b   :  { %247 = vrot.lane.b32.xlu1 %v1267_v23, %s1006_s10 }
  0x6e   :  { %271 = vrot.lane.b32.xlu0 %v109_v11, %s1007_s22 }
  0x6f   :  { %273 = vrot.lane.b32.xlu1 %v116_v12, %s1007_s22 }
  0x72   :  { %275 = vrot.lane.b32.xlu0 %v192_v21, %s1007_s22 }
  0x73   :  { %277 = vrot.lane.b32.xlu1 %v262_v30, %s1007_s22 }
  0x78   :  { %v144_v31 = vpop.permute.xlu1 %143  ;;  %v142_v32 = vpop.permute.xlu0 %141 }
  0x7c   :  { %v118_v33 = vpop.permute.xlu0 %117 }
  0x7d   :  { %v122_v34 = vpop.permute.xlu1 %121  ;;  %v284_v61 = vsel %vm281_vm0, %v1058_v1, %v118_v33 }
  0x7e   :  { %v308_v6 = vsel %vm306_vm1, %v284_v61, %v142_v32 }
  0x80   :  { %v120_v35 = vpop.permute.xlu0 %119 }
  0x81   :  { %v124_v36 = vpop.permute.xlu1 %123  ;;  %v287_v63 = vsel %vm281_vm0, %v1053_v0, %v120_v35  ;;  %v290_v0 = vsel %vm281_vm0, %v1069_v4, %v122_v34 }
  0x82   :  { %v310_v8 = vsel %vm306_vm1, %v287_v63, %v144_v31  ;;  %v293_v18 = vsel %vm281_vm0, %v1074_v5, %v124_v36 }
  0x84   :  { %v146_v37 = vpop.permute.xlu0 %145 }
  0x85   :  { %v148_v38 = vpop.permute.xlu1 %147  ;;  %v312_v19 = vsel %vm306_vm1, %v290_v0, %v146_v37 }
  0x86   :  { %v314_v25 = vsel %vm306_vm1, %v293_v18, %v148_v38  ;;  %v279_v38 = vrot.slane %v1174_v43, 1 }
  0x88   :  { %v164_v40 = vpop.permute.xlu0 %163 }
  0x89   :  { %v166_v44 = vpop.permute.xlu1 %165  ;;  %v325_v9 = vsel %vm323_vm2, %v308_v6, %v164_v40 }
  0x8a   :  { %v327_v10 = vsel %vm323_vm2, %v310_v8, %v166_v44 }
  0x8c   :  { %v168_v45 = vpop.permute.xlu0 %167 }
  0x8d   :  { %v170_v46 = vpop.permute.xlu1 %169  ;;  %v329_v4 = vsel %vm323_vm2, %v312_v19, %v168_v45 }
  0x8e   :  { %v331_v32 = vsel %vm323_vm2, %v314_v25, %v170_v46 }
  0x90   :  { %v194_v47 = vpop.permute.xlu0 %193 }
  0x91   :  { %v196_v50 = vpop.permute.xlu1 %195  ;;  %v342_v11 = vsel %vm340_vm3, %v325_v9, %v194_v47 }
  0x92   :  { %v344_v12 = vsel %vm340_vm3, %v327_v10, %v196_v50 }
  0x94   :  { %v198_v51 = vpop.permute.xlu0 %197 }
  0x95   :  { %v200_v52 = vpop.permute.xlu1 %199  ;;  %v346_v5 = vsel %vm340_vm3, %v329_v4, %v198_v51 }
  0x96   :  { %v348_v35 = vsel %vm340_vm3, %v331_v32, %v200_v52 }
  0x98   :  { %v212_v53 = vpop.permute.xlu0 %211 }
  0x99   :  { %v214_v54 = vpop.permute.xlu1 %213  ;;  %v359_v13 = vsel %vm357_vm4, %v342_v11, %v212_v53 }
  0x9a   :  { %v361_v20 = vsel %vm357_vm4, %v344_v12, %v214_v54 }
  0x9c   :  { %v216_v55 = vpop.permute.xlu0 %215 }
  0x9d   :  { %v218_v56 = vpop.permute.xlu1 %217  ;;  %v363_v36 = vsel %vm357_vm4, %v346_v5, %v216_v55 }
  0x9e   :  { %v365_v40 = vsel %vm357_vm4, %v348_v35, %v218_v56 }
  0xa0   :  { %v234_v60 = vpop.permute.xlu0 %233 }
  0xa1   :  { %v236_v62 = vpop.permute.xlu1 %235  ;;  %v376_v21 = vsel %vm374_vm5, %v359_v13, %v234_v60 }
  0xa2   :  { %v378_v29 = vsel %vm374_vm5, %v361_v20, %v236_v62 }
  0xa4   :  { %v238_v7 = vpop.permute.xlu0 %237 }
  0xa5   :  { %v240_v1 = vpop.permute.xlu1 %239  ;;  %v380_v44 = vsel %vm374_vm5, %v363_v36, %v238_v7 }
  0xa6   :  { %v382_v46 = vsel %vm374_vm5, %v365_v40, %v240_v1 }
  0xa8   :  { %v264_v24 = vpop.permute.xlu0 %263 }
  0xa9   :  { %v266_v30 = vpop.permute.xlu1 %265  ;;  %v393_v31 = vsel %vm391_vm6, %v376_v21, %v264_v24 }
  0xaa   :  { %v395_v33 = vsel %vm391_vm6, %v378_v29, %v266_v30  ;;  %v416_v34 = vcombine.low %v393_v31, %v1102_v26 }
  0xab   :  { %v424_v37 = vcombine.low %v395_v33, %v1107_v27 }
  0xac   :  { %v268_v45 = vpop.permute.xlu0 %267  ;;  %v423_v50 = vrot.slane %v416_v34, %v1297_v14 }
  0xad   :  { %v431_v47 = vrot.slane %v424_v37, %v1297_v14  ;;  %v270_v26 = vpop.permute.xlu1 %269  ;;  %v397_v51 = vsel %vm391_vm6, %v380_v44, %v268_v45 }
  0xae   :  { %v399_v52 = vsel %vm391_vm6, %v382_v46, %v270_v26  ;;  %v432_v27 = vcombine.low %v397_v51, %v209_v39 }
  0xaf   :  { %v440_v43 = vcombine.low %v399_v52, %v279_v38  ;;  %v498_v57 = vcombine.low %v423_v50, %v431_v47 }
  0xb0   :  { %v439_v53 = vrot.slane %v432_v27, %v1297_v14  ;;  %v126_v54 = vpop.permute.xlu0 %125 }
  0xb1   :  { %v447_v55 = vrot.slane %v440_v43, %v1297_v14  ;;  %v128_v56 = vpop.permute.xlu1 %127  ;;  %v506_v61 = vrot.slane %v498_v57, %v1297_v14  ;;  %v296_v4 = vsel %vm281_vm0, %v1164_v41, %v126_v54 }
  0xb2   :  { %v299_v29 = vsel %vm281_vm0, %v1169_v42, %v128_v56 }
  0xb3   :  { %v499_v58 = vcombine.low %v439_v53, %v447_v55  ;;  %v280_v55 = vrot.slane %v1267_v23, 1 }
  0xb4   :  { %v130_v59 = vpop.permute.xlu0 %129 }
  0xb5   :  { %v132_v60 = vpop.permute.xlu1 %131  ;;  %v513_v62 = vrot.slane %v499_v58, %v1297_v14  ;;  %v302_v36 = vsel %vm281_vm0, %v1193_v48, %v130_v59 }
  0xb6   :  { %v305_v42 = vsel %vm281_vm0, %v1198_v49, %v132_v60 }
  0xb7   :  { %v515_v63 = vcombine.high %v506_v61, %v513_v62  ;;  %v514_v2 = vcombine.low %v506_v61, %v513_v62 }
  0xb8   :  { %v150_v6 = vpop.permute.xlu0 %149 }
  0xb9   :  { %v152_v28 = vpop.permute.xlu1 %151  ;;  %890 = vmatprep.mubr.msk.bf16.mxu0 %vm281_vm0, %v515_v63  ;;  %v316_v30 = vsel %vm306_vm1, %v296_v4, %v150_v6 }
  0xba   :  { %629 = vmatmul.mubr.bf16.vlgmr.msra.gmra.mrb[0].mxu0 %v514_v2  ;;  %v318_v32 = vsel %vm306_vm1, %v299_v29, %v152_v28 }
  0xbc   :  { %v154_v39 = vpop.permute.xlu0 %153 }
  0xbd   :  { %v156_v7 = vpop.permute.xlu1 %155  ;;  %v320_v38 = vsel %vm306_vm1, %v302_v36, %v154_v39 }
  0xbe   :  { %v322_v46 = vsel %vm306_vm1, %v305_v42, %v156_v7 }
  0xc0   :  { %v172_v8 = vpop.permute.xlu0 %171 }
  0xc1   :  { %v174_v9 = vpop.permute.xlu1 %173  ;;  %v333_v5 = vsel %vm323_vm2, %v316_v30, %v172_v8  ;;  %v893_v30 = vld [vmem:[%s1427_s3] ss:$0 sm:$0xff] }
  0xc2   :  { %v335_v34 = vsel %vm323_vm2, %v318_v32, %v174_v9 }
  0xc4   :  { %v176_v1 = vpop.permute.xlu0 %175 }
  0xc5   :  { %v178_v10 = vpop.permute.xlu1 %177  ;;  %v337_v47 = vsel %vm323_vm2, %v320_v38, %v176_v1 }
  0xc6   :  { %v339_v51 = vsel %vm323_vm2, %v322_v46, %v178_v10  ;;  %v969_v10 = vld [vmem:[%s1428_s4 + $0x8] sm:$0xff]  }
  0xc8   :  { %v202_v11 = vpop.permute.xlu0 %201 }
  0xc9   :  { %v204_v0 = vpop.permute.xlu1 %203  ;;  %v350_v35 = vsel %vm340_vm3, %v333_v5, %v202_v11  ;;  %v971_v11 = vld [vmem:[%s1428_s4 + $0x18] sm:$0xff]  }
  0xca   :  { %v352_v41 = vsel %vm340_vm3, %v335_v34, %v204_v0  ;;  %v972_v0 = vld [vmem:[%s1428_s4 + $0x20] sm:$0xff]  }
  0xcc   :  { %v206_v12 = vpop.permute.xlu0 %205 }
  0xcd   :  { %v208_v13 = vpop.permute.xlu1 %207  ;;  %v354_v49 = vsel %vm340_vm3, %v337_v47, %v206_v12  ;;  %v973_v12 = vld [vmem:[%s1428_s4 + $0x28] sm:$0xff]  }
  0xce   :  { %v356_v43 = vsel %vm340_vm3, %v339_v51, %v208_v13  ;;  %v974_v13 = vld [vmem:[%s1428_s4 + $0x30] sm:$0xff]  }
  0xd0   :  { %v220_v18 = vpop.permute.xlu0 %219 }
  0xd1   :  { %v222_v19 = vpop.permute.xlu1 %221  ;;  %v367_v37 = vsel %vm357_vm4, %v350_v35, %v220_v18  ;;  %v975_v18 = vld [vmem:[%s1428_s4 + $0x38] sm:$0xff]  }
  0xd2   :  { %v369_v40 = vsel %vm357_vm4, %v352_v41, %v222_v19 }
  0xd4   :  { %v224_v20 = vpop.permute.xlu0 %223 }
  0xd5   :  { %v226_v21 = vpop.permute.xlu1 %225  ;;  %v371_v53 = vsel %vm357_vm4, %v354_v49, %v224_v20 }
  0xd6   :  { %v373_v56 = vsel %vm357_vm4, %v356_v43, %v226_v21 }
  0xd8   :  { %v242_v24 = vpop.permute.xlu0 %241 }
  0xd9   :  { %v244_v25 = vpop.permute.xlu1 %243  ;;  %v384_v44 = vsel %vm374_vm5, %v367_v37, %v242_v24 }
  0xda   :  { %v386_v48 = vsel %vm374_vm5, %v369_v40, %v244_v25  ;;  %v892_v25 = vld [vmem:[%s1426_s2] ss:$0 sm:$0xff] }
  0xdc   :  { %v246_v31 = vpop.permute.xlu0 %245 }
  0xdd   :  { %v248_v33 = vpop.permute.xlu1 %247  ;;  %v388_v57 = vsel %vm374_vm5, %v371_v53, %v246_v31 }
  0xde   :  { %v390_v59 = vsel %vm374_vm5, %v373_v56, %v248_v33 }
  0xe0   :  { %v272_v45 = vpop.permute.xlu0 %271 }
  0xe1   :  { %v274_v50 = vpop.permute.xlu1 %273  ;;  %v401_v26 = vsel %vm391_vm6, %v384_v44, %v272_v45 }
  0xe2   :  { %v403_v52 = vsel %vm391_vm6, %v386_v48, %v274_v50  ;;  %v448_v27 = vcombine.low %v401_v26, %v1229_v15 }
  0xe3   :  { %v456_v54 = vcombine.low %v403_v52, %v1232_v16 }
  0xe4   :  { %v276_v58 = vpop.permute.xlu0 %275  ;;  %v455_v61 = vrot.slane %v448_v27, %v1297_v14 }
  0xe5   :  { %v463_v60 = vrot.slane %v456_v54, %v1297_v14  ;;  %v278_v15 = vpop.permute.xlu1 %277  ;;  %v405_v62 = vsel %vm391_vm6, %v388_v57, %v276_v58 }
  0xe6   :  { %v407_v63 = vsel %vm391_vm6, %v390_v59, %v278_v15  ;;  %v464_v16 = vcombine.low %v405_v62, %v210_v22  ;;  %v1009_v22 = vmov 0.0  }
  0xe7   :  { %v472_v23 = vcombine.low %v407_v63, %v280_v55  ;;  %v516_v6 = vcombine.low %v455_v61, %v463_v60  ;;  %912 = vmatprep.subr.bf16.mxu1 %v1009_v22  ;;  %928 = vmatprep.mubr.msk.bf16.mxu1 %vm1010_vm7, %v1009_v22 }
  0xe8   :  { %v471_v2 = vrot.slane %v464_v16, %v1297_v14  ;;  %913 = vmatpush3.bf16.msra.mxu1 %v968_v17  ;;  %v894_v16 = vld [vmem:[%s1429_s5] ss:$0 sm:$0xff] }
  0xe9   :  { %v479_v28 = vrot.slane %v472_v23, %v1297_v14  ;;  %v524_v7 = vrot.slane %v516_v6, %v1297_v14  ;;  %914 = vmatprep.subr.bf16.mxu1 %v1009_v22  ;;  %v1011_v23 = vmov 1966171168  }
  0xeb   :  { %v517_v39 = vcombine.low %v471_v2, %v479_v28  ;;  %v814_v2 = vunpack.c.l.s4 %v1011_v23 }
  0xec   :  { %915 = vmatpush3.bf16.msra.mxu1 %v969_v10 }
  0xed   :  { %v531_v8 = vrot.slane %v517_v39, %v1297_v14  ;;  %916 = vmatprep.subr.bf16.mxu1 %v1009_v22  ;;  %v970_v14 = vld [vmem:[%s1428_s4 + $0x10] sm:$0xff]   ;;  %s1012_s4 = smov [#allocation2]  }
  0xee   :  { %s858_s5 = sshll.u32 %s1012_s4, 4  ;;  %s859_s5 = int_to_ptr.vmem [resolvable:$true] %s858_s5 }
  0xef   :  { %v533_v9 = vcombine.high %v524_v7, %v531_v8  ;;  %v532_v1 = vcombine.low %v524_v7, %v531_v8  ;;  %s976_s20 = scalar_lea.vmem %s859_s5, 512  ;;  %p981_p1 = scmp.lt.s32.totalorder %s859_s5, %s859_s5 }
  0xf0   :  { %917 = vmatpush3.bf16.msra.mxu1 %v970_v14  ;;  %p977_p0 = scmp.ne.s32.totalorder %s859_s5, %s976_s20  ;;  %p982_p2 = scmp.lt.s32.totalorder %s976_s20, %s976_s20 }
  0xf1   :  { %891 = vmatprep.mubr.msk.bf16.mxu0 %vm281_vm0, %v533_v9  ;;  %918 = vmatprep.subr.bf16.mxu1 %v1009_v22  ;;  %v815_v9 = vunpack.c.0.s8 %v814_v2 }
  0xf2   :  { %637 = vmatmul.mubr.bf16.gmra.mrb[4].mxu0 %v532_v1  ;;  %p983_p3 = por %p982_p2, %p981_p1 }
  0xf3   :  { %v818_v10 = vsub.s32 %v815_v9, %v1285_v3 }
  0xf4   :  { %919 = vmatpush3.bf16.msra.mxu1 %v971_v11  ;;  %p984_p4 = pnand %p983_p3, %p977_p0 }
  0xf5   :  { %920 = vmatprep.subr.bf16.mxu1 %v1009_v22 }
  0xf8   :  { %921 = vmatpush3.bf16.msra.mxu1 %v972_v0  ;;  %v837_v0 = vsub.s32 0, %v1285_v3 }
  0xf9   :  { %922 = vmatprep.subr.bf16.mxu1 %v1009_v22 }
  0xfc   :  { %923 = vmatpush3.bf16.msra.mxu1 %v973_v12 }
  0xfd   :  { %924 = vmatprep.subr.bf16.mxu1 %v1009_v22 }
 0x100   :  { %925 = vmatpush3.bf16.msra.mxu1 %v974_v13 }
 0x101   :  { %926 = vmatprep.subr.bf16.mxu1 %v1009_v22 }
 0x104   :  { %927 = vmatpush3.bf16.msra.mxu1 %v975_v18 }
 0x18d   :  { %v630_v19 = vpop.f32.mrb[0].mxu0 }
 0x18e   :  { %v632_v20 = vpop.f32.mrb[1].mxu0  ;;  %v652_v29 = vmul.f32 %v892_v25, %v630_v19 }
 0x18f   :  { %v633_v21 = vpop.f32.mrb[2].mxu0 }
 0x190   :  { %v635_v24 = vpop.f32.mrb[3].mxu0  ;;  %v653_v4 = vmul.f32 %v892_v25, %v633_v21  ;;  %v663_v32 = vadd.f32 %v893_v30, %v652_v29 }
 0x192   :  { %v1404_v31 = vadd.f32 %v893_v30, %v653_v4  ;;  %v667_v33 = vmax.f32 %v663_v32, 0.0 }
 0x194   :  { %v668_v5 = vmax.f32 %v1404_v31, 0.0 }
 0x196   :  { %v671_v34 = vadd.f32 %v668_v5, %v667_v33 }
 0x198   :  { %v672_v35 = vrot.slane %v671_v34, 4 }
 0x19a   :  { %v673_v36 = vadd.f32 %v672_v35, %v671_v34 }
 0x19c   :  { %v674_v40 = vrot.slane %v673_v36, 2 }
 0x19e   :  { %v675_v48 = vadd.f32 %v674_v40, %v673_v36 }
 0x1a0   :  { %v676_v49 = vrot.slane %v675_v48, 1 }
 0x1a2   :  { %v677_v53 = vadd.f32 %v676_v49, %v675_v48 }
 0x1a4   :  { %v685_v56 = vmul.f32 0.0625, %v677_v53 }
 0x1a6   :  { %v687_v59 = vpack.c.bf16 %v685_v56, %v685_v56 }
 0x1a8   :  { %v714_v61 = vunpack.c.l.b16 %v687_v59 }
 0x1c5   :  { %v638_v41 = vpop.f32.mrb[4].mxu0 }
 0x1c6   :  { %v654_v37 = vmul.f32 %v892_v25, %v638_v41  ;;  %v640_v42 = vpop.f32.mrb[5].mxu0 }
 0x1c7   :  { %v641_v38 = vpop.f32.mrb[6].mxu0 }
 0x1c8   :  { %v665_v44 = vadd.f32 %v893_v30, %v654_v37  ;;  %v655_v45 = vmul.f32 %v892_v25, %v641_v38  ;;  %v643_v46 = vpop.f32.mrb[7].mxu0 }
 0x1ca   :  { %v666_v47 = vadd.f32 %v893_v30, %v655_v45  ;;  %v669_v50 = vmax.f32 %v665_v44, 0.0 }
 0x1cc   :  { %v670_v26 = vmax.f32 %v666_v47, 0.0 }
 0x1ce   :  { %v678_v51 = vadd.f32 %v670_v26, %v669_v50 }
 0x1d0   :  { %v679_v52 = vrot.slane %v678_v51, 4 }
 0x1d2   :  { %v680_v27 = vadd.f32 %v679_v52, %v678_v51 }
 0x1d4   :  { %v681_v43 = vrot.slane %v680_v27, 2 }
 0x1d6   :  { %v682_v54 = vadd.f32 %v681_v43, %v680_v27 }
 0x1d8   :  { %v683_v55 = vrot.slane %v682_v54, 1 }
 0x1da   :  { %v684_v57 = vadd.f32 %v683_v55, %v682_v54 }
 0x1dc   :  { %v686_v58 = vmul.f32 0.0625, %v684_v57 }
 0x1de   :  { %v688_v60 = vpack.c.bf16 %v686_v58, %v686_v58 }
 0x1e0   :  { %v715_v15 = vunpack.c.l.b16 %v688_v60 }
 0x1e2   :  { %v717_v62 = vsel %vm716_vm8, %v715_v15, %v714_v61 }
 0x1e3   :  { %v718_v63 = vpack.c.b16 %v717_v62, %v717_v62 }
 0x1e5   :  { %929 = vmatmul.mubr.bf16.vlgmr.msra.gmra.mrb[0].mxu1 %v718_v63 }
 0x2b8   :  { %v802_v6 = vpop.f32.mrb[0].mxu1 }
 0x2b9   :  { %v803_v28 = vadd.f32 %v894_v16, %v802_v6  ;;  %v930_v39 = vpop.f32.mrb[1].mxu1 }
 0x2ba   :  { %v805_v7 = vpop.f32.mrb[2].mxu1 }
 0x2bb   :  { %v808_v8 = vadd.f32 3.0, %v803_v28  ;;  %v931_v1 = vpop.f32.mrb[3].mxu1 }
 0x2bd   :  { %v809_v17 = vmax.f32 %v808_v8, 0.0 }
 0x2bf   :  { %v810_v22 = vmin.f32 %v809_v17, 6.0 }
 0x2c1   :  { %v811_v14 = vmul.f32 0.16666667, %v810_v22 }
 0x2c3   :  { %v819_v11 = vrot.slane %v811_v14, %v818_v10 }
 0x2c5   :  { %v820_v12 = vcombine.high %v819_v11, %v819_v11  ;;  %v827_v13 = vrot.slane %v819_v11, %v818_v10 }
 0x2c7   :  { %v834_v18 = vrot.slane %v820_v12, %v818_v10  ;;  %v838_v19 = vrot.slane %v827_v13, %v837_v0 }
 0x2c9   :  { %v842_v20 = vrot.slane %v834_v18, %v837_v0  ;;  %v845_v21 = vmul.f32 %v838_v19, %v667_v33  ;;  %v846_v24 = vmul.f32 %v838_v19, %v668_v5 }
 0x2cb   :  { %v847_v25 = vmul.f32 %v842_v20, %v669_v50  ;;  %v848_v4 = vmul.f32 %v842_v20, %v670_v26  ;;  %849 = vst [vmem:[#allocation2] sm:$0xff] %v845_v21  ;;  %850 = vst [vmem:[#allocation2 + $0x8] sm:$0xff] %v846_v24 }
 0x2cd   :  { %851 = vst [vmem:[#allocation2 + $0x10] sm:$0xff] %v847_v25  ;;  %852 = vst [vmem:[#allocation2 + $0x18] sm:$0xff] %v848_v4 }
 0x2ce   :  { %987 = shalt.err (!%p984_p4)
}
 0x2cf   :  { %s988_s23 = scalar_lea.hbm %s1430_s6, 512 }
 0x2d0   :  { %p989_p5 = scmp.ne.s32.totalorder %s1430_s6, %s988_s23  ;;  %p992_p6 = scmp.lt.u32.totalorder %s988_s23, %s1430_s6 }
 0x2d2   :  { %p994_p7 = pnand %p992_p6, %p989_p5 }
 0x2d4   :  { %997 = shalt.err (!%p994_p7)
}
 0x2d5   :  { %s1013_s16 = smov 128   ;;  %s1014_s21 = smov 8  }
 0x2d6   :  { %864 = dma.vmem_to_hbm [thread:$0]  %s859_s5, 512, %s1430_s6, [#allocation3], %s1013_s16, %s1013_s16, %s1014_s21  }
 0x2d7   :  { %998 = dma.done.wait [#allocation3], 512  }
 0x2d8   :  { %999 = vsyncadd [#allocation3], 4294966784 }
 0x2d9   :  { %868 = vsyncpa [#allocation3], 1 }

</bundles_post_ra>
